<compile_context>
chip_gen: v7x
topology: tpu7x:2x2x1
jax: 0.10.0
libtpu: 0.0.40
codegen_flags: <defaults>
</compile_context>

<pallas_src>
import jax
import jax.numpy as jnp
from jax.experimental import pallas as pl
from jax.experimental.pallas import tpu as pltpu


# ----------------------------------------------------------------------------
# Fused LightVGG kernel (one image per grid step; base_dim=32, 32x32 input)
# ----------------------------------------------------------------------------
def lightvgg_kernel(p1_ref,                 # (1, 1024, 27) bf16  conv1 im2col patches
                    w1_ref, b1_ref,         # (27, 32) bf16, (1, 32) f32
                    w2_ref, b2_ref,         # (288, 64) bf16, (1, 64) f32
                    w3_ref, b3_ref,         # (576, 128) bf16, (1, 128) f32
                    w4_ref, b4_ref,         # (1152, 256) bf16, (1, 256) f32
                    wf1_ref, bf1_ref,       # (1024, 512) bf16 (NHWC-row-permuted), (1, 512) f32
                    wf2_ref, bf2_ref,       # (512, 10) bf16, (1, 10) f32
                    o_ref,                  # (1, 1, 10) f32
                    pad2_ref, pad3_ref, pad4_ref):   # f32 padded-activation scratch
    f32, bf16 = jnp.float32, jnp.bfloat16

    def pool2x2(a, hh, ww):
        # a: (hh*ww, c) conv output rows ordered h-major -> (hh//2, ww//2, c)
        c = a.shape[-1]
        y = a.reshape(hh, ww, c)
        y = y.reshape(hh // 2, 2, ww, c)
        y = jnp.max(y, axis=1)
        y = y.reshape(hh // 2, ww // 2, 2, c)
        y = jnp.max(y, axis=2)
        return y

    def to_padded(pad_ref, y):
        # zero border + write interior (scratch is per-core; re-zeroed every step so
        # the kernel is safe under megacore "parallel" scheduling)
        ph, pw = y.shape[0], y.shape[1]
        pad_ref[...] = jnp.zeros_like(pad_ref)
        pad_ref[1:ph + 1, 1:pw + 1, :] = y

    def conv3x3_relu(pad_ref, w_ref, b_ref, hh, ww, cin):
        # 3x3 conv (pad=1 already materialised in pad_ref) as 9 bf16 MXU matmuls;
        # accumulator (<= 64 KiB f32) stays in vregs.
        acc = None
        for kh in range(3):
            for kw in range(3):
                t = kh * 3 + kw
                patch = pad_ref[kh:kh + hh, kw:kw + ww, :].reshape(hh * ww, cin)
                part = jnp.dot(patch.astype(bf16),
                               w_ref[t * cin:(t + 1) * cin, :],
                               preferred_element_type=f32)
                acc = part if acc is None else acc + part
        return jnp.maximum(acc + b_ref[...], 0.0)

    # ---- stage 1: 32x32x3 -> 16x16x32  (single im2col matmul, K=27) -------------
    a1 = jnp.dot(p1_ref[0], w1_ref[...], preferred_element_type=f32)     # (1024, 32)
    a1 = jnp.maximum(a1 + b1_ref[...], 0.0)
    to_padded(pad2_ref, pool2x2(a1, 32, 32))

    # ---- stage 2: 16x16x32 -> 8x8x64 --------------------------------------------
    a2 = conv3x3_relu(pad2_ref, w2_ref, b2_ref, 16, 16, 32)              # (256, 64)
    to_padded(pad3_ref, pool2x2(a2, 16, 16))

    # ---- stage 3: 8x8x64 -> 4x4x128 ----------------------------------------------
    a3 = conv3x3_relu(pad3_ref, w3_ref, b3_ref, 8, 8, 64)                # (64, 128)
    to_padded(pad4_ref, pool2x2(a3, 8, 8))

    # ---- stage 4: 4x4x128 -> 2x2x256 ---------------------------------------------
    a4 = conv3x3_relu(pad4_ref, w4_ref, b4_ref, 4, 4, 128)               # (16, 256)
    y4 = pool2x2(a4, 4, 4).reshape(4, 256)   # rows p = h*2 + w (NHWC flatten order)

    # ---- classifier: Linear(1024,512) -> ReLU -> Dropout -> Linear(512,10) -------
    # FC1 weight rows are pre-permuted to NHWC order, so summing the 4 spatial rows
    # against their 256-row weight blocks is exactly  x.view(B,-1) @ W1.T + b1 .
    cfin = y4.shape[-1]
    h = bf1_ref[...]
    for p in range(y4.shape[0]):
        h = h + jnp.dot(y4[p:p + 1, :].astype(bf16),
                        wf1_ref[p * cfin:(p + 1) * cfin, :],
                        preferred_element_type=f32)
    h = jnp.maximum(h, 0.0)
    # TODO(synk): Dropout(0.4) is identity at inference; training-mode RNG masking not implemented.
    out = jnp.dot(h.astype(bf16), wf2_ref[...], preferred_element_type=f32) + bf2_ref[...]
    o_ref[0] = out.astype(o_ref.dtype)


def _full2d_spec(shape):
    return pl.BlockSpec(shape, lambda i: (0, 0))


@jax.jit
def light_vgg_forward(x_nchw, kparams):
    """x_nchw: (B, 3, 32, 32) f32; kparams: kernel-format params (see prepare_kernel_params)."""
    (w1, b1, w2, b2, w3, b3, w4, b4, wf1, bf1, wf2, bf2) = kparams
    B, C, H, W = x_nchw.shape
    assert (C, H, W) == (3, 32, 32), "LightVGG expects 3x32x32 inputs (base_dim=32)"

    # NCHW -> NHWC once, pad once, and build conv1 im2col patches (K = 9*3 = 27)
    # in the wrapper so the kernel never sees a lane-3 layout.
    x = jnp.transpose(x_nchw, (0, 2, 3, 1)).astype(jnp.float32)
    xp = jnp.pad(x, ((0, 0), (1, 1), (1, 1), (0, 0)))
    taps = [xp[:, kh:kh + H, kw:kw + W, :] for kh in range(3) for kw in range(3)]
    p1 = jnp.concatenate(taps, axis=-1).reshape(B, H * W, 9 * C).astype(jnp.bfloat16)

    num_classes = wf2.shape[-1]
    param_arrays = [w1, b1, w2, b2, w3, b3, w4, b4, wf1, bf1, wf2, bf2]

    out = pl.pallas_call(
        lightvgg_kernel,
        out_shape=jax.ShapeDtypeStruct((B, 1, num_classes), jnp.float32),
        grid=(B,),
        in_specs=[pl.BlockSpec((1, H * W, 9 * C), lambda i: (i, 0, 0))]
                 + [_full2d_spec(a.shape) for a in param_arrays],
        out_specs=pl.BlockSpec((1, 1, num_classes), lambda i: (i, 0, 0)),
        scratch_shapes=[
            pltpu.VMEM((18, 18, 32), jnp.float32),    # padded 16x16x32
            pltpu.VMEM((10, 10, 64), jnp.float32),    # padded 8x8x64
            pltpu.VMEM((6, 6, 128), jnp.float32),     # padded 4x4x128
        ],
        compiler_params=pltpu.CompilerParams(
            dimension_semantics=("parallel",),        # megacore-friendly on v7x
            vmem_limit_bytes=32 * 1024 * 1024,        # actual use ~3 MiB
        ),
    )(p1, *param_arrays)
    return out.reshape(B, num_classes)


# ----------------------------------------------------------------------------
# Parameters (PyTorch-like layout) and conversion to the kernel format
# ----------------------------------------------------------------------------
def init_params(key, base_dim=32, num_classes=10):
    dims = [(3, base_dim), (base_dim, base_dim * 2),
            (base_dim * 2, base_dim * 4), (base_dim * 4, base_dim * 8)]
    keys = jax.random.split(key, 2 * len(dims) + 4)
    ki = 0
    convs = []
    for cin, cout in dims:
        w = jax.random.normal(keys[ki], (cout, cin, 3, 3), jnp.float32) * (2.0 / (cin * 9)) ** 0.5
        ki += 1
        b = 0.01 * jax.random.normal(keys[ki], (cout,), jnp.float32)
        ki += 1
        convs.append((w, b))
    fc_in = base_dim * 8 * 2 * 2                                   # 1024
    W1 = jax.random.normal(keys[ki], (512, fc_in), jnp.float32) * (2.0 / fc_in) ** 0.5
    ki += 1
    b1 = 0.01 * jax.random.normal(keys[ki], (512,), jnp.float32)
    ki += 1
    W2 = jax.random.normal(keys[ki], (num_classes, 512), jnp.float32) * (2.0 / 512) ** 0.5
    ki += 1
    b2 = 0.01 * jax.random.normal(keys[ki], (num_classes,), jnp.float32)
    return {"convs": convs, "fc": (W1, b1, W2, b2)}


def prepare_kernel_params(params, base_dim=32):
    """One-time conversion: conv weights -> (9*Cin, Cout) bf16; FC1 rows permuted to NHWC order."""
    bf16, f32 = jnp.bfloat16, jnp.float32
    kp = []
    for (w, b) in params["convs"]:
        cout, cin = w.shape[0], w.shape[1]
        w_k = jnp.transpose(w, (2, 3, 1, 0)).reshape(9 * cin, cout).astype(bf16)
        kp += [w_k, b.reshape(1, cout).astype(f32)]

    W1, b1, W2, b2 = params["fc"]
    Cf, Hf, Wf = base_dim * 8, 2, 2
    # NHWC flatten index g = (h*Wf + w)*Cf + c  maps to  torch NCHW flatten f = c*Hf*Wf + h*Wf + w
    g = jnp.arange(Cf * Hf * Wf)
    hh = g // (Wf * Cf)
    ww = (g // Cf) % Wf
    cc = g % Cf
    perm = cc * (Hf * Wf) + hh * Wf + ww
    w1_k = jnp.transpose(W1)[perm, :].astype(bf16)                 # (1024, 512)
    w2_k = jnp.transpose(W2).astype(bf16)                          # (512, num_classes)
    kp += [w1_k, b1.reshape(1, -1).astype(f32), w2_k, b2.reshape(1, -1).astype(f32)]
    return kp


# ----------------------------------------------------------------------------
# Pure-JAX reference (same bf16-operand / f32-accumulate regime) for validation
# ----------------------------------------------------------------------------
@jax.jit
def reference_forward(x_nchw, params):
    bf16, f32 = jnp.bfloat16, jnp.float32
    x = jnp.transpose(x_nchw, (0, 2, 3, 1)).astype(f32)
    for (w, b) in params["convs"]:
        B, H, W, _ = x.shape
        cout = w.shape[0]
        w_hwio = jnp.transpose(w, (2, 3, 1, 0)).astype(bf16)
        xp = jnp.pad(x, ((0, 0), (1, 1), (1, 1), (0, 0))).astype(bf16)
        acc = jnp.zeros((B, H, W, cout), f32)
        for kh in range(3):
            for kw in range(3):
                acc = acc + jnp.einsum("bhwc,cd->bhwd",
                                       xp[:, kh:kh + H, kw:kw + W, :], w_hwio[kh, kw],
                                       preferred_element_type=f32)
        y = jnp.maximum(acc + b, 0.0)
        x = jnp.max(y.reshape(B, H // 2, 2, W // 2, 2, cout), axis=(2, 4))
    # torch semantics: x.view(B, -1) on NCHW
    xf = jnp.transpose(x, (0, 3, 1, 2)).reshape(x.shape[0], -1)
    W1, b1, W2, b2 = params["fc"]
    h = jnp.maximum(jnp.dot(xf.astype(bf16), jnp.transpose(W1).astype(bf16),
                            preferred_element_type=f32) + b1, 0.0)
    return jnp.dot(h.astype(bf16), jnp.transpose(W2).astype(bf16),
                   preferred_element_type=f32) + b2


if __name__ == "__main__":
    key = jax.random.PRNGKey(0)
    k_params, k_input = jax.random.split(key)

    params = init_params(k_params, base_dim=32, num_classes=10)
    kparams = prepare_kernel_params(params, base_dim=32)

    # Input implied by the architecture: 3x32x32 (CIFAR-10 style); batch=2.
    x = jax.random.normal(k_input, (2, 3, 32, 32), jnp.float32)

    out = jax.block_until_ready(light_vgg_forward(x, kparams))
    assert out.shape == (2, 10), out.shape
    assert out.dtype == jnp.float32

    ref = jax.block_until_ready(reference_forward(x, params))
    max_err = float(jnp.max(jnp.abs(out - ref)))
    assert max_err < 1e-2, f"kernel vs reference mismatch: max abs err {max_err}"

    print("KERNEL_OK")
</pallas_src>

<mosaic_0001>
module attributes {stable_mosaic.version = 11 : i64} {
  func.func @lightvgg_kernel(%arg0: i32, %arg1: memref<1x1024x27xbf16, #tpu.memory_space<vmem>>, %arg2: memref<27x32xbf16, #tpu.memory_space<vmem>>, %arg3: memref<1x32xf32, #tpu.memory_space<vmem>>, %arg4: memref<288x64xbf16, #tpu.memory_space<vmem>>, %arg5: memref<1x64xf32, #tpu.memory_space<vmem>>, %arg6: memref<576x128xbf16, #tpu.memory_space<vmem>>, %arg7: memref<1x128xf32, #tpu.memory_space<vmem>>, %arg8: memref<1152x256xbf16, #tpu.memory_space<vmem>>, %arg9: memref<1x256xf32, #tpu.memory_space<vmem>>, %arg10: memref<1024x512xbf16, #tpu.memory_space<vmem>>, %arg11: memref<1x512xf32, #tpu.memory_space<vmem>>, %arg12: memref<512x10xbf16, #tpu.memory_space<vmem>>, %arg13: memref<1x10xf32, #tpu.memory_space<vmem>>, %arg14: memref<1x1x10xf32, #tpu.memory_space<vmem>>, %arg15: memref<18x18x32xf32, #tpu.memory_space<vmem>>, %arg16: memref<10x10x64xf32, #tpu.memory_space<vmem>>, %arg17: memref<6x6x128xf32, #tpu.memory_space<vmem>>) attributes {dimension_semantics = [#tpu.dimension_semantics<parallel>], iteration_bounds = array<i64: 2>, scalar_prefetch = 0 : i64, scratch_operands = 3 : i64, tpu.core_type = #tpu.core_type<tc>, window_params = [{transform_indices = @transform_0, window_bounds = array<i64: 1, 1024, 27>}, {pipeline_mode = #tpu.pipeline_mode<synchronous>, transform_indices = @transform_1, window_bounds = array<i64: 27, 32>}, {pipeline_mode = #tpu.pipeline_mode<synchronous>, transform_indices = @transform_2, window_bounds = array<i64: 1, 32>}, {pipeline_mode = #tpu.pipeline_mode<synchronous>, transform_indices = @transform_3, window_bounds = array<i64: 288, 64>}, {pipeline_mode = #tpu.pipeline_mode<synchronous>, transform_indices = @transform_4, window_bounds = array<i64: 1, 64>}, {pipeline_mode = #tpu.pipeline_mode<synchronous>, transform_indices = @transform_5, window_bounds = array<i64: 576, 128>}, {pipeline_mode = #tpu.pipeline_mode<synchronous>, transform_indices = @transform_6, window_bounds = array<i64: 1, 128>}, {pipeline_mode = #tpu.pipeline_mode<synchronous>, transform_indices = @transform_7, window_bounds = array<i64: 1152, 256>}, {pipeline_mode = #tpu.pipeline_mode<synchronous>, transform_indices = @transform_8, window_bounds = array<i64: 1, 256>}, {pipeline_mode = #tpu.pipeline_mode<synchronous>, transform_indices = @transform_9, window_bounds = array<i64: 1024, 512>}, {pipeline_mode = #tpu.pipeline_mode<synchronous>, transform_indices = @transform_10, window_bounds = array<i64: 1, 512>}, {pipeline_mode = #tpu.pipeline_mode<synchronous>, transform_indices = @transform_11, window_bounds = array<i64: 512, 10>}, {pipeline_mode = #tpu.pipeline_mode<synchronous>, transform_indices = @transform_12, window_bounds = array<i64: 1, 10>}, {transform_indices = @transform_13, window_bounds = array<i64: 1, 1, 10>}]} {
    %c0 = arith.constant 0 : index
    %c0_0 = arith.constant 0 : index
    %c0_1 = arith.constant 0 : index
    %0 = vector.load %arg1[%c0, %c0_0, %c0_1] : memref<1x1024x27xbf16, #tpu.memory_space<vmem>>, vector<1x1024x27xbf16>
    %1 = vector.shape_cast %0 : vector<1x1024x27xbf16> to vector<1024x27xbf16>
    %c0_2 = arith.constant 0 : index
    %c0_3 = arith.constant 0 : index
    %2 = vector.load %arg2[%c0_2, %c0_3] : memref<27x32xbf16, #tpu.memory_space<vmem>>, vector<27x32xbf16>
    %cst = arith.constant dense<0.000000e+00> : vector<1024x32xf32>
    %3 = tpu.matmul %1, %2, %cst {dimension_numbers = #tpu.dot_dimension_numbers<[1], [0], [0], [1], [0, 0, 1, 1], [], []>} : vector<1024x27xbf16>, vector<27x32xbf16>, vector<1024x32xf32> -> vector<1024x32xf32>
    %c0_4 = arith.constant 0 : index
    %c0_5 = arith.constant 0 : index
    %4 = vector.load %arg3[%c0_4, %c0_5] : memref<1x32xf32, #tpu.memory_space<vmem>>, vector<1x32xf32>
    %5 = vector.broadcast %4 : vector<1x32xf32> to vector<1024x32xf32>
    %6 = arith.addf %3, %5 : vector<1024x32xf32>
    %cst_6 = arith.constant 0.000000e+00 : f32
    %7 = vector.broadcast %cst_6 : f32 to vector<1024x32xf32>
    %8 = arith.maximumf %6, %7 : vector<1024x32xf32>
    %9 = vector.shape_cast %8 : vector<1024x32xf32> to vector<32x32x32xf32>
    %10 = vector.shape_cast %9 : vector<32x32x32xf32> to vector<16x2x32x32xf32>
    %cst_7 = arith.constant dense<0xFF800000> : vector<16x32x32xf32>
    %11 = vector.multi_reduction <maximumf>, %10, %cst_7 [1] : vector<16x2x32x32xf32> to vector<16x32x32xf32>
    %12 = vector.shape_cast %11 : vector<16x32x32xf32> to vector<16x16x2x32xf32>
    %cst_8 = arith.constant dense<0xFF800000> : vector<16x16x32xf32>
    %13 = vector.multi_reduction <maximumf>, %12, %cst_8 [2] : vector<16x16x2x32xf32> to vector<16x16x32xf32>
    %cst_9 = arith.constant 0.000000e+00 : f32
    %14 = vector.broadcast %cst_9 : f32 to vector<18x18x32xf32>
    %c0_10 = arith.constant 0 : index
    %c0_11 = arith.constant 0 : index
    %c0_12 = arith.constant 0 : index
    %15 = vector.load %arg15[%c0_10, %c0_11, %c0_12] : memref<18x18x32xf32, #tpu.memory_space<vmem>>, vector<18x18x32xf32>
    tpu.vector_store %arg15[%c0_10, %c0_11, %c0_12], %14 {strides = array<i32>} : memref<18x18x32xf32, #tpu.memory_space<vmem>>, vector<18x18x32xf32>,
    %c1 = arith.constant 1 : index
    %c1_13 = arith.constant 1 : index
    %c0_14 = arith.constant 0 : index
    %16 = vector.load %arg15[%c1, %c1_13, %c0_14] : memref<18x18x32xf32, #tpu.memory_space<vmem>>, vector<16x16x32xf32>
    tpu.vector_store %arg15[%c1, %c1_13, %c0_14], %13 {strides = array<i32>} : memref<18x18x32xf32, #tpu.memory_space<vmem>>, vector<16x16x32xf32>,
    %c0_15 = arith.constant 0 : index
    %c0_16 = arith.constant 0 : index
    %c0_17 = arith.constant 0 : index
    %17 = vector.load %arg15[%c0_15, %c0_16, %c0_17] : memref<18x18x32xf32, #tpu.memory_space<vmem>>, vector<16x16x32xf32>
    %18 = vector.shape_cast %17 : vector<16x16x32xf32> to vector<256x32xf32>
    %19 = arith.truncf %18 : vector<256x32xf32> to vector<256x32xbf16>
    %c0_18 = arith.constant 0 : index
    %c0_19 = arith.constant 0 : index
    %20 = vector.load %arg4[%c0_18, %c0_19] : memref<288x64xbf16, #tpu.memory_space<vmem>>, vector<32x64xbf16>
    %cst_20 = arith.constant dense<0.000000e+00> : vector<256x64xf32>
    %21 = tpu.matmul %19, %20, %cst_20 {dimension_numbers = #tpu.dot_dimension_numbers<[1], [0], [0], [1], [0, 0, 1, 1], [], []>} : vector<256x32xbf16>, vector<32x64xbf16>, vector<256x64xf32> -> vector<256x64xf32>
    %c0_21 = arith.constant 0 : index
    %c1_22 = arith.constant 1 : index
    %c0_23 = arith.constant 0 : index
    %22 = vector.load %arg15[%c0_21, %c1_22, %c0_23] : memref<18x18x32xf32, #tpu.memory_space<vmem>>, vector<16x16x32xf32>
    %23 = vector.shape_cast %22 : vector<16x16x32xf32> to vector<256x32xf32>
    %24 = arith.truncf %23 : vector<256x32xf32> to vector<256x32xbf16>
    %c32 = arith.constant 32 : index
    %c0_24 = arith.constant 0 : index
    %25 = vector.load %arg4[%c32, %c0_24] : memref<288x64xbf16, #tpu.memory_space<vmem>>, vector<32x64xbf16>
    %cst_25 = arith.constant dense<0.000000e+00> : vector<256x64xf32>
    %26 = tpu.matmul %24, %25, %cst_25 {dimension_numbers = #tpu.dot_dimension_numbers<[1], [0], [0], [1], [0, 0, 1, 1], [], []>} : vector<256x32xbf16>, vector<32x64xbf16>, vector<256x64xf32> -> vector<256x64xf32>
    %27 = arith.addf %21, %26 : vector<256x64xf32>
    %c0_26 = arith.constant 0 : index
    %c2 = arith.constant 2 : index
    %c0_27 = arith.constant 0 : index
    %28 = vector.load %arg15[%c0_26, %c2, %c0_27] : memref<18x18x32xf32, #tpu.memory_space<vmem>>, vector<16x16x32xf32>
    %29 = vector.shape_cast %28 : vector<16x16x32xf32> to vector<256x32xf32>
    %30 = arith.truncf %29 : vector<256x32xf32> to vector<256x32xbf16>
    %c64 = arith.constant 64 : index
    %c0_28 = arith.constant 0 : index
    %31 = vector.load %arg4[%c64, %c0_28] : memref<288x64xbf16, #tpu.memory_space<vmem>>, vector<32x64xbf16>
    %cst_29 = arith.constant dense<0.000000e+00> : vector<256x64xf32>
    %32 = tpu.matmul %30, %31, %cst_29 {dimension_numbers = #tpu.dot_dimension_numbers<[1], [0], [0], [1], [0, 0, 1, 1], [], []>} : vector<256x32xbf16>, vector<32x64xbf16>, vector<256x64xf32> -> vector<256x64xf32>
    %33 = arith.addf %27, %32 : vector<256x64xf32>
    %c1_30 = arith.constant 1 : index
    %c0_31 = arith.constant 0 : index
    %c0_32 = arith.constant 0 : index
    %34 = vector.load %arg15[%c1_30, %c0_31, %c0_32] : memref<18x18x32xf32, #tpu.memory_space<vmem>>, vector<16x16x32xf32>
    %35 = vector.shape_cast %34 : vector<16x16x32xf32> to vector<256x32xf32>
    %36 = arith.truncf %35 : vector<256x32xf32> to vector<256x32xbf16>
    %c96 = arith.constant 96 : index
    %c0_33 = arith.constant 0 : index
    %37 = vector.load %arg4[%c96, %c0_33] : memref<288x64xbf16, #tpu.memory_space<vmem>>, vector<32x64xbf16>
    %cst_34 = arith.constant dense<0.000000e+00> : vector<256x64xf32>
    %38 = tpu.matmul %36, %37, %cst_34 {dimension_numbers = #tpu.dot_dimension_numbers<[1], [0], [0], [1], [0, 0, 1, 1], [], []>} : vector<256x32xbf16>, vector<32x64xbf16>, vector<256x64xf32> -> vector<256x64xf32>
    %39 = arith.addf %33, %38 : vector<256x64xf32>
    %c1_35 = arith.constant 1 : index
    %c1_36 = arith.constant 1 : index
    %c0_37 = arith.constant 0 : index
    %40 = vector.load %arg15[%c1_35, %c1_36, %c0_37] : memref<18x18x32xf32, #tpu.memory_space<vmem>>, vector<16x16x32xf32>
    %41 = vector.shape_cast %40 : vector<16x16x32xf32> to vector<256x32xf32>
    %42 = arith.truncf %41 : vector<256x32xf32> to vector<256x32xbf16>
    %c128 = arith.constant 128 : index
    %c0_38 = arith.constant 0 : index
    %43 = vector.load %arg4[%c128, %c0_38] : memref<288x64xbf16, #tpu.memory_space<vmem>>, vector<32x64xbf16>
    %cst_39 = arith.constant dense<0.000000e+00> : vector<256x64xf32>
    %44 = tpu.matmul %42, %43, %cst_39 {dimension_numbers = #tpu.dot_dimension_numbers<[1], [0], [0], [1], [0, 0, 1, 1], [], []>} : vector<256x32xbf16>, vector<32x64xbf16>, vector<256x64xf32> -> vector<256x64xf32>
    %45 = arith.addf %39, %44 : vector<256x64xf32>
    %c1_40 = arith.constant 1 : index
    %c2_41 = arith.constant 2 : index
    %c0_42 = arith.constant 0 : index
    %46 = vector.load %arg15[%c1_40, %c2_41, %c0_42] : memref<18x18x32xf32, #tpu.memory_space<vmem>>, vector<16x16x32xf32>
    %47 = vector.shape_cast %46 : vector<16x16x32xf32> to vector<256x32xf32>
    %48 = arith.truncf %47 : vector<256x32xf32> to vector<256x32xbf16>
    %c160 = arith.constant 160 : index
    %c0_43 = arith.constant 0 : index
    %49 = vector.load %arg4[%c160, %c0_43] : memref<288x64xbf16, #tpu.memory_space<vmem>>, vector<32x64xbf16>
    %cst_44 = arith.constant dense<0.000000e+00> : vector<256x64xf32>
    %50 = tpu.matmul %48, %49, %cst_44 {dimension_numbers = #tpu.dot_dimension_numbers<[1], [0], [0], [1], [0, 0, 1, 1], [], []>} : vector<256x32xbf16>, vector<32x64xbf16>, vector<256x64xf32> -> vector<256x64xf32>
    %51 = arith.addf %45, %50 : vector<256x64xf32>
    %c2_45 = arith.constant 2 : index
    %c0_46 = arith.constant 0 : index
    %c0_47 = arith.constant 0 : index
    %52 = vector.load %arg15[%c2_45, %c0_46, %c0_47] : memref<18x18x32xf32, #tpu.memory_space<vmem>>, vector<16x16x32xf32>
    %53 = vector.shape_cast %52 : vector<16x16x32xf32> to vector<256x32xf32>
    %54 = arith.truncf %53 : vector<256x32xf32> to vector<256x32xbf16>
    %c192 = arith.constant 192 : index
    %c0_48 = arith.constant 0 : index
    %55 = vector.load %arg4[%c192, %c0_48] : memref<288x64xbf16, #tpu.memory_space<vmem>>, vector<32x64xbf16>
    %cst_49 = arith.constant dense<0.000000e+00> : vector<256x64xf32>
    %56 = tpu.matmul %54, %55, %cst_49 {dimension_numbers = #tpu.dot_dimension_numbers<[1], [0], [0], [1], [0, 0, 1, 1], [], []>} : vector<256x32xbf16>, vector<32x64xbf16>, vector<256x64xf32> -> vector<256x64xf32>
    %57 = arith.addf %51, %56 : vector<256x64xf32>
    %c2_50 = arith.constant 2 : index
    %c1_51 = arith.constant 1 : index
    %c0_52 = arith.constant 0 : index
    %58 = vector.load %arg15[%c2_50, %c1_51, %c0_52] : memref<18x18x32xf32, #tpu.memory_space<vmem>>, vector<16x16x32xf32>
    %59 = vector.shape_cast %58 : vector<16x16x32xf32> to vector<256x32xf32>
    %60 = arith.truncf %59 : vector<256x32xf32> to vector<256x32xbf16>
    %c224 = arith.constant 224 : index
    %c0_53 = arith.constant 0 : index
    %61 = vector.load %arg4[%c224, %c0_53] : memref<288x64xbf16, #tpu.memory_space<vmem>>, vector<32x64xbf16>
    %cst_54 = arith.constant dense<0.000000e+00> : vector<256x64xf32>
    %62 = tpu.matmul %60, %61, %cst_54 {dimension_numbers = #tpu.dot_dimension_numbers<[1], [0], [0], [1], [0, 0, 1, 1], [], []>} : vector<256x32xbf16>, vector<32x64xbf16>, vector<256x64xf32> -> vector<256x64xf32>
    %63 = arith.addf %57, %62 : vector<256x64xf32>
    %c2_55 = arith.constant 2 : index
    %c2_56 = arith.constant 2 : index
    %c0_57 = arith.constant 0 : index
    %64 = vector.load %arg15[%c2_55, %c2_56, %c0_57] : memref<18x18x32xf32, #tpu.memory_space<vmem>>, vector<16x16x32xf32>
    %65 = vector.shape_cast %64 : vector<16x16x32xf32> to vector<256x32xf32>
    %66 = arith.truncf %65 : vector<256x32xf32> to vector<256x32xbf16>
    %c256 = arith.constant 256 : index
    %c0_58 = arith.constant 0 : index
    %67 = vector.load %arg4[%c256, %c0_58] : memref<288x64xbf16, #tpu.memory_space<vmem>>, vector<32x64xbf16>
    %cst_59 = arith.constant dense<0.000000e+00> : vector<256x64xf32>
    %68 = tpu.matmul %66, %67, %cst_59 {dimension_numbers = #tpu.dot_dimension_numbers<[1], [0], [0], [1], [0, 0, 1, 1], [], []>} : vector<256x32xbf16>, vector<32x64xbf16>, vector<256x64xf32> -> vector<256x64xf32>
    %69 = arith.addf %63, %68 : vector<256x64xf32>
    %c0_60 = arith.constant 0 : index
    %c0_61 = arith.constant 0 : index
    %70 = vector.load %arg5[%c0_60, %c0_61] : memref<1x64xf32, #tpu.memory_space<vmem>>, vector<1x64xf32>
    %71 = vector.broadcast %70 : vector<1x64xf32> to vector<256x64xf32>
    %72 = arith.addf %69, %71 : vector<256x64xf32>
    %cst_62 = arith.constant 0.000000e+00 : f32
    %73 = vector.broadcast %cst_62 : f32 to vector<256x64xf32>
    %74 = arith.maximumf %72, %73 : vector<256x64xf32>
    %75 = vector.shape_cast %74 : vector<256x64xf32> to vector<16x16x64xf32>
    %76 = vector.shape_cast %75 : vector<16x16x64xf32> to vector<8x2x16x64xf32>
    %cst_63 = arith.constant dense<0xFF800000> : vector<8x16x64xf32>
    %77 = vector.multi_reduction <maximumf>, %76, %cst_63 [1] : vector<8x2x16x64xf32> to vector<8x16x64xf32>
    %78 = vector.shape_cast %77 : vector<8x16x64xf32> to vector<8x8x2x64xf32>
    %cst_64 = arith.constant dense<0xFF800000> : vector<8x8x64xf32>
    %79 = vector.multi_reduction <maximumf>, %78, %cst_64 [2] : vector<8x8x2x64xf32> to vector<8x8x64xf32>
    %cst_65 = arith.constant 0.000000e+00 : f32
    %80 = vector.broadcast %cst_65 : f32 to vector<10x10x64xf32>
    %c0_66 = arith.constant 0 : index
    %c0_67 = arith.constant 0 : index
    %c0_68 = arith.constant 0 : index
    %81 = vector.load %arg16[%c0_66, %c0_67, %c0_68] : memref<10x10x64xf32, #tpu.memory_space<vmem>>, vector<10x10x64xf32>
    tpu.vector_store %arg16[%c0_66, %c0_67, %c0_68], %80 {strides = array<i32>} : memref<10x10x64xf32, #tpu.memory_space<vmem>>, vector<10x10x64xf32>,
    %c1_69 = arith.constant 1 : index
    %c1_70 = arith.constant 1 : index
    %c0_71 = arith.constant 0 : index
    %82 = vector.load %arg16[%c1_69, %c1_70, %c0_71] : memref<10x10x64xf32, #tpu.memory_space<vmem>>, vector<8x8x64xf32>
    tpu.vector_store %arg16[%c1_69, %c1_70, %c0_71], %79 {strides = array<i32>} : memref<10x10x64xf32, #tpu.memory_space<vmem>>, vector<8x8x64xf32>,
    %c0_72 = arith.constant 0 : index
    %c0_73 = arith.constant 0 : index
    %c0_74 = arith.constant 0 : index
    %83 = vector.load %arg16[%c0_72, %c0_73, %c0_74] : memref<10x10x64xf32, #tpu.memory_space<vmem>>, vector<8x8x64xf32>
    %84 = vector.shape_cast %83 : vector<8x8x64xf32> to vector<64x64xf32>
    %85 = arith.truncf %84 : vector<64x64xf32> to vector<64x64xbf16>
    %c0_75 = arith.constant 0 : index
    %c0_76 = arith.constant 0 : index
    %86 = vector.load %arg6[%c0_75, %c0_76] : memref<576x128xbf16, #tpu.memory_space<vmem>>, vector<64x128xbf16>
    %cst_77 = arith.constant dense<0.000000e+00> : vector<64x128xf32>
    %87 = tpu.matmul %85, %86, %cst_77 {dimension_numbers = #tpu.dot_dimension_numbers<[1], [0], [0], [1], [0, 0, 1, 1], [], []>} : vector<64x64xbf16>, vector<64x128xbf16>, vector<64x128xf32> -> vector<64x128xf32>
    %c0_78 = arith.constant 0 : index
    %c1_79 = arith.constant 1 : index
    %c0_80 = arith.constant 0 : index
    %88 = vector.load %arg16[%c0_78, %c1_79, %c0_80] : memref<10x10x64xf32, #tpu.memory_space<vmem>>, vector<8x8x64xf32>
    %89 = vector.shape_cast %88 : vector<8x8x64xf32> to vector<64x64xf32>
    %90 = arith.truncf %89 : vector<64x64xf32> to vector<64x64xbf16>
    %c64_81 = arith.constant 64 : index
    %c0_82 = arith.constant 0 : index
    %91 = vector.load %arg6[%c64_81, %c0_82] : memref<576x128xbf16, #tpu.memory_space<vmem>>, vector<64x128xbf16>
    %cst_83 = arith.constant dense<0.000000e+00> : vector<64x128xf32>
    %92 = tpu.matmul %90, %91, %cst_83 {dimension_numbers = #tpu.dot_dimension_numbers<[1], [0], [0], [1], [0, 0, 1, 1], [], []>} : vector<64x64xbf16>, vector<64x128xbf16>, vector<64x128xf32> -> vector<64x128xf32>
    %93 = arith.addf %87, %92 : vector<64x128xf32>
    %c0_84 = arith.constant 0 : index
    %c2_85 = arith.constant 2 : index
    %c0_86 = arith.constant 0 : index
    %94 = vector.load %arg16[%c0_84, %c2_85, %c0_86] : memref<10x10x64xf32, #tpu.memory_space<vmem>>, vector<8x8x64xf32>
    %95 = vector.shape_cast %94 : vector<8x8x64xf32> to vector<64x64xf32>
    %96 = arith.truncf %95 : vector<64x64xf32> to vector<64x64xbf16>
    %c128_87 = arith.constant 128 : index
    %c0_88 = arith.constant 0 : index
    %97 = vector.load %arg6[%c128_87, %c0_88] : memref<576x128xbf16, #tpu.memory_space<vmem>>, vector<64x128xbf16>
    %cst_89 = arith.constant dense<0.000000e+00> : vector<64x128xf32>
    %98 = tpu.matmul %96, %97, %cst_89 {dimension_numbers = #tpu.dot_dimension_numbers<[1], [0], [0], [1], [0, 0, 1, 1], [], []>} : vector<64x64xbf16>, vector<64x128xbf16>, vector<64x128xf32> -> vector<64x128xf32>
    %99 = arith.addf %93, %98 : vector<64x128xf32>
    %c1_90 = arith.constant 1 : index
    %c0_91 = arith.constant 0 : index
    %c0_92 = arith.constant 0 : index
    %100 = vector.load %arg16[%c1_90, %c0_91, %c0_92] : memref<10x10x64xf32, #tpu.memory_space<vmem>>, vector<8x8x64xf32>
    %101 = vector.shape_cast %100 : vector<8x8x64xf32> to vector<64x64xf32>
    %102 = arith.truncf %101 : vector<64x64xf32> to vector<64x64xbf16>
    %c192_93 = arith.constant 192 : index
    %c0_94 = arith.constant 0 : index
    %103 = vector.load %arg6[%c192_93, %c0_94] : memref<576x128xbf16, #tpu.memory_space<vmem>>, vector<64x128xbf16>
    %cst_95 = arith.constant dense<0.000000e+00> : vector<64x128xf32>
    %104 = tpu.matmul %102, %103, %cst_95 {dimension_numbers = #tpu.dot_dimension_numbers<[1], [0], [0], [1], [0, 0, 1, 1], [], []>} : vector<64x64xbf16>, vector<64x128xbf16>, vector<64x128xf32> -> vector<64x128xf32>
    %105 = arith.addf %99, %104 : vector<64x128xf32>
    %c1_96 = arith.constant 1 : index
    %c1_97 = arith.constant 1 : index
    %c0_98 = arith.constant 0 : index
    %106 = vector.load %arg16[%c1_96, %c1_97, %c0_98] : memref<10x10x64xf32, #tpu.memory_space<vmem>>, vector<8x8x64xf32>
    %107 = vector.shape_cast %106 : vector<8x8x64xf32> to vector<64x64xf32>
    %108 = arith.truncf %107 : vector<64x64xf32> to vector<64x64xbf16>
    %c256_99 = arith.constant 256 : index
    %c0_100 = arith.constant 0 : index
    %109 = vector.load %arg6[%c256_99, %c0_100] : memref<576x128xbf16, #tpu.memory_space<vmem>>, vector<64x128xbf16>
    %cst_101 = arith.constant dense<0.000000e+00> : vector<64x128xf32>
    %110 = tpu.matmul %108, %109, %cst_101 {dimension_numbers = #tpu.dot_dimension_numbers<[1], [0], [0], [1], [0, 0, 1, 1], [], []>} : vector<64x64xbf16>, vector<64x128xbf16>, vector<64x128xf32> -> vector<64x128xf32>
    %111 = arith.addf %105, %110 : vector<64x128xf32>
    %c1_102 = arith.constant 1 : index
    %c2_103 = arith.constant 2 : index
    %c0_104 = arith.constant 0 : index
    %112 = vector.load %arg16[%c1_102, %c2_103, %c0_104] : memref<10x10x64xf32, #tpu.memory_space<vmem>>, vector<8x8x64xf32>
    %113 = vector.shape_cast %112 : vector<8x8x64xf32> to vector<64x64xf32>
    %114 = arith.truncf %113 : vector<64x64xf32> to vector<64x64xbf16>
    %c320 = arith.constant 320 : index
    %c0_105 = arith.constant 0 : index
    %115 = vector.load %arg6[%c320, %c0_105] : memref<576x128xbf16, #tpu.memory_space<vmem>>, vector<64x128xbf16>
    %cst_106 = arith.constant dense<0.000000e+00> : vector<64x128xf32>
    %116 = tpu.matmul %114, %115, %cst_106 {dimension_numbers = #tpu.dot_dimension_numbers<[1], [0], [0], [1], [0, 0, 1, 1], [], []>} : vector<64x64xbf16>, vector<64x128xbf16>, vector<64x128xf32> -> vector<64x128xf32>
    %117 = arith.addf %111, %116 : vector<64x128xf32>
    %c2_107 = arith.constant 2 : index
    %c0_108 = arith.constant 0 : index
    %c0_109 = arith.constant 0 : index
    %118 = vector.load %arg16[%c2_107, %c0_108, %c0_109] : memref<10x10x64xf32, #tpu.memory_space<vmem>>, vector<8x8x64xf32>
    %119 = vector.shape_cast %118 : vector<8x8x64xf32> to vector<64x64xf32>
    %120 = arith.truncf %119 : vector<64x64xf32> to vector<64x64xbf16>
    %c384 = arith.constant 384 : index
    %c0_110 = arith.constant 0 : index
    %121 = vector.load %arg6[%c384, %c0_110] : memref<576x128xbf16, #tpu.memory_space<vmem>>, vector<64x128xbf16>
    %cst_111 = arith.constant dense<0.000000e+00> : vector<64x128xf32>
    %122 = tpu.matmul %120, %121, %cst_111 {dimension_numbers = #tpu.dot_dimension_numbers<[1], [0], [0], [1], [0, 0, 1, 1], [], []>} : vector<64x64xbf16>, vector<64x128xbf16>, vector<64x128xf32> -> vector<64x128xf32>
    %123 = arith.addf %117, %122 : vector<64x128xf32>
    %c2_112 = arith.constant 2 : index
    %c1_113 = arith.constant 1 : index
    %c0_114 = arith.constant 0 : index
    %124 = vector.load %arg16[%c2_112, %c1_113, %c0_114] : memref<10x10x64xf32, #tpu.memory_space<vmem>>, vector<8x8x64xf32>
    %125 = vector.shape_cast %124 : vector<8x8x64xf32> to vector<64x64xf32>
    %126 = arith.truncf %125 : vector<64x64xf32> to vector<64x64xbf16>
    %c448 = arith.constant 448 : index
    %c0_115 = arith.constant 0 : index
    %127 = vector.load %arg6[%c448, %c0_115] : memref<576x128xbf16, #tpu.memory_space<vmem>>, vector<64x128xbf16>
    %cst_116 = arith.constant dense<0.000000e+00> : vector<64x128xf32>
    %128 = tpu.matmul %126, %127, %cst_116 {dimension_numbers = #tpu.dot_dimension_numbers<[1], [0], [0], [1], [0, 0, 1, 1], [], []>} : vector<64x64xbf16>, vector<64x128xbf16>, vector<64x128xf32> -> vector<64x128xf32>
    %129 = arith.addf %123, %128 : vector<64x128xf32>
    %c2_117 = arith.constant 2 : index
    %c2_118 = arith.constant 2 : index
    %c0_119 = arith.constant 0 : index
    %130 = vector.load %arg16[%c2_117, %c2_118, %c0_119] : memref<10x10x64xf32, #tpu.memory_space<vmem>>, vector<8x8x64xf32>
    %131 = vector.shape_cast %130 : vector<8x8x64xf32> to vector<64x64xf32>
    %132 = arith.truncf %131 : vector<64x64xf32> to vector<64x64xbf16>
    %c512 = arith.constant 512 : index
    %c0_120 = arith.constant 0 : index
    %133 = vector.load %arg6[%c512, %c0_120] : memref<576x128xbf16, #tpu.memory_space<vmem>>, vector<64x128xbf16>
    %cst_121 = arith.constant dense<0.000000e+00> : vector<64x128xf32>
    %134 = tpu.matmul %132, %133, %cst_121 {dimension_numbers = #tpu.dot_dimension_numbers<[1], [0], [0], [1], [0, 0, 1, 1], [], []>} : vector<64x64xbf16>, vector<64x128xbf16>, vector<64x128xf32> -> vector<64x128xf32>
    %135 = arith.addf %129, %134 : vector<64x128xf32>
    %c0_122 = arith.constant 0 : index
    %c0_123 = arith.constant 0 : index
    %136 = vector.load %arg7[%c0_122, %c0_123] : memref<1x128xf32, #tpu.memory_space<vmem>>, vector<1x128xf32>
    %137 = vector.broadcast %136 : vector<1x128xf32> to vector<64x128xf32>
    %138 = arith.addf %135, %137 : vector<64x128xf32>
    %cst_124 = arith.constant 0.000000e+00 : f32
    %139 = vector.broadcast %cst_124 : f32 to vector<64x128xf32>
    %140 = arith.maximumf %138, %139 : vector<64x128xf32>
    %141 = vector.shape_cast %140 : vector<64x128xf32> to vector<8x8x128xf32>
    %142 = vector.shape_cast %141 : vector<8x8x128xf32> to vector<4x2x8x128xf32>
    %cst_125 = arith.constant dense<0xFF800000> : vector<4x8x128xf32>
    %143 = vector.multi_reduction <maximumf>, %142, %cst_125 [1] : vector<4x2x8x128xf32> to vector<4x8x128xf32>
    %144 = vector.shape_cast %143 : vector<4x8x128xf32> to vector<4x4x2x128xf32>
    %cst_126 = arith.constant dense<0xFF800000> : vector<4x4x128xf32>
    %145 = vector.multi_reduction <maximumf>, %144, %cst_126 [2] : vector<4x4x2x128xf32> to vector<4x4x128xf32>
    %cst_127 = arith.constant 0.000000e+00 : f32
    %146 = vector.broadcast %cst_127 : f32 to vector<6x6x128xf32>
    %c0_128 = arith.constant 0 : index
    %c0_129 = arith.constant 0 : index
    %c0_130 = arith.constant 0 : index
    %147 = vector.load %arg17[%c0_128, %c0_129, %c0_130] : memref<6x6x128xf32, #tpu.memory_space<vmem>>, vector<6x6x128xf32>
    tpu.vector_store %arg17[%c0_128, %c0_129, %c0_130], %146 {strides = array<i32>} : memref<6x6x128xf32, #tpu.memory_space<vmem>>, vector<6x6x128xf32>,
    %c1_131 = arith.constant 1 : index
    %c1_132 = arith.constant 1 : index
    %c0_133 = arith.constant 0 : index
    %148 = vector.load %arg17[%c1_131, %c1_132, %c0_133] : memref<6x6x128xf32, #tpu.memory_space<vmem>>, vector<4x4x128xf32>
    tpu.vector_store %arg17[%c1_131, %c1_132, %c0_133], %145 {strides = array<i32>} : memref<6x6x128xf32, #tpu.memory_space<vmem>>, vector<4x4x128xf32>,
    %c0_134 = arith.constant 0 : index
    %c0_135 = arith.constant 0 : index
    %c0_136 = arith.constant 0 : index
    %149 = vector.load %arg17[%c0_134, %c0_135, %c0_136] : memref<6x6x128xf32, #tpu.memory_space<vmem>>, vector<4x4x128xf32>
    %150 = vector.shape_cast %149 : vector<4x4x128xf32> to vector<16x128xf32>
    %151 = arith.truncf %150 : vector<16x128xf32> to vector<16x128xbf16>
    %c0_137 = arith.constant 0 : index
    %c0_138 = arith.constant 0 : index
    %152 = vector.load %arg8[%c0_137, %c0_138] : memref<1152x256xbf16, #tpu.memory_space<vmem>>, vector<128x256xbf16>
    %cst_139 = arith.constant dense<0.000000e+00> : vector<16x256xf32>
    %153 = tpu.matmul %151, %152, %cst_139 {dimension_numbers = #tpu.dot_dimension_numbers<[1], [0], [0], [1], [0, 0, 1, 1], [], []>} : vector<16x128xbf16>, vector<128x256xbf16>, vector<16x256xf32> -> vector<16x256xf32>
    %c0_140 = arith.constant 0 : index
    %c1_141 = arith.constant 1 : index
    %c0_142 = arith.constant 0 : index
    %154 = vector.load %arg17[%c0_140, %c1_141, %c0_142] : memref<6x6x128xf32, #tpu.memory_space<vmem>>, vector<4x4x128xf32>
    %155 = vector.shape_cast %154 : vector<4x4x128xf32> to vector<16x128xf32>
    %156 = arith.truncf %155 : vector<16x128xf32> to vector<16x128xbf16>
    %c128_143 = arith.constant 128 : index
    %c0_144 = arith.constant 0 : index
    %157 = vector.load %arg8[%c128_143, %c0_144] : memref<1152x256xbf16, #tpu.memory_space<vmem>>, vector<128x256xbf16>
    %cst_145 = arith.constant dense<0.000000e+00> : vector<16x256xf32>
    %158 = tpu.matmul %156, %157, %cst_145 {dimension_numbers = #tpu.dot_dimension_numbers<[1], [0], [0], [1], [0, 0, 1, 1], [], []>} : vector<16x128xbf16>, vector<128x256xbf16>, vector<16x256xf32> -> vector<16x256xf32>
    %159 = arith.addf %153, %158 : vector<16x256xf32>
    %c0_146 = arith.constant 0 : index
    %c2_147 = arith.constant 2 : index
    %c0_148 = arith.constant 0 : index
    %160 = vector.load %arg17[%c0_146, %c2_147, %c0_148] : memref<6x6x128xf32, #tpu.memory_space<vmem>>, vector<4x4x128xf32>
    %161 = vector.shape_cast %160 : vector<4x4x128xf32> to vector<16x128xf32>
    %162 = arith.truncf %161 : vector<16x128xf32> to vector<16x128xbf16>
    %c256_149 = arith.constant 256 : index
    %c0_150 = arith.constant 0 : index
    %163 = vector.load %arg8[%c256_149, %c0_150] : memref<1152x256xbf16, #tpu.memory_space<vmem>>, vector<128x256xbf16>
    %cst_151 = arith.constant dense<0.000000e+00> : vector<16x256xf32>
    %164 = tpu.matmul %162, %163, %cst_151 {dimension_numbers = #tpu.dot_dimension_numbers<[1], [0], [0], [1], [0, 0, 1, 1], [], []>} : vector<16x128xbf16>, vector<128x256xbf16>, vector<16x256xf32> -> vector<16x256xf32>
    %165 = arith.addf %159, %164 : vector<16x256xf32>
    %c1_152 = arith.constant 1 : index
    %c0_153 = arith.constant 0 : index
    %c0_154 = arith.constant 0 : index
    %166 = vector.load %arg17[%c1_152, %c0_153, %c0_154] : memref<6x6x128xf32, #tpu.memory_space<vmem>>, vector<4x4x128xf32>
    %167 = vector.shape_cast %166 : vector<4x4x128xf32> to vector<16x128xf32>
    %168 = arith.truncf %167 : vector<16x128xf32> to vector<16x128xbf16>
    %c384_155 = arith.constant 384 : index
    %c0_156 = arith.constant 0 : index
    %169 = vector.load %arg8[%c384_155, %c0_156] : memref<1152x256xbf16, #tpu.memory_space<vmem>>, vector<128x256xbf16>
    %cst_157 = arith.constant dense<0.000000e+00> : vector<16x256xf32>
    %170 = tpu.matmul %168, %169, %cst_157 {dimension_numbers = #tpu.dot_dimension_numbers<[1], [0], [0], [1], [0, 0, 1, 1], [], []>} : vector<16x128xbf16>, vector<128x256xbf16>, vector<16x256xf32> -> vector<16x256xf32>
    %171 = arith.addf %165, %170 : vector<16x256xf32>
    %c1_158 = arith.constant 1 : index
    %c1_159 = arith.constant 1 : index
    %c0_160 = arith.constant 0 : index
    %172 = vector.load %arg17[%c1_158, %c1_159, %c0_160] : memref<6x6x128xf32, #tpu.memory_space<vmem>>, vector<4x4x128xf32>
    %173 = vector.shape_cast %172 : vector<4x4x128xf32> to vector<16x128xf32>
    %174 = arith.truncf %173 : vector<16x128xf32> to vector<16x128xbf16>
    %c512_161 = arith.constant 512 : index
    %c0_162 = arith.constant 0 : index
    %175 = vector.load %arg8[%c512_161, %c0_162] : memref<1152x256xbf16, #tpu.memory_space<vmem>>, vector<128x256xbf16>
    %cst_163 = arith.constant dense<0.000000e+00> : vector<16x256xf32>
    %176 = tpu.matmul %174, %175, %cst_163 {dimension_numbers = #tpu.dot_dimension_numbers<[1], [0], [0], [1], [0, 0, 1, 1], [], []>} : vector<16x128xbf16>, vector<128x256xbf16>, vector<16x256xf32> -> vector<16x256xf32>
    %177 = arith.addf %171, %176 : vector<16x256xf32>
    %c1_164 = arith.constant 1 : index
    %c2_165 = arith.constant 2 : index
    %c0_166 = arith.constant 0 : index
    %178 = vector.load %arg17[%c1_164, %c2_165, %c0_166] : memref<6x6x128xf32, #tpu.memory_space<vmem>>, vector<4x4x128xf32>
    %179 = vector.shape_cast %178 : vector<4x4x128xf32> to vector<16x128xf32>
    %180 = arith.truncf %179 : vector<16x128xf32> to vector<16x128xbf16>
    %c640 = arith.constant 640 : index
    %c0_167 = arith.constant 0 : index
    %181 = vector.load %arg8[%c640, %c0_167] : memref<1152x256xbf16, #tpu.memory_space<vmem>>, vector<128x256xbf16>
    %cst_168 = arith.constant dense<0.000000e+00> : vector<16x256xf32>
    %182 = tpu.matmul %180, %181, %cst_168 {dimension_numbers = #tpu.dot_dimension_numbers<[1], [0], [0], [1], [0, 0, 1, 1], [], []>} : vector<16x128xbf16>, vector<128x256xbf16>, vector<16x256xf32> -> vector<16x256xf32>
    %183 = arith.addf %177, %182 : vector<16x256xf32>
    %c2_169 = arith.constant 2 : index
    %c0_170 = arith.constant 0 : index
    %c0_171 = arith.constant 0 : index
    %184 = vector.load %arg17[%c2_169, %c0_170, %c0_171] : memref<6x6x128xf32, #tpu.memory_space<vmem>>, vector<4x4x128xf32>
    %185 = vector.shape_cast %184 : vector<4x4x128xf32> to vector<16x128xf32>
    %186 = arith.truncf %185 : vector<16x128xf32> to vector<16x128xbf16>
    %c768 = arith.constant 768 : index
    %c0_172 = arith.constant 0 : index
    %187 = vector.load %arg8[%c768, %c0_172] : memref<1152x256xbf16, #tpu.memory_space<vmem>>, vector<128x256xbf16>
    %cst_173 = arith.constant dense<0.000000e+00> : vector<16x256xf32>
    %188 = tpu.matmul %186, %187, %cst_173 {dimension_numbers = #tpu.dot_dimension_numbers<[1], [0], [0], [1], [0, 0, 1, 1], [], []>} : vector<16x128xbf16>, vector<128x256xbf16>, vector<16x256xf32> -> vector<16x256xf32>
    %189 = arith.addf %183, %188 : vector<16x256xf32>
    %c2_174 = arith.constant 2 : index
    %c1_175 = arith.constant 1 : index
    %c0_176 = arith.constant 0 : index
    %190 = vector.load %arg17[%c2_174, %c1_175, %c0_176] : memref<6x6x128xf32, #tpu.memory_space<vmem>>, vector<4x4x128xf32>
    %191 = vector.shape_cast %190 : vector<4x4x128xf32> to vector<16x128xf32>
    %192 = arith.truncf %191 : vector<16x128xf32> to vector<16x128xbf16>
    %c896 = arith.constant 896 : index
    %c0_177 = arith.constant 0 : index
    %193 = vector.load %arg8[%c896, %c0_177] : memref<1152x256xbf16, #tpu.memory_space<vmem>>, vector<128x256xbf16>
    %cst_178 = arith.constant dense<0.000000e+00> : vector<16x256xf32>
    %194 = tpu.matmul %192, %193, %cst_178 {dimension_numbers = #tpu.dot_dimension_numbers<[1], [0], [0], [1], [0, 0, 1, 1], [], []>} : vector<16x128xbf16>, vector<128x256xbf16>, vector<16x256xf32> -> vector<16x256xf32>
    %195 = arith.addf %189, %194 : vector<16x256xf32>
    %c2_179 = arith.constant 2 : index
    %c2_180 = arith.constant 2 : index
    %c0_181 = arith.constant 0 : index
    %196 = vector.load %arg17[%c2_179, %c2_180, %c0_181] : memref<6x6x128xf32, #tpu.memory_space<vmem>>, vector<4x4x128xf32>
    %197 = vector.shape_cast %196 : vector<4x4x128xf32> to vector<16x128xf32>
    %198 = arith.truncf %197 : vector<16x128xf32> to vector<16x128xbf16>
    %c1024 = arith.constant 1024 : index
    %c0_182 = arith.constant 0 : index
    %199 = vector.load %arg8[%c1024, %c0_182] : memref<1152x256xbf16, #tpu.memory_space<vmem>>, vector<128x256xbf16>
    %cst_183 = arith.constant dense<0.000000e+00> : vector<16x256xf32>
    %200 = tpu.matmul %198, %199, %cst_183 {dimension_numbers = #tpu.dot_dimension_numbers<[1], [0], [0], [1], [0, 0, 1, 1], [], []>} : vector<16x128xbf16>, vector<128x256xbf16>, vector<16x256xf32> -> vector<16x256xf32>
    %201 = arith.addf %195, %200 : vector<16x256xf32>
    %c0_184 = arith.constant 0 : index
    %c0_185 = arith.constant 0 : index
    %202 = vector.load %arg9[%c0_184, %c0_185] : memref<1x256xf32, #tpu.memory_space<vmem>>, vector<1x256xf32>
    %203 = vector.broadcast %202 : vector<1x256xf32> to vector<16x256xf32>
    %204 = arith.addf %201, %203 : vector<16x256xf32>
    %cst_186 = arith.constant 0.000000e+00 : f32
    %205 = vector.broadcast %cst_186 : f32 to vector<16x256xf32>
    %206 = arith.maximumf %204, %205 : vector<16x256xf32>
    %207 = vector.shape_cast %206 : vector<16x256xf32> to vector<4x4x256xf32>
    %208 = vector.shape_cast %207 : vector<4x4x256xf32> to vector<2x2x4x256xf32>
    %cst_187 = arith.constant dense<0xFF800000> : vector<2x4x256xf32>
    %209 = vector.multi_reduction <maximumf>, %208, %cst_187 [1] : vector<2x2x4x256xf32> to vector<2x4x256xf32>
    %210 = vector.shape_cast %209 : vector<2x4x256xf32> to vector<2x2x2x256xf32>
    %cst_188 = arith.constant dense<0xFF800000> : vector<2x2x256xf32>
    %211 = vector.multi_reduction <maximumf>, %210, %cst_188 [2] : vector<2x2x2x256xf32> to vector<2x2x256xf32>
    %212 = vector.shape_cast %211 : vector<2x2x256xf32> to vector<4x256xf32>
    %c0_189 = arith.constant 0 : index
    %c0_190 = arith.constant 0 : index
    %213 = vector.load %arg11[%c0_189, %c0_190] : memref<1x512xf32, #tpu.memory_space<vmem>>, vector<1x512xf32>
    %214 = vector.extract_strided_slice %212 {offsets = [0, 0], sizes = [1, 256], strides = [1, 1]} : vector<4x256xf32> to vector<1x256xf32>
    %215 = arith.truncf %214 : vector<1x256xf32> to vector<1x256xbf16>
    %c0_191 = arith.constant 0 : index
    %c0_192 = arith.constant 0 : index
    %216 = vector.load %arg10[%c0_191, %c0_192] : memref<1024x512xbf16, #tpu.memory_space<vmem>>, vector<256x512xbf16>
    %cst_193 = arith.constant dense<0.000000e+00> : vector<1x512xf32>
    %217 = tpu.matmul %215, %216, %cst_193 {dimension_numbers = #tpu.dot_dimension_numbers<[1], [0], [0], [1], [0, 0, 1, 1], [], []>} : vector<1x256xbf16>, vector<256x512xbf16>, vector<1x512xf32> -> vector<1x512xf32>
    %218 = arith.addf %213, %217 : vector<1x512xf32>
    %219 = vector.extract_strided_slice %212 {offsets = [1, 0], sizes = [1, 256], strides = [1, 1]} : vector<4x256xf32> to vector<1x256xf32>
    %220 = arith.truncf %219 : vector<1x256xf32> to vector<1x256xbf16>
    %c256_194 = arith.constant 256 : index
    %c0_195 = arith.constant 0 : index
    %221 = vector.load %arg10[%c256_194, %c0_195] : memref<1024x512xbf16, #tpu.memory_space<vmem>>, vector<256x512xbf16>
    %cst_196 = arith.constant dense<0.000000e+00> : vector<1x512xf32>
    %222 = tpu.matmul %220, %221, %cst_196 {dimension_numbers = #tpu.dot_dimension_numbers<[1], [0], [0], [1], [0, 0, 1, 1], [], []>} : vector<1x256xbf16>, vector<256x512xbf16>, vector<1x512xf32> -> vector<1x512xf32>
    %223 = arith.addf %218, %222 : vector<1x512xf32>
    %224 = vector.extract_strided_slice %212 {offsets = [2, 0], sizes = [1, 256], strides = [1, 1]} : vector<4x256xf32> to vector<1x256xf32>
    %225 = arith.truncf %224 : vector<1x256xf32> to vector<1x256xbf16>
    %c512_197 = arith.constant 512 : index
    %c0_198 = arith.constant 0 : index
    %226 = vector.load %arg10[%c512_197, %c0_198] : memref<1024x512xbf16, #tpu.memory_space<vmem>>, vector<256x512xbf16>
    %cst_199 = arith.constant dense<0.000000e+00> : vector<1x512xf32>
    %227 = tpu.matmul %225, %226, %cst_199 {dimension_numbers = #tpu.dot_dimension_numbers<[1], [0], [0], [1], [0, 0, 1, 1], [], []>} : vector<1x256xbf16>, vector<256x512xbf16>, vector<1x512xf32> -> vector<1x512xf32>
    %228 = arith.addf %223, %227 : vector<1x512xf32>
    %229 = vector.extract_strided_slice %212 {offsets = [3, 0], sizes = [1, 256], strides = [1, 1]} : vector<4x256xf32> to vector<1x256xf32>
    %230 = arith.truncf %229 : vector<1x256xf32> to vector<1x256xbf16>
    %c768_200 = arith.constant 768 : index
    %c0_201 = arith.constant 0 : index
    %231 = vector.load %arg10[%c768_200, %c0_201] : memref<1024x512xbf16, #tpu.memory_space<vmem>>, vector<256x512xbf16>
    %cst_202 = arith.constant dense<0.000000e+00> : vector<1x512xf32>
    %232 = tpu.matmul %230, %231, %cst_202 {dimension_numbers = #tpu.dot_dimension_numbers<[1], [0], [0], [1], [0, 0, 1, 1], [], []>} : vector<1x256xbf16>, vector<256x512xbf16>, vector<1x512xf32> -> vector<1x512xf32>
    %233 = arith.addf %228, %232 : vector<1x512xf32>
    %cst_203 = arith.constant 0.000000e+00 : f32
    %234 = vector.broadcast %cst_203 : f32 to vector<1x512xf32>
    %235 = arith.maximumf %233, %234 : vector<1x512xf32>
    %236 = arith.truncf %235 : vector<1x512xf32> to vector<1x512xbf16>
    %c0_204 = arith.constant 0 : index
    %c0_205 = arith.constant 0 : index
    %237 = vector.load %arg12[%c0_204, %c0_205] : memref<512x10xbf16, #tpu.memory_space<vmem>>, vector<512x10xbf16>
    %cst_206 = arith.constant dense<0.000000e+00> : vector<1x10xf32>
    %238 = tpu.matmul %236, %237, %cst_206 {dimension_numbers = #tpu.dot_dimension_numbers<[1], [0], [0], [1], [0, 0, 1, 1], [], []>} : vector<1x512xbf16>, vector<512x10xbf16>, vector<1x10xf32> -> vector<1x10xf32>
    %c0_207 = arith.constant 0 : index
    %c0_208 = arith.constant 0 : index
    %239 = vector.load %arg13[%c0_207, %c0_208] : memref<1x10xf32, #tpu.memory_space<vmem>>, vector<1x10xf32>
    %240 = arith.addf %238, %239 : vector<1x10xf32>
    %c0_209 = arith.constant 0 : index
    %c0_210 = arith.constant 0 : index
    %c0_211 = arith.constant 0 : index
    %241 = vector.load %arg14[%c0_209, %c0_210, %c0_211] : memref<1x1x10xf32, #tpu.memory_space<vmem>>, vector<1x1x10xf32>
    %242 = vector.shape_cast %241 : vector<1x1x10xf32> to vector<1x10xf32>
    %243 = vector.shape_cast %240 : vector<1x10xf32> to vector<1x1x10xf32>
    tpu.vector_store %arg14[%c0_209, %c0_210, %c0_211], %243 {strides = array<i32>} : memref<1x1x10xf32, #tpu.memory_space<vmem>>, vector<1x1x10xf32>,
    return
  }
  func.func @transform_0(%arg0: i32) -> (i32, i32, i32) {
    %c0_i32 = arith.constant 0 : i32
    %c0_i32_0 = arith.constant 0 : i32
    %c0_i32_1 = arith.constant 0 : i32
    return %arg0, %c0_i32, %c0_i32_0 : i32, i32, i32
  }
  func.func @transform_1(%arg0: i32) -> (i32, i32) {
    %c0_i32 = arith.constant 0 : i32
    %c0_i32_0 = arith.constant 0 : i32
    %c0_i32_1 = arith.constant 0 : i32
    return %c0_i32, %c0_i32_0 : i32, i32
  }
  func.func @transform_2(%arg0: i32) -> (i32, i32) {
    %c0_i32 = arith.constant 0 : i32
    %c0_i32_0 = arith.constant 0 : i32
    %c0_i32_1 = arith.constant 0 : i32
    return %c0_i32, %c0_i32_0 : i32, i32
  }
  func.func @transform_3(%arg0: i32) -> (i32, i32) {
    %c0_i32 = arith.constant 0 : i32
    %c0_i32_0 = arith.constant 0 : i32
    %c0_i32_1 = arith.constant 0 : i32
    return %c0_i32, %c0_i32_0 : i32, i32
  }
  func.func @transform_4(%arg0: i32) -> (i32, i32) {
    %c0_i32 = arith.constant 0 : i32
    %c0_i32_0 = arith.constant 0 : i32
    %c0_i32_1 = arith.constant 0 : i32
    return %c0_i32, %c0_i32_0 : i32, i32
  }
  func.func @transform_5(%arg0: i32) -> (i32, i32) {
    %c0_i32 = arith.constant 0 : i32
    %c0_i32_0 = arith.constant 0 : i32
    %c0_i32_1 = arith.constant 0 : i32
    return %c0_i32, %c0_i32_0 : i32, i32
  }
  func.func @transform_6(%arg0: i32) -> (i32, i32) {
    %c0_i32 = arith.constant 0 : i32
    %c0_i32_0 = arith.constant 0 : i32
    %c0_i32_1 = arith.constant 0 : i32
    return %c0_i32, %c0_i32_0 : i32, i32
  }
  func.func @transform_7(%arg0: i32) -> (i32, i32) {
    %c0_i32 = arith.constant 0 : i32
    %c0_i32_0 = arith.constant 0 : i32
    %c0_i32_1 = arith.constant 0 : i32
    return %c0_i32, %c0_i32_0 : i32, i32
  }
  func.func @transform_8(%arg0: i32) -> (i32, i32) {
    %c0_i32 = arith.constant 0 : i32
    %c0_i32_0 = arith.constant 0 : i32
    %c0_i32_1 = arith.constant 0 : i32
    return %c0_i32, %c0_i32_0 : i32, i32
  }
  func.func @transform_9(%arg0: i32) -> (i32, i32) {
    %c0_i32 = arith.constant 0 : i32
    %c0_i32_0 = arith.constant 0 : i32
    %c0_i32_1 = arith.constant 0 : i32
    return %c0_i32, %c0_i32_0 : i32, i32
  }
  func.func @transform_10(%arg0: i32) -> (i32, i32) {
    %c0_i32 = arith.constant 0 : i32
    %c0_i32_0 = arith.constant 0 : i32
    %c0_i32_1 = arith.constant 0 : i32
    return %c0_i32, %c0_i32_0 : i32, i32
  }
  func.func @transform_11(%arg0: i32) -> (i32, i32) {
    %c0_i32 = arith.constant 0 : i32
    %c0_i32_0 = arith.constant 0 : i32
    %c0_i32_1 = arith.constant 0 : i32
    return %c0_i32, %c0_i32_0 : i32, i32
  }
  func.func @transform_12(%arg0: i32) -> (i32, i32) {
    %c0_i32 = arith.constant 0 : i32
    %c0_i32_0 = arith.constant 0 : i32
    %c0_i32_1 = arith.constant 0 : i32
    return %c0_i32, %c0_i32_0 : i32, i32
  }
  func.func @transform_13(%arg0: i32) -> (i32, i32, i32) {
    %c0_i32 = arith.constant 0 : i32
    %c0_i32_0 = arith.constant 0 : i32
    %c0_i32_1 = arith.constant 0 : i32
    return %arg0, %c0_i32, %c0_i32_0 : i32, i32, i32
  }
}

</mosaic_0001>

<bundles_post_ra>
// kernel: light_vgg_forward.1
= control target key start
LH: loop header
LB: loop body
LE: loop exit
PB: predicated region body
PF: predicated region fallthrough
CT: control target
= control target key end

     0   :  { %s22429_s0 = inlined_call_operand.vmem [shape: bf16[2,1024,27], index: 0, kind: input, shape index: {}]   ;;  %s22430_s1 = inlined_call_operand.vmem [shape: bf16[27,32], index: 1, kind: input, shape index: {}]   ;;  %s22431_s2 = inlined_call_operand.vmem [shape: f32[1,32], index: 2, kind: input, shape index: {}]   ;;  %s22432_s3 = inlined_call_operand.vmem [shape: bf16[288,64], index: 3, kind: input, shape index: {}]   ;;  %s22433_s4 = inlined_call_operand.vmem [shape: f32[1,64], index: 4, kind: input, shape index: {}]   ;;  %s22434_s5 = inlined_call_operand.vmem [shape: bf16[576,128], index: 5, kind: input, shape index: {}]   ;;  %s22435_s6 = inlined_call_operand.vmem [shape: f32[1,128], index: 6, kind: input, shape index: {}]   ;;  %s22436_s7 = inlined_call_operand.vmem [shape: bf16[1152,256], index: 7, kind: input, shape index: {}]   ;;  %s22437_s8 = inlined_call_operand.vmem [shape: f32[1,256], index: 8, kind: input, shape index: {}]   ;;  %s22438_s9 = inlined_call_operand.vmem [shape: bf16[1024,512], index: 9, kind: input, shape index: {}]   ;;  %s22439_s10 = inlined_call_operand.vmem [shape: f32[1,512], index: 10, kind: input, shape index: {}]   ;;  %s22440_s11 = inlined_call_operand.vmem [shape: bf16[512,10], index: 11, kind: input, shape index: {}]   ;;  %s22441_s12 = inlined_call_operand.vmem [shape: f32[1,10], index: 12, kind: input, shape index: {}]   ;;  %s22442_s13 = inlined_call_operand.hbm [shape: f32[2,1,10], index: 13, kind: output, shape index: {}]  }
   0x1   :  { %22445 = sst [smem:[#allocation8_spill]] %s22429_s0 }
   0x2   :  { %22446 = sst [smem:[#allocation9_spill]] %s22430_s1 }
   0x3   :  { %22447 = sst [smem:[#allocation10_spill]] %s22431_s2 }
   0x4   :  { %22448 = sst [smem:[#allocation11_spill]] %s22432_s3 }
   0x5   :  { %18 = vsyncpa [#allocation6], 0 }
   0x6   :  { %20 = vsyncpa [#allocation6 + $0x1], 0  ;;  %s18000_s25 = smov 0   ;;  %s18002_s26 = smov 0  }
   0x7   :  { %s18004_s27 = smov 0   ;;  %s18006_s28 = smov 0  }
   0x8 LB: > { %s18021_s29 = sadd.s32 4294967295, %s17922_s28   ;;  %s14930_s30 = sadd.s32 4294967294, %s17922_s28   ;;  %s17922_s28 = sphi %s18006_s28, %s22460_s28   ;;  %s17918_s27 = sphi %s18004_s27, %s22459_s27   ;;  %s17914_s26 = sphi %s18002_s26, %s22458_s26   ;;  %s17910_s25 = sphi %s18000_s25, %s22457_s25  }
   0x9   : > { %s18025_s14 = sadd.s32 1, %s17922_s28   ;;  %s311_s15 = sadd.s32 1, %s17918_s27 }
   0xa   : > { %s308_s16 = ssub.s32 %s17922_s28, %s18025_s14  ;;  %p321_p0 = scmp.ne.s32.totalorder %s17918_s27, %s17914_s26 }
   0xb   : > { %p309_p1 = scmp.eq.s32.totalorder %s308_s16, 0  ;;  %p322_p2 = scmp.eq.s32.totalorder %s18021_s29, 1 }
   0xc   : > { %p327_p3 = scmp.ne.s32.totalorder %s17914_s26, %s17910_s25  ;;  %p328_p4 = scmp.eq.s32.totalorder %s14930_s30, 1 }
   0xd   : > { %s18036_s17 = scalar_select %p309_p1, %s17918_s27, %s311_s15  }
   0xe   : > { %p18038_p5 = por %p322_p2, %p321_p0  ;;  %p18042_p6 = por %p328_p4, %p327_p3 }
   0xf   : > { %p14933_p7 = scmp.ge.s32.totalorder %s17922_s28, 1  ;;  %p390_p8 = scmp.lt.s32.totalorder %s17922_s28, 3 }
  0x11   : > { %p391_p9 = pnand %p14933_p7, %p390_p8 }
  0x12   : > { %s22451_s1 = sld [smem:[#allocation9_spill]] (!%p391_p9)  ;;  %vm1102_vm0 = vcmask (!%p391_p9), 1044480   ;;  %vm1103_vm1 = vcmask (!%p391_p9), 1045504   ;;  %p433_p10 = scmp.lt.s32.totalorder (!%p391_p9), %s18021_s29, 1  ;;  %vm909_vm2 = vcmask (!%p391_p9), 220160   ;;  %v17924_v2 = vmov (!%p391_p9), 65535  }
  0x13   : > { %394 = sbr.rel (%p391_p9) target bundleno = 3384 (0xd38), region = 72  ;;  %v1104_v3 = vsel (!%p391_p9), %vm1102_vm0, 4294967295, %v17924_v2  ;;  %s22452_s0 = sld [smem:[#allocation8_spill]] (!%p391_p9)  ;;  %vm1782_vm3 = vcmask (!%p391_p9), 261120   ;;  %vm3383_vm4 = vcmask (!%p391_p9), 254976   ;;  %v22443_v42 = vmov (!%p391_p9), 0.0  }
  0x14   : > { %v1105_v4 = vsel (!%p391_p9), %vm1103_vm1, %v1104_v3, 0  ;;  %5180 = vst.msk [vmem:[#allocation2 + $0x20] sm:$0xff] (!%p391_p9), %vm1782_vm3, %v22443_v42  ;;  %5176 = vst.msk [vmem:[#allocation2] sm:$0xff] (!%p391_p9), %vm1782_vm3, %v22443_v42  ;;  %s22453_s3 = sld [smem:[#allocation11_spill]] (!%p391_p9)  ;;  %s22454_s2 = sld [smem:[#allocation10_spill]] (!%p391_p9)  ;;  %vm5486_vm5 = vcmask (!%p391_p9), 1041409  }
  0x15   : > { %5181 = vst.msk [vmem:[#allocation2 + $0x28] sm:$0x3] (!%p391_p9), %vm3383_vm4, %v22443_v42  ;;  %5178 = vst.msk [vmem:[#allocation2 + $0x10] sm:$0x3] (!%p391_p9), %vm3383_vm4, %v22443_v42  ;;  %vm5488_vm6 = vcmask (!%p391_p9), 1042434   ;;  %vm5490_vm7 = vcmask (!%p391_p9), 1043459  }
  0x16   : > { %5177 = vst.msk [vmem:[#allocation2 + $0x8] sm:$0xff] (!%p391_p9), %vm1782_vm3, %v22443_v42  ;;  %5179 = vst.msk [vmem:[#allocation2 + $0x18] sm:$0xff] (!%p391_p9), %vm1782_vm3, %v22443_v42  ;;  %vm5492_vm8 = vcmask (!%p391_p9), 1044484   ;;  %vm5494_vm9 = vcmask (!%p391_p9), 1045509   ;;  %vm5496_vm10 = vcmask (!%p391_p9), 1046534   ;;  %vm5498_vm11 = vcmask (!%p391_p9), 1047559  }
  0x17   : > { %5182 = vst.msk [vmem:[#allocation2 + $0x30] sm:$0xff] (!%p391_p9), %vm1782_vm3, %v22443_v42  ;;  %5183 = vst.msk [vmem:[#allocation2 + $0x38] sm:$0xff] (!%p391_p9), %vm1782_vm3, %v22443_v42  ;;  %vm8535_vm12 = vcmask (!%p391_p9), 523264   ;;  %vm8936_vm13 = vcmask (!%p391_p9), 517120   ;;  %vm10803_vm14 = vcmask (!%p391_p9), 1041408   ;;  %vm14860_vm15 = vcmask (!%p391_p9), 73728  }
  0x18   : > { %v17083_v0 = vld [vmem:[%s22451_s1] sm:$0xff] (!%p391_p9)   ;;  %v17084_v1 = vld [vmem:[%s22451_s1 + $0x8] sm:$0x3f] (!%p391_p9)   ;;  %5184 = vst.msk [vmem:[#allocation2 + $0x40] sm:$0x3] (!%p391_p9), %vm3383_vm4, %v22443_v42 }
  0x19   : > { %16083 = vmatprep.subr.bf16.mxu0 (!%p391_p9), %v17083_v0  ;;  %16683 = vmatprep.subr.bf16.mxu1 (!%p391_p9), %v17083_v0  ;;  %v1107_v5 = vand.u32 (!%p391_p9), %v17084_v1, %v1105_v4  ;;  %5185 = vst.msk [vmem:[#allocation2 + $0x48] sm:$0xff] (!%p391_p9), %vm1782_vm3, %v22443_v42  ;;  %5186 = vst.msk [vmem:[#allocation2 + $0x50] sm:$0xff] (!%p391_p9), %vm1782_vm3, %v22443_v42 }
  0x1a   : > { %16084 = vmatpush3.bf16.msra.mxu0 %v17083_v0  ;;  %16685 = vmatpush3.bf16.msra.mxu1 %v17083_v0  ;;  %s434_s24 = scalar_select %p433_p10, %s18021_s29, 1  ;;  %5187 = vst.msk [vmem:[#allocation2 + $0x58] sm:$0x3] %vm3383_vm4, %v22443_v42  ;;  %5190 = vst.msk [vmem:[#allocation2 + $0x70] sm:$0x3] %vm3383_vm4, %v22443_v42  ;;  %v17149_v2 = vld [vmem:[%s22453_s3 + $0x10] sm:$0xff]  }
  0x1b   : > { %16085 = vmatprep.subr.bf16.mxu0 %v1107_v5  ;;  %16684 = vmatprep.subr.bf16.mxu1 %v1107_v5  ;;  %5188 = vst.msk [vmem:[#allocation2 + $0x60] sm:$0xff] %vm1782_vm3, %v22443_v42  ;;  %5189 = vst.msk [vmem:[#allocation2 + $0x68] sm:$0xff] %vm1782_vm3, %v22443_v42  ;;  %v17150_v3 = vld [vmem:[%s22453_s3 + $0x18] sm:$0xff]  }
  0x1c   : > { %s15738_s30 = sshll.u32 %s434_s24, 9  ;;  %5191 = vst.msk [vmem:[#allocation2 + $0x78] sm:$0xff] %vm1782_vm3, %v22443_v42  ;;  %5192 = vst.msk [vmem:[#allocation2 + $0x80] sm:$0xff] %vm1782_vm3, %v22443_v42 }
  0x1d   : > { %s18059_s20 = scalar_lea.vmem %s22452_s0, %s15738_s30  ;;  %5193 = vst.msk [vmem:[#allocation2 + $0x88] sm:$0x3] %vm3383_vm4, %v22443_v42  ;;  %5196 = vst.msk [vmem:[#allocation2 + $0xa0] sm:$0x3] %vm3383_vm4, %v22443_v42  ;;  %v5834_v4 = vld [vmem:[#allocation2 + $0x1] sm:$0xff] }
  0x1e   : > { %16086 = vmatpush3.bf16.msra.mxu0 %v1107_v5  ;;  %v17085_v6 = vld [vmem:[%s18059_s20] sm:$0xff]   ;;  %16686 = vmatpush3.bf16.msra.mxu1 %v1107_v5  ;;  %v17086_v7 = vld [vmem:[%s18059_s20 + $0x8] sm:$0xff]   ;;  %v17087_v8 = vld [vmem:[%s18059_s20 + $0x10] sm:$0xff]   ;;  %5194 = vst.msk [vmem:[#allocation2 + $0x90] sm:$0xff] %vm1782_vm3, %v22443_v42 }
  0x1f   : > { %16087 = vmatprep.mubr.msk.bf16.mxu0 %vm909_vm2, %v17085_v6  ;;  %v17088_v9 = vld [vmem:[%s18059_s20 + $0x18] sm:$0xff]   ;;  %v17089_v10 = vld [vmem:[%s18059_s20 + $0x20] sm:$0xff]   ;;  %v17090_v11 = vld [vmem:[%s18059_s20 + $0x28] sm:$0xff]   ;;  %5195 = vst.msk [vmem:[#allocation2 + $0x98] sm:$0xff] %vm1782_vm3, %v22443_v42  ;;  %16215 = vmatprep.subr.bf16.mxu1 %v17149_v2 }
  0x20   : > { %v17091_v12 = vld [vmem:[%s18059_s20 + $0x30] sm:$0xff]   ;;  %v17092_v13 = vld [vmem:[%s18059_s20 + $0x38] sm:$0xff]   ;;  %v17093_v14 = vld [vmem:[%s18059_s20 + $0x40] sm:$0xff]   ;;  %5197 = vst.msk [vmem:[#allocation2 + $0xa8] sm:$0xff] %vm1782_vm3, %v22443_v42 }
  0x21   : > { %16088 = vmatmul.mubr.msk.bf16.vlgmr.msra.gmra.mrb[0].mxu0 %vm909_vm2, %v17086_v7  ;;  %v17094_v15 = vld [vmem:[%s18059_s20 + $0x48] sm:$0xff]   ;;  %v17095_v16 = vld [vmem:[%s18059_s20 + $0x50] sm:$0xff]   ;;  %v17096_v17 = vld [vmem:[%s18059_s20 + $0x58] sm:$0xff]   ;;  %5198 = vst.msk [vmem:[#allocation2 + $0xb0] sm:$0xff] %vm1782_vm3, %v22443_v42 }
  0x22   : > { %16091 = vmatprep.mubr.msk.bf16.mxu0 %vm909_vm2, %v17087_v8  ;;  %v17097_v18 = vld [vmem:[%s18059_s20 + $0x60] sm:$0xff]   ;;  %v17098_v19 = vld [vmem:[%s18059_s20 + $0x68] sm:$0xff]   ;;  %v17099_v20 = vld [vmem:[%s18059_s20 + $0x70] sm:$0xff]   ;;  %5199 = vst.msk [vmem:[#allocation2 + $0xb8] sm:$0x3] %vm3383_vm4, %v22443_v42 }
  0x23   : > { %v17100_v21 = vld [vmem:[%s18059_s20 + $0x78] sm:$0xff]   ;;  %v17101_v22 = vld [vmem:[%s18059_s20 + $0x80] sm:$0xff]   ;;  %v17102_v23 = vld [vmem:[%s18059_s20 + $0x88] sm:$0xff]   ;;  %5200 = vst.msk [vmem:[#allocation2 + $0xc0] sm:$0xff] %vm1782_vm3, %v22443_v42 }
  0x24   : > { %v17103_v24 = vld [vmem:[%s18059_s20 + $0x90] sm:$0xff]   ;;  %v17104_v25 = vld [vmem:[%s18059_s20 + $0x98] sm:$0xff]   ;;  %v17105_v26 = vld [vmem:[%s18059_s20 + $0xa0] sm:$0xff]   ;;  %5201 = vst.msk [vmem:[#allocation2 + $0xc8] sm:$0xff] %vm1782_vm3, %v22443_v42 }
  0x25   : > { %v17106_v27 = vld [vmem:[%s18059_s20 + $0xa8] sm:$0xff]   ;;  %v17107_v28 = vld [vmem:[%s18059_s20 + $0xb0] sm:$0xff]   ;;  %v17108_v29 = vld [vmem:[%s18059_s20 + $0xb8] sm:$0xff]   ;;  %5202 = vst.msk [vmem:[#allocation2 + $0xd0] sm:$0x3] %vm3383_vm4, %v22443_v42 }
  0x26   : > { %v17109_v30 = vld [vmem:[%s18059_s20 + $0xc0] sm:$0xff]   ;;  %v17110_v31 = vld [vmem:[%s18059_s20 + $0xc8] sm:$0xff]   ;;  %v17111_v32 = vld [vmem:[%s18059_s20 + $0xd0] sm:$0xff]   ;;  %5203 = vst.msk [vmem:[#allocation2 + $0xd8] sm:$0xff] %vm1782_vm3, %v22443_v42 }
  0x27   : > { %v17112_v33 = vld [vmem:[%s18059_s20 + $0xd8] sm:$0xff]   ;;  %v17113_v34 = vld [vmem:[%s18059_s20 + $0xe0] sm:$0xff]   ;;  %v17114_v35 = vld [vmem:[%s18059_s20 + $0xe8] sm:$0xff]   ;;  %5204 = vst.msk [vmem:[#allocation2 + $0xe0] sm:$0xff] %vm1782_vm3, %v22443_v42 }
  0x28   : > { %v17115_v36 = vld [vmem:[%s18059_s20 + $0xf0] sm:$0xff]   ;;  %v17116_v37 = vld [vmem:[%s18059_s20 + $0xf8] sm:$0xff]   ;;  %v17117_v38 = vld [vmem:[%s18059_s20 + $0x100] sm:$0xff]   ;;  %5205 = vst.msk [vmem:[#allocation2 + $0xe8] sm:$0x3] %vm3383_vm4, %v22443_v42 }
  0x29   : > { %16092 = vmatmul.mubr.msk.bf16.gmra.mrb[4].mxu0 %vm909_vm2, %v17088_v9  ;;  %v17118_v39 = vld [vmem:[%s18059_s20 + $0x108] sm:$0xff]   ;;  %v17119_v40 = vld [vmem:[%s18059_s20 + $0x110] sm:$0xff]   ;;  %v18132_v41 = vld [vmem:[%s18059_s20 + $0x118] sm:$0xff]   ;;  %5206 = vst.msk [vmem:[#allocation2 + $0xf0] sm:$0xff] %vm1782_vm3, %v22443_v42 }
  0x2a   : > { %16095 = vmatprep.mubr.msk.bf16.mxu0 %vm909_vm2, %v17089_v10  ;;  %5207 = vst.msk [vmem:[#allocation2 + $0xf8] sm:$0xff] %vm1782_vm3, %v22443_v42  ;;  %5209 = vst.msk [vmem:[#allocation2 + $0x108] sm:$0xff] %vm1782_vm3, %v22443_v42  ;;  %v17121_v43 = vld [vmem:[%s18059_s20 + $0x120] sm:$0xff]   ;;  %v17122_v44 = vld [vmem:[%s18059_s20 + $0x128] sm:$0xff]  }
  0x2b   : > { %5208 = vst.msk [vmem:[#allocation2 + $0x100] sm:$0x3] %vm3383_vm4, %v22443_v42  ;;  %5211 = vst.msk [vmem:[#allocation2 + $0x118] sm:$0x3] %vm3383_vm4, %v22443_v42  ;;  %v17123_v45 = vld [vmem:[%s18059_s20 + $0x130] sm:$0xff]   ;;  %v17124_v46 = vld [vmem:[%s18059_s20 + $0x138] sm:$0xff]  }
  0x2c   : > { %5210 = vst.msk [vmem:[#allocation2 + $0x110] sm:$0xff] %vm1782_vm3, %v22443_v42  ;;  %5212 = vst.msk [vmem:[#allocation2 + $0x120] sm:$0xff] %vm1782_vm3, %v22443_v42  ;;  %v17125_v47 = vld [vmem:[%s18059_s20 + $0x140] sm:$0xff]   ;;  %v17126_v48 = vld [vmem:[%s18059_s20 + $0x148] sm:$0xff]  }
  0x2d   : > { %5213 = vst.msk [vmem:[#allocation2 + $0x128] sm:$0xff] %vm1782_vm3, %v22443_v42  ;;  %5215 = vst.msk [vmem:[#allocation2 + $0x138] sm:$0xff] %vm1782_vm3, %v22443_v42  ;;  %v17127_v49 = vld [vmem:[%s18059_s20 + $0x150] sm:$0xff]   ;;  %v17128_v50 = vld [vmem:[%s18059_s20 + $0x158] sm:$0xff]  }
  0x2e   : > { %5214 = vst.msk [vmem:[#allocation2 + $0x130] sm:$0x3] %vm3383_vm4, %v22443_v42  ;;  %5217 = vst.msk [vmem:[#allocation2 + $0x148] sm:$0x3] %vm3383_vm4, %v22443_v42  ;;  %v17129_v51 = vld [vmem:[%s18059_s20 + $0x160] sm:$0xff]   ;;  %v17130_v52 = vld [vmem:[%s18059_s20 + $0x168] sm:$0xff]  }
  0x2f   : > { %5216 = vst.msk [vmem:[#allocation2 + $0x140] sm:$0xff] %vm1782_vm3, %v22443_v42  ;;  %5218 = vst.msk [vmem:[#allocation2 + $0x150] sm:$0xff] %vm1782_vm3, %v22443_v42  ;;  %v17131_v53 = vld [vmem:[%s18059_s20 + $0x170] sm:$0xff]   ;;  %v17145_v54 = vld [vmem:[%s18059_s20 + $0x1e0] sm:$0xff]  }
  0x30   : > { %5219 = vst.msk [vmem:[#allocation2 + $0x158] sm:$0xff] %vm1782_vm3, %v22443_v42  ;;  %5221 = vst.msk [vmem:[#allocation2 + $0x168] sm:$0xff] %vm1782_vm3, %v22443_v42  ;;  %16207 = vmatprep.mubr.msk.bf16.mxu1 %vm909_vm2, %v17145_v54  ;;  %v17146_v55 = vld [vmem:[%s18059_s20 + $0x1e8] sm:$0xff]   ;;  %v17132_v56 = vld [vmem:[%s18059_s20 + $0x178] sm:$0xff]  }
  0x31   : > { %16096 = vmatmul.mubr.msk.bf16.gmra.mrb[8].mxu0 %vm909_vm2, %v17090_v11  ;;  %5220 = vst.msk [vmem:[#allocation2 + $0x160] sm:$0x3] %vm3383_vm4, %v22443_v42  ;;  %5223 = vst.msk [vmem:[#allocation2 + $0x178] sm:$0x3] %vm3383_vm4, %v22443_v42  ;;  %16208 = vmatmul.mubr.msk.bf16.vlgmr.msra.gmra.mrb[0].mxu1 %vm909_vm2, %v17146_v55  ;;  %v17133_v57 = vld [vmem:[%s18059_s20 + $0x180] sm:$0xff]   ;;  %v17134_v58 = vld [vmem:[%s18059_s20 + $0x188] sm:$0xff]  }
  0x32   : > { %16099 = vmatprep.mubr.msk.bf16.mxu0 %vm909_vm2, %v17091_v12  ;;  %5222 = vst.msk [vmem:[#allocation2 + $0x170] sm:$0xff] %vm1782_vm3, %v22443_v42  ;;  %5224 = vst.msk [vmem:[#allocation2 + $0x180] sm:$0xff] %vm1782_vm3, %v22443_v42  ;;  %v17135_v59 = vld [vmem:[%s18059_s20 + $0x190] sm:$0xff]   ;;  %v17136_v61 = vld [vmem:[%s18059_s20 + $0x198] sm:$0xff]   ;;  %16216 = vmatpush3.bf16.msra.mxu1 %v17149_v2 }
  0x33   : > { %5225 = vst.msk [vmem:[#allocation2 + $0x188] sm:$0xff] %vm1782_vm3, %v22443_v42  ;;  %5227 = vst.msk [vmem:[#allocation2 + $0x198] sm:$0xff] %vm1782_vm3, %v22443_v42  ;;  %v17147_v60 = vld [vmem:[%s18059_s20 + $0x1f0] sm:$0xff]   ;;  %v17137_v62 = vld [vmem:[%s18059_s20 + $0x1a0] sm:$0xff]   ;;  %16217 = vmatprep.subr.bf16.mxu1 %v17150_v3 }
  0x34   : > { %5226 = vst.msk [vmem:[#allocation2 + $0x190] sm:$0x3] %vm3383_vm4, %v22443_v42  ;;  %5229 = vst.msk [vmem:[#allocation2 + $0x1a8] sm:$0x3] %vm3383_vm4, %v22443_v42  ;;  %16211 = vmatprep.mubr.msk.bf16.mxu1 %vm909_vm2, %v17147_v60  ;;  %v17138_v63 = vld [vmem:[%s18059_s20 + $0x1a8] sm:$0xff]   ;;  %v17139_v0 = vld [vmem:[%s18059_s20 + $0x1b0] sm:$0xff]  }
  0x35   : > { %5228 = vst.msk [vmem:[#allocation2 + $0x1a0] sm:$0xff] %vm1782_vm3, %v22443_v42  ;;  %10916 = vst [vmem:[#allocation4] sm:$0x3f] %v22443_v42  ;;  %v17148_v1 = vld [vmem:[%s18059_s20 + $0x1f8] sm:$0xff]   ;;  %v5835_v5 = vld [vmem:[#allocation2 + $0x9] sm:$0xff] }
  0x36   : > { %10917 = vst [vmem:[#allocation4 + $0x8] sm:$0x3f] %v22443_v42  ;;  %10918 = vst [vmem:[#allocation4 + $0x10] sm:$0x3f] %v22443_v42  ;;  %v17140_v6 = vld [vmem:[%s18059_s20 + $0x1b8] sm:$0xff]   ;;  %16218 = vmatpush3.bf16.msra.mxu1 %v17150_v3  ;;  %v5866_v7 = vpack.c.bf16 %v5835_v5, %v5834_v4  ;;  %v17141_v10 = vld [vmem:[%s18059_s20 + $0x1c0] sm:$0xff]  }
  0x37   : > { %10919 = vst [vmem:[#allocation4 + $0x18] sm:$0x3f] %v22443_v42  ;;  %10920 = vst [vmem:[#allocation4 + $0x20] sm:$0x3f] %v22443_v42  ;;  %v18306_v9 = vld [vmem:[%s22454_s2] ss:$0 sm:$0xff] }
  0x38   : > { %10921 = vst [vmem:[#allocation4 + $0x28] sm:$0x3f] %v22443_v42 }
  0x39   : > { %16100 = vmatmul.mubr.msk.bf16.gmra.mrb[12].mxu0 %vm909_vm2, %v17092_v13  ;;  %16212 = vmatmul.mubr.msk.bf16.gmra.mrb[4].mxu1 %vm909_vm2, %v17148_v1 }
  0x3a   : > { %16103 = vmatprep.mubr.msk.bf16.mxu0 %vm909_vm2, %v17093_v14  ;;  %16219 = vmatprep.mubr.msk.bf16.mxu1 %vm1782_vm3, %v5866_v7  ;;  %v17926_v14 = vmov 1983009808  }
  0x41   : > { %16104 = vmatmul.mubr.msk.bf16.gmra.mrb[16].mxu0 %vm909_vm2, %v17094_v15  ;;  %v2041_v15 = vunpack.c.l.s4 %v17926_v14 }
  0x42   : > { %16107 = vmatprep.mubr.msk.bf16.mxu0 %vm909_vm2, %v17095_v16  ;;  %v2043_v16 = vlaneseq }
  0x49   : > { %16108 = vmatmul.mubr.msk.bf16.gmra.mrb[20].mxu0 %vm909_vm2, %v17096_v17 }
  0x4a   : > { %16111 = vmatprep.mubr.msk.bf16.mxu0 %vm909_vm2, %v17097_v18 }
  0x51   : > { %16112 = vmatmul.mubr.msk.bf16.gmra.mrb[24].mxu0 %vm909_vm2, %v17098_v19 }
  0x52   : > { %16115 = vmatprep.mubr.msk.bf16.mxu0 %vm909_vm2, %v17099_v20 }
  0x59   : > { %16116 = vmatmul.mubr.msk.bf16.gmra.mrb[28].mxu0 %vm909_vm2, %v17100_v21  ;;  %v17142_v21 = vld [vmem:[%s18059_s20 + $0x1c8] sm:$0xff]  }
  0x5a   : > { %16119 = vmatprep.mubr.msk.bf16.mxu0 %vm909_vm2, %v17101_v22 }
  0x61   : > { %16120 = vmatmul.mubr.msk.bf16.gmra.mrb[32].mxu0 %vm909_vm2, %v17102_v23  ;;  %v2042_v23 = vunpack.c.0.s8 %v2041_v15 }
  0x62   : > { %16123 = vmatprep.mubr.msk.bf16.mxu0 %vm909_vm2, %v17103_v24  ;;  %v18317_v24 = vshrl.u32 %v2043_v16, 7 }
  0x69   : > { %16124 = vmatmul.mubr.msk.bf16.gmra.mrb[36].mxu0 %vm909_vm2, %v17104_v25  ;;  %v17143_v25 = vld [vmem:[%s18059_s20 + $0x1d0] sm:$0xff]  }
  0x6a   : > { %16127 = vmatprep.mubr.msk.bf16.mxu0 %vm909_vm2, %v17105_v26 }
  0x71   : > { %16128 = vmatmul.mubr.msk.bf16.gmra.mrb[40].mxu0 %vm909_vm2, %v17106_v27 }
  0x72   : > { %16131 = vmatprep.mubr.msk.bf16.mxu0 %vm909_vm2, %v17107_v28 }
  0x79   : > { %16132 = vmatmul.mubr.msk.bf16.gmra.mrb[44].mxu0 %vm909_vm2, %v17108_v29 }
  0x7a   : > { %16135 = vmatprep.mubr.msk.bf16.mxu0 %vm909_vm2, %v17109_v30 }
  0x81   : > { %16136 = vmatmul.mubr.msk.bf16.gmra.mrb[48].mxu0 %vm909_vm2, %v17110_v31 }
  0x82   : > { %16139 = vmatprep.mubr.msk.bf16.mxu0 %vm909_vm2, %v17111_v32 }
  0x89   : > { %16140 = vmatmul.mubr.msk.bf16.gmra.mrb[52].mxu0 %vm909_vm2, %v17112_v33 }
  0x8a   : > { %16143 = vmatprep.mubr.msk.bf16.mxu0 %vm909_vm2, %v17113_v34 }
  0x91   : > { %16144 = vmatmul.mubr.msk.bf16.gmra.mrb[56].mxu0 %vm909_vm2, %v17114_v35 }
  0x92   : > { %16147 = vmatprep.mubr.msk.bf16.mxu0 %vm909_vm2, %v17115_v36 }
  0x99   : > { %16148 = vmatmul.mubr.msk.bf16.gmra.mrb[60].mxu0 %vm909_vm2, %v17116_v37  ;;  %v18324_v37 = vsub.s32 %v2042_v23, %v18317_v24 }
  0x9a   : > { %16151 = vmatprep.mubr.msk.bf16.mxu0 %vm909_vm2, %v17117_v38 }
  0xa1   : > { %16152 = vmatmul.mubr.msk.bf16.gmra.mrb[64].mxu0 %vm909_vm2, %v17118_v39 }
  0xa2   : > { %16155 = vmatprep.mubr.msk.bf16.mxu0 %vm909_vm2, %v17119_v40 }
  0xa9   : > { %16156 = vmatmul.mubr.msk.bf16.gmra.mrb[68].mxu0 %vm909_vm2, %v18132_v41 }
  0xaa   : > { %16159 = vmatprep.mubr.msk.bf16.mxu0 %vm909_vm2, %v17121_v43 }
  0xb1   : > { %16160 = vmatmul.mubr.msk.bf16.gmra.mrb[72].mxu0 %vm909_vm2, %v17122_v44 }
  0xb2   : > { %16163 = vmatprep.mubr.msk.bf16.mxu0 %vm909_vm2, %v17123_v45 }
  0xb9   : > { %16164 = vmatmul.mubr.msk.bf16.gmra.mrb[76].mxu0 %vm909_vm2, %v17124_v46 }
  0xba   : > { %16167 = vmatprep.mubr.msk.bf16.mxu0 %vm909_vm2, %v17125_v47 }
  0xc1   : > { %16168 = vmatmul.mubr.msk.bf16.gmra.mrb[80].mxu0 %vm909_vm2, %v17126_v48 }
  0xc2   : > { %16171 = vmatprep.mubr.msk.bf16.mxu0 %vm909_vm2, %v17127_v49 }
  0xc9   : > { %16172 = vmatmul.mubr.msk.bf16.gmra.mrb[84].mxu0 %vm909_vm2, %v17128_v50 }
  0xca   : > { %16175 = vmatprep.mubr.msk.bf16.mxu0 %vm909_vm2, %v17129_v51 }
  0xd1   : > { %16176 = vmatmul.mubr.msk.bf16.gmra.mrb[88].mxu0 %vm909_vm2, %v17130_v52  ;;  %v17144_v52 = vld [vmem:[%s18059_s20 + $0x1d8] sm:$0xff]   ;;  %s15735_s20 = sshll.u32 %s18021_s29, 4  ;;  %s17929_s29 = smov [#allocation5]  }
  0xd2   : > { %16179 = vmatprep.mubr.msk.bf16.mxu0 %vm909_vm2, %v17131_v53  ;;  %s17864_s30 = sshll.u32 %s17929_s29, 4  ;;  %s17865_s30 = int_to_ptr.vmem [resolvable:$false] %s17864_s30 }
  0xd3   : > { %s17866_s15 = scalar_lea.vmem %s17865_s30, 32 }
  0xd9   : > { %16180 = vmatmul.mubr.msk.bf16.gmra.mrb[92].mxu0 %vm909_vm2, %v17132_v56 }
  0xda   : > { %16183 = vmatprep.mubr.msk.bf16.mxu0 %vm909_vm2, %v17133_v57 }
  0xe1   : > { %16184 = vmatmul.mubr.msk.bf16.gmra.mrb[96].mxu0 %vm909_vm2, %v17134_v58 }
  0xe2   : > { %16187 = vmatprep.mubr.msk.bf16.mxu0 %vm909_vm2, %v17135_v59 }
  0xe9   : > { %16188 = vmatmul.mubr.msk.bf16.gmra.mrb[100].mxu0 %vm909_vm2, %v17136_v61 }
  0xea   : > { %16191 = vmatprep.mubr.msk.bf16.mxu0 %vm909_vm2, %v17137_v62 }
  0xf1   : > { %16192 = vmatmul.mubr.msk.bf16.gmra.mrb[104].mxu0 %vm909_vm2, %v17138_v63 }
  0xf2   : > { %16195 = vmatprep.mubr.msk.bf16.mxu0 %vm909_vm2, %v17139_v0 }
  0xf4   : > { %v16089_v8 = vpop.f32.mrb[0].mxu0 }
  0xf5   : > { %v1143_v11 = vpop.f32.mrb[1].mxu0  ;;  %v1152_v17 = vadd.f32 %v16089_v8, %v18306_v9 }
  0xf6   : > { %v16090_v12 = vpop.f32.mrb[2].mxu0  ;;  %v1144_v18 = vadd.f32 %v18306_v9, %v1143_v11 }
  0xf7   : > { %v1146_v13 = vpop.f32.mrb[3].mxu0  ;;  %v1155_v19 = vadd.f32 %v16090_v12, %v18306_v9  ;;  %v1656_v26 = vmax.f32 %v1152_v17, 0.0 }
  0xf8   : > { %v1147_v20 = vadd.f32 %v18306_v9, %v1146_v13  ;;  %v1654_v29 = vmax.f32 %v1144_v18, 0.0 }
  0xf9   : > { %16196 = vmatmul.mubr.msk.bf16.gmra.mrb[108].mxu0 %vm909_vm2, %v17140_v6  ;;  %v1657_v30 = vmax.f32 %v1155_v19, 0.0  ;;  %v1789_v40 = vsel %vm1782_vm3, %v1656_v26, -inf }
  0xfa   : > { %16199 = vmatprep.mubr.msk.bf16.mxu0 %vm909_vm2, %v17141_v10  ;;  %v1655_v33 = vmax.f32 %v1147_v20, 0.0  ;;  %v1783_v44 = vsel %vm1782_vm3, %v1654_v29, -inf }
  0xfb   : > { %v1792_v48 = vsel %vm1782_vm3, %v1657_v30, -inf }
  0xfc   : > { %v16093_v22 = vpop.f32.mrb[4].mxu0  ;;  %v1786_v49 = vsel %vm1782_vm3, %v1655_v33, -inf }
  0xfd   : > { %v1168_v27 = vadd.f32 %v16093_v22, %v18306_v9  ;;  %v1159_v28 = vpop.f32.mrb[5].mxu0 }
  0xfe   : > { %v1160_v31 = vadd.f32 %v18306_v9, %v1159_v28  ;;  %v16094_v32 = vpop.f32.mrb[6].mxu0 }
  0xff   : > { %v1660_v34 = vmax.f32 %v1168_v27, 0.0  ;;  %v1171_v35 = vadd.f32 %v16094_v32, %v18306_v9  ;;  %v1162_v36 = vpop.f32.mrb[7].mxu0 }
 0x100   : > { %v1658_v38 = vmax.f32 %v1160_v31, 0.0  ;;  %v1163_v39 = vadd.f32 %v18306_v9, %v1162_v36 }
 0x101   : > { %v1790_v41 = vsel %vm1782_vm3, %v1660_v34, -inf  ;;  %v1661_v43 = vmax.f32 %v1171_v35, 0.0  ;;  %16200 = vmatmul.mubr.msk.bf16.gmra.mrb[112].mxu0 %vm909_vm2, %v17142_v21 }
 0x102   : > { %v1791_v45 = vmax.f32 %v1789_v40, %v1790_v41  ;;  %v1784_v46 = vsel %vm1782_vm3, %v1658_v38, -inf  ;;  %v1659_v47 = vmax.f32 %v1163_v39, 0.0  ;;  %16203 = vmatprep.mubr.msk.bf16.mxu0 %vm909_vm2, %v17143_v25 }
 0x103   : > { %v1785_v50 = vmax.f32 %v1783_v44, %v1784_v46  ;;  %v1793_v51 = vsel %vm1782_vm3, %v1661_v43, -inf }
 0x104   : > { %v2073_v53 = vcombine.high %v1791_v45, %v1791_v45  ;;  %v2080_v54 = vrot.slane %v1791_v45, %v18324_v37  ;;  %v18338_v55 = vmax.f32 %v1792_v48, %v1793_v51  ;;  %v1787_v56 = vsel %vm1782_vm3, %v1659_v47, -inf  ;;  %v16097_v57 = vpop.f32.mrb[8].mxu0 }
 0x105   : > { %v2039_v58 = vcombine.high %v1785_v50, %v1785_v50  ;;  %v2046_v59 = vrot.slane %v1785_v50, %v18324_v37  ;;  %v18342_v60 = vmax.f32 %v1786_v49, %v1787_v56  ;;  %v18345_v61 = vadd.f32 %v16097_v57, %v18306_v9  ;;  %v18347_v62 = vpop.f32.mrb[9].mxu0 }
 0x106   : > { %v2087_v63 = vrot.slane %v2073_v53, %v18324_v37  ;;  %v2088_v0 = vcombine.high %v2080_v54, %v2080_v54  ;;  %v3440_v1 = vsel %vm3383_vm4, %v2080_v54, -inf  ;;  %v2090_v2 = vcombine.high %v18338_v55, %v18338_v55  ;;  %v18353_v3 = vpop.f32.mrb[10].mxu0 }
 0x107   : > { %v3441_v4 = vrot.slane %v3440_v1, 4  ;;  %v2053_v5 = vrot.slane %v2039_v58, %v18324_v37  ;;  %v2054_v6 = vcombine.high %v2046_v59, %v2046_v59  ;;  %v3384_v7 = vsel %vm3383_vm4, %v2046_v59, -inf  ;;  %v18357_v8 = vpop.f32.mrb[11].mxu0 }
 0x108   : > { %v2089_v10 = vcombine.high %v2087_v63, %v2087_v63  ;;  %v3447_v11 = vsel %vm3383_vm4, %v2088_v0, -inf  ;;  %v3454_v12 = vsel %vm3383_vm4, %v2087_v63, -inf  ;;  %v3385_v13 = vrot.slane %v3384_v7, 4 }
 0x109   : > { %v3442_v14 = vmax.f32 %v3440_v1, %v3441_v4  ;;  %v3448_v15 = vrot.slane %v3447_v11, 4  ;;  %v3455_v16 = vrot.slane %v3454_v12, 4  ;;  %v2055_v17 = vcombine.high %v2053_v5, %v2053_v5  ;;  %16204 = vmatmul.mubr.msk.bf16.gmra.mrb[116].mxu0 %vm909_vm2, %v17144_v52 }
 0x10a   : > { %v3461_v18 = vsel %vm3383_vm4, %v2089_v10, -inf  ;;  %v3386_v19 = vmax.f32 %v3384_v7, %v3385_v13  ;;  %v3391_v20 = vsel %vm3383_vm4, %v2054_v6, -inf  ;;  %v3398_v21 = vsel %vm3383_vm4, %v2053_v5, -inf }
 0x10b   : > { %v3443_v22 = vrot.slane %v3442_v14, 2  ;;  %v3449_v23 = vmax.f32 %v3447_v11, %v3448_v15  ;;  %v3456_v25 = vmax.f32 %v3454_v12, %v3455_v16  ;;  %v3462_v26 = vrot.slane %v3461_v18, 4 }
 0x10c   : > { %v3387_v27 = vrot.slane %v3386_v19, 2  ;;  %v3392_v28 = vrot.slane %v3391_v20, 4  ;;  %v3399_v29 = vrot.slane %v3398_v21, 4  ;;  %v3405_v30 = vsel %vm3383_vm4, %v2055_v17, -inf  ;;  %v18366_v31 = vpop.f32.mrb[12].mxu0 }
 0x10d   : > { %v3444_v32 = vmax.f32 %v3442_v14, %v3443_v22  ;;  %v3450_v33 = vrot.slane %v3449_v23, 2  ;;  %v3457_v34 = vrot.slane %v3456_v25, 2  ;;  %v3463_v35 = vmax.f32 %v3461_v18, %v3462_v26  ;;  %v18368_v36 = vpop.f32.mrb[13].mxu0 }
 0x10e   : > { %v3388_v38 = vmax.f32 %v3386_v19, %v3387_v27  ;;  %v3393_v39 = vmax.f32 %v3391_v20, %v3392_v28  ;;  %v3400_v40 = vmax.f32 %v3398_v21, %v3399_v29  ;;  %v3406_v41 = vrot.slane %v3405_v30, 4  ;;  %v18370_v43 = vpop.f32.mrb[14].mxu0 }
 0x10f   : > { %v3445_v44 = vrot.slane %v3444_v32, 1  ;;  %v3451_v45 = vmax.f32 %v3449_v23, %v3450_v33  ;;  %v3458_v46 = vmax.f32 %v3456_v25, %v3457_v34  ;;  %v3464_v47 = vrot.slane %v3463_v35, 2  ;;  %v18372_v48 = vpop.f32.mrb[15].mxu0 }
 0x110   : > { %v3389_v49 = vrot.slane %v3388_v38, 1  ;;  %v3394_v50 = vrot.slane %v3393_v39, 2  ;;  %v3401_v51 = vrot.slane %v3400_v40, 2  ;;  %v3407_v52 = vmax.f32 %v3405_v30, %v3406_v41 }
 0x111   : > { %v3446_v53 = vmax.f32 %v3444_v32, %v3445_v44  ;;  %v3452_v54 = vrot.slane %v3451_v45, 1  ;;  %v3459_v56 = vrot.slane %v3458_v46, 1  ;;  %v3465_v57 = vmax.f32 %v3463_v35, %v3464_v47 }
 0x112   : > { %v3390_v58 = vmax.f32 %v3388_v38, %v3389_v49  ;;  %v3395_v59 = vmax.f32 %v3393_v39, %v3394_v50  ;;  %v3402_v63 = vmax.f32 %v3400_v40, %v3401_v51  ;;  %v3408_v0 = vrot.slane %v3407_v52, 2 }
 0x113   : > { %v3453_v1 = vmax.f32 %v3451_v45, %v3452_v54  ;;  %v3460_v4 = vmax.f32 %v3458_v46, %v3459_v56  ;;  %v3466_v5 = vrot.slane %v3465_v57, 1  ;;  %v2097_v6 = vrot.slane %v18338_v55, %v18324_v37 }
 0x114   : > { %v3396_v7 = vrot.slane %v3395_v59, 1  ;;  %v3403_v10 = vrot.slane %v3402_v63, 1  ;;  %v3409_v11 = vmax.f32 %v3407_v52, %v3408_v0  ;;  %v2104_v12 = vrot.slane %v2090_v2, %v18324_v37  ;;  %v18380_v13 = vpop.f32.mrb[16].mxu0 }
 0x115   : > { %v3467_v14 = vmax.f32 %v3465_v57, %v3466_v5  ;;  %v5500_v15 = vsel %vm5486_vm5, %v3453_v1, %v3446_v53  ;;  %v2105_v16 = vcombine.high %v2097_v6, %v2097_v6  ;;  %v3468_v17 = vsel %vm3383_vm4, %v2097_v6, -inf  ;;  %v18384_v18 = vpop.f32.mrb[17].mxu0 }
 0x116   : > { %v5501_v19 = vsel %vm5488_vm6, %v3460_v4, %v5500_v15  ;;  %v3397_v20 = vmax.f32 %v3395_v59, %v3396_v7  ;;  %v3404_v21 = vmax.f32 %v3402_v63, %v3403_v10  ;;  %v3410_v22 = vrot.slane %v3409_v11, 1  ;;  %v18387_v23 = vpop.f32.mrb[18].mxu0 }
 0x117   : > { %v2106_v25 = vcombine.high %v2104_v12, %v2104_v12  ;;  %v3469_v55 = vrot.slane %v3468_v17, 4  ;;  %v3475_v2 = vsel %vm3383_vm4, %v2105_v16, -inf  ;;  %v3482_v26 = vsel %vm3383_vm4, %v2104_v12, -inf  ;;  %v18391_v27 = vpop.f32.mrb[19].mxu0 }
 0x118   : > { %v3411_v28 = vmax.f32 %v3409_v11, %v3410_v22  ;;  %v5487_v29 = vsel %vm5486_vm5, %v3397_v20, %v3390_v58  ;;  %v3476_v30 = vrot.slane %v3475_v2, 4  ;;  %v3483_v32 = vrot.slane %v3482_v26, 4 }
 0x119   : > { %v5489_v33 = vsel %vm5488_vm6, %v3404_v21, %v5487_v29  ;;  %v3470_v34 = vmax.f32 %v3468_v17, %v3469_v55  ;;  %v3489_v35 = vsel %vm3383_vm4, %v2106_v25, -inf  ;;  %v5502_v38 = vsel %vm5490_vm7, %v3467_v14, %v5501_v19 }
 0x11a   : > { %v3477_v39 = vmax.f32 %v3475_v2, %v3476_v30  ;;  %v3484_v40 = vmax.f32 %v3482_v26, %v3483_v32  ;;  %v3490_v41 = vrot.slane %v3489_v35, 4  ;;  %v2056_v44 = vcombine.high %v18342_v60, %v18342_v60 }
 0x11b   : > { %v3471_v45 = vrot.slane %v3470_v34, 2  ;;  %v2063_v46 = vrot.slane %v18342_v60, %v18324_v37  ;;  %v18402_v47 = vsel %vm5490_vm7, %v3411_v28, %v5489_v33  ;;  %v1664_v49 = vmax.f32 %v18345_v61, 0.0 }
 0x11c   : > { %v3478_v50 = vrot.slane %v3477_v39, 2  ;;  %v3485_v51 = vrot.slane %v3484_v40, 2  ;;  %v3491_v52 = vmax.f32 %v3489_v35, %v3490_v41  ;;  %v2070_v53 = vrot.slane %v2056_v44, %v18324_v37  ;;  %v18406_v54 = vpop.f32.mrb[20].mxu0 }
 0x11d   : > { %v3472_v56 = vmax.f32 %v3470_v34, %v3471_v45  ;;  %v2071_v57 = vcombine.high %v2063_v46, %v2063_v46  ;;  %v3412_v58 = vsel %vm3383_vm4, %v2063_v46, -inf  ;;  %v18410_v59 = vsel %vm1782_vm3, %v1664_v49, -inf  ;;  %v18412_v60 = vpop.f32.mrb[21].mxu0 }
 0x11e   : > { %v3479_v63 = vmax.f32 %v3477_v39, %v3478_v50  ;;  %v3486_v0 = vmax.f32 %v3484_v40, %v3485_v51  ;;  %v3492_v1 = vrot.slane %v3491_v52, 2  ;;  %v2072_v61 = vcombine.high %v2070_v53, %v2070_v53  ;;  %v18414_v4 = vpop.f32.mrb[22].mxu0 }
 0x11f   : > { %v3473_v5 = vrot.slane %v3472_v56, 1  ;;  %v3413_v6 = vrot.slane %v3412_v58, 4  ;;  %v3419_v7 = vsel %vm3383_vm4, %v2071_v57, -inf  ;;  %v3426_v10 = vsel %vm3383_vm4, %v2070_v53, -inf  ;;  %v18418_v11 = vpop.f32.mrb[23].mxu0 }
 0x120   : > { %v3480_v12 = vrot.slane %v3479_v63, 1  ;;  %v3487_v14 = vrot.slane %v3486_v0, 1  ;;  %v3493_v15 = vmax.f32 %v3491_v52, %v3492_v1  ;;  %v3420_v16 = vrot.slane %v3419_v7, 4 }
 0x121   : > { %v3474_v17 = vmax.f32 %v3472_v56, %v3473_v5  ;;  %v3414_v19 = vmax.f32 %v3412_v58, %v3413_v6  ;;  %v3427_v20 = vrot.slane %v3426_v10, 4  ;;  %v3433_v21 = vsel %vm3383_vm4, %v2072_v61, -inf }
 0x122   : > { %v3481_v22 = vmax.f32 %v3479_v63, %v3480_v12  ;;  %v3488_v25 = vmax.f32 %v3486_v0, %v3487_v14  ;;  %v3494_v55 = vrot.slane %v3493_v15, 1  ;;  %v3421_v2 = vmax.f32 %v3419_v7, %v3420_v16 }
 0x123   : > { %v5503_v26 = vsel %vm5492_vm8, %v3474_v17, %v5502_v38  ;;  %v3415_v28 = vrot.slane %v3414_v19, 2  ;;  %v3428_v29 = vmax.f32 %v3426_v10, %v3427_v20  ;;  %v3434_v30 = vrot.slane %v3433_v21, 4 }
 0x124   : > { %v3495_v32 = vmax.f32 %v3493_v15, %v3494_v55  ;;  %v5504_v33 = vsel %vm5494_vm9, %v3481_v22, %v5503_v26  ;;  %v3422_v34 = vrot.slane %v3421_v2, 2  ;;  %v1176_v35 = vadd.f32 %v18306_v9, %v18347_v62  ;;  %v18425_v39 = vpop.f32.mrb[24].mxu0 }
 0x125   : > { %v5505_v40 = vsel %vm5496_vm10, %v3488_v25, %v5504_v33  ;;  %v3416_v41 = vmax.f32 %v3414_v19, %v3415_v28  ;;  %v3429_v44 = vrot.slane %v3428_v29, 2  ;;  %v3435_v45 = vmax.f32 %v3433_v21, %v3434_v30  ;;  %v18428_v46 = vpop.f32.mrb[25].mxu0 }
 0x126   : > { %v5506_v38 = vsel %vm5498_vm11, %v3495_v32, %v5505_v40  ;;  %v3423_v49 = vmax.f32 %v3421_v2, %v3422_v34  ;;  %v1662_v50 = vmax.f32 %v1176_v35, 0.0  ;;  %v1187_v51 = vadd.f32 %v18353_v3, %v18306_v9  ;;  %v18433_v52 = vpop.f32.mrb[26].mxu0 }
 0x127   : > { %5751 = vst.msk [vmem:[#allocation2 + $0x21] sm:$0xff] %vm1782_vm3, %v5506_v38  ;;  %v3417_v62 = vrot.slane %v3416_v41, 1  ;;  %v3430_v53 = vmax.f32 %v3428_v29, %v3429_v44  ;;  %v3436_v56 = vrot.slane %v3435_v45, 2  ;;  %v1179_v57 = vadd.f32 %v18306_v9, %v18357_v8  ;;  %v18438_v58 = vpop.f32.mrb[27].mxu0 }
 0x128   : > { %v3424_v63 = vrot.slane %v3423_v49, 1  ;;  %v1795_v0 = vsel %vm1782_vm3, %v1662_v50, -inf  ;;  %v1665_v1 = vmax.f32 %v1187_v51, 0.0  ;;  %v1200_v61 = vadd.f32 %v18366_v31, %v18306_v9 }
 0x129   : > { %v3418_v3 = vmax.f32 %v3416_v41, %v3417_v62  ;;  %v3431_v5 = vrot.slane %v3430_v53, 1  ;;  %v3437_v6 = vmax.f32 %v3435_v45, %v3436_v56  ;;  %v1663_v7 = vmax.f32 %v1179_v57, 0.0 }
 0x12a   : > { %v3425_v10 = vmax.f32 %v3423_v49, %v3424_v63  ;;  %v1804_v12 = vsel %vm1782_vm3, %v1665_v1, -inf  ;;  %v1668_v14 = vmax.f32 %v1200_v61, 0.0  ;;  %v1192_v8 = vadd.f32 %v18306_v9, %v18368_v36 }
 0x12b   : > { %v3432_v15 = vmax.f32 %v3430_v53, %v3431_v5  ;;  %v3438_v16 = vrot.slane %v3437_v6, 1  ;;  %v5493_v17 = vsel %vm5492_vm8, %v3418_v3, %v18402_v47  ;;  %v18449_v19 = vsel %vm1782_vm3, %v1663_v7, -inf }
 0x12c   : > { %v5495_v31 = vsel %vm5494_vm9, %v3425_v10, %v5493_v17  ;;  %v1802_v20 = vsel %vm1782_vm3, %v1668_v14, -inf  ;;  %v1666_v21 = vmax.f32 %v1192_v8, 0.0  ;;  %v1203_v22 = vadd.f32 %v18370_v43, %v18306_v9  ;;  %v18455_v25 = vpop.f32.mrb[28].mxu0 }
 0x12d   : > { %v3439_v55 = vmax.f32 %v3437_v6, %v3438_v16  ;;  %v5497_v36 = vsel %vm5496_vm10, %v3432_v15, %v5495_v31  ;;  %v1803_v2 = vmax.f32 %v18410_v59, %v1802_v20  ;;  %v1195_v47 = vadd.f32 %v18306_v9, %v18372_v48  ;;  %v18461_v26 = vpop.f32.mrb[29].mxu0 }
 0x12e   : > { %v1796_v28 = vsel %vm1782_vm3, %v1666_v21, -inf  ;;  %v1669_v29 = vmax.f32 %v1203_v22, 0.0  ;;  %v18466_v30 = vadd.f32 %v18380_v13, %v18306_v9  ;;  %v18470_v43 = vadd.f32 %v18306_v9, %v18384_v18  ;;  %v18472_v32 = vpop.f32.mrb[30].mxu0 }
 0x12f   : > { %v5499_v59 = vsel %vm5498_vm11, %v3439_v55, %v5497_v36  ;;  %v2141_v33 = vcombine.high %v1803_v2, %v1803_v2  ;;  %v2148_v48 = vrot.slane %v1803_v2, %v18324_v37  ;;  %v1797_v34 = vmax.f32 %v1795_v0, %v1796_v28  ;;  %v18476_v35 = vpop.f32.mrb[31].mxu0 }
 0x130   : > { %5750 = vst.msk [vmem:[#allocation2 + $0x19] sm:$0xff] %vm1782_vm3, %v5499_v59  ;;  %v1805_v40 = vsel %vm1782_vm3, %v1669_v29, -inf  ;;  %v1667_v13 = vmax.f32 %v1195_v47, 0.0  ;;  %v1672_v41 = vmax.f32 %v18466_v30, 0.0  ;;  %v1670_v18 = vmax.f32 %v18470_v43, 0.0 }
 0x131   : > { %v2155_v44 = vrot.slane %v2141_v33, %v18324_v37  ;;  %v2156_v45 = vcombine.high %v2148_v48, %v2148_v48  ;;  %v3552_v38 = vsel %vm3383_vm4, %v2148_v48, -inf  ;;  %v2107_v49 = vcombine.high %v1797_v34, %v1797_v34 }
 0x132   : > { %v3553_v50 = vrot.slane %v3552_v38, 4  ;;  %v2114_v51 = vrot.slane %v1797_v34, %v18324_v37  ;;  %v18485_v62 = vmax.f32 %v1804_v12, %v1805_v40  ;;  %v18488_v53 = vsel %vm1782_vm3, %v1667_v13, -inf }
 0x133   : > { %v2157_v56 = vcombine.high %v2155_v44, %v2155_v44  ;;  %v3559_v57 = vsel %vm3383_vm4, %v2156_v45, -inf  ;;  %v3566_v63 = vsel %vm3383_vm4, %v2155_v44, -inf  ;;  %v2121_v0 = vrot.slane %v2107_v49, %v18324_v37 }
 0x134   : > { %v3554_v1 = vmax.f32 %v3552_v38, %v3553_v50  ;;  %v3560_v61 = vrot.slane %v3559_v57, 4  ;;  %v3567_v3 = vrot.slane %v3566_v63, 4  ;;  %v2122_v5 = vcombine.high %v2114_v51, %v2114_v51  ;;  %v18493_v6 = vpop.f32.mrb[32].mxu0 }
 0x135   : > { %v3573_v7 = vsel %vm3383_vm4, %v2157_v56, -inf  ;;  %v2123_v10 = vcombine.high %v2121_v0, %v2121_v0  ;;  %v3496_v12 = vsel %vm3383_vm4, %v2114_v51, -inf  ;;  %v3510_v14 = vsel %vm3383_vm4, %v2121_v0, -inf  ;;  %v18498_v8 = vpop.f32.mrb[33].mxu0 }
 0x136   : > { %v3555_v15 = vrot.slane %v3554_v1, 2  ;;  %v3561_v16 = vmax.f32 %v3559_v57, %v3560_v61  ;;  %v3568_v17 = vmax.f32 %v3566_v63, %v3567_v3  ;;  %v3574_v31 = vrot.slane %v3573_v7, 4  ;;  %v18500_v20 = vpop.f32.mrb[34].mxu0 }
 0x137   : > { %v3497_v21 = vrot.slane %v3496_v12, 4  ;;  %v3503_v22 = vsel %vm3383_vm4, %v2122_v5, -inf  ;;  %v3511_v55 = vrot.slane %v3510_v14, 4  ;;  %v3517_v36 = vsel %vm3383_vm4, %v2123_v10, -inf  ;;  %v18504_v2 = vpop.f32.mrb[35].mxu0 }
 0x138   : > { %v3556_v47 = vmax.f32 %v3554_v1, %v3555_v15  ;;  %v3562_v28 = vrot.slane %v3561_v16, 2  ;;  %v3569_v29 = vrot.slane %v3568_v17, 2  ;;  %v3575_v59 = vmax.f32 %v3573_v7, %v3574_v31 }
 0x139   : > { %v3498_v33 = vmax.f32 %v3496_v12, %v3497_v21  ;;  %v3504_v48 = vrot.slane %v3503_v22, 4  ;;  %v3512_v34 = vmax.f32 %v3510_v14, %v3511_v55  ;;  %v3518_v40 = vrot.slane %v3517_v36, 4 }
 0x13a   : > { %v3557_v13 = vrot.slane %v3556_v47, 1  ;;  %v3563_v44 = vmax.f32 %v3561_v16, %v3562_v28  ;;  %v3570_v45 = vmax.f32 %v3568_v17, %v3569_v29  ;;  %v3576_v38 = vrot.slane %v3575_v59, 2 }
 0x13b   : > { %v3499_v49 = vrot.slane %v3498_v33, 2  ;;  %v3505_v50 = vmax.f32 %v3503_v22, %v3504_v48  ;;  %v3513_v51 = vrot.slane %v3512_v34, 2  ;;  %v3519_v56 = vmax.f32 %v3517_v36, %v3518_v40 }
 0x13c   : > { %v3558_v57 = vmax.f32 %v3556_v47, %v3557_v13  ;;  %v3564_v63 = vrot.slane %v3563_v44, 1  ;;  %v3571_v0 = vrot.slane %v3570_v45, 1  ;;  %v3577_v61 = vmax.f32 %v3575_v59, %v3576_v38  ;;  %v18506_v1 = vpop.f32.mrb[36].mxu0 }
 0x13d   : > { %v3500_v3 = vmax.f32 %v3498_v33, %v3499_v49  ;;  %v3506_v5 = vrot.slane %v3505_v50, 2  ;;  %v3514_v7 = vmax.f32 %v3512_v34, %v3513_v51  ;;  %v3520_v10 = vrot.slane %v3519_v56, 2  ;;  %v18508_v12 = vpop.f32.mrb[37].mxu0 }
 0x13e   : > { %v3565_v14 = vmax.f32 %v3563_v44, %v3564_v63  ;;  %v3572_v15 = vmax.f32 %v3570_v45, %v3571_v0  ;;  %v3578_v16 = vrot.slane %v3577_v61, 1  ;;  %v2158_v17 = vcombine.high %v18485_v62, %v18485_v62  ;;  %v18512_v31 = vpop.f32.mrb[38].mxu0 }
 0x13f   : > { %v3501_v21 = vrot.slane %v3500_v3, 1  ;;  %v3507_v22 = vmax.f32 %v3505_v50, %v3506_v5  ;;  %v3515_v55 = vrot.slane %v3514_v7, 1  ;;  %v3521_v36 = vmax.f32 %v3519_v56, %v3520_v10  ;;  %v18514_v47 = vpop.f32.mrb[39].mxu0 }
 0x140   : > { %v3579_v28 = vmax.f32 %v3577_v61, %v3578_v16  ;;  %v5514_v29 = vsel %vm5486_vm5, %v3565_v14, %v3558_v57  ;;  %v2165_v59 = vrot.slane %v18485_v62, %v18324_v37  ;;  %v2172_v33 = vrot.slane %v2158_v17, %v18324_v37 }
 0x141   : > { %v5515_v48 = vsel %vm5488_vm6, %v3572_v15, %v5514_v29  ;;  %v3502_v34 = vmax.f32 %v3500_v3, %v3501_v21  ;;  %v3508_v40 = vrot.slane %v3507_v22, 1  ;;  %v3516_v13 = vmax.f32 %v3514_v7, %v3515_v55 }
 0x142   : > { %v3522_v44 = vrot.slane %v3521_v36, 1  ;;  %v2173_v45 = vcombine.high %v2165_v59, %v2165_v59  ;;  %v2174_v38 = vcombine.high %v2172_v33, %v2172_v33  ;;  %v3580_v49 = vsel %vm3383_vm4, %v2165_v59, -inf }
 0x143   : > { %v3509_v50 = vmax.f32 %v3507_v22, %v3508_v40  ;;  %v3581_v51 = vrot.slane %v3580_v49, 4  ;;  %v3594_v56 = vsel %vm3383_vm4, %v2172_v33, -inf  ;;  %v5516_v57 = vsel %vm5490_vm7, %v3579_v28, %v5515_v48 }
 0x144   : > { %v3523_v63 = vmax.f32 %v3521_v36, %v3522_v44  ;;  %v3587_v62 = vsel %vm3383_vm4, %v2173_v45, -inf  ;;  %v3595_v0 = vrot.slane %v3594_v56, 4  ;;  %v3601_v61 = vsel %vm3383_vm4, %v2174_v38, -inf  ;;  %v18548_v44 = vpop.f32.mrb[40].mxu0 }
 0x145   : > { %v5507_v3 = vsel %vm5486_vm5, %v3509_v50, %v3502_v34  ;;  %v3582_v5 = vmax.f32 %v3580_v49, %v3581_v51  ;;  %v3588_v7 = vrot.slane %v3587_v62, 4  ;;  %v3602_v10 = vrot.slane %v3601_v61, 4 }
 0x146   : > { %v5508_v14 = vsel %vm5488_vm6, %v3516_v13, %v5507_v3  ;;  %v3596_v15 = vmax.f32 %v3594_v56, %v3595_v0  ;;  %v1800_v16 = vmax.f32 %v18449_v19, %v18488_v53  ;;  %v18533_v17 = vsel %vm1782_vm3, %v1672_v41, -inf }
 0x147   : > { %v3583_v21 = vrot.slane %v3582_v5, 2  ;;  %v3589_v22 = vmax.f32 %v3587_v62, %v3588_v7  ;;  %v3603_v55 = vmax.f32 %v3601_v61, %v3602_v10  ;;  %v18536_v36 = vsel %vm5490_vm7, %v3523_v63, %v5508_v14 }
 0x148   : > { %v3597_v28 = vrot.slane %v3596_v15, 2  ;;  %v2124_v29 = vcombine.high %v1800_v16, %v1800_v16  ;;  %v2131_v59 = vrot.slane %v1800_v16, %v18324_v37  ;;  %v18542_v33 = vsel %vm1782_vm3, %v1670_v18, -inf  ;;  %v18550_v18 = vpop.f32.mrb[41].mxu0 }
 0x149   : > { %v3584_v19 = vmax.f32 %v3582_v5, %v3583_v21  ;;  %v3590_v30 = vrot.slane %v3589_v22, 2  ;;  %v3604_v53 = vrot.slane %v3603_v55, 2  ;;  %v1219_v41 = vadd.f32 %v18387_v23, %v18306_v9  ;;  %v18555_v10 = vpop.f32.mrb[42].mxu0 }
 0x14a   : > { %v3598_v48 = vmax.f32 %v3596_v15, %v3597_v28  ;;  %v2138_v34 = vrot.slane %v2124_v29, %v18324_v37  ;;  %v2139_v40 = vcombine.high %v2131_v59, %v2131_v59  ;;  %v3524_v13 = vsel %vm3383_vm4, %v2131_v59, -inf }
 0x14b   : > { %v3585_v45 = vrot.slane %v3584_v19, 1  ;;  %v3591_v38 = vmax.f32 %v3589_v22, %v3590_v30  ;;  %v3605_v43 = vmax.f32 %v3603_v55, %v3604_v53  ;;  %v3525_v49 = vrot.slane %v3524_v13, 4  ;;  %v18562_v30 = vld [vmem:[%s22454_s2] ss:$0 sm:$0xff] }
 0x14c   : > { %v3599_v50 = vrot.slane %v3598_v48, 1  ;;  %v2140_v51 = vcombine.high %v2138_v34, %v2138_v34  ;;  %v3531_v56 = vsel %vm3383_vm4, %v2139_v40, -inf  ;;  %v3538_v9 = vsel %vm3383_vm4, %v2138_v34, -inf }
 0x14d   : > { %v3586_v23 = vmax.f32 %v3584_v19, %v3585_v45  ;;  %v3592_v63 = vrot.slane %v3591_v38, 1  ;;  %v3606_v62 = vrot.slane %v3605_v43, 1  ;;  %v3526_v0 = vmax.f32 %v3524_v13, %v3525_v49 }
 0x14e   : > { %v3600_v61 = vmax.f32 %v3598_v48, %v3599_v50  ;;  %v3532_v3 = vrot.slane %v3531_v56, 4  ;;  %v3539_v5 = vrot.slane %v3538_v9, 4  ;;  %v3545_v7 = vsel %vm3383_vm4, %v2140_v51, -inf }
 0x14f   : > { %v3593_v14 = vmax.f32 %v3591_v38, %v3592_v63  ;;  %v3607_v15 = vmax.f32 %v3605_v43, %v3606_v62  ;;  %v5517_v16 = vsel %vm5492_vm8, %v3586_v23, %v5516_v57  ;;  %v3527_v21 = vrot.slane %v3526_v0, 2 }
 0x150   : > { %v3533_v22 = vmax.f32 %v3531_v56, %v3532_v3  ;;  %v3540_v55 = vmax.f32 %v3538_v9, %v3539_v5  ;;  %v3546_v28 = vrot.slane %v3545_v7, 4  ;;  %v1673_v29 = vmax.f32 %v1219_v41, 0.0  ;;  %v18569_v41 = vpop.f32.mrb[43].mxu0 }
 0x151   : > { %v5518_v59 = vsel %vm5494_vm9, %v3593_v14, %v5517_v16  ;;  %v3528_v19 = vmax.f32 %v3526_v0, %v3527_v21  ;;  %v1211_v53 = vadd.f32 %v18562_v30, %v18391_v27  ;;  %v1232_v48 = vadd.f32 %v18562_v30, %v18406_v54 }
 0x152   : > { %v5519_v57 = vsel %vm5496_vm10, %v3600_v61, %v5518_v59  ;;  %v3534_v34 = vrot.slane %v3533_v22, 2  ;;  %v3541_v40 = vrot.slane %v3540_v55, 2  ;;  %v3547_v13 = vmax.f32 %v3545_v7, %v3546_v28 }
 0x153   : > { %v5520_v45 = vsel %vm5498_vm11, %v3607_v15, %v5519_v57  ;;  %v3529_v38 = vrot.slane %v3528_v19, 1  ;;  %v1816_v43 = vsel %vm1782_vm3, %v1673_v29, -inf  ;;  %v1671_v49 = vmax.f32 %v1211_v53, 0.0 }
 0x154   : > { %5753 = vst.msk [vmem:[#allocation2 + $0x39] sm:$0xff] %vm1782_vm3, %v5520_v45  ;;  %v3535_v50 = vmax.f32 %v3533_v22, %v3534_v34  ;;  %v3542_v27 = vmax.f32 %v3540_v55, %v3541_v40  ;;  %v3548_v51 = vrot.slane %v3547_v13, 2  ;;  %v1676_v56 = vmax.f32 %v1232_v48, 0.0 }
 0x155   : > { %v3530_v54 = vmax.f32 %v3528_v19, %v3529_v38  ;;  %v18575_v9 = vsel %vm1782_vm3, %v1671_v49, -inf  ;;  %v1224_v23 = vadd.f32 %v18562_v30, %v18412_v60  ;;  %v1235_v63 = vadd.f32 %v18562_v30, %v18414_v4  ;;  %v18599_v38 = vpop.f32.mrb[44].mxu0 }
 0x156   : > { %v3536_v62 = vrot.slane %v3535_v50, 1  ;;  %v3543_v0 = vrot.slane %v3542_v27, 1  ;;  %v3549_v61 = vmax.f32 %v3547_v13, %v3548_v51  ;;  %v1814_v3 = vsel %vm1782_vm3, %v1676_v56, -inf }
 0x157   : > { %v5510_v5 = vsel %vm5492_vm8, %v3530_v54, %v18536_v36  ;;  %v1815_v7 = vmax.f32 %v18533_v17, %v1814_v3  ;;  %v1674_v14 = vmax.f32 %v1224_v23, 0.0  ;;  %v1677_v15 = vmax.f32 %v1235_v63, 0.0 }
 0x158   : > { %v3537_v16 = vmax.f32 %v3535_v50, %v3536_v62  ;;  %v3544_v21 = vmax.f32 %v3542_v27, %v3543_v0  ;;  %v3550_v22 = vrot.slane %v3549_v61, 1  ;;  %v18587_v60 = vadd.f32 %v18562_v30, %v18418_v11  ;;  %v18604_v27 = vpop.f32.mrb[45].mxu0 }
 0x159   : > { %v2209_v4 = vcombine.high %v1815_v7, %v1815_v7  ;;  %v2216_v55 = vrot.slane %v1815_v7, %v18324_v37  ;;  %v1808_v28 = vsel %vm1782_vm3, %v1674_v14, -inf  ;;  %v1817_v29 = vsel %vm1782_vm3, %v1677_v15, -inf  ;;  %v18607_v63 = vpop.f32.mrb[46].mxu0 }
 0x15a   : > { %v3551_v59 = vmax.f32 %v3549_v61, %v3550_v22  ;;  %v5511_v36 = vsel %vm5494_vm9, %v3537_v16, %v5510_v5  ;;  %v1809_v17 = vmax.f32 %v18542_v33, %v1808_v28  ;;  %v1818_v19 = vmax.f32 %v1816_v43, %v1817_v29 }
 0x15b   : > { %v5512_v53 = vsel %vm5496_vm10, %v3544_v21, %v5511_v36  ;;  %v2223_v48 = vrot.slane %v2209_v4, %v18324_v37  ;;  %v2224_v57 = vcombine.high %v2216_v55, %v2216_v55  ;;  %v3664_v11 = vsel %vm3383_vm4, %v2216_v55, -inf }
 0x15c   : > { %v5513_v34 = vsel %vm5498_vm11, %v3551_v59, %v5512_v53  ;;  %v3665_v40 = vrot.slane %v3664_v11, 4  ;;  %v2175_v13 = vcombine.high %v1809_v17, %v1809_v17  ;;  %v2182_v45 = vrot.slane %v1809_v17, %v18324_v37 }
 0x15d   : > { %5752 = vst.msk [vmem:[#allocation2 + $0x31] sm:$0xff] %vm1782_vm3, %v5513_v34  ;;  %v2225_v49 = vcombine.high %v2223_v48, %v2223_v48  ;;  %v3671_v33 = vsel %vm3383_vm4, %v2224_v57, -inf  ;;  %v3678_v43 = vsel %vm3383_vm4, %v2223_v48, -inf  ;;  %v2226_v50 = vcombine.high %v1818_v19, %v1818_v19 }
 0x15e   : > { %v3666_v51 = vmax.f32 %v3664_v11, %v3665_v40  ;;  %v3672_v56 = vrot.slane %v3671_v33, 4  ;;  %v3679_v54 = vrot.slane %v3678_v43, 4  ;;  %v2189_v23 = vrot.slane %v2175_v13, %v18324_v37 }
 0x15f   : > { %v3685_v62 = vsel %vm3383_vm4, %v2225_v49, -inf  ;;  %v2190_v0 = vcombine.high %v2182_v45, %v2182_v45  ;;  %v3608_v61 = vsel %vm3383_vm4, %v2182_v45, -inf  ;;  %v2233_v3 = vrot.slane %v1818_v19, %v18324_v37 }
 0x160   : > { %v3667_v5 = vrot.slane %v3666_v51, 2  ;;  %v3673_v7 = vmax.f32 %v3671_v33, %v3672_v56  ;;  %v3680_v14 = vmax.f32 %v3678_v43, %v3679_v54  ;;  %v3686_v15 = vrot.slane %v3685_v62, 4  ;;  %v18615_v54 = vpop.f32.mrb[47].mxu0 }
 0x161   : > { %v2191_v16 = vcombine.high %v2189_v23, %v2189_v23  ;;  %v3609_v21 = vrot.slane %v3608_v61, 4  ;;  %v3615_v22 = vsel %vm3383_vm4, %v2190_v0, -inf  ;;  %v3622_v4 = vsel %vm3383_vm4, %v2189_v23, -inf }
 0x162   : > { %v3668_v55 = vmax.f32 %v3666_v51, %v3667_v5  ;;  %v3674_v28 = vrot.slane %v3673_v7, 2  ;;  %v3681_v29 = vrot.slane %v3680_v14, 2  ;;  %v3687_v59 = vmax.f32 %v3685_v62, %v3686_v15 }
 0x163   : > { %v3610_v36 = vmax.f32 %v3608_v61, %v3609_v21  ;;  %v3616_v17 = vrot.slane %v3615_v22, 4  ;;  %v3623_v53 = vrot.slane %v3622_v4, 4  ;;  %v3629_v48 = vsel %vm3383_vm4, %v2191_v16, -inf }
 0x164   : > { %v3669_v19 = vrot.slane %v3668_v55, 1  ;;  %v3675_v57 = vmax.f32 %v3673_v7, %v3674_v28  ;;  %v3682_v11 = vmax.f32 %v3680_v14, %v3681_v29  ;;  %v3688_v34 = vrot.slane %v3687_v59, 2 }
 0x165   : > { %v3611_v40 = vrot.slane %v3610_v36, 2  ;;  %v3617_v13 = vmax.f32 %v3615_v22, %v3616_v17  ;;  %v3624_v45 = vmax.f32 %v3622_v4, %v3623_v53  ;;  %v3630_v49 = vrot.slane %v3629_v48, 4 }
 0x166   : > { %v3670_v33 = vmax.f32 %v3668_v55, %v3669_v19  ;;  %v3676_v43 = vrot.slane %v3675_v57, 1  ;;  %v3683_v56 = vrot.slane %v3682_v11, 1  ;;  %v3689_v51 = vmax.f32 %v3687_v59, %v3688_v34 }
 0x167   : > { %v3612_v23 = vmax.f32 %v3610_v36, %v3611_v40  ;;  %v3618_v62 = vrot.slane %v3617_v13, 2  ;;  %v3625_v0 = vrot.slane %v3624_v45, 2  ;;  %v3631_v61 = vmax.f32 %v3629_v48, %v3630_v49 }
 0x168   : > { %v3677_v5 = vmax.f32 %v3675_v57, %v3676_v43  ;;  %v3684_v15 = vmax.f32 %v3682_v11, %v3683_v56  ;;  %v3690_v16 = vrot.slane %v3689_v51, 1  ;;  %v2240_v7 = vrot.slane %v2226_v50, %v18324_v37 }
 0x169   : > { %v3613_v14 = vrot.slane %v3612_v23, 1  ;;  %v3619_v21 = vmax.f32 %v3617_v13, %v3618_v62  ;;  %v3626_v22 = vmax.f32 %v3624_v45, %v3625_v0  ;;  %v3632_v4 = vrot.slane %v3631_v61, 2 }
 0x16a   : > { %v3691_v28 = vmax.f32 %v3689_v51, %v3690_v16  ;;  %v5528_v55 = vsel %vm5486_vm5, %v3677_v5, %v3670_v33  ;;  %v2241_v29 = vcombine.high %v2233_v3, %v2233_v3  ;;  %v2242_v59 = vcombine.high %v2240_v7, %v2240_v7 }
 0x16b   : > { %v5529_v17 = vsel %vm5488_vm6, %v3684_v15, %v5528_v55  ;;  %v3614_v36 = vmax.f32 %v3612_v23, %v3613_v14  ;;  %v3620_v53 = vrot.slane %v3619_v21, 1  ;;  %v3627_v19 = vrot.slane %v3626_v22, 1 }
 0x16c   : > { %v3633_v48 = vmax.f32 %v3631_v61, %v3632_v4  ;;  %v3692_v57 = vsel %vm3383_vm4, %v2233_v3, -inf  ;;  %v3699_v11 = vsel %vm3383_vm4, %v2241_v29, -inf  ;;  %v3706_v50 = vsel %vm3383_vm4, %v2240_v7, -inf }
 0x16d   : > { %v3621_v34 = vmax.f32 %v3619_v21, %v3620_v53  ;;  %v3628_v40 = vmax.f32 %v3626_v22, %v3627_v19  ;;  %v3693_v13 = vrot.slane %v3692_v57, 4  ;;  %v3700_v45 = vrot.slane %v3699_v11, 4 }
 0x16e   : > { %v3634_v49 = vrot.slane %v3633_v48, 1  ;;  %v3707_v33 = vrot.slane %v3706_v50, 4  ;;  %v3713_v43 = vsel %vm3383_vm4, %v2242_v59, -inf  ;;  %v5530_v56 = vsel %vm5490_vm7, %v3691_v28, %v5529_v17 }
 0x16f   : > { %v5521_v51 = vsel %vm5486_vm5, %v3621_v34, %v3614_v36  ;;  %v3694_v23 = vmax.f32 %v3692_v57, %v3693_v13  ;;  %v3701_v62 = vmax.f32 %v3699_v11, %v3700_v45  ;;  %v3714_v0 = vrot.slane %v3713_v43, 4 }
 0x170   : > { %v3635_v3 = vmax.f32 %v3633_v48, %v3634_v49  ;;  %v5522_v61 = vsel %vm5488_vm6, %v3628_v40, %v5521_v51  ;;  %v3708_v5 = vmax.f32 %v3706_v50, %v3707_v33  ;;  %v1675_v15 = vmax.f32 %v18587_v60, 0.0  ;;  %v18639_v48 = vpop.f32.mrb[48].mxu0 }
 0x171   : > { %v3695_v16 = vrot.slane %v3694_v23, 2  ;;  %v3702_v7 = vrot.slane %v3701_v62, 2  ;;  %v3715_v14 = vmax.f32 %v3713_v43, %v3714_v0  ;;  %v1248_v21 = vadd.f32 %v18562_v30, %v18425_v39 }
 0x172   : > { %v3709_v22 = vrot.slane %v3708_v5, 2  ;;  %v1811_v4 = vsel %vm1782_vm3, %v1675_v15, -inf  ;;  %v18632_v28 = vsel %vm5490_vm7, %v3635_v3, %v5522_v61  ;;  %v1240_v55 = vadd.f32 %v18562_v30, %v18428_v46  ;;  %v5836_v15 = vld [vmem:[#allocation2 + $0x19] sm:$0xff] }
 0x173   : > { %v3696_v29 = vmax.f32 %v3694_v23, %v3695_v16  ;;  %v3703_v59 = vmax.f32 %v3701_v62, %v3702_v7  ;;  %v3716_v17 = vrot.slane %v3715_v14, 2  ;;  %v1812_v60 = vmax.f32 %v18575_v9, %v1811_v4  ;;  %v5837_v16 = vld [vmem:[#allocation2 + $0x21] sm:$0xff]  ;;  %v18651_v4 = vpop.f32.mrb[49].mxu0 }
 0x174   : > { %v3710_v36 = vmax.f32 %v3708_v5, %v3709_v22  ;;  %v1680_v53 = vmax.f32 %v1248_v21, 0.0  ;;  %v1678_v19 = vmax.f32 %v1240_v55, 0.0  ;;  %v1251_v39 = vadd.f32 %v18562_v30, %v18433_v52 }
 0x175   : > { %v3697_v57 = vrot.slane %v3696_v29, 1  ;;  %v3704_v11 = vrot.slane %v3703_v59, 1  ;;  %v3717_v50 = vmax.f32 %v3715_v14, %v3716_v17  ;;  %v2192_v34 = vcombine.high %v1812_v60, %v1812_v60 }
 0x176   : > { %v3711_v40 = vrot.slane %v3710_v36, 1  ;;  %v2199_v46 = vrot.slane %v1812_v60, %v18324_v37  ;;  %v1825_v13 = vsel %vm1782_vm3, %v1680_v53, -inf  ;;  %v1819_v45 = vsel %vm1782_vm3, %v1678_v19, -inf }
 0x177   : > { %v3698_v9 = vmax.f32 %v3696_v29, %v3697_v57  ;;  %v3705_v49 = vmax.f32 %v3703_v59, %v3704_v11  ;;  %v3718_v33 = vrot.slane %v3717_v50, 1  ;;  %v2206_v43 = vrot.slane %v2192_v34, %v18324_v37 }
 0x178   : > { %v3712_v51 = vmax.f32 %v3710_v36, %v3711_v40  ;;  %v2207_v52 = vcombine.high %v2199_v46, %v2199_v46  ;;  %v3636_v23 = vsel %vm3383_vm4, %v2199_v46, -inf  ;;  %v1681_v62 = vmax.f32 %v1251_v39, 0.0 }
 0x179   : > { %v3719_v0 = vmax.f32 %v3717_v50, %v3718_v33  ;;  %v5531_v3 = vsel %vm5492_vm8, %v3698_v9, %v5530_v56  ;;  %v2208_v61 = vcombine.high %v2206_v43, %v2206_v43  ;;  %v3637_v5 = vrot.slane %v3636_v23, 4 }
 0x17a   : > { %v5532_v7 = vsel %vm5494_vm9, %v3705_v49, %v5531_v3  ;;  %v3643_v14 = vsel %vm3383_vm4, %v2207_v52, -inf  ;;  %v3650_v21 = vsel %vm3383_vm4, %v2206_v43, -inf  ;;  %v1828_v22 = vsel %vm1782_vm3, %v1681_v62, -inf  ;;  %v18666_v43 = vpop.f32.mrb[50].mxu0 }
 0x17b   : > { %v5533_v55 = vsel %vm5496_vm10, %v3712_v51, %v5532_v7  ;;  %v3638_v29 = vmax.f32 %v3636_v23, %v3637_v5  ;;  %v3644_v59 = vrot.slane %v3643_v14, 4  ;;  %v3651_v17 = vrot.slane %v3650_v21, 4 }
 0x17c   : > { %v5534_v56 = vsel %vm5498_vm11, %v3719_v0, %v5533_v55  ;;  %v3657_v60 = vsel %vm3383_vm4, %v2208_v61, -inf  ;;  %v1243_v36 = vadd.f32 %v18562_v30, %v18438_v58  ;;  %v5867_v53 = vpack.c.bf16 %v5837_v16, %v5836_v15  ;;  %v18671_v0 = vpop.f32.mrb[51].mxu0 }
 0x17d   : > { %5755 = vst.msk [vmem:[#allocation2 + $0x51] sm:$0xff] %vm1782_vm3, %v5534_v56  ;;  %v3639_v19 = vrot.slane %v3638_v29, 2  ;;  %v3645_v39 = vmax.f32 %v3643_v14, %v3644_v59  ;;  %v3652_v57 = vmax.f32 %v3650_v21, %v3651_v17  ;;  %v3658_v11 = vrot.slane %v3657_v60, 4 }
 0x17e   : > { %v1679_v50 = vmax.f32 %v1243_v36, 0.0  ;;  %16220 = vmatmul.mubr.msk.bf16.vlgmr.msra.gmra.mrb[8].mxu1 %vm1782_vm3, %v5867_v53  ;;  %v1264_v34 = vadd.f32 %v18562_v30, %v18455_v25  ;;  %v1256_v40 = vadd.f32 %v18562_v30, %v18461_v26  ;;  %v1267_v46 = vadd.f32 %v18562_v30, %v18472_v32 }
 0x17f   : > { %v3640_v58 = vmax.f32 %v3638_v29, %v3639_v19  ;;  %v3646_v9 = vrot.slane %v3645_v39, 2  ;;  %v3653_v49 = vrot.slane %v3652_v57, 2  ;;  %v3659_v33 = vmax.f32 %v3657_v60, %v3658_v11 }
 0x180   : > { %v18669_v51 = vsel %vm1782_vm3, %v1679_v50, -inf  ;;  %v1684_v52 = vmax.f32 %v1264_v34, 0.0  ;;  %v1682_v23 = vmax.f32 %v1256_v40, 0.0  ;;  %v1685_v62 = vmax.f32 %v1267_v46, 0.0 }
 0x181   : > { %v3641_v25 = vrot.slane %v3640_v58, 1  ;;  %v3647_v3 = vmax.f32 %v3645_v39, %v3646_v9  ;;  %v3654_v26 = vmax.f32 %v3652_v57, %v3653_v49  ;;  %v3660_v61 = vrot.slane %v3659_v33, 2 }
 0x182   : > { %v1826_v32 = vsel %vm1782_vm3, %v1684_v52, -inf  ;;  %v1820_v5 = vsel %vm1782_vm3, %v1682_v23, -inf  ;;  %v1829_v15 = vsel %vm1782_vm3, %v1685_v62, -inf  ;;  %v18678_v16 = vadd.f32 %v18562_v30, %v18476_v35 }
 0x183   : > { %v3642_v7 = vmax.f32 %v3640_v58, %v3641_v25  ;;  %v3648_v14 = vrot.slane %v3647_v3, 1  ;;  %v3655_v21 = vrot.slane %v3654_v26, 1  ;;  %v3661_v55 = vmax.f32 %v3659_v33, %v3660_v61  ;;  %v18697_v58 = vpop.f32.mrb[52].mxu0 }
 0x184   : > { %v1827_v29 = vmax.f32 %v1825_v13, %v1826_v32  ;;  %v1821_v59 = vmax.f32 %v1819_v45, %v1820_v5  ;;  %v18680_v17 = vmax.f32 %v1828_v22, %v1829_v15  ;;  %v1683_v56 = vmax.f32 %v18678_v16, 0.0  ;;  %v18701_v23 = vpop.f32.mrb[53].mxu0 }
 0x185   : > { %v3649_v60 = vmax.f32 %v3647_v3, %v3648_v14  ;;  %v3656_v36 = vmax.f32 %v3654_v26, %v3655_v21  ;;  %v3662_v53 = vrot.slane %v3661_v55, 1  ;;  %v5524_v19 = vsel %vm5492_vm8, %v3642_v7, %v18632_v28  ;;  %v18707_v61 = vpop.f32.mrb[54].mxu0 }
 0x186   : > { %v2277_v39 = vcombine.high %v1827_v29, %v1827_v29  ;;  %v2284_v35 = vrot.slane %v1827_v29, %v18324_v37  ;;  %v2243_v57 = vcombine.high %v1821_v59, %v1821_v59  ;;  %v2250_v11 = vrot.slane %v1821_v59, %v18324_v37 }
 0x187   : > { %v3663_v50 = vmax.f32 %v3661_v55, %v3662_v53  ;;  %v5525_v13 = vsel %vm5494_vm9, %v3649_v60, %v5524_v19  ;;  %v2294_v45 = vcombine.high %v18680_v17, %v18680_v17  ;;  %v18692_v22 = vrot.slane %v18680_v17, %v18324_v37 }
 0x188   : > { %v5526_v34 = vsel %vm5496_vm10, %v3656_v36, %v5525_v13  ;;  %v2291_v28 = vrot.slane %v2277_v39, %v18324_v37  ;;  %v2292_v40 = vcombine.high %v2284_v35, %v2284_v35  ;;  %v3776_v46 = vsel %vm3383_vm4, %v2284_v35, -inf }
 0x189   : > { %v5527_v9 = vsel %vm5498_vm11, %v3663_v50, %v5526_v34  ;;  %v3777_v49 = vrot.slane %v3776_v46, 4  ;;  %v2257_v33 = vrot.slane %v2243_v57, %v18324_v37  ;;  %v2258_v52 = vcombine.high %v2250_v11, %v2250_v11 }
 0x18a   : > { %5754 = vst.msk [vmem:[#allocation2 + $0x49] sm:$0xff] %vm1782_vm3, %v5527_v9  ;;  %v2293_v62 = vcombine.high %v2291_v28, %v2291_v28  ;;  %v3783_v25 = vsel %vm3383_vm4, %v2292_v40, -inf  ;;  %v3790_v3 = vsel %vm3383_vm4, %v2291_v28, -inf  ;;  %v3720_v26 = vsel %vm3383_vm4, %v2250_v11, -inf }
 0x18b   : > { %v3778_v32 = vmax.f32 %v3776_v46, %v3777_v49  ;;  %v3784_v5 = vrot.slane %v3783_v25, 4  ;;  %v3791_v15 = vrot.slane %v3790_v3, 4  ;;  %v2259_v7 = vcombine.high %v2257_v33, %v2257_v33 }
 0x18c   : > { %v3797_v14 = vsel %vm3383_vm4, %v2293_v62, -inf  ;;  %v3721_v21 = vrot.slane %v3720_v26, 4  ;;  %v3727_v55 = vsel %vm3383_vm4, %v2258_v52, -inf  ;;  %v3734_v29 = vsel %vm3383_vm4, %v2257_v33, -inf }
 0x18d   : > { %v3779_v59 = vrot.slane %v3778_v32, 2  ;;  %v3785_v17 = vmax.f32 %v3783_v25, %v3784_v5  ;;  %v3792_v60 = vmax.f32 %v3790_v3, %v3791_v15  ;;  %v3798_v36 = vrot.slane %v3797_v14, 4 }
 0x18e   : > { %v3722_v53 = vmax.f32 %v3720_v26, %v3721_v21  ;;  %v3728_v19 = vrot.slane %v3727_v55, 4  ;;  %v3735_v39 = vrot.slane %v3734_v29, 4  ;;  %v3741_v35 = vsel %vm3383_vm4, %v2259_v7, -inf }
 0x18f   : > { %v3780_v57 = vmax.f32 %v3778_v32, %v3779_v59  ;;  %v3786_v11 = vrot.slane %v3785_v17, 2  ;;  %v3793_v50 = vrot.slane %v3792_v60, 2  ;;  %v3799_v13 = vmax.f32 %v3797_v14, %v3798_v36  ;;  %v18713_v36 = vpop.f32.mrb[55].mxu0 }
 0x190   : > { %v3723_v34 = vrot.slane %v3722_v53, 2  ;;  %v3729_v28 = vmax.f32 %v3727_v55, %v3728_v19  ;;  %v3736_v40 = vmax.f32 %v3734_v29, %v3735_v39  ;;  %v3742_v46 = vrot.slane %v3741_v35, 4 }
 0x191   : > { %v3781_v9 = vrot.slane %v3780_v57, 1  ;;  %v3787_v49 = vmax.f32 %v3785_v17, %v3786_v11  ;;  %v3794_v33 = vmax.f32 %v3792_v60, %v3793_v50  ;;  %v3800_v52 = vrot.slane %v3799_v13, 2 }
 0x192   : > { %v3724_v62 = vmax.f32 %v3722_v53, %v3723_v34  ;;  %v3730_v25 = vrot.slane %v3729_v28, 2  ;;  %v3737_v3 = vrot.slane %v3736_v40, 2  ;;  %v3743_v26 = vmax.f32 %v3741_v35, %v3742_v46 }
 0x193   : > { %v3782_v5 = vmax.f32 %v3780_v57, %v3781_v9  ;;  %v3788_v15 = vrot.slane %v3787_v49, 1  ;;  %v3795_v21 = vrot.slane %v3794_v33, 1  ;;  %v3801_v7 = vmax.f32 %v3799_v13, %v3800_v52 }
 0x194   : > { %v3725_v32 = vrot.slane %v3724_v62, 1  ;;  %v3731_v59 = vmax.f32 %v3729_v28, %v3730_v25  ;;  %v3738_v42 = vmax.f32 %v3736_v40, %v3737_v3  ;;  %v3744_v14 = vrot.slane %v3743_v26, 2 }
 0x195   : > { %v3789_v55 = vmax.f32 %v3787_v49, %v3788_v15  ;;  %v3796_v29 = vmax.f32 %v3794_v33, %v3795_v21  ;;  %v3802_v19 = vrot.slane %v3801_v7, 1  ;;  %v2308_v17 = vrot.slane %v2294_v45, %v18324_v37 }
 0x196   : > { %v3726_v60 = vmax.f32 %v3724_v62, %v3725_v32  ;;  %v3732_v53 = vrot.slane %v3731_v59, 1  ;;  %v3739_v39 = vrot.slane %v3738_v42, 1  ;;  %v3745_v11 = vmax.f32 %v3743_v26, %v3744_v14 }
 0x197   : > { %v3803_v35 = vmax.f32 %v3801_v7, %v3802_v19  ;;  %v5542_v57 = vsel %vm5486_vm5, %v3789_v55, %v3782_v5  ;;  %v2309_v50 = vcombine.high %v18692_v22, %v18692_v22  ;;  %v2310_v13 = vcombine.high %v2308_v17, %v2308_v17 }
 0x198   : > { %v5543_v34 = vsel %vm5488_vm6, %v3796_v29, %v5542_v57  ;;  %v3733_v28 = vmax.f32 %v3731_v59, %v3732_v53  ;;  %v3740_v40 = vmax.f32 %v3738_v42, %v3739_v39  ;;  %v3746_v46 = vrot.slane %v3745_v11, 1 }
 0x199   : > { %v3804_v9 = vsel %vm3383_vm4, %v18692_v22, -inf  ;;  %v3811_v45 = vsel %vm3383_vm4, %v2309_v50, -inf  ;;  %v3818_v49 = vsel %vm3383_vm4, %v2308_v17, -inf  ;;  %v3825_v33 = vsel %vm3383_vm4, %v2310_v13, -inf }
 0x19a   : > { %v3747_v52 = vmax.f32 %v3745_v11, %v3746_v46  ;;  %v5535_v62 = vsel %vm5486_vm5, %v3733_v28, %v3726_v60  ;;  %v3805_v25 = vrot.slane %v3804_v9, 4  ;;  %v3812_v3 = vrot.slane %v3811_v45, 4 }
 0x19b   : > { %v5536_v26 = vsel %vm5488_vm6, %v3740_v40, %v5535_v62  ;;  %v3819_v5 = vrot.slane %v3818_v49, 4  ;;  %v3826_v15 = vrot.slane %v3825_v33, 4  ;;  %v5544_v42 = vsel %vm5490_vm7, %v3803_v35, %v5543_v34  ;;  %v18742_v35 = vpop.f32.mrb[56].mxu0 }
 0x19c   : > { %v3806_v21 = vmax.f32 %v3804_v9, %v3805_v25  ;;  %v3813_v7 = vmax.f32 %v3811_v45, %v3812_v3  ;;  %v1823_v22 = vsel %vm1782_vm3, %v1683_v56, -inf  ;;  %v18732_v32 = vsel %vm5490_vm7, %v3747_v52, %v5536_v26 }
 0x19d   : > { %v3820_v59 = vmax.f32 %v3818_v49, %v3819_v5  ;;  %v3827_v14 = vmax.f32 %v3825_v33, %v3826_v15  ;;  %v1824_v55 = vmax.f32 %v18669_v51, %v1823_v22  ;;  %v1280_v29 = vadd.f32 %v18562_v30, %v18493_v6  ;;  %v18744_v6 = vpop.f32.mrb[57].mxu0 }
 0x19e   : > { %v3807_v19 = vrot.slane %v3806_v21, 2  ;;  %v3814_v17 = vrot.slane %v3813_v7, 2  ;;  %v1272_v60 = vadd.f32 %v18562_v30, %v18498_v8  ;;  %v1283_v16 = vadd.f32 %v18562_v30, %v18500_v20 }
 0x19f   : > { %v3821_v53 = vrot.slane %v3820_v59, 2  ;;  %v3828_v56 = vrot.slane %v3827_v14, 2  ;;  %v2260_v39 = vcombine.high %v1824_v55, %v1824_v55  ;;  %v2267_v11 = vrot.slane %v1824_v55, %v18324_v37 }
 0x1a0   : > { %v3808_v57 = vmax.f32 %v3806_v21, %v3807_v19  ;;  %v3815_v51 = vmax.f32 %v3813_v7, %v3814_v17  ;;  %v1688_v50 = vmax.f32 %v1280_v29, 0.0  ;;  %v1686_v13 = vmax.f32 %v1272_v60, 0.0 }
 0x1a1   : > { %v3822_v34 = vmax.f32 %v3820_v59, %v3821_v53  ;;  %v3829_v28 = vmax.f32 %v3827_v14, %v3828_v56  ;;  %v2274_v8 = vrot.slane %v2260_v39, %v18324_v37  ;;  %v2275_v40 = vcombine.high %v2267_v11, %v2267_v11  ;;  %v5838_v56 = vld [vmem:[#allocation2 + $0x31] sm:$0xff]  ;;  %v5839_v39 = vld [vmem:[#allocation2 + $0x39] sm:$0xff] }
 0x1a2   : > { %v3809_v46 = vrot.slane %v3808_v57, 1  ;;  %v3816_v20 = vrot.slane %v3815_v51, 1  ;;  %v3748_v9 = vsel %vm3383_vm4, %v2267_v11, -inf  ;;  %v1837_v45 = vsel %vm1782_vm3, %v1688_v50, -inf  ;;  %v18755_v11 = vpop.f32.mrb[58].mxu0 }
 0x1a3   : > { %v3823_v49 = vrot.slane %v3822_v34, 1  ;;  %v3830_v33 = vrot.slane %v3829_v28, 1  ;;  %v2276_v52 = vcombine.high %v2274_v8, %v2274_v8  ;;  %v3749_v62 = vrot.slane %v3748_v9, 4 }
 0x1a4   : > { %v3810_v25 = vmax.f32 %v3808_v57, %v3809_v46  ;;  %v3817_v3 = vmax.f32 %v3815_v51, %v3816_v20  ;;  %v3755_v26 = vsel %vm3383_vm4, %v2275_v40, -inf  ;;  %v3762_v5 = vsel %vm3383_vm4, %v2274_v8, -inf }
 0x1a5   : > { %v3824_v15 = vmax.f32 %v3822_v34, %v3823_v49  ;;  %v3831_v21 = vmax.f32 %v3829_v28, %v3830_v33  ;;  %v3750_v7 = vmax.f32 %v3748_v9, %v3749_v62  ;;  %v3756_v22 = vrot.slane %v3755_v26, 4 }
 0x1a6   : > { %v5545_v59 = vsel %vm5492_vm8, %v3810_v25, %v5544_v42  ;;  %v3763_v14 = vrot.slane %v3762_v5, 4  ;;  %v3769_v55 = vsel %vm3383_vm4, %v2276_v52, -inf  ;;  %v1831_v29 = vsel %vm1782_vm3, %v1686_v13, -inf }
 0x1a7   : > { %v5546_v19 = vsel %vm5494_vm9, %v3817_v3, %v5545_v59  ;;  %v3751_v17 = vrot.slane %v3750_v7, 2  ;;  %v3757_v60 = vmax.f32 %v3755_v26, %v3756_v22  ;;  %v3770_v53 = vrot.slane %v3769_v55, 4  ;;  %v18773_v26 = vpop.f32.mrb[59].mxu0 }
 0x1a8   : > { %v5547_v57 = vsel %vm5496_vm10, %v3824_v15, %v5546_v19  ;;  %v3764_v51 = vmax.f32 %v3762_v5, %v3763_v14  ;;  %v1689_v50 = vmax.f32 %v1283_v16, 0.0  ;;  %v1275_v42 = vadd.f32 %v18562_v30, %v18504_v2 }
 0x1a9   : > { %v5548_v34 = vsel %vm5498_vm11, %v3831_v21, %v5547_v57  ;;  %v3752_v28 = vmax.f32 %v3750_v7, %v3751_v17  ;;  %v3758_v13 = vrot.slane %v3757_v60, 2  ;;  %v3771_v8 = vmax.f32 %v3769_v55, %v3770_v53 }
 0x1aa   : > { %5757 = vst.msk [vmem:[#allocation2 + $0x69] sm:$0xff] %vm1782_vm3, %v5548_v34  ;;  %v3765_v40 = vrot.slane %v3764_v51, 2  ;;  %v1840_v46 = vsel %vm1782_vm3, %v1689_v50, -inf  ;;  %v1687_v20 = vmax.f32 %v1275_v42, 0.0  ;;  %v5868_v9 = vpack.c.bf16 %v5839_v39, %v5838_v56 }
 0x1ab   : > { %v3753_v49 = vrot.slane %v3752_v28, 1  ;;  %v3759_v33 = vmax.f32 %v3757_v60, %v3758_v13  ;;  %v3772_v52 = vrot.slane %v3771_v8, 2  ;;  %v1296_v16 = vadd.f32 %v18562_v30, %v18506_v1 }
 0x1ac   : > { %v3766_v62 = vmax.f32 %v3764_v51, %v3765_v40  ;;  %v18766_v2 = vsel %vm1782_vm3, %v1687_v20, -inf  ;;  %16223 = vmatprep.mubr.msk.bf16.mxu1 %vm1782_vm3, %v5868_v9  ;;  %v1288_v25 = vadd.f32 %v18562_v30, %v18508_v12  ;;  %v1299_v3 = vadd.f32 %v18562_v30, %v18512_v31 }
 0x1ad   : > { %v3754_v5 = vmax.f32 %v3752_v28, %v3753_v49  ;;  %v3760_v15 = vrot.slane %v3759_v33, 1  ;;  %v3773_v21 = vmax.f32 %v3771_v8, %v3772_v52  ;;  %v1692_v7 = vmax.f32 %v1296_v16, 0.0 }
 0x1ae   : > { %v3767_v22 = vrot.slane %v3766_v62, 1  ;;  %v1690_v1 = vmax.f32 %v1288_v25, 0.0  ;;  %v1693_v59 = vmax.f32 %v1299_v3, 0.0  ;;  %v18777_v14 = vadd.f32 %v18562_v30, %v18514_v47  ;;  %v18805_v3 = vpop.f32.mrb[60].mxu0 }
 0x1af   : > { %v3761_v55 = vmax.f32 %v3759_v33, %v3760_v15  ;;  %v3774_v19 = vrot.slane %v3773_v21, 1  ;;  %v5538_v12 = vsel %vm5492_vm8, %v3754_v5, %v18732_v32  ;;  %v1838_v31 = vsel %vm1782_vm3, %v1692_v7, -inf }
 0x1b0   : > { %v3768_v17 = vmax.f32 %v3766_v62, %v3767_v22  ;;  %v1839_v60 = vmax.f32 %v1837_v45, %v1838_v31  ;;  %v1832_v53 = vsel %vm1782_vm3, %v1690_v1, -inf  ;;  %v1841_v56 = vsel %vm1782_vm3, %v1693_v59, -inf  ;;  %v18807_v22 = vpop.f32.mrb[61].mxu0 }
 0x1b1   : > { %v3775_v39 = vmax.f32 %v3773_v21, %v3774_v19  ;;  %v5539_v57 = vsel %vm5494_vm9, %v3761_v55, %v5538_v12  ;;  %v1833_v51 = vmax.f32 %v1831_v29, %v1832_v53  ;;  %v18785_v50 = vmax.f32 %v1840_v46, %v1841_v56  ;;  %v18812_v12 = vpop.f32.mrb[62].mxu0 }
 0x1b2   : > { %v5540_v47 = vsel %vm5496_vm10, %v3768_v17, %v5539_v57  ;;  %v2345_v30 = vcombine.high %v1839_v60, %v1839_v60  ;;  %v2352_v42 = vrot.slane %v1839_v60, %v18324_v37  ;;  %v1691_v32 = vmax.f32 %v18777_v14, 0.0 }
 0x1b3   : > { %v5541_v34 = vsel %vm5498_vm11, %v3775_v39, %v5540_v47  ;;  %v2311_v45 = vcombine.high %v1833_v51, %v1833_v51  ;;  %v2318_v28 = vrot.slane %v1833_v51, %v18324_v37  ;;  %v2362_v13 = vcombine.high %v18785_v50, %v18785_v50 }
 0x1b4   : > { %5756 = vst.msk [vmem:[#allocation2 + $0x61] sm:$0xff] %vm1782_vm3, %v5541_v34  ;;  %v2359_v29 = vrot.slane %v2345_v30, %v18324_v37  ;;  %v2360_v8 = vcombine.high %v2352_v42, %v2352_v42  ;;  %v3888_v40 = vsel %vm3383_vm4, %v2352_v42, -inf  ;;  %v18799_v46 = vrot.slane %v18785_v50, %v18324_v37 }
 0x1b5   : > { %v3889_v20 = vrot.slane %v3888_v40, 4  ;;  %v2325_v9 = vrot.slane %v2311_v45, %v18324_v37  ;;  %v2326_v49 = vcombine.high %v2318_v28, %v2318_v28  ;;  %v3832_v33 = vsel %vm3383_vm4, %v2318_v28, -inf }
 0x1b6   : > { %v2361_v52 = vcombine.high %v2359_v29, %v2359_v29  ;;  %v3895_v16 = vsel %vm3383_vm4, %v2360_v8, -inf  ;;  %v3902_v62 = vsel %vm3383_vm4, %v2359_v29, -inf  ;;  %v3833_v25 = vrot.slane %v3832_v33, 4 }
 0x1b7   : > { %v3890_v5 = vmax.f32 %v3888_v40, %v3889_v20  ;;  %v3896_v15 = vrot.slane %v3895_v16, 4  ;;  %v3903_v21 = vrot.slane %v3902_v62, 4  ;;  %v2327_v7 = vcombine.high %v2325_v9, %v2325_v9 }
 0x1b8   : > { %v3909_v1 = vsel %vm3383_vm4, %v2361_v52, -inf  ;;  %v3834_v59 = vmax.f32 %v3832_v33, %v3833_v25  ;;  %v3839_v55 = vsel %vm3383_vm4, %v2326_v49, -inf  ;;  %v3846_v19 = vsel %vm3383_vm4, %v2325_v9, -inf }
 0x1b9   : > { %v3891_v31 = vrot.slane %v3890_v5, 2  ;;  %v3897_v17 = vmax.f32 %v3895_v16, %v3896_v15  ;;  %v3904_v60 = vmax.f32 %v3902_v62, %v3903_v21  ;;  %v3910_v53 = vrot.slane %v3909_v1, 4 }
 0x1ba   : > { %v3835_v56 = vrot.slane %v3834_v59, 2  ;;  %v3840_v39 = vrot.slane %v3839_v55, 4  ;;  %v3847_v57 = vrot.slane %v3846_v19, 4  ;;  %v3853_v51 = vsel %vm3383_vm4, %v2327_v7, -inf }
 0x1bb   : > { %v3892_v50 = vmax.f32 %v3890_v5, %v3891_v31  ;;  %v3898_v47 = vrot.slane %v3897_v17, 2  ;;  %v3905_v30 = vrot.slane %v3904_v60, 2  ;;  %v3911_v42 = vmax.f32 %v3909_v1, %v3910_v53 }
 0x1bc   : > { %v3836_v34 = vmax.f32 %v3834_v59, %v3835_v56  ;;  %v3841_v45 = vmax.f32 %v3839_v55, %v3840_v39  ;;  %v3848_v28 = vmax.f32 %v3846_v19, %v3847_v57  ;;  %v3854_v29 = vrot.slane %v3853_v51, 4  ;;  %v18815_v59 = vpop.f32.mrb[63].mxu0 }
 0x1bd   : > { %v3893_v8 = vrot.slane %v3892_v50, 1  ;;  %v3899_v40 = vmax.f32 %v3897_v17, %v3898_v47  ;;  %v3906_v20 = vmax.f32 %v3904_v60, %v3905_v30  ;;  %v3912_v9 = vrot.slane %v3911_v42, 2 }
 0x1be   : > { %v3837_v49 = vrot.slane %v3836_v34, 1  ;;  %v3842_v33 = vrot.slane %v3841_v45, 2  ;;  %v3849_v52 = vrot.slane %v3848_v28, 2  ;;  %v3855_v16 = vmax.f32 %v3853_v51, %v3854_v29 }
 0x1bf   : > { %v3894_v62 = vmax.f32 %v3892_v50, %v3893_v8  ;;  %v3900_v25 = vrot.slane %v3899_v40, 1  ;;  %v3907_v15 = vrot.slane %v3906_v20, 1  ;;  %v3913_v21 = vmax.f32 %v3911_v42, %v3912_v9 }
 0x1c0   : > { %v3838_v5 = vmax.f32 %v3836_v34, %v3837_v49  ;;  %v3843_v7 = vmax.f32 %v3841_v45, %v3842_v33  ;;  %v3850_v31 = vmax.f32 %v3848_v28, %v3849_v52  ;;  %v3856_v1 = vrot.slane %v3855_v16, 2 }
 0x1c1   : > { %v3901_v55 = vmax.f32 %v3899_v40, %v3900_v25  ;;  %v3908_v19 = vmax.f32 %v3906_v20, %v3907_v15  ;;  %v3914_v53 = vrot.slane %v3913_v21, 1  ;;  %v2376_v17 = vrot.slane %v2362_v13, %v18324_v37 }
 0x1c2   : > { %v3844_v60 = vrot.slane %v3843_v7, 1  ;;  %v3851_v56 = vrot.slane %v3850_v31, 1  ;;  %v3857_v39 = vmax.f32 %v3855_v16, %v3856_v1  ;;  %v2377_v57 = vcombine.high %v18799_v46, %v18799_v46 }
 0x1c3   : > { %v3915_v51 = vmax.f32 %v3913_v21, %v3914_v53  ;;  %v5556_v50 = vsel %vm5486_vm5, %v3901_v55, %v3894_v62  ;;  %v2378_v47 = vcombine.high %v2376_v17, %v2376_v17  ;;  %v3916_v30 = vsel %vm3383_vm4, %v18799_v46, -inf  ;;  %v18840_v55 = vld [vmem:[%s22454_s2] ss:$0 sm:$0xff] }
 0x1c4   : > { %v5557_v42 = vsel %vm5488_vm6, %v3908_v19, %v5556_v50  ;;  %v3845_v34 = vmax.f32 %v3843_v7, %v3844_v60  ;;  %v3852_v45 = vmax.f32 %v3850_v31, %v3851_v56  ;;  %v3858_v28 = vrot.slane %v3857_v39, 1 }
 0x1c5   : > { %v3917_v29 = vrot.slane %v3916_v30, 4  ;;  %v3923_v13 = vsel %vm3383_vm4, %v2377_v57, -inf  ;;  %v3930_v8 = vsel %vm3383_vm4, %v2376_v17, -inf  ;;  %v3937_v40 = vsel %vm3383_vm4, %v2378_v47, -inf }
 0x1c6   : > { %v3859_v20 = vmax.f32 %v3857_v39, %v3858_v28  ;;  %v5549_v9 = vsel %vm5486_vm5, %v3845_v34, %v3838_v5  ;;  %v3924_v49 = vrot.slane %v3923_v13, 4  ;;  %v3931_v33 = vrot.slane %v3930_v8, 4 }
 0x1c7   : > { %v5550_v52 = vsel %vm5488_vm6, %v3852_v45, %v5549_v9  ;;  %v3918_v46 = vmax.f32 %v3916_v30, %v3917_v29  ;;  %v3938_v16 = vrot.slane %v3937_v40, 4  ;;  %v5558_v62 = vsel %vm5490_vm7, %v3915_v51, %v5557_v42  ;;  %v18849_v30 = vpop.f32.mrb[64].mxu0 }
 0x1c8   : > { %v3925_v25 = vmax.f32 %v3923_v13, %v3924_v49  ;;  %v3932_v15 = vmax.f32 %v3930_v8, %v3931_v33  ;;  %v1835_v21 = vsel %vm1782_vm3, %v1691_v32, -inf  ;;  %v18834_v7 = vsel %vm5490_vm7, %v3859_v20, %v5550_v52 }
 0x1c9   : > { %v3919_v31 = vrot.slane %v3918_v46, 2  ;;  %v3939_v1 = vmax.f32 %v3937_v40, %v3938_v16  ;;  %v1836_v5 = vmax.f32 %v18766_v2, %v1835_v21  ;;  %v1312_v19 = vadd.f32 %v18840_v55, %v18548_v44 }
 0x1ca   : > { %v3926_v53 = vrot.slane %v3925_v25, 2  ;;  %v3933_v17 = vrot.slane %v3932_v15, 2  ;;  %v1304_v14 = vadd.f32 %v18840_v55, %v18550_v18  ;;  %v1315_v32 = vadd.f32 %v18840_v55, %v18555_v10  ;;  %v18852_v18 = vpop.f32.mrb[65].mxu0 }
 0x1cb   : > { %v3920_v60 = vmax.f32 %v3918_v46, %v3919_v31  ;;  %v3940_v56 = vrot.slane %v3939_v1, 2  ;;  %v2328_v39 = vcombine.high %v1836_v5, %v1836_v5  ;;  %v2335_v2 = vrot.slane %v1836_v5, %v18324_v37  ;;  %v18856_v8 = vpop.f32.mrb[66].mxu0 }
 0x1cc   : > { %v3927_v57 = vmax.f32 %v3925_v25, %v3926_v53  ;;  %v3934_v51 = vmax.f32 %v3932_v15, %v3933_v17  ;;  %v1696_v50 = vmax.f32 %v1312_v19, 0.0  ;;  %v1694_v47 = vmax.f32 %v1304_v14, 0.0  ;;  %v5840_v17 = vld [vmem:[#allocation2 + $0x49] sm:$0xff]  ;;  %v5841_v14 = vld [vmem:[#allocation2 + $0x51] sm:$0xff] }
 0x1cd   : > { %v3921_v44 = vrot.slane %v3920_v60, 1  ;;  %v3941_v42 = vmax.f32 %v3939_v1, %v3940_v56  ;;  %v2342_v34 = vrot.slane %v2328_v39, %v18324_v37  ;;  %v2343_v45 = vcombine.high %v2335_v2, %v2335_v2 }
 0x1ce   : > { %v3928_v28 = vrot.slane %v3927_v57, 1  ;;  %v3935_v10 = vrot.slane %v3934_v51, 1  ;;  %v3860_v29 = vsel %vm3383_vm4, %v2335_v2, -inf  ;;  %v1849_v13 = vsel %vm1782_vm3, %v1696_v50, -inf }
 0x1cf   : > { %v3922_v40 = vmax.f32 %v3920_v60, %v3921_v44  ;;  %v3942_v20 = vrot.slane %v3941_v42, 1  ;;  %v2344_v9 = vcombine.high %v2342_v34, %v2342_v34  ;;  %v3861_v49 = vrot.slane %v3860_v29, 4 }
 0x1d0   : > { %v3929_v33 = vmax.f32 %v3927_v57, %v3928_v28  ;;  %v3936_v52 = vmax.f32 %v3934_v51, %v3935_v10  ;;  %v3867_v46 = vsel %vm3383_vm4, %v2343_v45, -inf  ;;  %v3874_v16 = vsel %vm3383_vm4, %v2342_v34, -inf  ;;  %v18865_v57 = vpop.f32.mrb[67].mxu0 }
 0x1d1   : > { %v3943_v25 = vmax.f32 %v3941_v42, %v3942_v20  ;;  %v5559_v15 = vsel %vm5492_vm8, %v3922_v40, %v5558_v62  ;;  %v3862_v21 = vmax.f32 %v3860_v29, %v3861_v49  ;;  %v3868_v31 = vrot.slane %v3867_v46, 4 }
 0x1d2   : > { %v5560_v1 = vsel %vm5494_vm9, %v3929_v33, %v5559_v15  ;;  %v3875_v5 = vrot.slane %v3874_v16, 4  ;;  %v3881_v19 = vsel %vm3383_vm4, %v2344_v9, -inf  ;;  %v1843_v53 = vsel %vm1782_vm3, %v1694_v47, -inf }
 0x1d3   : > { %v5561_v60 = vsel %vm5496_vm10, %v3936_v52, %v5560_v1  ;;  %v3863_v56 = vrot.slane %v3862_v21, 2  ;;  %v3869_v39 = vmax.f32 %v3867_v46, %v3868_v31  ;;  %v3882_v2 = vrot.slane %v3881_v19, 4 }
 0x1d4   : > { %v5562_v62 = vsel %vm5498_vm11, %v3943_v25, %v5561_v60  ;;  %v3876_v51 = vmax.f32 %v3874_v16, %v3875_v5  ;;  %v1697_v50 = vmax.f32 %v1315_v32, 0.0  ;;  %v1307_v44 = vadd.f32 %v18840_v55, %v18569_v41 }
 0x1d5   : > { %5759 = vst.msk [vmem:[#allocation2 + $0x81] sm:$0xff] %vm1782_vm3, %v5562_v62  ;;  %v3864_v42 = vmax.f32 %v3862_v21, %v3863_v56  ;;  %v3870_v47 = vrot.slane %v3869_v39, 2  ;;  %v3883_v34 = vmax.f32 %v3881_v19, %v3882_v2  ;;  %v5869_v45 = vpack.c.bf16 %v5841_v14, %v5840_v17 }
 0x1d6   : > { %v3877_v28 = vrot.slane %v3876_v51, 2  ;;  %v1852_v10 = vsel %vm1782_vm3, %v1697_v50, -inf  ;;  %v1695_v29 = vmax.f32 %v1307_v44, 0.0  ;;  %v1328_v40 = vadd.f32 %v18840_v55, %v18599_v38 }
 0x1d7   : > { %v3865_v20 = vrot.slane %v3864_v42, 1  ;;  %v3871_v9 = vmax.f32 %v3869_v39, %v3870_v47  ;;  %v3884_v49 = vrot.slane %v3883_v34, 2  ;;  %16224 = vmatmul.mubr.msk.bf16.gmra.mrb[12].mxu1 %vm1782_vm3, %v5869_v45  ;;  %v1320_v41 = vadd.f32 %v18840_v55, %v18604_v27 }
 0x1d8   : > { %v3878_v32 = vmax.f32 %v3876_v51, %v3877_v28  ;;  %v18878_v33 = vsel %vm1782_vm3, %v1695_v29, -inf  ;;  %v1700_v52 = vmax.f32 %v1328_v40, 0.0  ;;  %v1331_v46 = vadd.f32 %v18840_v55, %v18607_v63 }
 0x1d9   : > { %v3866_v16 = vmax.f32 %v3864_v42, %v3865_v20  ;;  %v3872_v25 = vrot.slane %v3871_v9, 1  ;;  %v3885_v15 = vmax.f32 %v3883_v34, %v3884_v49  ;;  %v1698_v38 = vmax.f32 %v1320_v41, 0.0 }
 0x1da   : > { %v3879_v21 = vrot.slane %v3878_v32, 1  ;;  %v1850_v31 = vsel %vm1782_vm3, %v1700_v52, -inf  ;;  %v1701_v1 = vmax.f32 %v1331_v46, 0.0  ;;  %v1323_v5 = vadd.f32 %v18840_v55, %v18615_v54 }
 0x1db   : > { %v3873_v27 = vmax.f32 %v3871_v9, %v3872_v25  ;;  %v3886_v19 = vrot.slane %v3885_v15, 1  ;;  %v5552_v17 = vsel %vm5492_vm8, %v3866_v16, %v18834_v7  ;;  %v1851_v14 = vmax.f32 %v1849_v13, %v1850_v31  ;;  %v18900_v9 = vpop.f32.mrb[68].mxu0 }
 0x1dc   : > { %v3880_v60 = vmax.f32 %v3878_v32, %v3879_v21  ;;  %v1844_v63 = vsel %vm1782_vm3, %v1698_v38, -inf  ;;  %v1853_v56 = vsel %vm1782_vm3, %v1701_v1, -inf  ;;  %v1699_v39 = vmax.f32 %v1323_v5, 0.0  ;;  %v18907_v32 = vpop.f32.mrb[69].mxu0 }
 0x1dd   : > { %v3887_v2 = vmax.f32 %v3885_v15, %v3886_v19  ;;  %v5553_v62 = vsel %vm5494_vm9, %v3873_v27, %v5552_v17  ;;  %v2413_v51 = vcombine.high %v1851_v14, %v1851_v14  ;;  %v2420_v50 = vrot.slane %v1851_v14, %v18324_v37  ;;  %v18910_v15 = vpop.f32.mrb[70].mxu0 }
 0x1de   : > { %v5554_v54 = vsel %vm5496_vm10, %v3880_v60, %v5553_v62  ;;  %v1845_v44 = vmax.f32 %v1843_v53, %v1844_v63  ;;  %v1854_v42 = vmax.f32 %v1852_v10, %v1853_v56  ;;  %v18893_v47 = vsel %vm1782_vm3, %v1699_v39, -inf }
 0x1df   : > { %v5555_v7 = vsel %vm5498_vm11, %v3887_v2, %v5554_v54  ;;  %v2427_v13 = vrot.slane %v2413_v51, %v18324_v37  ;;  %v2428_v34 = vcombine.high %v2420_v50, %v2420_v50  ;;  %v4000_v45 = vsel %vm3383_vm4, %v2420_v50, -inf }
 0x1e0   : > { %5758 = vst.msk [vmem:[#allocation2 + $0x79] sm:$0xff] %vm1782_vm3, %v5555_v7  ;;  %v4001_v28 = vrot.slane %v4000_v45, 4  ;;  %v2379_v29 = vcombine.high %v1845_v44, %v1845_v44  ;;  %v2386_v40 = vrot.slane %v1845_v44, %v18324_v37  ;;  %v2430_v20 = vcombine.high %v1854_v42, %v1854_v42 }
 0x1e1   : > { %v2429_v53 = vcombine.high %v2427_v13, %v2427_v13  ;;  %v4007_v10 = vsel %vm3383_vm4, %v2428_v34, -inf  ;;  %v4014_v49 = vsel %vm3383_vm4, %v2427_v13, -inf  ;;  %v18905_v41 = vrot.slane %v1854_v42, %v18324_v37 }
 0x1e2   : > { %v4002_v52 = vmax.f32 %v4000_v45, %v4001_v28  ;;  %v4008_v46 = vrot.slane %v4007_v10, 4  ;;  %v4015_v16 = vrot.slane %v4014_v49, 4  ;;  %v2393_v25 = vrot.slane %v2379_v29, %v18324_v37 }
 0x1e3   : > { %v4021_v38 = vsel %vm3383_vm4, %v2429_v53, -inf  ;;  %v2394_v21 = vcombine.high %v2386_v40, %v2386_v40  ;;  %v3944_v31 = vsel %vm3383_vm4, %v2386_v40, -inf  ;;  %v2444_v1 = vrot.slane %v2430_v20, %v18324_v37 }
 0x1e4   : > { %v4003_v5 = vrot.slane %v4002_v52, 2  ;;  %v4009_v27 = vmax.f32 %v4007_v10, %v4008_v46  ;;  %v4016_v19 = vmax.f32 %v4014_v49, %v4015_v16  ;;  %v4022_v17 = vrot.slane %v4021_v38, 4  ;;  %v18918_v46 = vpop.f32.mrb[71].mxu0 }
 0x1e5   : > { %v2395_v14 = vcombine.high %v2393_v25, %v2393_v25  ;;  %v3945_v60 = vrot.slane %v3944_v31, 4  ;;  %v3951_v63 = vsel %vm3383_vm4, %v2394_v21, -inf  ;;  %v3958_v56 = vsel %vm3383_vm4, %v2393_v25, -inf }
 0x1e6   : > { %v4004_v39 = vmax.f32 %v4002_v52, %v4003_v5  ;;  %v4010_v2 = vrot.slane %v4009_v27, 2  ;;  %v4017_v62 = vrot.slane %v4016_v19, 2  ;;  %v4023_v51 = vmax.f32 %v4021_v38, %v4022_v17 }
 0x1e7   : > { %v3946_v50 = vmax.f32 %v3944_v31, %v3945_v60  ;;  %v3952_v54 = vrot.slane %v3951_v63, 4  ;;  %v3959_v44 = vrot.slane %v3958_v56, 4  ;;  %v3965_v42 = vsel %vm3383_vm4, %v2395_v14, -inf }
 0x1e8   : > { %v4005_v7 = vrot.slane %v4004_v39, 1  ;;  %v4011_v13 = vmax.f32 %v4009_v27, %v4010_v2  ;;  %v4018_v34 = vmax.f32 %v4016_v19, %v4017_v62  ;;  %v4024_v45 = vrot.slane %v4023_v51, 2 }
 0x1e9   : > { %v3947_v28 = vrot.slane %v3946_v50, 2  ;;  %v3953_v29 = vmax.f32 %v3951_v63, %v3952_v54  ;;  %v3960_v40 = vmax.f32 %v3958_v56, %v3959_v44  ;;  %v3966_v20 = vrot.slane %v3965_v42, 4 }
 0x1ea   : > { %v4006_v53 = vmax.f32 %v4004_v39, %v4005_v7  ;;  %v4012_v10 = vrot.slane %v4011_v13, 1  ;;  %v4019_v49 = vrot.slane %v4018_v34, 1  ;;  %v4025_v52 = vmax.f32 %v4023_v51, %v4024_v45 }
 0x1eb   : > { %v3948_v16 = vmax.f32 %v3946_v50, %v3947_v28  ;;  %v3954_v25 = vrot.slane %v3953_v29, 2  ;;  %v3961_v38 = vrot.slane %v3960_v40, 2  ;;  %v3967_v21 = vmax.f32 %v3965_v42, %v3966_v20 }
 0x1ec   : > { %v4013_v31 = vmax.f32 %v4011_v13, %v4012_v10  ;;  %v4020_v5 = vmax.f32 %v4018_v34, %v4019_v49  ;;  %v4026_v17 = vrot.slane %v4025_v52, 1  ;;  %v2445_v27 = vcombine.high %v18905_v41, %v18905_v41 }
 0x1ed   : > { %v3949_v19 = vrot.slane %v3948_v16, 1  ;;  %v3955_v14 = vmax.f32 %v3953_v29, %v3954_v25  ;;  %v3962_v60 = vmax.f32 %v3960_v40, %v3961_v38  ;;  %v3968_v63 = vrot.slane %v3967_v21, 2 }
 0x1ee   : > { %v4027_v56 = vmax.f32 %v4025_v52, %v4026_v17  ;;  %v5570_v39 = vsel %vm5486_vm5, %v4013_v31, %v4006_v53  ;;  %v2446_v2 = vcombine.high %v2444_v1, %v2444_v1  ;;  %v4028_v62 = vsel %vm3383_vm4, %v18905_v41, -inf }
 0x1ef   : > { %v5571_v51 = vsel %vm5488_vm6, %v4020_v5, %v5570_v39  ;;  %v3950_v50 = vmax.f32 %v3948_v16, %v3949_v19  ;;  %v3956_v54 = vrot.slane %v3955_v14, 1  ;;  %v3963_v44 = vrot.slane %v3962_v60, 1 }
 0x1f0   : > { %v3969_v42 = vmax.f32 %v3967_v21, %v3968_v63  ;;  %v4029_v7 = vrot.slane %v4028_v62, 4  ;;  %v4035_v13 = vsel %vm3383_vm4, %v2445_v27, -inf  ;;  %v4042_v34 = vsel %vm3383_vm4, %v2444_v1, -inf }
 0x1f1   : > { %v3957_v45 = vmax.f32 %v3955_v14, %v3956_v54  ;;  %v3964_v28 = vmax.f32 %v3962_v60, %v3963_v44  ;;  %v4036_v29 = vrot.slane %v4035_v13, 4  ;;  %v4043_v40 = vrot.slane %v4042_v34, 4 }
 0x1f2   : > { %v3970_v20 = vrot.slane %v3969_v42, 1  ;;  %v4030_v53 = vmax.f32 %v4028_v62, %v4029_v7  ;;  %v4049_v10 = vsel %vm3383_vm4, %v2446_v2, -inf  ;;  %v5572_v41 = vsel %vm5490_vm7, %v4027_v56, %v5571_v51 }
 0x1f3   : > { %v5563_v49 = vsel %vm5486_vm5, %v3957_v45, %v3950_v50  ;;  %v4037_v52 = vmax.f32 %v4035_v13, %v4036_v29  ;;  %v4044_v16 = vmax.f32 %v4042_v34, %v4043_v40  ;;  %v4050_v25 = vrot.slane %v4049_v10, 4  ;;  %v18944_v29 = vpop.f32.mrb[72].mxu0 }
 0x1f4   : > { %v3971_v38 = vmax.f32 %v3969_v42, %v3970_v20  ;;  %v5564_v21 = vsel %vm5488_vm6, %v3964_v28, %v5563_v49  ;;  %v4031_v31 = vrot.slane %v4030_v53, 2  ;;  %v1848_v1 = vmax.f32 %v18878_v33, %v18893_v47  ;;  %v18946_v49 = vpop.f32.mrb[73].mxu0 }
 0x1f5   : > { %v4038_v5 = vrot.slane %v4037_v52, 2  ;;  %v4045_v17 = vrot.slane %v4044_v16, 2  ;;  %v4051_v27 = vmax.f32 %v4049_v10, %v4050_v25  ;;  %v1344_v19 = vadd.f32 %v18840_v55, %v18639_v48 }
 0x1f6   : > { %v4032_v14 = vmax.f32 %v4030_v53, %v4031_v31  ;;  %v2396_v60 = vcombine.high %v1848_v1, %v1848_v1  ;;  %v2403_v63 = vrot.slane %v1848_v1, %v18324_v37  ;;  %v18938_v56 = vsel %vm5490_vm7, %v3971_v38, %v5564_v21  ;;  %v18950_v21 = vpop.f32.mrb[74].mxu0 }
 0x1f7   : > { %v4039_v39 = vmax.f32 %v4037_v52, %v4038_v5  ;;  %v4046_v2 = vmax.f32 %v4044_v16, %v4045_v17  ;;  %v4052_v62 = vrot.slane %v4051_v27, 2  ;;  %v1704_v51 = vmax.f32 %v1344_v19, 0.0 }
 0x1f8   : > { %v4033_v50 = vrot.slane %v4032_v14, 1  ;;  %v2410_v33 = vrot.slane %v2396_v60, %v18324_v37  ;;  %v2411_v47 = vcombine.high %v2403_v63, %v2403_v63  ;;  %v3972_v54 = vsel %vm3383_vm4, %v2403_v63, -inf }
 0x1f9   : > { %v4040_v44 = vrot.slane %v4039_v39, 1  ;;  %v4047_v42 = vrot.slane %v4046_v2, 1  ;;  %v4053_v48 = vmax.f32 %v4051_v27, %v4052_v62  ;;  %v3973_v7 = vrot.slane %v3972_v54, 4  ;;  %v18953_v27 = vpop.f32.mrb[75].mxu0 }
 0x1fa   : > { %v4034_v13 = vmax.f32 %v4032_v14, %v4033_v50  ;;  %v2412_v34 = vcombine.high %v2410_v33, %v2410_v33  ;;  %v3979_v45 = vsel %vm3383_vm4, %v2411_v47, -inf  ;;  %v3986_v28 = vsel %vm3383_vm4, %v2410_v33, -inf }
 0x1fb   : > { %v4041_v40 = vmax.f32 %v4039_v39, %v4040_v44  ;;  %v4048_v20 = vmax.f32 %v4046_v2, %v4047_v42  ;;  %v4054_v53 = vrot.slane %v4053_v48, 1  ;;  %v3974_v10 = vmax.f32 %v3972_v54, %v3973_v7  ;;  %v5843_v39 = vld [vmem:[#allocation2 + $0x69] sm:$0xff] }
 0x1fc   : > { %v5573_v52 = vsel %vm5492_vm8, %v4034_v13, %v5572_v41  ;;  %v3980_v16 = vrot.slane %v3979_v45, 4  ;;  %v3987_v25 = vrot.slane %v3986_v28, 4  ;;  %v3993_v38 = vsel %vm3383_vm4, %v2412_v34, -inf  ;;  %v5842_v41 = vld [vmem:[#allocation2 + $0x61] sm:$0xff] }
 0x1fd   : > { %v4055_v31 = vmax.f32 %v4053_v48, %v4054_v53  ;;  %v5574_v1 = vsel %vm5494_vm9, %v4041_v40, %v5573_v52  ;;  %v3975_v5 = vrot.slane %v3974_v10, 2  ;;  %v3994_v17 = vrot.slane %v3993_v38, 4 }
 0x1fe   : > { %v5575_v19 = vsel %vm5496_vm10, %v4048_v20, %v5574_v1  ;;  %v3981_v14 = vmax.f32 %v3979_v45, %v3980_v16  ;;  %v3988_v60 = vmax.f32 %v3986_v28, %v3987_v25  ;;  %v1861_v63 = vsel %vm1782_vm3, %v1704_v51, -inf }
 0x1ff   : > { %v5576_v2 = vsel %vm5498_vm11, %v4055_v31, %v5575_v19  ;;  %v3976_v62 = vmax.f32 %v3974_v10, %v3975_v5  ;;  %v3995_v50 = vmax.f32 %v3993_v38, %v3994_v17  ;;  %v1336_v33 = vadd.f32 %v18840_v55, %v18651_v4 }
 0x200   : > { %5761 = vst.msk [vmem:[#allocation2 + $0x99] sm:$0xff] %vm1782_vm3, %v5576_v2  ;;  %v3982_v47 = vrot.slane %v3981_v14, 2  ;;  %v3989_v54 = vrot.slane %v3988_v60, 2  ;;  %v1347_v44 = vadd.f32 %v18840_v55, %v18666_v43  ;;  %v1339_v42 = vadd.f32 %v18840_v55, %v18671_v0 }
 0x201   : > { %v3977_v51 = vrot.slane %v3976_v62, 1  ;;  %v3996_v48 = vrot.slane %v3995_v50, 2  ;;  %v1702_v7 = vmax.f32 %v1336_v33, 0.0  ;;  %v5870_v13 = vpack.c.bf16 %v5843_v39, %v5842_v41 }
 0x202   : > { %v3983_v34 = vmax.f32 %v3981_v14, %v3982_v47  ;;  %v3990_v45 = vmax.f32 %v3988_v60, %v3989_v54  ;;  %v1705_v28 = vmax.f32 %v1347_v44, 0.0  ;;  %v1703_v40 = vmax.f32 %v1339_v42, 0.0  ;;  %v18991_v42 = vpop.f32.mrb[76].mxu0 }
 0x203   : > { %v3978_v20 = vmax.f32 %v3976_v62, %v3977_v51  ;;  %v3997_v4 = vmax.f32 %v3995_v50, %v3996_v48  ;;  %v1855_v53 = vsel %vm1782_vm3, %v1702_v7, -inf  ;;  %16227 = vmatprep.mubr.msk.bf16.mxu1 %vm1782_vm3, %v5870_v13  ;;  %v1360_v43 = vadd.f32 %v18840_v55, %v18697_v58  ;;  %v19000_v7 = vpop.f32.mrb[77].mxu0 }
 0x204   : > { %v3984_v10 = vrot.slane %v3983_v34, 1  ;;  %v3991_v52 = vrot.slane %v3990_v45, 1  ;;  %v1864_v0 = vsel %vm1782_vm3, %v1705_v28, -inf  ;;  %v1858_v16 = vsel %vm1782_vm3, %v1703_v40, -inf  ;;  %v19004_v40 = vpop.f32.mrb[78].mxu0 }
 0x205   : > { %v3998_v25 = vrot.slane %v3997_v4, 1  ;;  %v5566_v38 = vsel %vm5492_vm8, %v3978_v20, %v18938_v56  ;;  %v1708_v31 = vmax.f32 %v1360_v43, 0.0  ;;  %v1352_v1 = vadd.f32 %v18840_v55, %v18701_v23 }
 0x206   : > { %v3985_v5 = vmax.f32 %v3983_v34, %v3984_v10  ;;  %v3992_v17 = vmax.f32 %v3990_v45, %v3991_v52  ;;  %v1363_v19 = vadd.f32 %v18840_v55, %v18707_v61  ;;  %v1355_v58 = vadd.f32 %v18840_v55, %v18713_v36 }
 0x207   : > { %v3999_v14 = vmax.f32 %v3997_v4, %v3998_v25  ;;  %v1862_v60 = vsel %vm1782_vm3, %v1708_v31, -inf  ;;  %v1706_v41 = vmax.f32 %v1352_v1, 0.0  ;;  %v1376_v39 = vadd.f32 %v18840_v55, %v18742_v35 }
 0x208   : > { %v5567_v56 = vsel %vm5494_vm9, %v3985_v5, %v5566_v38  ;;  %v1863_v2 = vmax.f32 %v1861_v63, %v1862_v60  ;;  %v1709_v62 = vmax.f32 %v1363_v19, 0.0  ;;  %v1707_v23 = vmax.f32 %v1355_v58, 0.0 }
 0x209   : > { %v5568_v50 = vsel %vm5496_vm10, %v3992_v17, %v5567_v56  ;;  %v1856_v33 = vsel %vm1782_vm3, %v1706_v41, -inf  ;;  %v1712_v61 = vmax.f32 %v1376_v39, 0.0  ;;  %v18987_v36 = vadd.f32 %v18840_v55, %v18744_v6 }
 0x20a   : > { %v5569_v47 = vsel %vm5498_vm11, %v3999_v14, %v5568_v50  ;;  %v2481_v54 = vcombine.high %v1863_v2, %v1863_v2  ;;  %v2488_v44 = vrot.slane %v1863_v2, %v18324_v37  ;;  %v1857_v35 = vmax.f32 %v1855_v53, %v1856_v33 }
 0x20b   : > { %5760 = vst.msk [vmem:[#allocation2 + $0x91] sm:$0xff] %vm1782_vm3, %v5569_v47  ;;  %v1865_v63 = vsel %vm1782_vm3, %v1709_v62, -inf  ;;  %v1859_v51 = vsel %vm1782_vm3, %v1707_v23, -inf  ;;  %v18997_v48 = vsel %vm1782_vm3, %v1712_v61, -inf  ;;  %v1710_v6 = vmax.f32 %v18987_v36, 0.0 }
 0x20c   : > { %v2495_v13 = vrot.slane %v2481_v54, %v18324_v37  ;;  %v2496_v34 = vcombine.high %v2488_v44, %v2488_v44  ;;  %v4112_v45 = vsel %vm3383_vm4, %v2488_v44, -inf  ;;  %v2447_v28 = vcombine.high %v1857_v35, %v1857_v35 }
 0x20d   : > { %v4113_v20 = vrot.slane %v4112_v45, 4  ;;  %v2454_v4 = vrot.slane %v1857_v35, %v18324_v37  ;;  %v1866_v53 = vmax.f32 %v1864_v0, %v1865_v63  ;;  %v19007_v43 = vmax.f32 %v1858_v16, %v1859_v51 }
 0x20e   : > { %v2497_v10 = vcombine.high %v2495_v13, %v2495_v13  ;;  %v4119_v52 = vsel %vm3383_vm4, %v2496_v34, -inf  ;;  %v4126_v25 = vsel %vm3383_vm4, %v2495_v13, -inf  ;;  %v2461_v38 = vrot.slane %v2447_v28, %v18324_v37 }
 0x20f   : > { %v4114_v31 = vmax.f32 %v4112_v45, %v4113_v20  ;;  %v4120_v1 = vrot.slane %v4119_v52, 4  ;;  %v4127_v5 = vrot.slane %v4126_v25, 4  ;;  %v2462_v17 = vcombine.high %v2454_v4, %v2454_v4 }
 0x210   : > { %v4133_v19 = vsel %vm3383_vm4, %v2497_v10, -inf  ;;  %v2463_v58 = vcombine.high %v2461_v38, %v2461_v38  ;;  %v4056_v14 = vsel %vm3383_vm4, %v2454_v4, -inf  ;;  %v4070_v0 = vsel %vm3383_vm4, %v2461_v38, -inf }
 0x211   : > { %v4115_v16 = vrot.slane %v4114_v31, 2  ;;  %v4121_v60 = vmax.f32 %v4119_v52, %v4120_v1  ;;  %v4128_v41 = vmax.f32 %v4126_v25, %v4127_v5  ;;  %v4134_v39 = vrot.slane %v4133_v19, 4 }
 0x212   : > { %v4057_v56 = vrot.slane %v4056_v14, 4  ;;  %v4063_v2 = vsel %vm3383_vm4, %v2462_v17, -inf  ;;  %v4071_v62 = vrot.slane %v4070_v0, 4  ;;  %v4077_v23 = vsel %vm3383_vm4, %v2463_v58, -inf }
 0x213   : > { %v4116_v50 = vmax.f32 %v4114_v31, %v4115_v16  ;;  %v4122_v33 = vrot.slane %v4121_v60, 2  ;;  %v4129_v61 = vrot.slane %v4128_v41, 2  ;;  %v4135_v47 = vmax.f32 %v4133_v19, %v4134_v39  ;;  %v19017_v31 = vpop.f32.mrb[79].mxu0 }
 0x214   : > { %v4058_v54 = vmax.f32 %v4056_v14, %v4057_v56  ;;  %v4064_v44 = vrot.slane %v4063_v2, 4  ;;  %v4072_v35 = vmax.f32 %v4070_v0, %v4071_v62  ;;  %v4078_v63 = vrot.slane %v4077_v23, 4 }
 0x215   : > { %v4117_v51 = vrot.slane %v4116_v50, 1  ;;  %v4123_v13 = vmax.f32 %v4121_v60, %v4122_v33  ;;  %v4130_v34 = vmax.f32 %v4128_v41, %v4129_v61  ;;  %v4136_v45 = vrot.slane %v4135_v47, 2 }
 0x216   : > { %v4059_v28 = vrot.slane %v4058_v54, 2  ;;  %v4065_v20 = vmax.f32 %v4063_v2, %v4064_v44  ;;  %v4073_v4 = vrot.slane %v4072_v35, 2  ;;  %v4079_v10 = vmax.f32 %v4077_v23, %v4078_v63 }
 0x217   : > { %v4118_v52 = vmax.f32 %v4116_v50, %v4117_v51  ;;  %v4124_v25 = vrot.slane %v4123_v13, 1  ;;  %v4131_v38 = vrot.slane %v4130_v34, 1  ;;  %v4137_v1 = vmax.f32 %v4135_v47, %v4136_v45 }
 0x218   : > { %v4060_v5 = vmax.f32 %v4058_v54, %v4059_v28  ;;  %v4066_v17 = vrot.slane %v4065_v20, 2  ;;  %v4074_v19 = vmax.f32 %v4072_v35, %v4073_v4  ;;  %v4080_v58 = vrot.slane %v4079_v10, 2 }
 0x219   : > { %v4125_v14 = vmax.f32 %v4123_v13, %v4124_v25  ;;  %v4132_v0 = vmax.f32 %v4130_v34, %v4131_v38  ;;  %v4138_v16 = vrot.slane %v4137_v1, 1  ;;  %v2498_v60 = vcombine.high %v1866_v53, %v1866_v53 }
 0x21a   : > { %v4061_v41 = vrot.slane %v4060_v5, 1  ;;  %v4067_v39 = vmax.f32 %v4065_v20, %v4066_v17  ;;  %v4075_v56 = vrot.slane %v4074_v19, 1  ;;  %v4081_v2 = vmax.f32 %v4079_v10, %v4080_v58 }
 0x21b   : > { %v4139_v62 = vmax.f32 %v4137_v1, %v4138_v16  ;;  %v5584_v23 = vsel %vm5486_vm5, %v4125_v14, %v4118_v52  ;;  %v2505_v50 = vrot.slane %v1866_v53, %v18324_v37  ;;  %v2512_v33 = vrot.slane %v2498_v60, %v18324_v37 }
 0x21c   : > { %v5585_v61 = vsel %vm5488_vm6, %v4132_v0, %v5584_v23  ;;  %v4062_v47 = vmax.f32 %v4060_v5, %v4061_v41  ;;  %v4068_v54 = vrot.slane %v4067_v39, 1  ;;  %v4076_v44 = vmax.f32 %v4074_v19, %v4075_v56 }
 0x21d   : > { %v4082_v35 = vrot.slane %v4081_v2, 1  ;;  %v2513_v63 = vcombine.high %v2505_v50, %v2505_v50  ;;  %v2514_v51 = vcombine.high %v2512_v33, %v2512_v33  ;;  %v4140_v13 = vsel %vm3383_vm4, %v2505_v50, -inf }
 0x21e   : > { %v4069_v34 = vmax.f32 %v4067_v39, %v4068_v54  ;;  %v4141_v45 = vrot.slane %v4140_v13, 4  ;;  %v4154_v28 = vsel %vm3383_vm4, %v2512_v33, -inf  ;;  %v5586_v20 = vsel %vm5490_vm7, %v4139_v62, %v5585_v61  ;;  %v19035_v39 = vpop.f32.mrb[80].mxu0 }
 0x21f   : > { %v4083_v4 = vmax.f32 %v4081_v2, %v4082_v35  ;;  %v4147_v53 = vsel %vm3383_vm4, %v2513_v63, -inf  ;;  %v4155_v10 = vrot.slane %v4154_v28, 4  ;;  %v4161_v52 = vsel %vm3383_vm4, %v2514_v51, -inf }
 0x220   : > { %v5577_v25 = vsel %vm5486_vm5, %v4069_v34, %v4062_v47  ;;  %v4142_v38 = vmax.f32 %v4140_v13, %v4141_v45  ;;  %v4148_v1 = vrot.slane %v4147_v53, 4  ;;  %v4162_v5 = vrot.slane %v4161_v52, 4 }
 0x221   : > { %v5578_v17 = vsel %vm5488_vm6, %v4076_v44, %v5577_v25  ;;  %v4156_v19 = vmax.f32 %v4154_v28, %v4155_v10  ;;  %v2464_v58 = vcombine.high %v19007_v43, %v19007_v43  ;;  %v2471_v14 = vrot.slane %v19007_v43, %v18324_v37 }
 0x222   : > { %v4143_v0 = vrot.slane %v4142_v38, 2  ;;  %v4149_v16 = vmax.f32 %v4147_v53, %v4148_v1  ;;  %v4163_v60 = vmax.f32 %v4161_v52, %v4162_v5  ;;  %v5579_v41 = vsel %vm5490_vm7, %v4083_v4, %v5578_v17 }
 0x223   : > { %v4157_v56 = vrot.slane %v4156_v19, 2  ;;  %v2478_v2 = vrot.slane %v2464_v58, %v18324_v37  ;;  %v2479_v62 = vcombine.high %v2471_v14, %v2471_v14  ;;  %v4084_v23 = vsel %vm3383_vm4, %v2471_v14, -inf  ;;  %v19042_v58 = vpop.f32.mrb[81].mxu0 }
 0x224   : > { %v4144_v50 = vmax.f32 %v4142_v38, %v4143_v0  ;;  %v4150_v33 = vrot.slane %v4149_v16, 2  ;;  %v4164_v61 = vrot.slane %v4163_v60, 2  ;;  %v4085_v47 = vrot.slane %v4084_v23, 4 }
 0x225   : > { %v4158_v54 = vmax.f32 %v4156_v19, %v4157_v56  ;;  %v2480_v44 = vcombine.high %v2478_v2, %v2478_v2  ;;  %v4091_v43 = vsel %vm3383_vm4, %v2479_v62, -inf  ;;  %v4098_v35 = vsel %vm3383_vm4, %v2478_v2, -inf }
 0x226   : > { %v4145_v63 = vrot.slane %v4144_v50, 1  ;;  %v4151_v51 = vmax.f32 %v4149_v16, %v4150_v33  ;;  %v4165_v13 = vmax.f32 %v4163_v60, %v4164_v61  ;;  %v4086_v34 = vmax.f32 %v4084_v23, %v4085_v47 }
 0x227   : > { %v4159_v45 = vrot.slane %v4158_v54, 1  ;;  %v4092_v28 = vrot.slane %v4091_v43, 4  ;;  %v4099_v4 = vrot.slane %v4098_v35, 4  ;;  %v4105_v53 = vsel %vm3383_vm4, %v2480_v44, -inf  ;;  %v5845_v44 = vld [vmem:[#allocation2 + $0x81] sm:$0xff] }
 0x228   : > { %v4146_v10 = vmax.f32 %v4144_v50, %v4145_v63  ;;  %v4152_v52 = vrot.slane %v4151_v51, 1  ;;  %v4166_v25 = vrot.slane %v4165_v13, 1  ;;  %v4087_v38 = vrot.slane %v4086_v34, 2 }
 0x229   : > { %v4160_v1 = vmax.f32 %v4158_v54, %v4159_v45  ;;  %v4093_v5 = vmax.f32 %v4091_v43, %v4092_v28  ;;  %v4100_v17 = vmax.f32 %v4098_v35, %v4099_v4  ;;  %v4106_v19 = vrot.slane %v4105_v53, 4  ;;  %v5844_v54 = vld [vmem:[#allocation2 + $0x79] sm:$0xff] }
 0x22a   : > { %v4153_v14 = vmax.f32 %v4151_v51, %v4152_v52  ;;  %v4167_v0 = vmax.f32 %v4165_v13, %v4166_v25  ;;  %v5587_v16 = vsel %vm5492_vm8, %v4146_v10, %v5586_v20  ;;  %v4088_v60 = vmax.f32 %v4086_v34, %v4087_v38  ;;  %v19055_v34 = vpop.f32.mrb[82].mxu0 }
 0x22b   : > { %v4094_v56 = vrot.slane %v4093_v5, 2  ;;  %v4101_v2 = vrot.slane %v4100_v17, 2  ;;  %v4107_v62 = vmax.f32 %v4105_v53, %v4106_v19  ;;  %v1867_v23 = vsel %vm1782_vm3, %v1710_v6, -inf  ;;  %v19058_v4 = vpop.f32.mrb[83].mxu0 }
 0x22c   : > { %v5588_v50 = vsel %vm5494_vm9, %v4153_v14, %v5587_v16  ;;  %v4089_v33 = vrot.slane %v4088_v60, 1  ;;  %v1379_v61 = vadd.f32 %v18840_v55, %v18755_v11  ;;  %v1371_v47 = vadd.f32 %v18840_v55, %v18773_v26 }
 0x22d   : > { %v5589_v20 = vsel %vm5496_vm10, %v4160_v1, %v5588_v50  ;;  %v4095_v43 = vmax.f32 %v4093_v5, %v4094_v56  ;;  %v4102_v35 = vmax.f32 %v4100_v17, %v4101_v2  ;;  %v4108_v63 = vrot.slane %v4107_v62, 2 }
 0x22e   : > { %v5590_v36 = vsel %vm5498_vm11, %v4167_v0, %v5589_v20  ;;  %v4090_v51 = vmax.f32 %v4088_v60, %v4089_v33  ;;  %v1713_v6 = vmax.f32 %v1379_v61, 0.0  ;;  %v1711_v13 = vmax.f32 %v1371_v47, 0.0 }
 0x22f   : > { %5763 = vst.msk [vmem:[#allocation2 + $0xb1] sm:$0xff] %vm1782_vm3, %v5590_v36  ;;  %v4096_v11 = vrot.slane %v4095_v43, 1  ;;  %v4103_v45 = vrot.slane %v4102_v35, 1  ;;  %v4109_v28 = vmax.f32 %v4107_v62, %v4108_v63  ;;  %v5871_v26 = vpack.c.bf16 %v5845_v44, %v5844_v54 }
 0x230   : > { %v5580_v53 = vsel %vm5492_vm8, %v4090_v51, %v5579_v41  ;;  %v1876_v10 = vsel %vm1782_vm3, %v1713_v6, -inf  ;;  %v1870_v52 = vsel %vm1782_vm3, %v1711_v13, -inf  ;;  %v1392_v25 = vadd.f32 %v18840_v55, %v18805_v3 }
 0x231   : > { %v4097_v38 = vmax.f32 %v4095_v43, %v4096_v11  ;;  %v4104_v1 = vmax.f32 %v4102_v35, %v4103_v45  ;;  %v4110_v5 = vrot.slane %v4109_v28, 1  ;;  %16228 = vmatmul.mubr.msk.bf16.gmra.mrb[16].mxu1 %vm1782_vm3, %v5871_v26  ;;  %v1384_v17 = vadd.f32 %v18840_v55, %v18807_v22  ;;  %v19101_v11 = vpop.f32.mrb[84].mxu0 }
 0x232   : > { %v1716_v19 = vmax.f32 %v1392_v25, 0.0  ;;  %v1395_v14 = vadd.f32 %v18840_v55, %v18812_v12  ;;  %v1387_v41 = vadd.f32 %v18840_v55, %v18815_v59  ;;  %v1408_v0 = vadd.f32 %v18840_v55, %v18849_v30 }
 0x233   : > { %v4111_v16 = vmax.f32 %v4109_v28, %v4110_v5  ;;  %v5581_v3 = vsel %vm5494_vm9, %v4097_v38, %v5580_v53  ;;  %v1714_v60 = vmax.f32 %v1384_v17, 0.0  ;;  %v1400_v56 = vadd.f32 %v18840_v55, %v18852_v18 }
 0x234   : > { %v5582_v2 = vsel %vm5496_vm10, %v4104_v1, %v5581_v3  ;;  %v1874_v22 = vsel %vm1782_vm3, %v1716_v19, -inf  ;;  %v1717_v62 = vmax.f32 %v1395_v14, 0.0  ;;  %v1715_v50 = vmax.f32 %v1387_v41, 0.0 }
 0x235   : > { %v5583_v12 = vsel %vm5498_vm11, %v4111_v16, %v5582_v2  ;;  %v1875_v59 = vmax.f32 %v18997_v48, %v1874_v22  ;;  %v1868_v33 = vsel %vm1782_vm3, %v1714_v60, -inf  ;;  %v1720_v30 = vmax.f32 %v1408_v0, 0.0 }
 0x236   : > { %5762 = vst.msk [vmem:[#allocation2 + $0xa9] sm:$0xff] %vm1782_vm3, %v5583_v12  ;;  %v1869_v61 = vmax.f32 %v1867_v23, %v1868_v33  ;;  %v1877_v47 = vsel %vm1782_vm3, %v1717_v62, -inf  ;;  %v1871_v55 = vsel %vm1782_vm3, %v1715_v50, -inf  ;;  %v1718_v18 = vmax.f32 %v1400_v56, 0.0 }
 0x237   : > { %v2549_v54 = vcombine.high %v1875_v59, %v1875_v59  ;;  %v2556_v44 = vrot.slane %v1875_v59, %v18324_v37  ;;  %v19086_v20 = vmax.f32 %v1876_v10, %v1877_v47  ;;  %v19088_v43 = vmax.f32 %v1870_v52, %v1871_v55  ;;  %v19105_v10 = vpop.f32.mrb[85].mxu0 }
 0x238   : > { %v2515_v35 = vcombine.high %v1869_v61, %v1869_v61  ;;  %v2522_v48 = vrot.slane %v1869_v61, %v18324_v37  ;;  %v19092_v63 = vsel %vm1782_vm3, %v1720_v30, -inf  ;;  %v19095_v23 = vsel %vm1782_vm3, %v1718_v18, -inf  ;;  %v19109_v5 = vpop.f32.mrb[86].mxu0 }
 0x239   : > { %v2563_v36 = vrot.slane %v2549_v54, %v18324_v37  ;;  %v2564_v51 = vcombine.high %v2556_v44, %v2556_v44  ;;  %v4224_v6 = vsel %vm3383_vm4, %v2556_v44, -inf  ;;  %v2566_v13 = vcombine.high %v19086_v20, %v19086_v20 }
 0x23a   : > { %v4225_v45 = vrot.slane %v4224_v6, 4  ;;  %v2529_v28 = vrot.slane %v2515_v35, %v18324_v37  ;;  %v2530_v26 = vcombine.high %v2522_v48, %v2522_v48  ;;  %v4168_v53 = vsel %vm3383_vm4, %v2522_v48, -inf }
 0x23b   : > { %v2565_v52 = vcombine.high %v2563_v36, %v2563_v36  ;;  %v4231_v25 = vsel %vm3383_vm4, %v2564_v51, -inf  ;;  %v4238_v38 = vsel %vm3383_vm4, %v2563_v36, -inf  ;;  %v4169_v1 = vrot.slane %v4168_v53, 4 }
 0x23c   : > { %v4226_v17 = vmax.f32 %v4224_v6, %v4225_v45  ;;  %v4232_v19 = vrot.slane %v4231_v25, 4  ;;  %v4239_v14 = vrot.slane %v4238_v38, 4  ;;  %v2531_v41 = vcombine.high %v2529_v28, %v2529_v28 }
 0x23d   : > { %v4245_v0 = vsel %vm3383_vm4, %v2565_v52, -inf  ;;  %v4170_v16 = vmax.f32 %v4168_v53, %v4169_v1  ;;  %v4175_v3 = vsel %vm3383_vm4, %v2530_v26, -inf  ;;  %v4182_v60 = vsel %vm3383_vm4, %v2529_v28, -inf }
 0x23e   : > { %v4227_v56 = vrot.slane %v4226_v17, 2  ;;  %v4233_v2 = vmax.f32 %v4231_v25, %v4232_v19  ;;  %v4240_v22 = vmax.f32 %v4238_v38, %v4239_v14  ;;  %v4246_v62 = vrot.slane %v4245_v0, 4 }
 0x23f   : > { %v4171_v50 = vrot.slane %v4170_v16, 2  ;;  %v4176_v12 = vrot.slane %v4175_v3, 4  ;;  %v4183_v59 = vrot.slane %v4182_v60, 4  ;;  %v4189_v33 = vsel %vm3383_vm4, %v2531_v41, -inf }
 0x240   : > { %v4228_v30 = vmax.f32 %v4226_v17, %v4227_v56  ;;  %v4234_v61 = vrot.slane %v4233_v2, 2  ;;  %v4241_v47 = vrot.slane %v4240_v22, 2  ;;  %v4247_v55 = vmax.f32 %v4245_v0, %v4246_v62  ;;  %v19115_v17 = vpop.f32.mrb[87].mxu0 }
 0x241   : > { %v4172_v18 = vmax.f32 %v4170_v16, %v4171_v50  ;;  %v4177_v54 = vmax.f32 %v4175_v3, %v4176_v12  ;;  %v4184_v44 = vmax.f32 %v4182_v60, %v4183_v59  ;;  %v4190_v35 = vrot.slane %v4189_v33, 4 }
 0x242   : > { %v4229_v48 = vrot.slane %v4228_v30, 1  ;;  %v4235_v36 = vmax.f32 %v4233_v2, %v4234_v61  ;;  %v4242_v51 = vmax.f32 %v4240_v22, %v4241_v47  ;;  %v4248_v6 = vrot.slane %v4247_v55, 2 }
 0x243   : > { %v4173_v45 = vrot.slane %v4172_v18, 1  ;;  %v4178_v28 = vrot.slane %v4177_v54, 2  ;;  %v4185_v26 = vrot.slane %v4184_v44, 2  ;;  %v4191_v53 = vmax.f32 %v4189_v33, %v4190_v35 }
 0x244   : > { %v4230_v52 = vmax.f32 %v4228_v30, %v4229_v48  ;;  %v4236_v25 = vrot.slane %v4235_v36, 1  ;;  %v4243_v38 = vrot.slane %v4242_v51, 1  ;;  %v4249_v1 = vmax.f32 %v4247_v55, %v4248_v6 }
 0x245   : > { %v4174_v19 = vmax.f32 %v4172_v18, %v4173_v45  ;;  %v4179_v14 = vmax.f32 %v4177_v54, %v4178_v28  ;;  %v4186_v41 = vmax.f32 %v4184_v44, %v4185_v26  ;;  %v4192_v0 = vrot.slane %v4191_v53, 2 }
 0x246   : > { %v4237_v16 = vmax.f32 %v4235_v36, %v4236_v25  ;;  %v4244_v3 = vmax.f32 %v4242_v51, %v4243_v38  ;;  %v4250_v60 = vrot.slane %v4249_v1, 1  ;;  %v2573_v56 = vrot.slane %v19086_v20, %v18324_v37 }
 0x247   : > { %v4180_v2 = vrot.slane %v4179_v14, 1  ;;  %v4187_v22 = vrot.slane %v4186_v41, 1  ;;  %v4193_v62 = vmax.f32 %v4191_v53, %v4192_v0  ;;  %v2580_v50 = vrot.slane %v2566_v13, %v18324_v37 }
 0x248   : > { %v4251_v12 = vmax.f32 %v4249_v1, %v4250_v60  ;;  %v5598_v59 = vsel %vm5486_vm5, %v4237_v16, %v4230_v52  ;;  %v2581_v33 = vcombine.high %v2573_v56, %v2573_v56  ;;  %v4252_v30 = vsel %vm3383_vm4, %v2573_v56, -inf  ;;  %v19143_v16 = vpop.f32.mrb[88].mxu0 }
 0x249   : > { %v5599_v61 = vsel %vm5488_vm6, %v4244_v3, %v5598_v59  ;;  %v4181_v47 = vmax.f32 %v4179_v14, %v4180_v2  ;;  %v4188_v55 = vmax.f32 %v4186_v41, %v4187_v22  ;;  %v4194_v18 = vrot.slane %v4193_v62, 1  ;;  %v19139_v41 = vld [vmem:[%s22454_s2] ss:$0 sm:$0xff] }
 0x24a   : > { %v2582_v54 = vcombine.high %v2580_v50, %v2580_v50  ;;  %v4253_v44 = vrot.slane %v4252_v30, 4  ;;  %v4259_v20 = vsel %vm3383_vm4, %v2581_v33, -inf  ;;  %v4266_v35 = vsel %vm3383_vm4, %v2580_v50, -inf }
 0x24b   : > { %v4195_v48 = vmax.f32 %v4193_v62, %v4194_v18  ;;  %v5591_v13 = vsel %vm5486_vm5, %v4181_v47, %v4174_v19  ;;  %v4260_v36 = vrot.slane %v4259_v20, 4  ;;  %v4267_v51 = vrot.slane %v4266_v35, 4 }
 0x24c   : > { %v5592_v6 = vsel %vm5488_vm6, %v4188_v55, %v5591_v13  ;;  %v4254_v45 = vmax.f32 %v4252_v30, %v4253_v44  ;;  %v4273_v28 = vsel %vm3383_vm4, %v2582_v54, -inf  ;;  %v5600_v26 = vsel %vm5490_vm7, %v4251_v12, %v5599_v61 }
 0x24d   : > { %v4261_v53 = vmax.f32 %v4259_v20, %v4260_v36  ;;  %v4268_v52 = vmax.f32 %v4266_v35, %v4267_v51  ;;  %v4274_v25 = vrot.slane %v4273_v28, 4  ;;  %v2532_v38 = vcombine.high %v19088_v43, %v19088_v43 }
 0x24e   : > { %v4255_v1 = vrot.slane %v4254_v45, 2  ;;  %v2539_v14 = vrot.slane %v19088_v43, %v18324_v37  ;;  %v19134_v19 = vsel %vm5490_vm7, %v4195_v48, %v5592_v6  ;;  %v1411_v0 = vadd.f32 %v19139_v41, %v18856_v8 }
 0x24f   : > { %v4262_v3 = vrot.slane %v4261_v53, 2  ;;  %v4269_v60 = vrot.slane %v4268_v52, 2  ;;  %v4275_v56 = vmax.f32 %v4273_v28, %v4274_v25  ;;  %v2546_v2 = vrot.slane %v2532_v38, %v18324_v37 }
 0x250   : > { %v4256_v22 = vmax.f32 %v4254_v45, %v4255_v1  ;;  %v2547_v43 = vcombine.high %v2539_v14, %v2539_v14  ;;  %v4196_v62 = vsel %vm3383_vm4, %v2539_v14, -inf  ;;  %v1721_v50 = vmax.f32 %v1411_v0, 0.0  ;;  %v5846_v1 = vld [vmem:[#allocation2 + $0x91] sm:$0xff]  ;;  %v5847_v14 = vld [vmem:[#allocation2 + $0x99] sm:$0xff] }
 0x251   : > { %v4263_v12 = vmax.f32 %v4261_v53, %v4262_v3  ;;  %v4270_v59 = vmax.f32 %v4268_v52, %v4269_v60  ;;  %v4276_v33 = vrot.slane %v4275_v56, 2  ;;  %v2548_v30 = vcombine.high %v2546_v2, %v2546_v2 }
 0x252   : > { %v4257_v61 = vrot.slane %v4256_v22, 1  ;;  %v4197_v47 = vrot.slane %v4196_v62, 4  ;;  %v4203_v8 = vsel %vm3383_vm4, %v2547_v43, -inf  ;;  %v4210_v55 = vsel %vm3383_vm4, %v2546_v2, -inf  ;;  %v19153_v2 = vpop.f32.mrb[89].mxu0 }
 0x253   : > { %v4264_v18 = vrot.slane %v4263_v12, 1  ;;  %v4271_v54 = vrot.slane %v4270_v59, 1  ;;  %v4277_v44 = vmax.f32 %v4275_v56, %v4276_v33  ;;  %v4204_v20 = vrot.slane %v4203_v8, 4 }
 0x254   : > { %v4258_v35 = vmax.f32 %v4256_v22, %v4257_v61  ;;  %v4198_v48 = vmax.f32 %v4196_v62, %v4197_v47  ;;  %v4211_v13 = vrot.slane %v4210_v55, 4  ;;  %v4217_v36 = vsel %vm3383_vm4, %v2548_v30, -inf  ;;  %v19159_v61 = vpop.f32.mrb[90].mxu0 }
 0x255   : > { %v4265_v51 = vmax.f32 %v4263_v12, %v4264_v18  ;;  %v4272_v6 = vmax.f32 %v4270_v59, %v4271_v54  ;;  %v4278_v45 = vrot.slane %v4277_v44, 1  ;;  %v4205_v28 = vmax.f32 %v4203_v8, %v4204_v20  ;;  %v19169_v20 = vpop.f32.mrb[91].mxu0 }
 0x256   : > { %v5601_v53 = vsel %vm5492_vm8, %v4258_v35, %v5600_v26  ;;  %v4199_v52 = vrot.slane %v4198_v48, 2  ;;  %v4212_v25 = vmax.f32 %v4210_v55, %v4211_v13  ;;  %v4218_v38 = vrot.slane %v4217_v36, 4 }
 0x257   : > { %v4279_v0 = vmax.f32 %v4277_v44, %v4278_v45  ;;  %v5602_v3 = vsel %vm5494_vm9, %v4265_v51, %v5601_v53  ;;  %v4206_v60 = vrot.slane %v4205_v28, 2  ;;  %v1888_v56 = vsel %vm1782_vm3, %v1721_v50, -inf }
 0x258   : > { %v5603_v22 = vsel %vm5496_vm10, %v4272_v6, %v5602_v3  ;;  %v4200_v43 = vmax.f32 %v4198_v48, %v4199_v52  ;;  %v4213_v62 = vrot.slane %v4212_v25, 2  ;;  %v4219_v12 = vmax.f32 %v4217_v36, %v4218_v38 }
 0x259   : > { %v5604_v26 = vsel %vm5498_vm11, %v4279_v0, %v5603_v22  ;;  %v4207_v59 = vmax.f32 %v4205_v28, %v4206_v60  ;;  %v1403_v33 = vadd.f32 %v19139_v41, %v18865_v57  ;;  %v5872_v30 = vpack.c.bf16 %v5847_v14, %v5846_v1 }
 0x25a   : > { %5765 = vst.msk [vmem:[#allocation2 + $0xc9] sm:$0xff] %vm1782_vm3, %v5604_v26  ;;  %v4201_v47 = vrot.slane %v4200_v43, 1  ;;  %v4214_v50 = vmax.f32 %v4212_v25, %v4213_v62  ;;  %v4220_v8 = vrot.slane %v4219_v12, 2  ;;  %v1424_v55 = vadd.f32 %v19139_v41, %v18900_v9 }
 0x25b   : > { %v4208_v18 = vrot.slane %v4207_v59, 1  ;;  %v1719_v54 = vmax.f32 %v1403_v33, 0.0  ;;  %16231 = vmatprep.mubr.msk.bf16.mxu1 %vm1782_vm3, %v5872_v30  ;;  %v1416_v44 = vadd.f32 %v19139_v41, %v18907_v32  ;;  %v1427_v57 = vadd.f32 %v19139_v41, %v18910_v15 }
 0x25c   : > { %v4202_v35 = vmax.f32 %v4200_v43, %v4201_v47  ;;  %v4215_v48 = vrot.slane %v4214_v50, 1  ;;  %v4221_v13 = vmax.f32 %v4219_v12, %v4220_v8  ;;  %v1724_v36 = vmax.f32 %v1424_v55, 0.0 }
 0x25d   : > { %v4209_v51 = vmax.f32 %v4207_v59, %v4208_v18  ;;  %v19172_v6 = vsel %vm1782_vm3, %v1719_v54, -inf  ;;  %v1722_v9 = vmax.f32 %v1416_v44, 0.0  ;;  %v1725_v45 = vmax.f32 %v1427_v57, 0.0  ;;  %v19209_v44 = vpop.f32.mrb[92].mxu0 }
 0x25e   : > { %v4216_v28 = vmax.f32 %v4214_v50, %v4215_v48  ;;  %v4222_v53 = vrot.slane %v4221_v13, 1  ;;  %v5594_v32 = vsel %vm5492_vm8, %v4202_v35, %v19134_v19  ;;  %v1886_v52 = vsel %vm1782_vm3, %v1724_v36, -inf }
 0x25f   : > { %v5595_v15 = vsel %vm5494_vm9, %v4209_v51, %v5594_v32  ;;  %v1887_v25 = vmax.f32 %v19092_v63, %v1886_v52  ;;  %v1880_v38 = vsel %vm1782_vm3, %v1722_v9, -inf  ;;  %v1889_v1 = vsel %vm1782_vm3, %v1725_v45, -inf }
 0x260   : > { %v4223_v14 = vmax.f32 %v4221_v13, %v4222_v53  ;;  %v5596_v0 = vsel %vm5496_vm10, %v4216_v28, %v5595_v15  ;;  %v1881_v3 = vmax.f32 %v19095_v23, %v1880_v38  ;;  %v19183_v60 = vmax.f32 %v1888_v56, %v1889_v1  ;;  %v19214_v28 = vpop.f32.mrb[93].mxu0 }
 0x261   : > { %v2617_v22 = vcombine.high %v1887_v25, %v1887_v25  ;;  %v2624_v19 = vrot.slane %v1887_v25, %v18324_v37  ;;  %v19188_v43 = vadd.f32 %v19139_v41, %v18918_v46  ;;  %v19192_v63 = vadd.f32 %v19139_v41, %v18944_v29  ;;  %v19216_v25 = vpop.f32.mrb[94].mxu0 }
 0x262   : > { %v5597_v62 = vsel %vm5498_vm11, %v4223_v14, %v5596_v0  ;;  %v2583_v12 = vcombine.high %v1881_v3, %v1881_v3  ;;  %v2590_v26 = vrot.slane %v1881_v3, %v18324_v37  ;;  %v2634_v23 = vcombine.high %v19183_v60, %v19183_v60 }
 0x263   : > { %5764 = vst.msk [vmem:[#allocation2 + $0xc1] sm:$0xff] %vm1782_vm3, %v5597_v62  ;;  %v2631_v56 = vrot.slane %v2617_v22, %v18324_v37  ;;  %v2632_v59 = vcombine.high %v2624_v19, %v2624_v19  ;;  %v4336_v46 = vsel %vm3383_vm4, %v2624_v19, -inf  ;;  %v19203_v33 = vrot.slane %v19183_v60, %v18324_v37 }
 0x264   : > { %v4337_v29 = vrot.slane %v4336_v46, 4  ;;  %v2597_v30 = vrot.slane %v2583_v12, %v18324_v37  ;;  %v2598_v47 = vcombine.high %v2590_v26, %v2590_v26  ;;  %v4280_v50 = vsel %vm3383_vm4, %v2590_v26, -inf }
 0x265   : > { %v2633_v8 = vcombine.high %v2631_v56, %v2631_v56  ;;  %v4343_v55 = vsel %vm3383_vm4, %v2632_v59, -inf  ;;  %v4350_v18 = vsel %vm3383_vm4, %v2631_v56, -inf  ;;  %v4281_v54 = vrot.slane %v4280_v50, 4 }
 0x266   : > { %v4338_v57 = vmax.f32 %v4336_v46, %v4337_v29  ;;  %v4344_v35 = vrot.slane %v4343_v55, 4  ;;  %v4351_v48 = vrot.slane %v4350_v18, 4  ;;  %v2599_v13 = vcombine.high %v2597_v30, %v2597_v30 }
 0x267   : > { %v4357_v36 = vsel %vm3383_vm4, %v2633_v8, -inf  ;;  %v4282_v51 = vmax.f32 %v4280_v50, %v4281_v54  ;;  %v4287_v9 = vsel %vm3383_vm4, %v2598_v47, -inf  ;;  %v4294_v45 = vsel %vm3383_vm4, %v2597_v30, -inf }
 0x268   : > { %v4339_v53 = vrot.slane %v4338_v57, 2  ;;  %v4345_v32 = vmax.f32 %v4343_v55, %v4344_v35  ;;  %v4352_v52 = vmax.f32 %v4350_v18, %v4351_v48  ;;  %v4358_v15 = vrot.slane %v4357_v36, 4 }
 0x269   : > { %v4283_v38 = vrot.slane %v4282_v51, 2  ;;  %v4288_v1 = vrot.slane %v4287_v9, 4  ;;  %v4295_v14 = vrot.slane %v4294_v45, 4  ;;  %v4301_v0 = vsel %vm3383_vm4, %v2599_v13, -inf }
 0x26a   : > { %v4340_v3 = vmax.f32 %v4338_v57, %v4339_v53  ;;  %v4346_v60 = vrot.slane %v4345_v32, 2  ;;  %v4353_v22 = vrot.slane %v4352_v52, 2  ;;  %v4359_v19 = vmax.f32 %v4357_v36, %v4358_v15 }
 0x26b   : > { %v4284_v62 = vmax.f32 %v4282_v51, %v4283_v38  ;;  %v4289_v12 = vmax.f32 %v4287_v9, %v4288_v1  ;;  %v4296_v26 = vmax.f32 %v4294_v45, %v4295_v14  ;;  %v4302_v56 = vrot.slane %v4301_v0, 4  ;;  %v19219_v51 = vpop.f32.mrb[95].mxu0 }
 0x26c   : > { %v4341_v59 = vrot.slane %v4340_v3, 1  ;;  %v4347_v46 = vmax.f32 %v4345_v32, %v4346_v60  ;;  %v4354_v29 = vmax.f32 %v4352_v52, %v4353_v22  ;;  %v4360_v30 = vrot.slane %v4359_v19, 2 }
 0x26d   : > { %v4285_v47 = vrot.slane %v4284_v62, 1  ;;  %v4290_v50 = vrot.slane %v4289_v12, 2  ;;  %v4297_v8 = vrot.slane %v4296_v26, 2  ;;  %v4303_v55 = vmax.f32 %v4301_v0, %v4302_v56 }
 0x26e   : > { %v4342_v18 = vmax.f32 %v4340_v3, %v4341_v59  ;;  %v4348_v54 = vrot.slane %v4347_v46, 1  ;;  %v4355_v35 = vrot.slane %v4354_v29, 1  ;;  %v4361_v48 = vmax.f32 %v4359_v19, %v4360_v30 }
 0x26f   : > { %v4286_v57 = vmax.f32 %v4284_v62, %v4285_v47  ;;  %v4291_v13 = vmax.f32 %v4289_v12, %v4290_v50  ;;  %v4298_v53 = vmax.f32 %v4296_v26, %v4297_v8  ;;  %v4304_v36 = vrot.slane %v4303_v55, 2 }
 0x270   : > { %v4349_v9 = vmax.f32 %v4347_v46, %v4348_v54  ;;  %v4356_v45 = vmax.f32 %v4354_v29, %v4355_v35  ;;  %v4362_v15 = vrot.slane %v4361_v48, 1  ;;  %v2648_v32 = vrot.slane %v2634_v23, %v18324_v37 }
 0x271   : > { %v4292_v52 = vrot.slane %v4291_v13, 1  ;;  %v4299_v38 = vrot.slane %v4298_v53, 1  ;;  %v4305_v1 = vmax.f32 %v4303_v55, %v4304_v36  ;;  %v2649_v14 = vcombine.high %v19203_v33, %v19203_v33 }
 0x272   : > { %v4363_v0 = vmax.f32 %v4361_v48, %v4362_v15  ;;  %v5612_v3 = vsel %vm5486_vm5, %v4349_v9, %v4342_v18  ;;  %v2650_v60 = vcombine.high %v2648_v32, %v2648_v32  ;;  %v4364_v22 = vsel %vm3383_vm4, %v19203_v33, -inf }
 0x273   : > { %v5613_v19 = vsel %vm5488_vm6, %v4356_v45, %v5612_v3  ;;  %v4293_v62 = vmax.f32 %v4291_v13, %v4292_v52  ;;  %v4300_v12 = vmax.f32 %v4298_v53, %v4299_v38  ;;  %v4306_v26 = vrot.slane %v4305_v1, 1 }
 0x274   : > { %v4365_v56 = vrot.slane %v4364_v22, 4  ;;  %v4371_v23 = vsel %vm3383_vm4, %v2649_v14, -inf  ;;  %v4378_v59 = vsel %vm3383_vm4, %v2648_v32, -inf  ;;  %v4385_v46 = vsel %vm3383_vm4, %v2650_v60, -inf }
 0x275   : > { %v4307_v29 = vmax.f32 %v4305_v1, %v4306_v26  ;;  %v5605_v30 = vsel %vm5486_vm5, %v4293_v62, %v4286_v57  ;;  %v4372_v47 = vrot.slane %v4371_v23, 4  ;;  %v4379_v50 = vrot.slane %v4378_v59, 4 }
 0x276   : > { %v5606_v8 = vsel %vm5488_vm6, %v4300_v12, %v5605_v30  ;;  %v4366_v33 = vmax.f32 %v4364_v22, %v4365_v56  ;;  %v4386_v55 = vrot.slane %v4385_v46, 4  ;;  %v5614_v18 = vsel %vm5490_vm7, %v4363_v0, %v5613_v19  ;;  %v19248_v22 = vpop.f32.mrb[96].mxu0 }
 0x277   : > { %v4373_v54 = vmax.f32 %v4371_v23, %v4372_v47  ;;  %v4380_v35 = vmax.f32 %v4378_v59, %v4379_v50  ;;  %v1723_v48 = vmax.f32 %v19188_v43, 0.0  ;;  %v19236_v13 = vsel %vm5490_vm7, %v4307_v29, %v5606_v8  ;;  %v19251_v26 = vpop.f32.mrb[97].mxu0 }
 0x278   : > { %v4367_v53 = vrot.slane %v4366_v33, 2  ;;  %v4387_v36 = vmax.f32 %v4385_v46, %v4386_v55  ;;  %v1728_v9 = vmax.f32 %v19192_v63, 0.0  ;;  %v1432_v57 = vadd.f32 %v19139_v41, %v18946_v49  ;;  %v19255_v59 = vpop.f32.mrb[98].mxu0 }
 0x279   : > { %v4374_v45 = vrot.slane %v4373_v54, 2  ;;  %v4381_v15 = vrot.slane %v4380_v35, 2  ;;  %v1883_v32 = vsel %vm1782_vm3, %v1723_v48, -inf  ;;  %v1443_v52 = vadd.f32 %v19139_v41, %v18950_v21 }
 0x27a   : > { %v4368_v38 = vmax.f32 %v4366_v33, %v4367_v53  ;;  %v4388_v1 = vrot.slane %v4387_v36, 2  ;;  %v1884_v43 = vmax.f32 %v19172_v6, %v1883_v32  ;;  %v19246_v14 = vsel %vm1782_vm3, %v1728_v9, -inf  ;;  %v5849_v9 = vld [vmem:[#allocation2 + $0xb1] sm:$0xff] }
 0x27b   : > { %v4375_v0 = vmax.f32 %v4373_v54, %v4374_v45  ;;  %v4382_v3 = vmax.f32 %v4380_v35, %v4381_v15  ;;  %v1726_v63 = vmax.f32 %v1432_v57, 0.0  ;;  %v1729_v60 = vmax.f32 %v1443_v52, 0.0 }
 0x27c   : > { %v4369_v49 = vrot.slane %v4368_v38, 1  ;;  %v4389_v19 = vmax.f32 %v4387_v36, %v4388_v1  ;;  %v2600_v62 = vcombine.high %v1884_v43, %v1884_v43  ;;  %v2607_v12 = vrot.slane %v1884_v43, %v18324_v37  ;;  %v5848_v36 = vld [vmem:[#allocation2 + $0xa9] sm:$0xff] }
 0x27d   : > { %v4376_v21 = vrot.slane %v4375_v0, 1  ;;  %v4383_v56 = vrot.slane %v4382_v3, 1  ;;  %v1891_v6 = vsel %vm1782_vm3, %v1726_v63, -inf  ;;  %v1900_v23 = vsel %vm1782_vm3, %v1729_v60, -inf }
 0x27e   : > { %v4370_v46 = vmax.f32 %v4368_v38, %v4369_v49  ;;  %v4390_v29 = vrot.slane %v4389_v19, 1  ;;  %v2614_v30 = vrot.slane %v2600_v62, %v18324_v37  ;;  %v2615_v47 = vcombine.high %v2607_v12, %v2607_v12 }
 0x27f   : > { %v4377_v50 = vmax.f32 %v4375_v0, %v4376_v21  ;;  %v4384_v8 = vmax.f32 %v4382_v3, %v4383_v56  ;;  %v4308_v33 = vsel %vm3383_vm4, %v2607_v12, -inf  ;;  %v1435_v55 = vadd.f32 %v19139_v41, %v18953_v27  ;;  %v19266_v27 = vpop.f32.mrb[99].mxu0 }
 0x280   : > { %v4391_v54 = vmax.f32 %v4389_v19, %v4390_v29  ;;  %v5615_v35 = vsel %vm5492_vm8, %v4370_v46, %v5614_v18  ;;  %v2616_v48 = vcombine.high %v2614_v30, %v2614_v30  ;;  %v4309_v53 = vrot.slane %v4308_v33, 4 }
 0x281   : > { %v5616_v57 = vsel %vm5494_vm9, %v4377_v50, %v5615_v35  ;;  %v4315_v45 = vsel %vm3383_vm4, %v2615_v47, -inf  ;;  %v4322_v15 = vsel %vm3383_vm4, %v2614_v30, -inf  ;;  %v1727_v32 = vmax.f32 %v1435_v55, 0.0 }
 0x282   : > { %v5617_v52 = vsel %vm5496_vm10, %v4384_v8, %v5616_v57  ;;  %v4310_v38 = vmax.f32 %v4308_v33, %v4309_v53  ;;  %v4316_v1 = vrot.slane %v4315_v45, 4  ;;  %v4323_v43 = vrot.slane %v4322_v15, 4 }
 0x283   : > { %v5618_v18 = vsel %vm5498_vm11, %v4391_v54, %v5617_v52  ;;  %v4329_v0 = vsel %vm3383_vm4, %v2616_v48, -inf  ;;  %v1894_v3 = vsel %vm1782_vm3, %v1727_v32, -inf  ;;  %v5873_v63 = vpack.c.bf16 %v5849_v9, %v5848_v36 }
 0x284   : > { %5767 = vst.msk [vmem:[#allocation2 + $0xe1] sm:$0xff] %vm1782_vm3, %v5618_v18  ;;  %v4311_v60 = vrot.slane %v4310_v38, 2  ;;  %v4317_v49 = vmax.f32 %v4315_v45, %v4316_v1  ;;  %v4324_v19 = vmax.f32 %v4322_v15, %v4323_v43  ;;  %v4330_v62 = vrot.slane %v4329_v0, 4 }
 0x285   : > { %16232 = vmatmul.mubr.msk.bf16.gmra.mrb[20].mxu1 %vm1782_vm3, %v5873_v63  ;;  %v1456_v12 = vadd.f32 %v19139_v41, %v18991_v42  ;;  %v1448_v21 = vadd.f32 %v19139_v41, %v19000_v7  ;;  %v1459_v56 = vadd.f32 %v19139_v41, %v19004_v40  ;;  %v1451_v46 = vadd.f32 %v19139_v41, %v19017_v31 }
 0x286   : > { %v4312_v29 = vmax.f32 %v4310_v38, %v4311_v60  ;;  %v4318_v30 = vrot.slane %v4317_v49, 2  ;;  %v4325_v47 = vrot.slane %v4324_v19, 2  ;;  %v4331_v50 = vmax.f32 %v4329_v0, %v4330_v62 }
 0x287   : > { %v1732_v8 = vmax.f32 %v1456_v12, 0.0  ;;  %v1730_v33 = vmax.f32 %v1448_v21, 0.0  ;;  %v1733_v55 = vmax.f32 %v1459_v56, 0.0  ;;  %v1731_v54 = vmax.f32 %v1451_v46, 0.0  ;;  %v19304_v46 = vpop.f32.mrb[100].mxu0 }
 0x288   : > { %v4313_v35 = vrot.slane %v4312_v29, 1  ;;  %v4319_v48 = vmax.f32 %v4317_v49, %v4318_v30  ;;  %v4326_v42 = vmax.f32 %v4324_v19, %v4325_v47  ;;  %v4332_v53 = vrot.slane %v4331_v50, 2 }
 0x289   : > { %v1898_v7 = vsel %vm1782_vm3, %v1732_v8, -inf  ;;  %v1892_v36 = vsel %vm1782_vm3, %v1730_v33, -inf  ;;  %v1901_v40 = vsel %vm1782_vm3, %v1733_v55, -inf  ;;  %v1895_v31 = vsel %vm1782_vm3, %v1731_v54, -inf  ;;  %v19308_v8 = vpop.f32.mrb[101].mxu0 }
 0x28a   : > { %v4314_v9 = vmax.f32 %v4312_v29, %v4313_v35  ;;  %v4320_v57 = vrot.slane %v4319_v48, 1  ;;  %v4327_v45 = vrot.slane %v4326_v42, 1  ;;  %v4333_v15 = vmax.f32 %v4331_v50, %v4332_v53 }
 0x28b   : > { %v1899_v32 = vmax.f32 %v19246_v14, %v1898_v7  ;;  %v1893_v52 = vmax.f32 %v1891_v6, %v1892_v36  ;;  %v19286_v38 = vmax.f32 %v1900_v23, %v1901_v40  ;;  %v19288_v1 = vmax.f32 %v1894_v3, %v1895_v31 }
 0x28c   : > { %v4321_v43 = vmax.f32 %v4319_v48, %v4320_v57  ;;  %v4328_v18 = vmax.f32 %v4326_v42, %v4327_v45  ;;  %v4334_v0 = vrot.slane %v4333_v15, 1  ;;  %v5608_v63 = vsel %vm5492_vm8, %v4314_v9, %v19236_v13  ;;  %v19314_v48 = vpop.f32.mrb[102].mxu0 }
 0x28d   : > { %v2685_v60 = vcombine.high %v1899_v32, %v1899_v32  ;;  %v2692_v49 = vrot.slane %v1899_v32, %v18324_v37  ;;  %v2651_v19 = vcombine.high %v1893_v52, %v1893_v52  ;;  %v2658_v62 = vrot.slane %v1893_v52, %v18324_v37 }
 0x28e   : > { %v4335_v12 = vmax.f32 %v4333_v15, %v4334_v0  ;;  %v5609_v14 = vsel %vm5494_vm9, %v4321_v43, %v5608_v63  ;;  %v2702_v6 = vcombine.high %v19286_v38, %v19286_v38  ;;  %v19299_v23 = vrot.slane %v19286_v38, %v18324_v37 }
 0x28f   : > { %v5610_v3 = vsel %vm5496_vm10, %v4328_v18, %v5609_v14  ;;  %v2699_v13 = vrot.slane %v2685_v60, %v18324_v37  ;;  %v2700_v21 = vcombine.high %v2692_v49, %v2692_v49  ;;  %v4448_v56 = vsel %vm3383_vm4, %v2692_v49, -inf }
 0x290   : > { %v5611_v29 = vsel %vm5498_vm11, %v4335_v12, %v5610_v3  ;;  %v4449_v30 = vrot.slane %v4448_v56, 4  ;;  %v2665_v47 = vrot.slane %v2651_v19, %v18324_v37  ;;  %v2666_v50 = vcombine.high %v2658_v62, %v2658_v62 }
 0x291   : > { %5766 = vst.msk [vmem:[#allocation2 + $0xd9] sm:$0xff] %vm1782_vm3, %v5611_v29  ;;  %v2701_v33 = vcombine.high %v2699_v13, %v2699_v13  ;;  %v4455_v55 = vsel %vm3383_vm4, %v2700_v21, -inf  ;;  %v4462_v54 = vsel %vm3383_vm4, %v2699_v13, -inf  ;;  %v4392_v35 = vsel %vm3383_vm4, %v2658_v62, -inf }
 0x292   : > { %v4450_v42 = vmax.f32 %v4448_v56, %v4449_v30  ;;  %v4456_v53 = vrot.slane %v4455_v55, 4  ;;  %v4463_v7 = vrot.slane %v4462_v54, 4  ;;  %v2667_v36 = vcombine.high %v2665_v47, %v2665_v47 }
 0x293   : > { %v4469_v40 = vsel %vm3383_vm4, %v2701_v33, -inf  ;;  %v4393_v31 = vrot.slane %v4392_v35, 4  ;;  %v4399_v9 = vsel %vm3383_vm4, %v2666_v50, -inf  ;;  %v4406_v57 = vsel %vm3383_vm4, %v2665_v47, -inf }
 0x294   : > { %v4451_v45 = vrot.slane %v4450_v42, 2  ;;  %v4457_v15 = vmax.f32 %v4455_v55, %v4456_v53  ;;  %v4464_v32 = vmax.f32 %v4462_v54, %v4463_v7  ;;  %v4470_v52 = vrot.slane %v4469_v40, 4  ;;  %v19320_v55 = vpop.f32.mrb[103].mxu0 }
 0x295   : > { %v4394_v38 = vmax.f32 %v4392_v35, %v4393_v31  ;;  %v4400_v43 = vrot.slane %v4399_v9, 4  ;;  %v4407_v18 = vrot.slane %v4406_v57, 4  ;;  %v4413_v0 = vsel %vm3383_vm4, %v2667_v36, -inf }
 0x296   : > { %v4452_v63 = vmax.f32 %v4450_v42, %v4451_v45  ;;  %v4458_v60 = vrot.slane %v4457_v15, 2  ;;  %v4465_v49 = vrot.slane %v4464_v32, 2  ;;  %v4471_v19 = vmax.f32 %v4469_v40, %v4470_v52 }
 0x297   : > { %v4395_v62 = vrot.slane %v4394_v38, 2  ;;  %v4401_v12 = vmax.f32 %v4399_v9, %v4400_v43  ;;  %v4408_v14 = vmax.f32 %v4406_v57, %v4407_v18  ;;  %v4414_v3 = vrot.slane %v4413_v0, 4 }
 0x298   : > { %v4453_v13 = vrot.slane %v4452_v63, 1  ;;  %v4459_v21 = vmax.f32 %v4457_v15, %v4458_v60  ;;  %v4466_v56 = vmax.f32 %v4464_v32, %v4465_v49  ;;  %v4472_v29 = vrot.slane %v4471_v19, 2 }
 0x299   : > { %v4396_v30 = vmax.f32 %v4394_v38, %v4395_v62  ;;  %v4402_v47 = vrot.slane %v4401_v12, 2  ;;  %v4409_v50 = vrot.slane %v4408_v14, 2  ;;  %v4415_v33 = vmax.f32 %v4413_v0, %v4414_v3 }
 0x29a   : > { %v4454_v54 = vmax.f32 %v4452_v63, %v4453_v13  ;;  %v4460_v35 = vrot.slane %v4459_v21, 1  ;;  %v4467_v42 = vrot.slane %v4466_v56, 1  ;;  %v4473_v53 = vmax.f32 %v4471_v19, %v4472_v29 }
 0x29b   : > { %v4397_v7 = vrot.slane %v4396_v30, 1  ;;  %v4403_v36 = vmax.f32 %v4401_v12, %v4402_v47  ;;  %v4410_v40 = vmax.f32 %v4408_v14, %v4409_v50  ;;  %v4416_v31 = vrot.slane %v4415_v33, 2 }
 0x29c   : > { %v4461_v9 = vmax.f32 %v4459_v21, %v4460_v35  ;;  %v4468_v57 = vmax.f32 %v4466_v56, %v4467_v42  ;;  %v4474_v45 = vrot.slane %v4473_v53, 1  ;;  %v2716_v15 = vrot.slane %v2702_v6, %v18324_v37 }
 0x29d   : > { %v4398_v32 = vmax.f32 %v4396_v30, %v4397_v7  ;;  %v4404_v52 = vrot.slane %v4403_v36, 1  ;;  %v4411_v38 = vrot.slane %v4410_v40, 1  ;;  %v4417_v43 = vmax.f32 %v4415_v33, %v4416_v31 }
 0x29e   : > { %v4475_v18 = vmax.f32 %v4473_v53, %v4474_v45  ;;  %v5626_v0 = vsel %vm5486_vm5, %v4461_v9, %v4454_v54  ;;  %v2717_v63 = vcombine.high %v19299_v23, %v19299_v23  ;;  %v2718_v60 = vcombine.high %v2716_v15, %v2716_v15 }
 0x29f   : > { %v5627_v49 = vsel %vm5488_vm6, %v4468_v57, %v5626_v0  ;;  %v4405_v19 = vmax.f32 %v4403_v36, %v4404_v52  ;;  %v4412_v62 = vmax.f32 %v4410_v40, %v4411_v38  ;;  %v4418_v12 = vrot.slane %v4417_v43, 1 }
 0x2a0   : > { %v4476_v14 = vsel %vm3383_vm4, %v19299_v23, -inf  ;;  %v4483_v6 = vsel %vm3383_vm4, %v2717_v63, -inf  ;;  %v4490_v3 = vsel %vm3383_vm4, %v2716_v15, -inf  ;;  %v4497_v13 = vsel %vm3383_vm4, %v2718_v60, -inf }
 0x2a1   : > { %v4419_v21 = vmax.f32 %v4417_v43, %v4418_v12  ;;  %v5619_v56 = vsel %vm5486_vm5, %v4405_v19, %v4398_v32  ;;  %v4477_v29 = vrot.slane %v4476_v14, 4  ;;  %v4484_v30 = vrot.slane %v4483_v6, 4 }
 0x2a2   : > { %v5620_v47 = vsel %vm5488_vm6, %v4412_v62, %v5619_v56  ;;  %v4491_v50 = vrot.slane %v4490_v3, 4  ;;  %v4498_v33 = vrot.slane %v4497_v13, 4  ;;  %v5628_v54 = vsel %vm5490_vm7, %v4475_v18, %v5627_v49 }
 0x2a3   : > { %v4478_v35 = vmax.f32 %v4476_v14, %v4477_v29  ;;  %v4485_v42 = vmax.f32 %v4483_v6, %v4484_v30  ;;  %v2668_v23 = vcombine.high %v19288_v1, %v19288_v1  ;;  %v2675_v53 = vrot.slane %v19288_v1, %v18324_v37 }
 0x2a4   : > { %v4492_v7 = vmax.f32 %v4490_v3, %v4491_v50  ;;  %v4499_v36 = vmax.f32 %v4497_v13, %v4498_v33  ;;  %v19340_v40 = vsel %vm5490_vm7, %v4419_v21, %v5620_v47  ;;  %v1472_v31 = vadd.f32 %v19139_v41, %v19035_v39  ;;  %v19348_v3 = vpop.f32.mrb[104].mxu0 }
 0x2a5   : > { %v4479_v9 = vrot.slane %v4478_v35, 2  ;;  %v4486_v57 = vrot.slane %v4485_v42, 2  ;;  %v2682_v45 = vrot.slane %v2668_v23, %v18324_v37  ;;  %v2683_v15 = vcombine.high %v2675_v53, %v2675_v53  ;;  %v19351_v30 = vpop.f32.mrb[105].mxu0 }
 0x2a6   : > { %v4493_v32 = vrot.slane %v4492_v7, 2  ;;  %v4500_v52 = vrot.slane %v4499_v36, 2  ;;  %v4420_v38 = vsel %vm3383_vm4, %v2675_v53, -inf  ;;  %v1736_v43 = vmax.f32 %v1472_v31, 0.0 }
 0x2a7   : > { %v4480_v18 = vmax.f32 %v4478_v35, %v4479_v9  ;;  %v4487_v1 = vmax.f32 %v4485_v42, %v4486_v57  ;;  %v2684_v0 = vcombine.high %v2682_v45, %v2682_v45  ;;  %v4421_v63 = vrot.slane %v4420_v38, 4  ;;  %v19353_v42 = vpop.f32.mrb[106].mxu0 }
 0x2a8   : > { %v4494_v60 = vmax.f32 %v4492_v7, %v4493_v32  ;;  %v4501_v49 = vmax.f32 %v4499_v36, %v4500_v52  ;;  %v4427_v19 = vsel %vm3383_vm4, %v2683_v15, -inf  ;;  %v4434_v39 = vsel %vm3383_vm4, %v2682_v45, -inf  ;;  %v19355_v31 = vpop.f32.mrb[107].mxu0 }
 0x2a9   : > { %v4481_v62 = vrot.slane %v4480_v18, 1  ;;  %v4488_v12 = vrot.slane %v4487_v1, 1  ;;  %v4422_v14 = vmax.f32 %v4420_v38, %v4421_v63  ;;  %v4428_v6 = vrot.slane %v4427_v19, 4 }
 0x2aa   : > { %v4495_v13 = vrot.slane %v4494_v60, 1  ;;  %v4502_v21 = vrot.slane %v4501_v49, 1  ;;  %v4435_v56 = vrot.slane %v4434_v39, 4  ;;  %v4441_v29 = vsel %vm3383_vm4, %v2684_v0, -inf }
 0x2ab   : > { %v4482_v47 = vmax.f32 %v4480_v18, %v4481_v62  ;;  %v4489_v50 = vmax.f32 %v4487_v1, %v4488_v12  ;;  %v4423_v33 = vrot.slane %v4422_v14, 2  ;;  %v4429_v35 = vmax.f32 %v4427_v19, %v4428_v6 }
 0x2ac   : > { %v4496_v23 = vmax.f32 %v4494_v60, %v4495_v13  ;;  %v4503_v53 = vmax.f32 %v4501_v49, %v4502_v21  ;;  %v4436_v7 = vmax.f32 %v4434_v39, %v4435_v56  ;;  %v4442_v36 = vrot.slane %v4441_v29, 4  ;;  %v5850_v49 = vld [vmem:[#allocation2 + $0xc1] sm:$0xff] }
 0x2ad   : > { %v5629_v9 = vsel %vm5492_vm8, %v4482_v47, %v5628_v54  ;;  %v4424_v57 = vmax.f32 %v4422_v14, %v4423_v33  ;;  %v4430_v45 = vrot.slane %v4429_v35, 2  ;;  %v1909_v15 = vsel %vm1782_vm3, %v1736_v43, -inf  ;;  %v5851_v54 = vld [vmem:[#allocation2 + $0xc9] sm:$0xff] }
 0x2ae   : > { %v5630_v32 = vsel %vm5494_vm9, %v4489_v50, %v5629_v9  ;;  %v4437_v52 = vrot.slane %v4436_v7, 2  ;;  %v4443_v38 = vmax.f32 %v4441_v29, %v4442_v36  ;;  %v1464_v18 = vadd.f32 %v19139_v41, %v19042_v58 }
 0x2af   : > { %v5631_v1 = vsel %vm5496_vm10, %v4496_v23, %v5630_v32  ;;  %v4425_v0 = vrot.slane %v4424_v57, 1  ;;  %v4431_v63 = vmax.f32 %v4429_v35, %v4430_v45  ;;  %v1475_v60 = vadd.f32 %v19139_v41, %v19055_v34 }
 0x2b0   : > { %v5632_v19 = vsel %vm5498_vm11, %v4503_v53, %v5631_v1  ;;  %v4438_v39 = vmax.f32 %v4436_v7, %v4437_v52  ;;  %v4444_v43 = vrot.slane %v4443_v38, 2  ;;  %v1734_v62 = vmax.f32 %v1464_v18, 0.0 }
 0x2b1   : > { %5769 = vst.msk [vmem:[#allocation2 + $0xf9] sm:$0xff] %vm1782_vm3, %v5632_v19  ;;  %v4426_v12 = vmax.f32 %v4424_v57, %v4425_v0  ;;  %v4432_v14 = vrot.slane %v4431_v63, 1  ;;  %v1737_v6 = vmax.f32 %v1475_v60, 0.0  ;;  %v1467_v58 = vadd.f32 %v19139_v41, %v19058_v4 }
 0x2b2   : > { %v4439_v13 = vrot.slane %v4438_v39, 1  ;;  %v4445_v21 = vmax.f32 %v4443_v38, %v4444_v43  ;;  %v1903_v56 = vsel %vm1782_vm3, %v1734_v62, -inf  ;;  %v5874_v34 = vpack.c.bf16 %v5851_v54, %v5850_v49 }
 0x2b3   : > { %v4433_v29 = vmax.f32 %v4431_v63, %v4432_v14  ;;  %v5622_v47 = vsel %vm5492_vm8, %v4426_v12, %v19340_v40  ;;  %v1912_v50 = vsel %vm1782_vm3, %v1737_v6, -inf  ;;  %v1735_v33 = vmax.f32 %v1467_v58, 0.0 }
 0x2b4   : > { %v4440_v35 = vmax.f32 %v4438_v39, %v4439_v13  ;;  %v4446_v23 = vrot.slane %v4445_v21, 1  ;;  %16235 = vmatprep.mubr.msk.bf16.mxu1 %vm1782_vm3, %v5874_v34  ;;  %v1488_v53 = vadd.f32 %v19139_v41, %v19101_v11  ;;  %v1480_v4 = vadd.f32 %v19139_v41, %v19105_v10 }
 0x2b5   : > { %v5623_v7 = vsel %vm5494_vm9, %v4433_v29, %v5622_v47  ;;  %v1906_v36 = vsel %vm1782_vm3, %v1735_v33, -inf  ;;  %v1491_v40 = vadd.f32 %v19139_v41, %v19109_v5  ;;  %v1483_v9 = vadd.f32 %v19139_v41, %v19115_v17 }
 0x2b6   : > { %v4447_v57 = vmax.f32 %v4445_v21, %v4446_v23  ;;  %v5624_v45 = vsel %vm5496_vm10, %v4440_v35, %v5623_v7  ;;  %v1740_v32 = vmax.f32 %v1488_v53, 0.0  ;;  %v1738_v52 = vmax.f32 %v1480_v4, 0.0 }
 0x2b7   : > { %v1741_v38 = vmax.f32 %v1491_v40, 0.0  ;;  %v1739_v11 = vmax.f32 %v1483_v9, 0.0  ;;  %v19387_v10 = vadd.f32 %v19139_v41, %v19143_v16  ;;  %v19391_v18 = vadd.f32 %v19139_v41, %v19153_v2  ;;  %v19403_v2 = vpop.f32.mrb[108].mxu0 }
 0x2b8   : > { %v5625_v5 = vsel %vm5498_vm11, %v4447_v57, %v5624_v45  ;;  %v1910_v1 = vsel %vm1782_vm3, %v1740_v32, -inf  ;;  %v1904_v17 = vsel %vm1782_vm3, %v1738_v52, -inf  ;;  %v19398_v0 = vadd.f32 %v19139_v41, %v19159_v61  ;;  %v19409_v62 = vpop.f32.mrb[109].mxu0 }
 0x2b9   : > { %5768 = vst.msk [vmem:[#allocation2 + $0xf1] sm:$0xff] %vm1782_vm3, %v5625_v5  ;;  %v1911_v63 = vmax.f32 %v1909_v15, %v1910_v1  ;;  %v1905_v60 = vmax.f32 %v1903_v56, %v1904_v17  ;;  %v1913_v16 = vsel %vm1782_vm3, %v1741_v38, -inf  ;;  %v1907_v49 = vsel %vm1782_vm3, %v1739_v11, -inf  ;;  %v19413_v14 = vpop.f32.mrb[110].mxu0 }
 0x2ba   : > { %v1914_v54 = vmax.f32 %v1912_v50, %v1913_v16  ;;  %v19405_v19 = vmax.f32 %v1906_v36, %v1907_v49  ;;  %v1744_v39 = vmax.f32 %v19387_v10, 0.0 }
 0x2bb   : > { %v2753_v41 = vcombine.high %v1911_v63, %v1911_v63  ;;  %v2760_v61 = vrot.slane %v1911_v63, %v18324_v37  ;;  %v2719_v15 = vcombine.high %v1905_v60, %v1905_v60  ;;  %v2726_v12 = vrot.slane %v1905_v60, %v18324_v37 }
 0x2bc   : > { %v2770_v6 = vcombine.high %v1914_v54, %v1914_v54  ;;  %v19416_v58 = vrot.slane %v1914_v54, %v18324_v37  ;;  %v2736_v13 = vcombine.high %v19405_v19, %v19405_v19  ;;  %v19422_v21 = vrot.slane %v19405_v19, %v18324_v37 }
 0x2bd   : > { %v2767_v56 = vrot.slane %v2753_v41, %v18324_v37  ;;  %v2768_v34 = vcombine.high %v2760_v61, %v2760_v61  ;;  %v4560_v29 = vsel %vm3383_vm4, %v2760_v61, -inf  ;;  %v2733_v47 = vrot.slane %v2719_v15, %v18324_v37 }
 0x2be   : > { %v4561_v50 = vrot.slane %v4560_v29, 4  ;;  %v2734_v33 = vcombine.high %v2726_v12, %v2726_v12  ;;  %v4504_v35 = vsel %vm3383_vm4, %v2726_v12, -inf  ;;  %v19429_v23 = vrot.slane %v2770_v6, %v18324_v37 }
 0x2bf   : > { %v2769_v53 = vcombine.high %v2767_v56, %v2767_v56  ;;  %v4567_v4 = vsel %vm3383_vm4, %v2768_v34, -inf  ;;  %v4574_v7 = vsel %vm3383_vm4, %v2767_v56, -inf  ;;  %v2735_v36 = vcombine.high %v2733_v47, %v2733_v47 }
 0x2c0   : > { %v4562_v40 = vmax.f32 %v4560_v29, %v4561_v50  ;;  %v4568_v9 = vrot.slane %v4567_v4, 4  ;;  %v4575_v57 = vrot.slane %v4574_v7, 4  ;;  %v4505_v45 = vrot.slane %v4504_v35, 4 }
 0x2c1   : > { %v4581_v32 = vsel %vm3383_vm4, %v2769_v53, -inf  ;;  %v4511_v52 = vsel %vm3383_vm4, %v2734_v33, -inf  ;;  %v4518_v38 = vsel %vm3383_vm4, %v2733_v47, -inf  ;;  %v4525_v11 = vsel %vm3383_vm4, %v2735_v36, -inf  ;;  %v19437_v36 = vpop.f32.mrb[111].mxu0 }
 0x2c2   : > { %v4563_v5 = vrot.slane %v4562_v40, 2  ;;  %v4569_v1 = vmax.f32 %v4567_v4, %v4568_v9  ;;  %v4576_v17 = vmax.f32 %v4574_v7, %v4575_v57  ;;  %v4582_v63 = vrot.slane %v4581_v32, 4 }
 0x2c3   : > { %v4506_v60 = vmax.f32 %v4504_v35, %v4505_v45  ;;  %v4512_v16 = vrot.slane %v4511_v52, 4  ;;  %v4519_v49 = vrot.slane %v4518_v38, 4  ;;  %v4526_v54 = vrot.slane %v4525_v11, 4 }
 0x2c4   : > { %v4564_v41 = vmax.f32 %v4562_v40, %v4563_v5  ;;  %v4570_v61 = vrot.slane %v4569_v1, 2  ;;  %v4577_v15 = vrot.slane %v4576_v17, 2  ;;  %v4583_v12 = vmax.f32 %v4581_v32, %v4582_v63 }
 0x2c5   : > { %v4507_v6 = vrot.slane %v4506_v60, 2  ;;  %v4513_v56 = vmax.f32 %v4511_v52, %v4512_v16  ;;  %v4520_v34 = vmax.f32 %v4518_v38, %v4519_v49  ;;  %v4527_v29 = vmax.f32 %v4525_v11, %v4526_v54 }
 0x2c6   : > { %v4565_v50 = vrot.slane %v4564_v41, 1  ;;  %v4571_v47 = vmax.f32 %v4569_v1, %v4570_v61  ;;  %v4578_v33 = vmax.f32 %v4576_v17, %v4577_v15  ;;  %v4584_v53 = vrot.slane %v4583_v12, 2 }
 0x2c7   : > { %v4508_v4 = vmax.f32 %v4506_v60, %v4507_v6  ;;  %v4514_v7 = vrot.slane %v4513_v56, 2  ;;  %v4521_v35 = vrot.slane %v4520_v34, 2  ;;  %v4528_v9 = vrot.slane %v4527_v29, 2 }
 0x2c8   : > { %v4566_v57 = vmax.f32 %v4564_v41, %v4565_v50  ;;  %v4572_v45 = vrot.slane %v4571_v47, 1  ;;  %v4579_v40 = vrot.slane %v4578_v33, 1  ;;  %v4585_v5 = vmax.f32 %v4583_v12, %v4584_v53 }
 0x2c9   : > { %v4509_v43 = vrot.slane %v4508_v4, 1  ;;  %v4515_v32 = vmax.f32 %v4513_v56, %v4514_v7  ;;  %v4522_v63 = vmax.f32 %v4520_v34, %v4521_v35  ;;  %v4529_v52 = vmax.f32 %v4527_v29, %v4528_v9 }
 0x2ca   : > { %v4573_v38 = vmax.f32 %v4571_v47, %v4572_v45  ;;  %v4580_v11 = vmax.f32 %v4578_v33, %v4579_v40  ;;  %v4586_v16 = vrot.slane %v4585_v5, 1  ;;  %v2785_v1 = vcombine.high %v19416_v58, %v19416_v58 }
 0x2cb   : > { %v4510_v17 = vmax.f32 %v4508_v4, %v4509_v43  ;;  %v4516_v49 = vrot.slane %v4515_v32, 1  ;;  %v4523_v60 = vrot.slane %v4522_v63, 1  ;;  %v4530_v54 = vrot.slane %v4529_v52, 1 }
 0x2cc   : > { %v4587_v61 = vmax.f32 %v4585_v5, %v4586_v16  ;;  %v5640_v41 = vsel %vm5486_vm5, %v4573_v38, %v4566_v57  ;;  %v2786_v15 = vcombine.high %v19429_v23, %v19429_v23  ;;  %v4588_v12 = vsel %vm3383_vm4, %v19416_v58, -inf }
 0x2cd   : > { %v5641_v6 = vsel %vm5488_vm6, %v4580_v11, %v5640_v41  ;;  %v4517_v56 = vmax.f32 %v4515_v32, %v4516_v49  ;;  %v4524_v34 = vmax.f32 %v4522_v63, %v4523_v60  ;;  %v4531_v29 = vmax.f32 %v4529_v52, %v4530_v54  ;;  %v19460_v63 = vpop.f32.mrb[112].mxu0 }
 0x2ce   : > { %v4589_v50 = vrot.slane %v4588_v12, 4  ;;  %v4595_v43 = vsel %vm3383_vm4, %v2785_v1, -inf  ;;  %v4602_v47 = vsel %vm3383_vm4, %v19429_v23, -inf  ;;  %v4609_v33 = vsel %vm3383_vm4, %v2786_v15, -inf }
 0x2cf   : > { %v5633_v53 = vsel %vm5486_vm5, %v4517_v56, %v4510_v17  ;;  %v4596_v4 = vrot.slane %v4595_v43, 4  ;;  %v4603_v7 = vrot.slane %v4602_v47, 4  ;;  %v4610_v35 = vrot.slane %v4609_v33, 4 }
 0x2d0   : > { %v5634_v58 = vsel %vm5488_vm6, %v4524_v34, %v5633_v53  ;;  %v4590_v9 = vmax.f32 %v4588_v12, %v4589_v50  ;;  %v5642_v57 = vsel %vm5490_vm7, %v4587_v61, %v5641_v6  ;;  %v2750_v45 = vrot.slane %v2736_v13, %v18324_v37 }
 0x2d1   : > { %v4597_v40 = vmax.f32 %v4595_v43, %v4596_v4  ;;  %v4604_v5 = vmax.f32 %v4602_v47, %v4603_v7  ;;  %v4611_v23 = vmax.f32 %v4609_v33, %v4610_v35  ;;  %v2751_v32 = vcombine.high %v19422_v21, %v19422_v21 }
 0x2d2   : > { %v4591_v52 = vrot.slane %v4590_v9, 2  ;;  %v2752_v38 = vcombine.high %v2750_v45, %v2750_v45  ;;  %v4532_v11 = vsel %vm3383_vm4, %v19422_v21, -inf  ;;  %v4546_v16 = vsel %vm3383_vm4, %v2750_v45, -inf  ;;  %v19467_v45 = vpop.f32.mrb[113].mxu0 }
 0x2d3   : > { %v4598_v1 = vrot.slane %v4597_v40, 2  ;;  %v4605_v17 = vrot.slane %v4604_v5, 2  ;;  %v4612_v49 = vrot.slane %v4611_v23, 2  ;;  %v4533_v19 = vrot.slane %v4532_v11, 4 }
 0x2d4   : > { %v4592_v13 = vmax.f32 %v4590_v9, %v4591_v52  ;;  %v4539_v60 = vsel %vm3383_vm4, %v2751_v32, -inf  ;;  %v4547_v54 = vrot.slane %v4546_v16, 4  ;;  %v4553_v61 = vsel %vm3383_vm4, %v2752_v38, -inf }
 0x2d5   : > { %v4599_v41 = vmax.f32 %v4597_v40, %v4598_v1  ;;  %v4606_v15 = vmax.f32 %v4604_v5, %v4605_v17  ;;  %v4613_v12 = vmax.f32 %v4611_v23, %v4612_v49  ;;  %v4534_v6 = vmax.f32 %v4532_v11, %v4533_v19 }
 0x2d6   : > { %v4593_v56 = vrot.slane %v4592_v13, 1  ;;  %v4540_v34 = vrot.slane %v4539_v60, 4  ;;  %v4548_v50 = vmax.f32 %v4546_v16, %v4547_v54  ;;  %v4554_v21 = vrot.slane %v4553_v61, 4 }
 0x2d7   : > { %v4600_v43 = vrot.slane %v4599_v41, 1  ;;  %v4607_v47 = vrot.slane %v4606_v15, 1  ;;  %v4614_v33 = vrot.slane %v4613_v12, 1  ;;  %v4535_v53 = vrot.slane %v4534_v6, 2 }
 0x2d8   : > { %v4594_v4 = vmax.f32 %v4592_v13, %v4593_v56  ;;  %v4541_v7 = vmax.f32 %v4539_v60, %v4540_v34  ;;  %v4549_v35 = vrot.slane %v4548_v50, 2  ;;  %v4555_v9 = vmax.f32 %v4553_v61, %v4554_v21 }
 0x2d9   : > { %v4601_v32 = vmax.f32 %v4599_v41, %v4600_v43  ;;  %v4608_v52 = vmax.f32 %v4606_v15, %v4607_v47  ;;  %v4615_v40 = vmax.f32 %v4613_v12, %v4614_v33  ;;  %v4536_v5 = vmax.f32 %v4534_v6, %v4535_v53  ;;  %v5852_v41 = vld [vmem:[#allocation2 + $0xd9] sm:$0xff]  ;;  %v5853_v15 = vld [vmem:[#allocation2 + $0xe1] sm:$0xff] }
 0x2da   : > { %v5643_v23 = vsel %vm5492_vm8, %v4594_v4, %v5642_v57  ;;  %v4542_v38 = vrot.slane %v4541_v7, 2  ;;  %v4550_v11 = vmax.f32 %v4548_v50, %v4549_v35  ;;  %v4556_v16 = vrot.slane %v4555_v9, 2  ;;  %v19487_v50 = vld [vmem:[%s22454_s2] ss:$0 sm:$0xff] }
 0x2db   : > { %v5644_v1 = vsel %vm5494_vm9, %v4601_v32, %v5643_v23  ;;  %v4537_v17 = vrot.slane %v4536_v5, 1  ;;  %v5635_v49 = vsel %vm5490_vm7, %v4531_v29, %v5634_v58  ;;  %v1921_v19 = vsel %vm1782_vm3, %v1744_v39, -inf  ;;  %v19481_v58 = vpop.f32.mrb[114].mxu0 }
 0x2dc   : > { %v5645_v13 = vsel %vm5496_vm10, %v4608_v52, %v5644_v1  ;;  %v4543_v60 = vmax.f32 %v4541_v7, %v4542_v38  ;;  %v4551_v54 = vrot.slane %v4550_v11, 1  ;;  %v4557_v61 = vmax.f32 %v4555_v9, %v4556_v16 }
 0x2dd   : > { %v5646_v57 = vsel %vm5498_vm11, %v4615_v40, %v5645_v13  ;;  %v4538_v12 = vmax.f32 %v4536_v5, %v4537_v17  ;;  %v22455_v6 = vmax.f32 %v19391_v18, 0.0  ;;  %v1745_v29 = vmax.f32 %v19398_v0, 0.0  ;;  %v19491_v18 = vpop.f32.mrb[115].mxu0 }
 0x2de   : > { %5771 = vst.msk [vmem:[#allocation2 + $0x111] sm:$0xff] %vm1782_vm3, %v5646_v57  ;;  %v4544_v10 = vrot.slane %v4543_v60, 1  ;;  %v4552_v39 = vmax.f32 %v4550_v11, %v4551_v54  ;;  %v4558_v34 = vrot.slane %v4557_v61, 1  ;;  %v1499_v21 = vadd.f32 %v19487_v50, %v19169_v20  ;;  %v17151_v20 = vld [vmem:[%s22453_s3] sm:$0xff]  }
 0x2df   : > { %v1915_v56 = vsel %vm1782_vm3, %v22455_v6, -inf  ;;  %v5636_v43 = vsel %vm5492_vm8, %v4538_v12, %v5635_v49  ;;  %v1924_v0 = vsel %vm1782_vm3, %v1745_v29, -inf  ;;  %v5875_v47 = vpack.c.bf16 %v5853_v15, %v5852_v41  ;;  %16251 = vmatprep.subr.bf16.mxu1 %v17151_v20 }
 0x2e0   : > { %v1520_v33 = vadd.f32 %v19487_v50, %v19209_v44  ;;  %v4545_v53 = vmax.f32 %v4543_v60, %v4544_v10  ;;  %v4559_v4 = vmax.f32 %v4557_v61, %v4558_v34  ;;  %v1743_v7 = vmax.f32 %v1499_v21, 0.0  ;;  %16252 = vmatpush3.bf16.msra.mxu1 %v17151_v20  ;;  %v19536_v34 = vpop.f32.mrb[116].mxu0 }
 0x2e1   : > { %v1512_v35 = vadd.f32 %v19487_v50, %v19214_v28  ;;  %16236 = vmatmul.mubr.msk.bf16.gmra.mrb[24].mxu1 %vm1782_vm3, %v5875_v47  ;;  %v1523_v32 = vadd.f32 %v19487_v50, %v19216_v25  ;;  %v1515_v52 = vadd.f32 %v19487_v50, %v19219_v51  ;;  %v1536_v44 = vadd.f32 %v19487_v50, %v19248_v22 }
 0x2e2   : > { %v1748_v9 = vmax.f32 %v1520_v33, 0.0  ;;  %v5637_v40 = vsel %vm5494_vm9, %v4545_v53, %v5636_v43  ;;  %v1918_v28 = vsel %vm1782_vm3, %v1743_v7, -inf  ;;  %v1528_v23 = vadd.f32 %v19487_v50, %v19251_v26  ;;  %v19540_v33 = vpop.f32.mrb[117].mxu0 }
 0x2e3   : > { %v1746_v5 = vmax.f32 %v1512_v35, 0.0  ;;  %v5638_v38 = vsel %vm5496_vm10, %v4552_v39, %v5637_v40  ;;  %v1749_v25 = vmax.f32 %v1523_v32, 0.0  ;;  %v1747_v16 = vmax.f32 %v1515_v52, 0.0  ;;  %v19544_v20 = vpop.f32.mrb[118].mxu0 }
 0x2e4   : > { %v1922_v11 = vsel %vm1782_vm3, %v1748_v9, -inf  ;;  %v5639_v51 = vsel %vm5498_vm11, %v4559_v4, %v5638_v38  ;;  %v1752_v17 = vmax.f32 %v1536_v44, 0.0  ;;  %v1750_v60 = vmax.f32 %v1528_v23, 0.0 }
 0x2e5   : > { %v1923_v1 = vmax.f32 %v1921_v19, %v1922_v11  ;;  %v1916_v22 = vsel %vm1782_vm3, %v1746_v5, -inf  ;;  %5770 = vst.msk [vmem:[#allocation2 + $0x109] sm:$0xff] %vm1782_vm3, %v5639_v51  ;;  %v1925_v13 = vsel %vm1782_vm3, %v1749_v25, -inf  ;;  %v1919_v26 = vsel %vm1782_vm3, %v1747_v16, -inf }
 0x2e6   : > { %v1917_v49 = vmax.f32 %v1915_v56, %v1916_v22  ;;  %v19521_v41 = vmax.f32 %v1924_v0, %v1925_v13  ;;  %v19523_v15 = vmax.f32 %v1918_v28, %v1919_v26  ;;  %v19527_v12 = vsel %vm1782_vm3, %v1752_v17, -inf }
 0x2e7   : > { %v2821_v54 = vcombine.high %v1923_v1, %v1923_v1  ;;  %v2828_v61 = vrot.slane %v1923_v1, %v18324_v37  ;;  %v19530_v6 = vsel %vm1782_vm3, %v1750_v60, -inf }
 0x2e8   : > { %v2787_v57 = vcombine.high %v1917_v49, %v1917_v49  ;;  %v2794_v19 = vrot.slane %v1917_v49, %v18324_v37  ;;  %v2838_v39 = vcombine.high %v19521_v41, %v19521_v41 }
 0x2e9   : > { %v2835_v56 = vrot.slane %v2821_v54, %v18324_v37  ;;  %v2836_v29 = vcombine.high %v2828_v61, %v2828_v61  ;;  %v4672_v10 = vsel %vm3383_vm4, %v2828_v61, -inf }
 0x2ea   : > { %v4673_v21 = vrot.slane %v4672_v10, 4  ;;  %v2801_v43 = vrot.slane %v2787_v57, %v18324_v37  ;;  %v2802_v0 = vcombine.high %v2794_v19, %v2794_v19  ;;  %v4616_v47 = vsel %vm3383_vm4, %v2794_v19, -inf }
 0x2eb   : > { %v2837_v53 = vcombine.high %v2835_v56, %v2835_v56  ;;  %v4679_v4 = vsel %vm3383_vm4, %v2836_v29, -inf  ;;  %v4686_v7 = vsel %vm3383_vm4, %v2835_v56, -inf  ;;  %v4617_v35 = vrot.slane %v4616_v47, 4 }
 0x2ec   : > { %v4674_v9 = vmax.f32 %v4672_v10, %v4673_v21  ;;  %v4680_v32 = vrot.slane %v4679_v4, 4  ;;  %v4687_v52 = vrot.slane %v4686_v7, 4  ;;  %v2803_v44 = vcombine.high %v2801_v43, %v2801_v43 }
 0x2ed   : > { %v4693_v40 = vsel %vm3383_vm4, %v2837_v53, -inf  ;;  %v4618_v28 = vmax.f32 %v4616_v47, %v4617_v35  ;;  %v4623_v5 = vsel %vm3383_vm4, %v2802_v0, -inf  ;;  %v4630_v23 = vsel %vm3383_vm4, %v2801_v43, -inf }
 0x2ee   : > { %v4675_v38 = vrot.slane %v4674_v9, 2  ;;  %v4681_v11 = vmax.f32 %v4679_v4, %v4680_v32  ;;  %v4688_v25 = vmax.f32 %v4686_v7, %v4687_v52  ;;  %v4694_v16 = vrot.slane %v4693_v40, 4 }
 0x2ef   : > { %v4619_v51 = vrot.slane %v4618_v28, 2  ;;  %v4624_v1 = vrot.slane %v4623_v5, 4  ;;  %v4631_v22 = vrot.slane %v4630_v23, 4  ;;  %v4637_v17 = vsel %vm3383_vm4, %v2803_v44, -inf }
 0x2f0   : > { %v4676_v49 = vmax.f32 %v4674_v9, %v4675_v38  ;;  %v4682_v13 = vrot.slane %v4681_v11, 2  ;;  %v4689_v26 = vrot.slane %v4688_v25, 2  ;;  %v4695_v60 = vmax.f32 %v4693_v40, %v4694_v16  ;;  %v19550_v9 = vpop.f32.mrb[119].mxu0 }
 0x2f1   : > { %v4620_v54 = vmax.f32 %v4618_v28, %v4619_v51  ;;  %v4625_v61 = vmax.f32 %v4623_v5, %v4624_v1  ;;  %v4632_v57 = vmax.f32 %v4630_v23, %v4631_v22  ;;  %v4638_v19 = vrot.slane %v4637_v17, 4 }
 0x2f2   : > { %v4677_v56 = vrot.slane %v4676_v49, 1  ;;  %v4683_v29 = vmax.f32 %v4681_v11, %v4682_v13  ;;  %v4690_v10 = vmax.f32 %v4688_v25, %v4689_v26  ;;  %v4696_v21 = vrot.slane %v4695_v60, 2 }
 0x2f3   : > { %v4621_v43 = vrot.slane %v4620_v54, 1  ;;  %v4626_v0 = vrot.slane %v4625_v61, 2  ;;  %v4633_v47 = vrot.slane %v4632_v57, 2  ;;  %v4639_v53 = vmax.f32 %v4637_v17, %v4638_v19 }
 0x2f4   : > { %v4678_v4 = vmax.f32 %v4676_v49, %v4677_v56  ;;  %v4684_v7 = vrot.slane %v4683_v29, 1  ;;  %v4691_v35 = vrot.slane %v4690_v10, 1  ;;  %v4697_v32 = vmax.f32 %v4695_v60, %v4696_v21 }
 0x2f5   : > { %v4622_v52 = vmax.f32 %v4620_v54, %v4621_v43  ;;  %v4627_v44 = vmax.f32 %v4625_v61, %v4626_v0  ;;  %v4634_v40 = vmax.f32 %v4632_v57, %v4633_v47  ;;  %v4640_v28 = vrot.slane %v4639_v53, 2 }
 0x2f6   : > { %v4685_v5 = vmax.f32 %v4683_v29, %v4684_v7  ;;  %v4692_v23 = vmax.f32 %v4690_v10, %v4691_v35  ;;  %v4698_v38 = vrot.slane %v4697_v32, 1  ;;  %v2845_v11 = vrot.slane %v19521_v41, %v18324_v37 }
 0x2f7   : > { %v4628_v25 = vrot.slane %v4627_v44, 1  ;;  %v4635_v16 = vrot.slane %v4634_v40, 1  ;;  %v4641_v51 = vmax.f32 %v4639_v53, %v4640_v28  ;;  %v2852_v1 = vrot.slane %v2838_v39, %v18324_v37 }
 0x2f8   : > { %v4699_v22 = vmax.f32 %v4697_v32, %v4698_v38  ;;  %v5654_v17 = vsel %vm5486_vm5, %v4685_v5, %v4678_v4  ;;  %v2853_v49 = vcombine.high %v2845_v11, %v2845_v11  ;;  %v4700_v13 = vsel %vm3383_vm4, %v2845_v11, -inf }
 0x2f9   : > { %v5655_v26 = vsel %vm5488_vm6, %v4692_v23, %v5654_v17  ;;  %v4629_v60 = vmax.f32 %v4627_v44, %v4628_v25  ;;  %v4636_v54 = vmax.f32 %v4634_v40, %v4635_v16  ;;  %v4642_v61 = vrot.slane %v4641_v51, 1 }
 0x2fa   : > { %v2854_v57 = vcombine.high %v2852_v1, %v2852_v1  ;;  %v4701_v19 = vrot.slane %v4700_v13, 4  ;;  %v4707_v41 = vsel %vm3383_vm4, %v2853_v49, -inf  ;;  %v4714_v56 = vsel %vm3383_vm4, %v2852_v1, -inf }
 0x2fb   : > { %v4643_v29 = vmax.f32 %v4641_v51, %v4642_v61  ;;  %v5647_v39 = vsel %vm5486_vm5, %v4629_v60, %v4622_v52  ;;  %v4708_v10 = vrot.slane %v4707_v41, 4  ;;  %v4715_v21 = vrot.slane %v4714_v56, 4 }
 0x2fc   : > { %v5648_v43 = vsel %vm5488_vm6, %v4636_v54, %v5647_v39  ;;  %v4702_v0 = vmax.f32 %v4700_v13, %v4701_v19  ;;  %v4721_v47 = vsel %vm3383_vm4, %v2854_v57, -inf  ;;  %v5656_v53 = vsel %vm5490_vm7, %v4699_v22, %v5655_v26 }
 0x2fd   : > { %v4709_v4 = vmax.f32 %v4707_v41, %v4708_v10  ;;  %v4716_v7 = vmax.f32 %v4714_v56, %v4715_v21  ;;  %v4722_v35 = vrot.slane %v4721_v47, 4  ;;  %v2804_v32 = vcombine.high %v19523_v15, %v19523_v15 }
 0x2fe   : > { %v4703_v44 = vrot.slane %v4702_v0, 2  ;;  %v2811_v40 = vrot.slane %v19523_v15, %v18324_v37  ;;  %v19569_v52 = vsel %vm5490_vm7, %v4643_v29, %v5648_v43  ;;  %v1539_v28 = vadd.f32 %v19487_v50, %v19255_v59 }
 0x2ff   : > { %v4710_v5 = vrot.slane %v4709_v4, 2  ;;  %v4717_v23 = vrot.slane %v4716_v7, 2  ;;  %v4723_v38 = vmax.f32 %v4721_v47, %v4722_v35  ;;  %v2818_v11 = vrot.slane %v2804_v32, %v18324_v37  ;;  %v5854_v32 = vld [vmem:[#allocation2 + $0xf1] sm:$0xff] }
 0x300   : > { %v4704_v25 = vmax.f32 %v4702_v0, %v4703_v44  ;;  %v2819_v16 = vcombine.high %v2811_v40, %v2811_v40  ;;  %v4644_v51 = vsel %vm3383_vm4, %v2811_v40, -inf  ;;  %v1753_v1 = vmax.f32 %v1539_v28, 0.0  ;;  %v5855_v44 = vld [vmem:[#allocation2 + $0xf9] sm:$0xff] }
 0x301   : > { %v4711_v22 = vmax.f32 %v4709_v4, %v4710_v5  ;;  %v4718_v17 = vmax.f32 %v4716_v7, %v4717_v23  ;;  %v4724_v49 = vrot.slane %v4723_v38, 2  ;;  %v2820_v15 = vcombine.high %v2818_v11, %v2818_v11 }
 0x302   : > { %v4705_v13 = vrot.slane %v4704_v25, 1  ;;  %v4645_v26 = vrot.slane %v4644_v51, 4  ;;  %v4651_v60 = vsel %vm3383_vm4, %v2819_v16, -inf  ;;  %v4658_v59 = vsel %vm3383_vm4, %v2818_v11, -inf }
 0x303   : > { %v4712_v54 = vrot.slane %v4711_v22, 1  ;;  %v4719_v61 = vrot.slane %v4718_v17, 1  ;;  %v4725_v57 = vmax.f32 %v4723_v38, %v4724_v49  ;;  %v4652_v19 = vrot.slane %v4651_v60, 4 }
 0x304   : > { %v4706_v41 = vmax.f32 %v4704_v25, %v4705_v13  ;;  %v4646_v56 = vmax.f32 %v4644_v51, %v4645_v26  ;;  %v4659_v29 = vrot.slane %v4658_v59, 4  ;;  %v4665_v39 = vsel %vm3383_vm4, %v2820_v15, -inf }
 0x305   : > { %v4713_v10 = vmax.f32 %v4711_v22, %v4712_v54  ;;  %v4720_v21 = vmax.f32 %v4718_v17, %v4719_v61  ;;  %v4726_v43 = vrot.slane %v4725_v57, 1  ;;  %v4653_v0 = vmax.f32 %v4651_v60, %v4652_v19 }
 0x306   : > { %v5657_v47 = vsel %vm5492_vm8, %v4706_v41, %v5656_v53  ;;  %v4647_v4 = vrot.slane %v4646_v56, 2  ;;  %v4660_v7 = vmax.f32 %v4658_v59, %v4659_v29  ;;  %v4666_v35 = vrot.slane %v4665_v39, 4 }
 0x307   : > { %v4727_v40 = vmax.f32 %v4725_v57, %v4726_v43  ;;  %v5658_v28 = vsel %vm5494_vm9, %v4713_v10, %v5657_v47  ;;  %v4654_v5 = vrot.slane %v4653_v0, 2  ;;  %v1936_v23 = vsel %vm1782_vm3, %v1753_v1, -inf }
 0x308   : > { %v5659_v38 = vsel %vm5496_vm10, %v4720_v21, %v5658_v28  ;;  %v4648_v11 = vmax.f32 %v4646_v56, %v4647_v4  ;;  %v4661_v25 = vrot.slane %v4660_v7, 2  ;;  %v4667_v16 = vmax.f32 %v4665_v39, %v4666_v35 }
 0x309   : > { %v5660_v51 = vsel %vm5498_vm11, %v4727_v40, %v5659_v38  ;;  %v4655_v22 = vmax.f32 %v4653_v0, %v4654_v5  ;;  %v1531_v53 = vadd.f32 %v19487_v50, %v19266_v27  ;;  %v5876_v17 = vpack.c.bf16 %v5855_v44, %v5854_v32 }
 0x30a   : > { %5773 = vst.msk [vmem:[#allocation2 + $0x129] sm:$0xff] %vm1782_vm3, %v5660_v51  ;;  %v4649_v49 = vrot.slane %v4648_v11, 1  ;;  %v4662_v15 = vmax.f32 %v4660_v7, %v4661_v25  ;;  %v4668_v13 = vrot.slane %v4667_v16, 2  ;;  %v1552_v1 = vadd.f32 %v19487_v50, %v19304_v46 }
 0x30b   : > { %v4656_v26 = vrot.slane %v4655_v22, 1  ;;  %v1751_v60 = vmax.f32 %v1531_v53, 0.0  ;;  %16239 = vmatprep.mubr.msk.bf16.mxu1 %vm1782_vm3, %v5876_v17  ;;  %v1544_v59 = vadd.f32 %v19487_v50, %v19308_v8  ;;  %v1555_v54 = vadd.f32 %v19487_v50, %v19314_v48 }
 0x30c   : > { %v4650_v27 = vmax.f32 %v4648_v11, %v4649_v49  ;;  %v4663_v61 = vrot.slane %v4662_v15, 1  ;;  %v4669_v57 = vmax.f32 %v4667_v16, %v4668_v13  ;;  %v1756_v19 = vmax.f32 %v1552_v1, 0.0  ;;  %v17152_v13 = vld [vmem:[%s22453_s3 + $0x8] sm:$0xff]  }
 0x30d   : > { %v4657_v41 = vmax.f32 %v4655_v22, %v4656_v26  ;;  %v19594_v56 = vsel %vm1782_vm3, %v1751_v60, -inf  ;;  %v1754_v29 = vmax.f32 %v1544_v59, 0.0  ;;  %v1757_v46 = vmax.f32 %v1555_v54, 0.0  ;;  %16253 = vmatprep.subr.bf16.mxu1 %v17152_v13 }
 0x30e   : > { %v4664_v39 = vmax.f32 %v4662_v15, %v4663_v61  ;;  %v4670_v10 = vrot.slane %v4669_v57, 1  ;;  %v5650_v21 = vsel %vm5492_vm8, %v4650_v27, %v19569_v52  ;;  %v1934_v8 = vsel %vm1782_vm3, %v1756_v19, -inf  ;;  %16254 = vmatpush3.bf16.msra.mxu1 %v17152_v13 }
 0x30f   : > { %v5651_v43 = vsel %vm5494_vm9, %v4657_v41, %v5650_v21  ;;  %v1935_v48 = vmax.f32 %v19527_v12, %v1934_v8  ;;  %v1928_v0 = vsel %vm1782_vm3, %v1754_v29, -inf  ;;  %v1937_v47 = vsel %vm1782_vm3, %v1757_v46, -inf }
 0x310   : > { %v4671_v4 = vmax.f32 %v4669_v57, %v4670_v10  ;;  %v5652_v7 = vsel %vm5496_vm10, %v4664_v39, %v5651_v43  ;;  %v1929_v35 = vmax.f32 %v19530_v6, %v1928_v0  ;;  %v19605_v32 = vmax.f32 %v1936_v23, %v1937_v47 }
 0x311   : > { %v2889_v44 = vcombine.high %v1935_v48, %v1935_v48  ;;  %v2896_v52 = vrot.slane %v1935_v48, %v18324_v37  ;;  %v19610_v40 = vadd.f32 %v19487_v50, %v19320_v55  ;;  %v19614_v12 = vadd.f32 %v19487_v50, %v19348_v3 }
 0x312   : > { %v5653_v28 = vsel %vm5498_vm11, %v4671_v4, %v5652_v7  ;;  %v2855_v5 = vcombine.high %v1929_v35, %v1929_v35  ;;  %v2862_v38 = vrot.slane %v1929_v35, %v18324_v37  ;;  %v2906_v6 = vcombine.high %v19605_v32, %v19605_v32 }
 0x313   : > { %5772 = vst.msk [vmem:[#allocation2 + $0x121] sm:$0xff] %vm1782_vm3, %v5653_v28  ;;  %v2903_v23 = vrot.slane %v2889_v44, %v18324_v37  ;;  %v2904_v11 = vcombine.high %v2896_v52, %v2896_v52  ;;  %v4784_v55 = vsel %vm3383_vm4, %v2896_v52, -inf  ;;  %v19625_v25 = vrot.slane %v19605_v32, %v18324_v37 }
 0x314   : > { %v4785_v3 = vrot.slane %v4784_v55, 4  ;;  %v2869_v16 = vrot.slane %v2855_v5, %v18324_v37  ;;  %v2870_v51 = vcombine.high %v2862_v38, %v2862_v38  ;;  %v4728_v22 = vsel %vm3383_vm4, %v2862_v38, -inf }
 0x315   : > { %v2905_v53 = vcombine.high %v2903_v23, %v2903_v23  ;;  %v4791_v17 = vsel %vm3383_vm4, %v2904_v11, -inf  ;;  %v4798_v49 = vsel %vm3383_vm4, %v2903_v23, -inf  ;;  %v4729_v15 = vrot.slane %v4728_v22, 4 }
 0x316   : > { %v4786_v1 = vmax.f32 %v4784_v55, %v4785_v3  ;;  %v4792_v26 = vrot.slane %v4791_v17, 4  ;;  %v4799_v60 = vrot.slane %v4798_v49, 4  ;;  %v2871_v59 = vcombine.high %v2869_v16, %v2869_v16 }
 0x317   : > { %v4805_v54 = vsel %vm3383_vm4, %v2905_v53, -inf  ;;  %v4730_v27 = vmax.f32 %v4728_v22, %v4729_v15  ;;  %v4735_v61 = vsel %vm3383_vm4, %v2870_v51, -inf  ;;  %v4742_v57 = vsel %vm3383_vm4, %v2869_v16, -inf }
 0x318   : > { %v4787_v19 = vrot.slane %v4786_v1, 2  ;;  %v4793_v41 = vmax.f32 %v4791_v17, %v4792_v26  ;;  %v4800_v29 = vmax.f32 %v4798_v49, %v4799_v60  ;;  %v4806_v46 = vrot.slane %v4805_v54, 4 }
 0x319   : > { %v4731_v39 = vrot.slane %v4730_v27, 2  ;;  %v4736_v10 = vrot.slane %v4735_v61, 4  ;;  %v4743_v21 = vrot.slane %v4742_v57, 4  ;;  %v4749_v8 = vsel %vm3383_vm4, %v2871_v59, -inf  ;;  %v17153_v59 = vld [vmem:[%s22453_s3 + $0x20] sm:$0xff]  }
 0x31a   : > { %v4788_v43 = vmax.f32 %v4786_v1, %v4787_v19  ;;  %v4794_v48 = vrot.slane %v4793_v41, 2  ;;  %v4801_v0 = vrot.slane %v4800_v29, 2  ;;  %v4807_v47 = vmax.f32 %v4805_v54, %v4806_v46  ;;  %16287 = vmatprep.subr.bf16.mxu1 %v17153_v59 }
 0x31b   : > { %v4732_v4 = vmax.f32 %v4730_v27, %v4731_v39  ;;  %v4737_v7 = vmax.f32 %v4735_v61, %v4736_v10  ;;  %v4744_v35 = vmax.f32 %v4742_v57, %v4743_v21  ;;  %v4750_v32 = vrot.slane %v4749_v8, 4 }
 0x31c   : > { %v4789_v44 = vrot.slane %v4788_v43, 1  ;;  %v4795_v52 = vmax.f32 %v4793_v41, %v4794_v48  ;;  %v4802_v28 = vmax.f32 %v4800_v29, %v4801_v0  ;;  %v4808_v5 = vrot.slane %v4807_v47, 2 }
 0x31d   : > { %v4733_v38 = vrot.slane %v4732_v4, 1  ;;  %v4738_v23 = vrot.slane %v4737_v7, 2  ;;  %v4745_v11 = vrot.slane %v4744_v35, 2  ;;  %v4751_v55 = vmax.f32 %v4749_v8, %v4750_v32 }
 0x31e   : > { %v4790_v3 = vmax.f32 %v4788_v43, %v4789_v44  ;;  %v4796_v16 = vrot.slane %v4795_v52, 1  ;;  %v4803_v51 = vrot.slane %v4802_v28, 1  ;;  %v4809_v22 = vmax.f32 %v4807_v47, %v4808_v5 }
 0x31f   : > { %v4734_v53 = vmax.f32 %v4732_v4, %v4733_v38  ;;  %v4739_v17 = vmax.f32 %v4737_v7, %v4738_v23  ;;  %v4746_v49 = vmax.f32 %v4744_v35, %v4745_v11  ;;  %v4752_v15 = vrot.slane %v4751_v55, 2 }
 0x320   : > { %v4797_v13 = vmax.f32 %v4795_v52, %v4796_v16  ;;  %v4804_v1 = vmax.f32 %v4802_v28, %v4803_v51  ;;  %v4810_v26 = vrot.slane %v4809_v22, 1  ;;  %v2920_v60 = vrot.slane %v2906_v6, %v18324_v37 }
 0x321   : > { %v4740_v54 = vrot.slane %v4739_v17, 1  ;;  %v4747_v27 = vrot.slane %v4746_v49, 1  ;;  %v4753_v61 = vmax.f32 %v4751_v55, %v4752_v15  ;;  %v2921_v57 = vcombine.high %v19625_v25, %v19625_v25 }
 0x322   : > { %v4811_v19 = vmax.f32 %v4809_v22, %v4810_v26  ;;  %v5668_v41 = vsel %vm5486_vm5, %v4797_v13, %v4790_v3  ;;  %v2922_v29 = vcombine.high %v2920_v60, %v2920_v60  ;;  %v4812_v46 = vsel %vm3383_vm4, %v19625_v25, -inf }
 0x323   : > { %v5669_v6 = vsel %vm5488_vm6, %v4804_v1, %v5668_v41  ;;  %v4741_v39 = vmax.f32 %v4739_v17, %v4740_v54  ;;  %v4748_v10 = vmax.f32 %v4746_v49, %v4747_v27  ;;  %v4754_v21 = vrot.slane %v4753_v61, 1 }
 0x324   : > { %v4813_v8 = vrot.slane %v4812_v46, 4  ;;  %v4819_v43 = vsel %vm3383_vm4, %v2921_v57, -inf  ;;  %v4826_v48 = vsel %vm3383_vm4, %v2920_v60, -inf  ;;  %v4833_v0 = vsel %vm3383_vm4, %v2922_v29, -inf }
 0x325   : > { %v4755_v47 = vmax.f32 %v4753_v61, %v4754_v21  ;;  %v5661_v4 = vsel %vm5486_vm5, %v4741_v39, %v4734_v53  ;;  %v4820_v7 = vrot.slane %v4819_v43, 4  ;;  %v4827_v35 = vrot.slane %v4826_v48, 4 }
 0x326   : > { %v5662_v25 = vsel %vm5488_vm6, %v4748_v10, %v5661_v4  ;;  %v4814_v32 = vmax.f32 %v4812_v46, %v4813_v8  ;;  %v4834_v44 = vrot.slane %v4833_v0, 4  ;;  %v5670_v52 = vsel %vm5490_vm7, %v4811_v19, %v5669_v6  ;;  %v5857_v4 = vld [vmem:[#allocation2 + $0x111] sm:$0xff] }
 0x327   : > { %v4821_v28 = vmax.f32 %v4819_v43, %v4820_v7  ;;  %v4828_v5 = vmax.f32 %v4826_v48, %v4827_v35  ;;  %v1755_v38 = vmax.f32 %v19610_v40, 0.0  ;;  %v19656_v23 = vsel %vm5490_vm7, %v4755_v47, %v5662_v25  ;;  %v5856_v47 = vld [vmem:[#allocation2 + $0x109] sm:$0xff] }
 0x328   : > { %v4815_v11 = vrot.slane %v4814_v32, 2  ;;  %v4835_v55 = vmax.f32 %v4833_v0, %v4834_v44  ;;  %v1760_v3 = vmax.f32 %v19614_v12, 0.0  ;;  %v1560_v16 = vadd.f32 %v19487_v50, %v19351_v30 }
 0x329   : > { %v4822_v51 = vrot.slane %v4821_v28, 2  ;;  %v4829_v22 = vrot.slane %v4828_v5, 2  ;;  %v1931_v53 = vsel %vm1782_vm3, %v1755_v38, -inf  ;;  %v1571_v17 = vadd.f32 %v19487_v50, %v19353_v42 }
 0x32a   : > { %v4816_v49 = vmax.f32 %v4814_v32, %v4815_v11  ;;  %v4836_v15 = vrot.slane %v4835_v55, 2  ;;  %v1932_v40 = vmax.f32 %v19594_v56, %v1931_v53  ;;  %v19666_v13 = vsel %vm1782_vm3, %v1760_v3, -inf }
 0x32b   : > { %v4823_v1 = vmax.f32 %v4821_v28, %v4822_v51  ;;  %v4830_v26 = vmax.f32 %v4828_v5, %v4829_v22  ;;  %v1758_v12 = vmax.f32 %v1560_v16, 0.0  ;;  %v1761_v60 = vmax.f32 %v1571_v17, 0.0 }
 0x32c   : > { %v4817_v59 = vrot.slane %v4816_v49, 1  ;;  %v4837_v30 = vmax.f32 %v4835_v55, %v4836_v15  ;;  %v2872_v54 = vcombine.high %v1932_v40, %v1932_v40  ;;  %v2879_v27 = vrot.slane %v1932_v40, %v18324_v37 }
 0x32d   : > { %v4824_v61 = vrot.slane %v4823_v1, 1  ;;  %v4831_v57 = vrot.slane %v4830_v26, 1  ;;  %v1939_v42 = vsel %vm1782_vm3, %v1758_v12, -inf  ;;  %v1948_v19 = vsel %vm1782_vm3, %v1761_v60, -inf }
 0x32e   : > { %v4818_v41 = vmax.f32 %v4816_v49, %v4817_v59  ;;  %v4838_v56 = vrot.slane %v4837_v30, 1  ;;  %v2886_v29 = vrot.slane %v2872_v54, %v18324_v37  ;;  %v2887_v46 = vcombine.high %v2879_v27, %v2879_v27 }
 0x32f   : > { %v4825_v6 = vmax.f32 %v4823_v1, %v4824_v61  ;;  %v4832_v39 = vmax.f32 %v4830_v26, %v4831_v57  ;;  %v4756_v10 = vsel %vm3383_vm4, %v2879_v27, -inf  ;;  %v1563_v21 = vadd.f32 %v19487_v50, %v19355_v31 }
 0x330   : > { %v4839_v8 = vmax.f32 %v4837_v30, %v4838_v56  ;;  %v5671_v43 = vsel %vm5492_vm8, %v4818_v41, %v5670_v52  ;;  %v2888_v48 = vcombine.high %v2886_v29, %v2886_v29  ;;  %v4757_v0 = vrot.slane %v4756_v10, 4 }
 0x331   : > { %v5672_v7 = vsel %vm5494_vm9, %v4825_v6, %v5671_v43  ;;  %v4763_v35 = vsel %vm3383_vm4, %v2887_v46, -inf  ;;  %v4770_v25 = vsel %vm3383_vm4, %v2886_v29, -inf  ;;  %v1759_v32 = vmax.f32 %v1563_v21, 0.0 }
 0x332   : > { %v5673_v44 = vsel %vm5496_vm10, %v4832_v39, %v5672_v7  ;;  %v4758_v28 = vmax.f32 %v4756_v10, %v4757_v0  ;;  %v4764_v5 = vrot.slane %v4763_v35, 4  ;;  %v4771_v38 = vrot.slane %v4770_v25, 4 }
 0x333   : > { %v5674_v31 = vsel %vm5498_vm11, %v4839_v8, %v5673_v44  ;;  %v4777_v52 = vsel %vm3383_vm4, %v2888_v48, -inf  ;;  %v1942_v11 = vsel %vm1782_vm3, %v1759_v32, -inf  ;;  %v5877_v55 = vpack.c.bf16 %v5857_v4, %v5856_v47 }
 0x334   : > { %5775 = vst.msk [vmem:[#allocation2 + $0x141] sm:$0xff] %vm1782_vm3, %v5674_v31  ;;  %v4759_v3 = vrot.slane %v4758_v28, 2  ;;  %v4765_v16 = vmax.f32 %v4763_v35, %v4764_v5  ;;  %v4772_v51 = vmax.f32 %v4770_v25, %v4771_v38  ;;  %v4778_v22 = vrot.slane %v4777_v52, 4 }
 0x335   : > { %16240 = vmatmul.mubr.msk.bf16.gmra.mrb[28].mxu1 %vm1782_vm3, %v5877_v55  ;;  %v1584_v53 = vadd.f32 %v19487_v50, %v19403_v2  ;;  %v1576_v17 = vadd.f32 %v19487_v50, %v19409_v62  ;;  %v1587_v49 = vadd.f32 %v19487_v50, %v19413_v14  ;;  %v1579_v15 = vadd.f32 %v19487_v50, %v19437_v36 }
 0x336   : > { %v4760_v40 = vmax.f32 %v4758_v28, %v4759_v3  ;;  %v4766_v1 = vrot.slane %v4765_v16, 2  ;;  %v4773_v26 = vrot.slane %v4772_v51, 2  ;;  %v4779_v12 = vmax.f32 %v4777_v52, %v4778_v22 }
 0x337   : > { %v1764_v60 = vmax.f32 %v1584_v53, 0.0  ;;  %v1762_v59 = vmax.f32 %v1576_v17, 0.0  ;;  %v1765_v30 = vmax.f32 %v1587_v49, 0.0  ;;  %v1763_v54 = vmax.f32 %v1579_v15, 0.0 }
 0x338   : > { %v4761_v27 = vrot.slane %v4760_v40, 1  ;;  %v4767_v61 = vmax.f32 %v4765_v16, %v4766_v1  ;;  %v4774_v2 = vmax.f32 %v4772_v51, %v4773_v26  ;;  %v4780_v57 = vrot.slane %v4779_v12, 2 }
 0x339   : > { %v1946_v62 = vsel %vm1782_vm3, %v1764_v60, -inf  ;;  %v1940_v41 = vsel %vm1782_vm3, %v1762_v59, -inf  ;;  %v1949_v14 = vsel %vm1782_vm3, %v1765_v30, -inf  ;;  %v1943_v36 = vsel %vm1782_vm3, %v1763_v54, -inf }
 0x33a   : > { %v4762_v56 = vmax.f32 %v4760_v40, %v4761_v27  ;;  %v4768_v29 = vrot.slane %v4767_v61, 1  ;;  %v4775_v46 = vrot.slane %v4774_v2, 1  ;;  %v4781_v6 = vmax.f32 %v4779_v12, %v4780_v57 }
 0x33b   : > { %v1947_v39 = vmax.f32 %v19666_v13, %v1946_v62  ;;  %v1941_v10 = vmax.f32 %v1939_v42, %v1940_v41  ;;  %v19698_v21 = vmax.f32 %v1948_v19, %v1949_v14  ;;  %v19700_v8 = vmax.f32 %v1942_v11, %v1943_v36 }
 0x33c   : > { %v4769_v43 = vmax.f32 %v4767_v61, %v4768_v29  ;;  %v4776_v48 = vmax.f32 %v4774_v2, %v4775_v46  ;;  %v4782_v0 = vrot.slane %v4781_v6, 1  ;;  %v5664_v47 = vsel %vm5492_vm8, %v4762_v56, %v19656_v23 }
 0x33d   : > { %v2957_v4 = vcombine.high %v1947_v39, %v1947_v39  ;;  %v2964_v7 = vrot.slane %v1947_v39, %v18324_v37  ;;  %v2923_v35 = vcombine.high %v1941_v10, %v1941_v10  ;;  %v2930_v25 = vrot.slane %v1941_v10, %v18324_v37 }
 0x33e   : > { %v4783_v32 = vmax.f32 %v4781_v6, %v4782_v0  ;;  %v5665_v13 = vsel %vm5494_vm9, %v4769_v43, %v5664_v47  ;;  %v2974_v42 = vcombine.high %v19698_v21, %v19698_v21 }
 0x33f   : > { %v5666_v19 = vsel %vm5496_vm10, %v4776_v48, %v5665_v13  ;;  %v2971_v44 = vrot.slane %v2957_v4, %v18324_v37  ;;  %v2972_v28 = vcombine.high %v2964_v7, %v2964_v7  ;;  %v4896_v5 = vsel %vm3383_vm4, %v2964_v7, -inf }
 0x340   : > { %v5667_v23 = vsel %vm5498_vm11, %v4783_v32, %v5666_v19  ;;  %v4897_v38 = vrot.slane %v4896_v5, 4  ;;  %v2937_v31 = vrot.slane %v2923_v35, %v18324_v37  ;;  %v2938_v52 = vcombine.high %v2930_v25, %v2930_v25 }
 0x341   : > { %5774 = vst.msk [vmem:[#allocation2 + $0x139] sm:$0xff] %vm1782_vm3, %v5667_v23  ;;  %v2973_v11 = vcombine.high %v2971_v44, %v2971_v44  ;;  %v4903_v55 = vsel %vm3383_vm4, %v2972_v28, -inf  ;;  %v4910_v3 = vsel %vm3383_vm4, %v2971_v44, -inf  ;;  %v4840_v16 = vsel %vm3383_vm4, %v2930_v25, -inf }
 0x342   : > { %v4898_v51 = vmax.f32 %v4896_v5, %v4897_v38  ;;  %v4904_v22 = vrot.slane %v4903_v55, 4  ;;  %v4911_v53 = vrot.slane %v4910_v3, 4  ;;  %v2939_v17 = vcombine.high %v2937_v31, %v2937_v31 }
 0x343   : > { %v4917_v49 = vsel %vm3383_vm4, %v2973_v11, -inf  ;;  %v4841_v15 = vrot.slane %v4840_v16, 4  ;;  %v4847_v40 = vsel %vm3383_vm4, %v2938_v52, -inf  ;;  %v4854_v1 = vsel %vm3383_vm4, %v2937_v31, -inf }
 0x344   : > { %v4899_v26 = vrot.slane %v4898_v51, 2  ;;  %v4905_v12 = vmax.f32 %v4903_v55, %v4904_v22  ;;  %v4912_v60 = vmax.f32 %v4910_v3, %v4911_v53  ;;  %v4918_v59 = vrot.slane %v4917_v49, 4 }
 0x345   : > { %v4842_v30 = vmax.f32 %v4840_v16, %v4841_v15  ;;  %v4848_v54 = vrot.slane %v4847_v40, 4  ;;  %v4855_v27 = vrot.slane %v4854_v1, 4  ;;  %v4861_v61 = vsel %vm3383_vm4, %v2939_v17, -inf }
 0x346   : > { %v4900_v2 = vmax.f32 %v4898_v51, %v4899_v26  ;;  %v4906_v57 = vrot.slane %v4905_v12, 2  ;;  %v4913_v62 = vrot.slane %v4912_v60, 2  ;;  %v4919_v41 = vmax.f32 %v4917_v49, %v4918_v59 }
 0x347   : > { %v4843_v14 = vrot.slane %v4842_v30, 2  ;;  %v4849_v36 = vmax.f32 %v4847_v40, %v4848_v54  ;;  %v4856_v56 = vmax.f32 %v4854_v1, %v4855_v27  ;;  %v4862_v29 = vrot.slane %v4861_v61, 4 }
 0x348   : > { %v4901_v46 = vrot.slane %v4900_v2, 1  ;;  %v4907_v6 = vmax.f32 %v4905_v12, %v4906_v57  ;;  %v4914_v39 = vmax.f32 %v4912_v60, %v4913_v62  ;;  %v4920_v10 = vrot.slane %v4919_v41, 2 }
 0x349   : > { %v4844_v43 = vmax.f32 %v4842_v30, %v4843_v14  ;;  %v4850_v48 = vrot.slane %v4849_v36, 2  ;;  %v4857_v0 = vrot.slane %v4856_v56, 2  ;;  %v4863_v47 = vmax.f32 %v4861_v61, %v4862_v29 }
 0x34a   : > { %v4908_v4 = vrot.slane %v4907_v6, 1  ;;  %v4915_v7 = vrot.slane %v4914_v39, 1  ;;  %v4921_v35 = vmax.f32 %v4919_v41, %v4920_v10  ;;  %v2981_v25 = vrot.slane %v19698_v21, %v18324_v37 }
 0x34b   : > { %v4845_v32 = vrot.slane %v4844_v43, 1  ;;  %v4851_v13 = vmax.f32 %v4849_v36, %v4850_v48  ;;  %v4858_v19 = vmax.f32 %v4856_v56, %v4857_v0  ;;  %v4864_v44 = vrot.slane %v4863_v47, 2 }
 0x34c   : > { %v4902_v28 = vmax.f32 %v4900_v2, %v4901_v46  ;;  %v4909_v5 = vmax.f32 %v4907_v6, %v4908_v4  ;;  %v4922_v23 = vrot.slane %v4921_v35, 1  ;;  %v2988_v38 = vrot.slane %v2974_v42, %v18324_v37 }
 0x34d   : > { %v4916_v31 = vmax.f32 %v4914_v39, %v4915_v7  ;;  %v4852_v52 = vrot.slane %v4851_v13, 1  ;;  %v4859_v11 = vrot.slane %v4858_v19, 1  ;;  %v4865_v55 = vmax.f32 %v4863_v47, %v4864_v44 }
 0x34e   : > { %v5682_v3 = vsel %vm5486_vm5, %v4909_v5, %v4902_v28  ;;  %v4846_v16 = vmax.f32 %v4844_v43, %v4845_v32  ;;  %v2989_v51 = vcombine.high %v2981_v25, %v2981_v25  ;;  %v2990_v22 = vcombine.high %v2988_v38, %v2988_v38 }
 0x34f   : > { %v4923_v53 = vmax.f32 %v4921_v35, %v4922_v23  ;;  %v4853_v21 = vmax.f32 %v4851_v13, %v4852_v52  ;;  %v4860_v17 = vmax.f32 %v4858_v19, %v4859_v11  ;;  %v4866_v49 = vrot.slane %v4865_v55, 1 }
 0x350   : > { %v4924_v15 = vsel %vm3383_vm4, %v2981_v25, -inf  ;;  %v4931_v40 = vsel %vm3383_vm4, %v2989_v51, -inf  ;;  %v4938_v1 = vsel %vm3383_vm4, %v2988_v38, -inf  ;;  %v4945_v42 = vsel %vm3383_vm4, %v2990_v22, -inf }
 0x351   : > { %v5683_v26 = vsel %vm5488_vm6, %v4916_v31, %v5682_v3  ;;  %v5675_v12 = vsel %vm5486_vm5, %v4853_v21, %v4846_v16  ;;  %v4925_v60 = vrot.slane %v4924_v15, 4  ;;  %v4932_v59 = vrot.slane %v4931_v40, 4 }
 0x352   : > { %v4867_v30 = vmax.f32 %v4865_v55, %v4866_v49  ;;  %v4939_v54 = vrot.slane %v4938_v1, 4  ;;  %v4946_v27 = vrot.slane %v4945_v42, 4  ;;  %v2940_v57 = vcombine.high %v19700_v8, %v19700_v8 }
 0x353   : > { %v4926_v61 = vmax.f32 %v4924_v15, %v4925_v60  ;;  %v4933_v2 = vmax.f32 %v4931_v40, %v4932_v59  ;;  %v2947_v62 = vrot.slane %v19700_v8, %v18324_v37  ;;  %v5676_v41 = vsel %vm5488_vm6, %v4860_v17, %v5675_v12 }
 0x354   : > { %v4940_v14 = vmax.f32 %v4938_v1, %v4939_v54  ;;  %v4947_v36 = vmax.f32 %v4945_v42, %v4946_v27  ;;  %v5684_v56 = vsel %vm5490_vm7, %v4923_v53, %v5683_v26  ;;  %v2954_v6 = vrot.slane %v2940_v57, %v18324_v37  ;;  %v19750_v42 = vld [vmem:[%s22454_s2] ss:$0 sm:$0xff]  ;;  %v5858_v27 = vld [vmem:[#allocation2 + $0x121] sm:$0xff]  ;;  %s22387_s2 = scalar_lea.hbm %s22442_s13, %s15735_s20 }
 0x355   : > { %v4927_v29 = vrot.slane %v4926_v61, 2  ;;  %v4934_v46 = vrot.slane %v4933_v2, 2  ;;  %v2955_v39 = vcombine.high %v2947_v62, %v2947_v62  ;;  %v4868_v48 = vsel %vm3383_vm4, %v2947_v62, -inf }
 0x356   : > { %v4941_v10 = vrot.slane %v4940_v14, 2  ;;  %v4948_v43 = vrot.slane %v4947_v36, 2  ;;  %v1600_v0 = vadd.f32 %v19487_v50, %v19460_v63  ;;  %v2956_v4 = vcombine.high %v2954_v6, %v2954_v6 }
 0x357   : > { %v4928_v47 = vmax.f32 %v4926_v61, %v4927_v29  ;;  %v4935_v8 = vmax.f32 %v4933_v2, %v4934_v46  ;;  %v4869_v7 = vrot.slane %v4868_v48, 4  ;;  %v4875_v32 = vsel %vm3383_vm4, %v2955_v39, -inf  ;;  %v5859_v61 = vld [vmem:[#allocation2 + $0x129] sm:$0xff] }
 0x358   : > { %v4942_v35 = vmax.f32 %v4940_v14, %v4941_v10  ;;  %v4949_v25 = vmax.f32 %v4947_v36, %v4948_v43  ;;  %v4882_v13 = vsel %vm3383_vm4, %v2954_v6, -inf  ;;  %v4876_v5 = vrot.slane %v4875_v32, 4 }
 0x359   : > { %v4929_v19 = vrot.slane %v4928_v47, 1  ;;  %v4936_v44 = vrot.slane %v4935_v8, 1  ;;  %v4870_v28 = vmax.f32 %v4868_v48, %v4869_v7  ;;  %v4883_v31 = vrot.slane %v4882_v13, 4 }
 0x35a   : > { %v4943_v23 = vrot.slane %v4942_v35, 1  ;;  %v4950_v38 = vrot.slane %v4949_v25, 1  ;;  %v4889_v52 = vsel %vm3383_vm4, %v2956_v4, -inf  ;;  %v4877_v11 = vmax.f32 %v4875_v32, %v4876_v5  ;;  %v5861_v4 = vld [vmem:[#allocation2 + $0x141] sm:$0xff] }
 0x35b   : > { %v4930_v63 = vmax.f32 %v4928_v47, %v4929_v19  ;;  %v4871_v50 = vrot.slane %v4870_v28, 2  ;;  %v1768_v55 = vmax.f32 %v1600_v0, 0.0  ;;  %v4937_v3 = vmax.f32 %v4935_v8, %v4936_v44  ;;  %v5860_v8 = vld [vmem:[#allocation2 + $0x139] sm:$0xff] }
 0x35c   : > { %v4944_v16 = vmax.f32 %v4942_v35, %v4943_v23  ;;  %v4884_v51 = vmax.f32 %v4882_v13, %v4883_v31  ;;  %v4890_v22 = vrot.slane %v4889_v52, 4  ;;  %v4951_v53 = vmax.f32 %v4949_v25, %v4950_v38 }
 0x35d   : > { %v5685_v21 = vsel %vm5492_vm8, %v4930_v63, %v5684_v56  ;;  %v4872_v17 = vmax.f32 %v4870_v28, %v4871_v50  ;;  %v4878_v49 = vrot.slane %v4877_v11, 2  ;;  %v1592_v26 = vadd.f32 %v19750_v42, %v19467_v45 }
 0x35e   : > { %v5686_v15 = vsel %vm5494_vm9, %v4937_v3, %v5685_v21  ;;  %v4885_v40 = vrot.slane %v4884_v51, 2  ;;  %v4891_v1 = vmax.f32 %v4889_v52, %v4890_v22  ;;  %v1603_v54 = vadd.f32 %v19750_v42, %v19481_v58 }
 0x35f   : > { %v5687_v12 = vsel %vm5496_vm10, %v4944_v16, %v5686_v15  ;;  %v4873_v60 = vrot.slane %v4872_v17, 1  ;;  %v4879_v59 = vmax.f32 %v4877_v11, %v4878_v49  ;;  %v5677_v14 = vsel %vm5490_vm7, %v4867_v30, %v5676_v41 }
 0x360   : > { %v5688_v2 = vsel %vm5498_vm11, %v4951_v53, %v5687_v12  ;;  %v4886_v57 = vmax.f32 %v4884_v51, %v4885_v40  ;;  %v4892_v62 = vrot.slane %v4891_v1, 2  ;;  %v1766_v45 = vmax.f32 %v1592_v26, 0.0 }
 0x361   : > { %5777 = vst.msk [vmem:[#allocation2 + $0x159] sm:$0xff] %vm1782_vm3, %v5688_v2  ;;  %v4874_v36 = vmax.f32 %v4872_v17, %v4873_v60  ;;  %v4880_v56 = vrot.slane %v4879_v59, 1  ;;  %v1595_v29 = vadd.f32 %v19750_v42, %v19491_v18  ;;  %v1957_v58 = vsel %vm1782_vm3, %v1768_v55, -inf }
 0x362   : > { %v4887_v46 = vrot.slane %v4886_v57, 1  ;;  %v4893_v6 = vmax.f32 %v4891_v1, %v4892_v62  ;;  %v5878_v39 = vpack.c.bf16 %v5859_v61, %v5858_v27  ;;  %v1769_v48 = vmax.f32 %v1603_v54, 0.0 }
 0x363   : > { %v4881_v10 = vmax.f32 %v4879_v59, %v4880_v56  ;;  %v5678_v43 = vsel %vm5492_vm8, %v4874_v36, %v5677_v14  ;;  %v1767_v0 = vmax.f32 %v1595_v29, 0.0  ;;  %v1616_v41 = vadd.f32 %v19750_v42, %v19536_v34 }
 0x364   : > { %v4888_v47 = vmax.f32 %v4886_v57, %v4887_v46  ;;  %v4894_v30 = vrot.slane %v4893_v6, 1  ;;  %16243 = vmatprep.mubr.msk.bf16.mxu1 %vm1782_vm3, %v5878_v39  ;;  %v1608_v18 = vadd.f32 %v19750_v42, %v19540_v33  ;;  %v1951_v35 = vsel %vm1782_vm3, %v1766_v45, -inf }
 0x365   : > { %v5679_v7 = vsel %vm5494_vm9, %v4881_v10, %v5678_v43  ;;  %v1619_v25 = vadd.f32 %v19750_v42, %v19544_v20  ;;  %v1611_v32 = vadd.f32 %v19750_v42, %v19550_v9  ;;  %v1772_v44 = vmax.f32 %v1616_v41, 0.0 }
 0x366   : > { %v4895_v13 = vmax.f32 %v4893_v6, %v4894_v30  ;;  %v5680_v19 = vsel %vm5496_vm10, %v4888_v47, %v5679_v7  ;;  %v1770_v34 = vmax.f32 %v1608_v18, 0.0  ;;  %v1960_v28 = vsel %vm1782_vm3, %v1769_v48, -inf }
 0x367   : > { %v1773_v33 = vmax.f32 %v1619_v25, 0.0  ;;  %v1771_v5 = vmax.f32 %v1611_v32, 0.0  ;;  %v19777_v23 = vpack.c.bf16 %v5861_v4, %v5860_v8  ;;  %v1954_v31 = vsel %vm1782_vm3, %v1767_v0, -inf }
 0x368   : > { %v5681_v38 = vsel %vm5498_vm11, %v4895_v13, %v5680_v19  ;;  %v1958_v20 = vsel %vm1782_vm3, %v1772_v44, -inf  ;;  %v1952_v52 = vsel %vm1782_vm3, %v1770_v34, -inf }
 0x369   : > { %5776 = vst.msk [vmem:[#allocation2 + $0x151] sm:$0xff] %vm1782_vm3, %v5681_v38  ;;  %v1959_v9 = vmax.f32 %v1957_v58, %v1958_v20  ;;  %v1953_v63 = vmax.f32 %v1951_v35, %v1952_v52  ;;  %v1961_v50 = vsel %vm1782_vm3, %v1773_v33, -inf  ;;  %v1955_v11 = vsel %vm1782_vm3, %v1771_v5, -inf  ;;  %16244 = vmatmul.mubr.msk.bf16.gmra.mrb[32].mxu1 %vm1782_vm3, %v19777_v23 }
 0x36a   : > { %v1962_v55 = vmax.f32 %v1960_v28, %v1961_v50  ;;  %v19788_v3 = vmax.f32 %v1954_v31, %v1955_v11 }
 0x36b   : > { %v3025_v16 = vcombine.high %v1959_v9, %v1959_v9  ;;  %v3032_v51 = vrot.slane %v1959_v9, %v18324_v37  ;;  %v2991_v22 = vcombine.high %v1953_v63, %v1953_v63  ;;  %v2998_v53 = vrot.slane %v1953_v63, %v18324_v37 }
 0x36c   : > { %v3042_v21 = vcombine.high %v1962_v55, %v1962_v55  ;;  %v19793_v17 = vrot.slane %v1962_v55, %v18324_v37  ;;  %v3008_v49 = vcombine.high %v19788_v3, %v19788_v3 }
 0x36d   : > { %v3039_v15 = vrot.slane %v3025_v16, %v18324_v37  ;;  %v3040_v40 = vcombine.high %v3032_v51, %v3032_v51  ;;  %v5008_v1 = vsel %vm3383_vm4, %v3032_v51, -inf  ;;  %v3005_v26 = vrot.slane %v2991_v22, %v18324_v37 }
 0x36e   : > { %v5009_v12 = vrot.slane %v5008_v1, 4  ;;  %v3006_v60 = vcombine.high %v2998_v53, %v2998_v53  ;;  %v4952_v59 = vsel %vm3383_vm4, %v2998_v53, -inf  ;;  %v19802_v54 = vrot.slane %v3042_v21, %v18324_v37 }
 0x36f   : > { %v3041_v27 = vcombine.high %v3039_v15, %v3039_v15  ;;  %v5015_v61 = vsel %vm3383_vm4, %v3040_v40, -inf  ;;  %v5022_v2 = vsel %vm3383_vm4, %v3039_v15, -inf  ;;  %v3007_v57 = vcombine.high %v3005_v26, %v3005_v26 }
 0x370   : > { %v5010_v62 = vmax.f32 %v5008_v1, %v5009_v12  ;;  %v5016_v14 = vrot.slane %v5015_v61, 4  ;;  %v5023_v36 = vrot.slane %v5022_v2, 4  ;;  %v4953_v56 = vrot.slane %v4952_v59, 4 }
 0x371   : > { %v5029_v45 = vsel %vm3383_vm4, %v3041_v27, -inf  ;;  %v4959_v29 = vsel %vm3383_vm4, %v3006_v60, -inf  ;;  %v4966_v46 = vsel %vm3383_vm4, %v3005_v26, -inf  ;;  %v4973_v6 = vsel %vm3383_vm4, %v3007_v57, -inf }
 0x372   : > { %v5011_v58 = vrot.slane %v5010_v62, 2  ;;  %v5017_v39 = vmax.f32 %v5015_v61, %v5016_v14  ;;  %v5024_v10 = vmax.f32 %v5022_v2, %v5023_v36  ;;  %v5030_v43 = vrot.slane %v5029_v45, 4 }
 0x373   : > { %v4954_v48 = vmax.f32 %v4952_v59, %v4953_v56  ;;  %v4960_v0 = vrot.slane %v4959_v29, 4  ;;  %v4967_v47 = vrot.slane %v4966_v46, 4  ;;  %v4974_v30 = vrot.slane %v4973_v6, 4 }
 0x374   : > { %v5012_v41 = vmax.f32 %v5010_v62, %v5011_v58  ;;  %v5018_v18 = vrot.slane %v5017_v39, 2  ;;  %v5025_v8 = vrot.slane %v5024_v10, 2  ;;  %v5031_v4 = vmax.f32 %v5029_v45, %v5030_v43 }
 0x375   : > { %v4955_v7 = vrot.slane %v4954_v48, 2  ;;  %v4961_v35 = vmax.f32 %v4959_v29, %v4960_v0  ;;  %v4968_v25 = vmax.f32 %v4966_v46, %v4967_v47  ;;  %v4975_v32 = vmax.f32 %v4973_v6, %v4974_v30 }
 0x376   : > { %v5013_v13 = vrot.slane %v5012_v41, 1  ;;  %v5019_v19 = vmax.f32 %v5017_v39, %v5018_v18  ;;  %v5026_v44 = vmax.f32 %v5024_v10, %v5025_v8  ;;  %v5032_v34 = vrot.slane %v5031_v4, 2 }
 0x377   : > { %v4956_v28 = vmax.f32 %v4954_v48, %v4955_v7  ;;  %v4962_v33 = vrot.slane %v4961_v35, 2  ;;  %v4969_v5 = vrot.slane %v4968_v25, 2  ;;  %v4976_v38 = vrot.slane %v4975_v32, 2 }
 0x378   : > { %v5014_v31 = vmax.f32 %v5012_v41, %v5013_v13  ;;  %v5020_v20 = vrot.slane %v5019_v19, 1  ;;  %v5027_v52 = vrot.slane %v5026_v44, 1  ;;  %v5033_v9 = vmax.f32 %v5031_v4, %v5032_v34 }
 0x379   : > { %v4957_v63 = vrot.slane %v4956_v28, 1  ;;  %v4963_v50 = vmax.f32 %v4961_v35, %v4962_v33  ;;  %v4970_v11 = vmax.f32 %v4968_v25, %v4969_v5  ;;  %v4977_v55 = vmax.f32 %v4975_v32, %v4976_v38 }
 0x37a   : > { %v5021_v16 = vmax.f32 %v5019_v19, %v5020_v20  ;;  %v5028_v51 = vmax.f32 %v5026_v44, %v5027_v52  ;;  %v5034_v22 = vrot.slane %v5033_v9, 1  ;;  %v3057_v53 = vcombine.high %v19793_v17, %v19793_v17 }
 0x37b   : > { %v4964_v21 = vrot.slane %v4963_v50, 1  ;;  %v4971_v15 = vrot.slane %v4970_v11, 1  ;;  %v4978_v40 = vrot.slane %v4977_v55, 1  ;;  %v3015_v1 = vrot.slane %v19788_v3, %v18324_v37 }
 0x37c   : > { %v5035_v26 = vmax.f32 %v5033_v9, %v5034_v22  ;;  %v5696_v12 = vsel %vm5486_vm5, %v5021_v16, %v5014_v31  ;;  %v3058_v60 = vcombine.high %v19802_v54, %v19802_v54  ;;  %v5036_v59 = vsel %vm3383_vm4, %v19793_v17, -inf  ;;  %v5862_v16 = vld [vmem:[#allocation2 + $0x151] sm:$0xff] }
 0x37d   : > { %v5697_v27 = vsel %vm5488_vm6, %v5028_v51, %v5696_v12  ;;  %v4958_v61 = vmax.f32 %v4956_v28, %v4957_v63  ;;  %v4965_v2 = vmax.f32 %v4963_v50, %v4964_v21  ;;  %v4972_v57 = vmax.f32 %v4970_v11, %v4971_v15  ;;  %v5863_v51 = vld [vmem:[#allocation2 + $0x159] sm:$0xff] }
 0x37e   : > { %v5037_v62 = vrot.slane %v5036_v59, 4  ;;  %v5043_v14 = vsel %vm3383_vm4, %v3057_v53, -inf  ;;  %v5050_v36 = vsel %vm3383_vm4, %v19802_v54, -inf  ;;  %v5057_v56 = vsel %vm3383_vm4, %v3058_v60, -inf }
 0x37f   : > { %v4979_v45 = vmax.f32 %v4977_v55, %v4978_v40  ;;  %v5044_v29 = vrot.slane %v5043_v14, 4  ;;  %v5051_v46 = vrot.slane %v5050_v36, 4  ;;  %v5058_v6 = vrot.slane %v5057_v56, 4 }
 0x380   : > { %v5689_v58 = vsel %vm5486_vm5, %v4965_v2, %v4958_v61  ;;  %v5038_v17 = vmax.f32 %v5036_v59, %v5037_v62  ;;  %v5698_v39 = vsel %vm5490_vm7, %v5035_v26, %v5697_v27  ;;  %v3022_v10 = vrot.slane %v3008_v49, %v18324_v37 }
 0x381   : > { %v5045_v43 = vmax.f32 %v5043_v14, %v5044_v29  ;;  %v5052_v48 = vmax.f32 %v5050_v36, %v5051_v46  ;;  %v5059_v0 = vmax.f32 %v5057_v56, %v5058_v6  ;;  %v3023_v54 = vcombine.high %v3015_v1, %v3015_v1 }
 0x382   : > { %v5039_v47 = vrot.slane %v5038_v17, 2  ;;  %v3024_v30 = vcombine.high %v3022_v10, %v3022_v10  ;;  %v4980_v41 = vsel %vm3383_vm4, %v3015_v1, -inf  ;;  %v4994_v18 = vsel %vm3383_vm4, %v3022_v10, -inf }
 0x383   : > { %v5046_v8 = vrot.slane %v5045_v43, 2  ;;  %v5053_v4 = vrot.slane %v5052_v48, 2  ;;  %v5060_v7 = vrot.slane %v5059_v0, 2  ;;  %v4981_v35 = vrot.slane %v4980_v41, 4 }
 0x384   : > { %v5040_v25 = vmax.f32 %v5038_v17, %v5039_v47  ;;  %v4987_v32 = vsel %vm3383_vm4, %v3023_v54, -inf  ;;  %v4995_v13 = vrot.slane %v4994_v18, 4  ;;  %v5001_v3 = vsel %vm3383_vm4, %v3024_v30, -inf  ;;  %v5782_v54 = vld [vmem:[#allocation2] sm:$0xff]  ;;  %v5783_v47 = vld [vmem:[#allocation2 + $0x8] sm:$0xff] }
 0x385   : > { %v5047_v49 = vmax.f32 %v5045_v43, %v5046_v8  ;;  %v5054_v19 = vmax.f32 %v5052_v48, %v5053_v4  ;;  %v5061_v44 = vmax.f32 %v5059_v0, %v5060_v7  ;;  %v4982_v34 = vmax.f32 %v4980_v41, %v4981_v35  ;;  %v16209_v0 = vpop.f32.mrb[0].mxu1 }
 0x386   : > { %v5041_v28 = vrot.slane %v5040_v25, 1  ;;  %v4988_v33 = vrot.slane %v4987_v32, 4  ;;  %v4996_v5 = vmax.f32 %v4994_v18, %v4995_v13  ;;  %v5002_v38 = vrot.slane %v5001_v3, 4  ;;  %v1623_v41 = vpop.f32.mrb[1].mxu1  ;;  %v5784_v13 = vld [vmem:[#allocation2 + $0x18] sm:$0xff] }
 0x387   : > { %v5048_v31 = vrot.slane %v5047_v49, 1  ;;  %v5055_v20 = vrot.slane %v5054_v19, 1  ;;  %v5062_v52 = vrot.slane %v5061_v44, 1  ;;  %v4983_v9 = vrot.slane %v4982_v34, 2  ;;  %v16210_v4 = vpop.f32.mrb[2].mxu1 }
 0x388   : > { %v5042_v63 = vmax.f32 %v5040_v25, %v5041_v28  ;;  %v4989_v50 = vmax.f32 %v4987_v32, %v4988_v33  ;;  %v4997_v11 = vrot.slane %v4996_v5, 2  ;;  %v5003_v55 = vmax.f32 %v5001_v3, %v5002_v38  ;;  %v1626_v35 = vpop.f32.mrb[3].mxu1  ;;  %v5786_v28 = vld [vmem:[#allocation2 + $0x30] sm:$0xff]  ;;  %v5787_v33 = vld [vmem:[#allocation2 + $0x38] sm:$0xff]  ;;  %v5788_v38 = vld [vmem:[#allocation2 + $0x48] sm:$0xff] }
 0x389   : > { %v5690_v22 = vsel %vm5488_vm6, %v4972_v57, %v5689_v58  ;;  %v5049_v53 = vmax.f32 %v5047_v49, %v5048_v31  ;;  %v5056_v21 = vmax.f32 %v5054_v19, %v5055_v20  ;;  %v4984_v15 = vmax.f32 %v4982_v34, %v4983_v9  ;;  %v16213_v19 = vpop.f32.mrb[4].mxu1  ;;  %v5785_v34 = vld [vmem:[#allocation2 + $0x20] sm:$0xff]  ;;  %v5789_v31 = vld [vmem:[#allocation2 + $0x50] sm:$0xff] }
 0x38a   : > { %v5699_v40 = vsel %vm5492_vm8, %v5042_v63, %v5698_v39  ;;  %v4990_v1 = vrot.slane %v4989_v50, 2  ;;  %v4998_v26 = vmax.f32 %v4996_v5, %v4997_v11  ;;  %v5004_v12 = vrot.slane %v5003_v55, 2  ;;  %v1639_v5 = vpop.f32.mrb[5].mxu1  ;;  %v5790_v20 = vld [vmem:[#allocation2 + $0x60] sm:$0xff]  ;;  %v5791_v63 = vld [vmem:[#allocation2 + $0x68] sm:$0xff] }
 0x38b   : > { %v5063_v60 = vmax.f32 %v5061_v44, %v5062_v52  ;;  %v5700_v59 = vsel %vm5494_vm9, %v5049_v53, %v5699_v40  ;;  %v4985_v27 = vrot.slane %v4984_v15, 1  ;;  %v19837_v61 = vpack.c.bf16 %v5863_v51, %v5862_v16  ;;  %v5793_v11 = vld [vmem:[#allocation2 + $0x80] sm:$0xff]  ;;  %v5794_v16 = vld [vmem:[#allocation2 + $0x90] sm:$0xff] }
 0x38c   : > { %v5701_v2 = vsel %vm5496_vm10, %v5056_v21, %v5700_v59  ;;  %v4991_v62 = vmax.f32 %v4989_v50, %v4990_v1  ;;  %v5005_v14 = vmax.f32 %v5003_v55, %v5004_v12  ;;  %v5691_v57 = vsel %vm5490_vm7, %v4979_v45, %v5690_v22  ;;  %v5792_v50 = vld [vmem:[#allocation2 + $0x78] sm:$0xff]  ;;  %v5797_v59 = vld [vmem:[#allocation2 + $0xb0] sm:$0xff] }
 0x38d   : > { %v5702_v36 = vsel %vm5498_vm11, %v5063_v60, %v5701_v2  ;;  %v4986_v56 = vmax.f32 %v4984_v15, %v4985_v27  ;;  %v4999_v29 = vrot.slane %v4998_v26, 1  ;;  %16247 = vmatprep.mubr.msk.bf16.mxu1 %vm1782_vm3, %v19837_v61  ;;  %v1632_v30 = vadd.f32 %v19750_v42, %v16209_v0  ;;  %v16214_v15 = vpop.f32.mrb[6].mxu1  ;;  %v5795_v12 = vld [vmem:[#allocation2 + $0x98] sm:$0xff]  ;;  %v5796_v60 = vld [vmem:[#allocation2 + $0xa8] sm:$0xff] }
 0x38e   : > { %5779 = vst.msk [vmem:[#allocation2 + $0x171] sm:$0xff] %vm1782_vm3, %v5702_v36  ;;  %v4992_v46 = vrot.slane %v4991_v62, 1  ;;  %v5006_v6 = vrot.slane %v5005_v14, 1  ;;  %v1624_v8 = vadd.f32 %v19750_v42, %v1623_v41  ;;  %v5814_v32 = vpack.c.bf16 %v5783_v47, %v5782_v54  ;;  %v1642_v2 = vpop.f32.mrb[7].mxu1 }
 0x38f   : > { %v5692_v58 = vsel %vm5492_vm8, %v4986_v56, %v5691_v57  ;;  %v5000_v39 = vmax.f32 %v4998_v26, %v4999_v29  ;;  %v1776_v7 = vmax.f32 %v1632_v30, 0.0  ;;  %v1635_v49 = vadd.f32 %v19750_v42, %v16210_v4  ;;  %v5798_v29 = vld [vmem:[#allocation2 + $0xc0] sm:$0xff] }
 0x390   : > { %v4993_v17 = vmax.f32 %v4991_v62, %v4992_v46  ;;  %v5007_v10 = vmax.f32 %v5005_v14, %v5006_v6  ;;  %v1774_v3 = vmax.f32 %v1624_v8, 0.0  ;;  %v1648_v52 = vadd.f32 %v19750_v42, %v16213_v19  ;;  %v5799_v46 = vld [vmem:[#allocation2 + $0xc8] sm:$0xff] }
 0x391   : > { %v1640_v9 = vadd.f32 %v19750_v42, %v1639_v5  ;;  %v1969_v55 = vsel %vm1782_vm3, %v1776_v7, -inf  ;;  %v1777_v22 = vmax.f32 %v1635_v49, 0.0  ;;  %v19862_v40 = vpack.c.bf16 %v5785_v34, %v5784_v13  ;;  %v19912_v34 = vld [vmem:[%s22453_s3 + $0x30] sm:$0xff]  }
 0x392   : > { %v5693_v43 = vsel %vm5494_vm9, %v4993_v17, %v5692_v58  ;;  %v1963_v51 = vsel %vm1782_vm3, %v1774_v3, -inf  ;;  %v1780_v53 = vmax.f32 %v1648_v52, 0.0  ;;  %v19864_v1 = vpack.c.bf16 %v5787_v33, %v5786_v28 }
 0x393   : > { %v5694_v45 = vsel %vm5496_vm10, %v5000_v39, %v5693_v43  ;;  %v1778_v21 = vmax.f32 %v1640_v9, 0.0  ;;  %v19866_v26 = vpack.c.bf16 %v5789_v31, %v5788_v38  ;;  %v1651_v27 = vadd.f32 %v19750_v42, %v16214_v15 }
 0x394   : > { %v5695_v48 = vsel %vm5498_vm11, %v5007_v10, %v5694_v45  ;;  %v19870_v62 = vadd.f32 %v19750_v42, %v1626_v35  ;;  %v1970_v14 = vsel %vm1782_vm3, %v1780_v53, -inf  ;;  %v19875_v36 = vadd.f32 %v19750_v42, %v1642_v2  ;;  %v17154_v42 = vld [vmem:[%s22453_s3 + $0x28] sm:$0xff]  }
 0x395   : > { %5778 = vst.msk [vmem:[#allocation2 + $0x169] sm:$0xff] %vm1782_vm3, %v5695_v48  ;;  %v5865_v18 = vld [vmem:[#allocation2 + $0x171] sm:$0xff]  ;;  %v1964_v57 = vsel %vm1782_vm3, %v1778_v21, -inf  ;;  %v19877_v56 = vpack.c.bf16 %v5791_v63, %v5790_v20  ;;  %v1971_v6 = vmax.f32 %v1969_v55, %v1970_v14  ;;  %v1781_v17 = vmax.f32 %v1651_v27, 0.0 }
 0x396   : > { %v1965_v58 = vmax.f32 %v1963_v51, %v1964_v57  ;;  %v19879_v39 = vpack.c.bf16 %v5793_v11, %v5792_v50  ;;  %v19881_v10 = vpack.c.bf16 %v5795_v12, %v5794_v16  ;;  %v19883_v43 = vpack.c.bf16 %v5797_v59, %v5796_v60 }
 0x397   : > { %v1972_v45 = vsel %vm1782_vm3, %v1777_v22, -inf  ;;  %v3093_v48 = vcombine.high %v1971_v6, %v1971_v6  ;;  %v3100_v0 = vrot.slane %v1971_v6, %v18324_v37  ;;  %v19891_v30 = vpack.c.bf16 %v5799_v46, %v5798_v29 }
 0x398   : > { %v3059_v54 = vcombine.high %v1965_v58, %v1965_v58  ;;  %v3066_v47 = vrot.slane %v1965_v58, %v18324_v37  ;;  %v1775_v41 = vmax.f32 %v19870_v62, 0.0  ;;  %v1779_v8 = vmax.f32 %v19875_v36, 0.0  ;;  %v5800_v58 = vld [vmem:[#allocation2 + $0xd8] sm:$0xff] }
 0x399   : > { %v3107_v4 = vrot.slane %v3093_v48, %v18324_v37  ;;  %v3108_v7 = vcombine.high %v3100_v0, %v3100_v0  ;;  %v5120_v35 = vsel %vm3383_vm4, %v3100_v0, -inf  ;;  %v5801_v0 = vld [vmem:[#allocation2 + $0xe0] sm:$0xff] }
 0x39a   : > { %v5121_v13 = vrot.slane %v5120_v35, 4  ;;  %v3074_v3 = vcombine.high %v3066_v47, %v3066_v47  ;;  %v5064_v49 = vsel %vm3383_vm4, %v3066_v47, -inf  ;;  %v5803_v47 = vld [vmem:[#allocation2 + $0xf8] sm:$0xff]  ;;  %v1967_v62 = vsel %vm1782_vm3, %v1779_v8, -inf }
 0x39b   : > { %v3109_v28 = vcombine.high %v3107_v4, %v3107_v4  ;;  %v5127_v33 = vsel %vm3383_vm4, %v3108_v7, -inf  ;;  %v5134_v5 = vsel %vm3383_vm4, %v3107_v4, -inf  ;;  %v5065_v9 = vrot.slane %v5064_v49, 4 }
 0x39c   : > { %v5864_v25 = vld [vmem:[#allocation2 + $0x169] sm:$0xff]  ;;  %v5122_v31 = vmax.f32 %v5120_v35, %v5121_v13  ;;  %v5128_v20 = vrot.slane %v5127_v33, 4  ;;  %v5135_v52 = vrot.slane %v5134_v5, 4  ;;  %v5071_v50 = vsel %vm3383_vm4, %v3074_v3, -inf }
 0x39d   : > { %v19853_v44 = vpack.c.bf16 %v5865_v18, %v5864_v25  ;;  %v1973_v18 = vsel %vm1782_vm3, %v1781_v17, -inf  ;;  %v3073_v25 = vrot.slane %v3059_v54, %v18324_v37  ;;  %v5141_v63 = vsel %vm3383_vm4, %v3109_v28, -inf  ;;  %v5802_v54 = vld [vmem:[#allocation2 + $0xf0] sm:$0xff] }
 0x39e   : > { %v19907_v19 = vmax.f32 %v1972_v45, %v1973_v18  ;;  %v5123_v16 = vrot.slane %v5122_v31, 2  ;;  %v5129_v51 = vmax.f32 %v5127_v33, %v5128_v20  ;;  %v5136_v22 = vmax.f32 %v5134_v5, %v5135_v52 }
 0x39f   : > { %16248 = vmatmul.mubr.msk.bf16.gmra.mrb[36].mxu1 %vm1782_vm3, %v19853_v44  ;;  %v3075_v38 = vcombine.high %v3073_v25, %v3073_v25  ;;  %v5078_v11 = vsel %vm3383_vm4, %v3073_v25, -inf  ;;  %v5142_v53 = vrot.slane %v5141_v63, 4  ;;  %v5066_v21 = vmax.f32 %v5064_v49, %v5065_v9 }
 0x3a0   : > { %16255 = vmatprep.mubr.msk.bf16.mxu1 %vm1782_vm3, %v5814_v32  ;;  %v17858_v32 = vld [vmem:[%s22453_s3 + $0x20] sm:$0xff]   ;;  %v5072_v15 = vrot.slane %v5071_v50, 4  ;;  %v5079_v12 = vrot.slane %v5078_v11, 4  ;;  %v5124_v59 = vmax.f32 %v5122_v31, %v5123_v16  ;;  %v5130_v27 = vrot.slane %v5129_v51, 2 }
 0x3a1   : > { %v5085_v55 = vsel %vm3383_vm4, %v3075_v38, -inf  ;;  %v5137_v2 = vrot.slane %v5136_v22, 2  ;;  %v5143_v14 = vmax.f32 %v5141_v63, %v5142_v53  ;;  %v5067_v57 = vrot.slane %v5066_v21, 2 }
 0x3a2   : > { %v5086_v60 = vrot.slane %v5085_v55, 4  ;;  %v5073_v29 = vmax.f32 %v5071_v50, %v5072_v15  ;;  %v5080_v46 = vmax.f32 %v5078_v11, %v5079_v12  ;;  %v5125_v17 = vrot.slane %v5124_v59, 1 }
 0x3a3   : > { %v5131_v45 = vmax.f32 %v5129_v51, %v5130_v27  ;;  %v5144_v48 = vrot.slane %v5143_v14, 2  ;;  %v5068_v18 = vmax.f32 %v5066_v21, %v5067_v57  ;;  %v19925_v38 = vpack.c.bf16 %v5801_v0, %v5800_v58 }
 0x3a4   : > { %v5087_v6 = vmax.f32 %v5085_v55, %v5086_v60  ;;  %v5074_v4 = vrot.slane %v5073_v29, 2  ;;  %v5081_v7 = vrot.slane %v5080_v46, 2  ;;  %v5126_v25 = vmax.f32 %v5124_v59, %v5125_v17 }
 0x3a5   : > { %v5145_v3 = vmax.f32 %v5143_v14, %v5144_v48  ;;  %v5069_v49 = vrot.slane %v5068_v18, 1  ;;  %v19927_v31 = vpack.c.bf16 %v5803_v47, %v5802_v54  ;;  %v3110_v52 = vcombine.high %v19907_v19, %v19907_v19 }
 0x3a6   : > { %v5088_v35 = vrot.slane %v5087_v6, 2  ;;  %v5075_v28 = vmax.f32 %v5073_v29, %v5074_v4  ;;  %v5082_v33 = vmax.f32 %v5080_v46, %v5081_v7  ;;  %v1966_v9 = vsel %vm1782_vm3, %v1775_v41, -inf }
 0x3a7   : > { %16256 = vmatmul.mubr.msk.bf16.vlgmr.msra.gmra.mrb[8].mxu1 %vm1782_vm3, %v19862_v40  ;;  %v5146_v50 = vrot.slane %v5145_v3, 1  ;;  %v3117_v51 = vrot.slane %v19907_v19, %v18324_v37  ;;  %v5070_v53 = vmax.f32 %v5068_v18, %v5069_v49  ;;  %v1968_v8 = vmax.f32 %v1966_v9, %v1967_v62 }
 0x3a8   : > { %16288 = vmatpush3.bf16.msra.mxu1 %v17858_v32  ;;  %16259 = vmatprep.mubr.msk.bf16.mxu1 %vm1782_vm3, %v19864_v1  ;;  %v5132_v32 = vrot.slane %v5131_v45, 1  ;;  %v5089_v5 = vmax.f32 %v5087_v6, %v5088_v35  ;;  %v5076_v11 = vrot.slane %v5075_v28, 1  ;;  %v5083_v16 = vrot.slane %v5082_v33, 1 }
 0x3a9   : > { %16289 = vmatprep.subr.bf16.mxu1 %v17154_v42  ;;  %v3125_v41 = vcombine.high %v3117_v51, %v3117_v51  ;;  %v5148_v60 = vsel %vm3383_vm4, %v3117_v51, -inf  ;;  %v5147_v59 = vmax.f32 %v5145_v3, %v5146_v50  ;;  %v3076_v48 = vcombine.high %v1968_v8, %v1968_v8 }
 0x3aa   : > { %v5133_v20 = vmax.f32 %v5131_v45, %v5132_v32  ;;  %v5077_v21 = vmax.f32 %v5075_v28, %v5076_v11  ;;  %v5090_v15 = vrot.slane %v5089_v5, 1  ;;  %v5084_v57 = vmax.f32 %v5082_v33, %v5083_v16 }
 0x3ab   : > { %v5155_v29 = vsel %vm3383_vm4, %v3125_v41, -inf  ;;  %v3083_v0 = vrot.slane %v1968_v8, %v18324_v37  ;;  %v3090_v35 = vrot.slane %v3076_v48, %v18324_v37 }
 0x3ac   : > { %16290 = vmatpush3.bf16.msra.mxu1 %v17154_v42  ;;  %v5138_v42 = vmax.f32 %v5136_v22, %v5137_v2  ;;  %v5710_v55 = vsel %vm5486_vm5, %v5133_v20, %v5126_v25  ;;  %v3124_v22 = vrot.slane %v3110_v52, %v18324_v37  ;;  %v5149_v2 = vrot.slane %v5148_v60, 4 }
 0x3ad   : > { %16323 = vmatprep.subr.bf16.mxu1 %v19912_v34  ;;  %v5156_v6 = vrot.slane %v5155_v29, 4  ;;  %v5091_v45 = vmax.f32 %v5089_v5, %v5090_v15  ;;  %v3091_v25 = vcombine.high %v3083_v0, %v3083_v0  ;;  %v5092_v32 = vsel %vm3383_vm4, %v3083_v0, -inf }
 0x3ae   : > { %v5139_v13 = vrot.slane %v5138_v42, 1  ;;  %v3126_v12 = vcombine.high %v3124_v22, %v3124_v22  ;;  %v5162_v19 = vsel %vm3383_vm4, %v3124_v22, -inf  ;;  %v5150_v46 = vmax.f32 %v5148_v60, %v5149_v2 }
 0x3af   : > { %16260 = vmatmul.mubr.msk.bf16.gmra.mrb[12].mxu1 %vm1782_vm3, %v19866_v26  ;;  %v5163_v14 = vrot.slane %v5162_v19, 4  ;;  %v5157_v47 = vmax.f32 %v5155_v29, %v5156_v6  ;;  %v3092_v33 = vcombine.high %v3090_v35, %v3090_v35  ;;  %v5093_v5 = vrot.slane %v5092_v32, 4 }
 0x3b0   : > { %16263 = vmatprep.mubr.msk.bf16.mxu1 %vm1782_vm3, %v19877_v56  ;;  %v5140_v63 = vmax.f32 %v5138_v42, %v5139_v13  ;;  %v5169_v36 = vsel %vm3383_vm4, %v3126_v12, -inf  ;;  %v5703_v42 = vsel %vm5486_vm5, %v5077_v21, %v5070_v53  ;;  %v5151_v54 = vrot.slane %v5150_v46, 2 }
 0x3b1   : > { %v5164_v58 = vmax.f32 %v5162_v19, %v5163_v14  ;;  %v5170_v17 = vrot.slane %v5169_v36, 4  ;;  %v5158_v3 = vrot.slane %v5157_v47, 2  ;;  %v5099_v20 = vsel %vm3383_vm4, %v3091_v25, -inf  ;;  %v5806_v25 = vld [vmem:[#allocation2 + $0x120] sm:$0xff] }
 0x3b2   : > { %v5711_v27 = vsel %vm5488_vm6, %v5140_v63, %v5710_v55  ;;  %v5152_v13 = vmax.f32 %v5150_v46, %v5151_v54  ;;  %v5106_v52 = vsel %vm3383_vm4, %v3090_v35, -inf  ;;  %v5094_v55 = vmax.f32 %v5092_v32, %v5093_v5  ;;  %v5807_v32 = vld [vmem:[#allocation2 + $0x128] sm:$0xff] }
 0x3b3   : > { %v5165_v18 = vrot.slane %v5164_v58, 2  ;;  %v5171_v4 = vmax.f32 %v5169_v36, %v5170_v17  ;;  %v5712_v7 = vsel %vm5490_vm7, %v5147_v59, %v5711_v27  ;;  %v5159_v63 = vmax.f32 %v5157_v47, %v5158_v3  ;;  %v5804_v47 = vld [vmem:[#allocation2 + $0x108] sm:$0xff] }
 0x3b4   : > { %v5153_v9 = vrot.slane %v5152_v13, 1  ;;  %v5100_v16 = vrot.slane %v5099_v20, 4  ;;  %v5107_v51 = vrot.slane %v5106_v52, 4  ;;  %v5113_v22 = vsel %vm3383_vm4, %v3092_v33, -inf }
 0x3b5   : > { %v5166_v49 = vmax.f32 %v5164_v58, %v5165_v18  ;;  %v5172_v28 = vrot.slane %v5171_v4, 2  ;;  %v5160_v21 = vrot.slane %v5159_v63, 1  ;;  %v5095_v41 = vrot.slane %v5094_v55, 2  ;;  %v5805_v18 = vld [vmem:[#allocation2 + $0x110] sm:$0xff] }
 0x3b6   : > { %v5154_v53 = vmax.f32 %v5152_v13, %v5153_v9  ;;  %v5101_v12 = vmax.f32 %v5099_v20, %v5100_v16  ;;  %v5108_v60 = vmax.f32 %v5106_v52, %v5107_v51  ;;  %v5114_v19 = vrot.slane %v5113_v22, 4  ;;  %v5811_v16 = vld [vmem:[#allocation2 + $0x158] sm:$0xff] }
 0x3b7   : > { %16264 = vmatmul.mubr.msk.bf16.gmra.mrb[16].mxu1 %vm1782_vm3, %v19879_v39  ;;  %v5167_v50 = vrot.slane %v5166_v49, 1  ;;  %v5173_v11 = vmax.f32 %v5171_v4, %v5172_v28  ;;  %v5704_v59 = vsel %vm5488_vm6, %v5084_v57, %v5703_v42  ;;  %v5161_v27 = vmax.f32 %v5159_v63, %v5160_v21  ;;  %v6329_v21 = vld [vmem:[#allocation2 + $0xa] sm:$0xff] }
 0x3b8   : > { %16267 = vmatprep.mubr.msk.bf16.mxu1 %vm1782_vm3, %v19881_v10  ;;  %v5713_v14 = vsel %vm5492_vm8, %v5154_v53, %v5712_v7  ;;  %v5096_v29 = vmax.f32 %v5094_v55, %v5095_v41  ;;  %v5102_v36 = vrot.slane %v5101_v12, 2  ;;  %v5109_v8 = vrot.slane %v5108_v60, 2  ;;  %v5810_v55 = vld [vmem:[#allocation2 + $0x150] sm:$0xff]  ;;  %v6328_v53 = vld [vmem:[#allocation2 + $0x2] sm:$0xff] }
 0x3b9   : > { %v5168_v15 = vmax.f32 %v5166_v49, %v5167_v50  ;;  %v5174_v62 = vrot.slane %v5173_v11, 1  ;;  %v5115_v46 = vmax.f32 %v5113_v22, %v5114_v19  ;;  %v5714_v6 = vsel %vm5494_vm9, %v5161_v27, %v5713_v14  ;;  %v5808_v50 = vld [vmem:[#allocation2 + $0x138] sm:$0xff]  ;;  %v6331_v19 = vld [vmem:[#allocation2 + $0x22] sm:$0xff] }
 0x3ba   : > { %v5097_v17 = vrot.slane %v5096_v29, 1  ;;  %v5103_v57 = vmax.f32 %v5101_v12, %v5102_v36  ;;  %v5110_v42 = vmax.f32 %v5108_v60, %v5109_v8  ;;  %v5705_v54 = vsel %vm5490_vm7, %v5091_v45, %v5704_v59  ;;  %v6330_v60 = vld [vmem:[#allocation2 + $0x1a] sm:$0xff]  ;;  %v6332_v59 = vld [vmem:[#allocation2 + $0x32] sm:$0xff]  ;;  %v6334_v8 = vld [vmem:[#allocation2 + $0x4a] sm:$0xff] }
 0x3bb   : > { %v5175_v2 = vmax.f32 %v5173_v11, %v5174_v62  ;;  %v5715_v58 = vsel %vm5496_vm10, %v5168_v15, %v5714_v6  ;;  %v5116_v0 = vrot.slane %v5115_v46, 2  ;;  %v19974_v33 = vpack.c.bf16 %v5805_v18, %v5804_v47  ;;  %v5809_v11 = vld [vmem:[#allocation2 + $0x140] sm:$0xff]  ;;  %v5812_v15 = vld [vmem:[#allocation2 + $0x168] sm:$0xff]  ;;  %v5813_v62 = vld [vmem:[#allocation2 + $0x170] sm:$0xff] }
 0x3bc   : > { %v5098_v4 = vmax.f32 %v5096_v29, %v5097_v17  ;;  %v5104_v7 = vrot.slane %v5103_v57, 1  ;;  %v5111_v35 = vrot.slane %v5110_v42, 1  ;;  %v19976_v20 = vpack.c.bf16 %v5807_v32, %v5806_v25  ;;  %v6333_v27 = vld [vmem:[#allocation2 + $0x3a] sm:$0xff]  ;;  %v6336_v6 = vld [vmem:[#allocation2 + $0x62] sm:$0xff]  ;;  %v6342_v18 = vld [vmem:[#allocation2 + $0xaa] sm:$0xff] }
 0x3bd   : > { %v5716_v48 = vsel %vm5498_vm11, %v5175_v2, %v5715_v58  ;;  %v5117_v13 = vmax.f32 %v5115_v46, %v5116_v0  ;;  %v19986_v51 = vpack.c.bf16 %v5809_v11, %v5808_v50  ;;  %v19988_v22 = vpack.c.bf16 %v5811_v16, %v5810_v55  ;;  %v17156_v14 = vld [vmem:[%s22453_s3 + $0x38] sm:$0xff]   ;;  %v17157_v36 = vld [vmem:[%s22453_s3 + $0x40] sm:$0xff]   ;;  %v6337_v58 = vld [vmem:[#allocation2 + $0x6a] sm:$0xff] }
 0x3be   : > { %5781 = vst.msk [vmem:[#allocation2 + $0x189] sm:$0xff] %vm1782_vm3, %v5716_v48  ;;  %v5105_v3 = vmax.f32 %v5103_v57, %v5104_v7  ;;  %v5112_v49 = vmax.f32 %v5110_v42, %v5111_v35  ;;  %v5706_v28 = vsel %vm5492_vm8, %v5098_v4, %v5705_v54  ;;  %v6360_v41 = vpack.c.bf16 %v6329_v21, %v6328_v53  ;;  %v6335_v46 = vld [vmem:[#allocation2 + $0x52] sm:$0xff]  ;;  %v6339_v42 = vld [vmem:[#allocation2 + $0x82] sm:$0xff]  ;;  %v6341_v0 = vld [vmem:[#allocation2 + $0x9a] sm:$0xff] }
 0x3bf   : > { %16268 = vmatmul.mubr.msk.bf16.gmra.mrb[20].mxu1 %vm1782_vm3, %v19883_v43  ;;  %v5118_v5 = vrot.slane %v5117_v13, 1  ;;  %v19994_v12 = vpack.c.bf16 %v5813_v62, %v5812_v15  ;;  %v19999_v2 = vpack.c.bf16 %v6331_v19, %v6330_v60  ;;  %v20004_v29 = vpack.c.bf16 %v6333_v27, %v6332_v59  ;;  %v6340_v48 = vld [vmem:[#allocation2 + $0x92] sm:$0xff]  ;;  %v6344_v7 = vld [vmem:[#allocation2 + $0xc2] sm:$0xff]  ;;  %v6345_v35 = vld [vmem:[#allocation2 + $0xca] sm:$0xff] }
 0x3c0   : > { %16271 = vmatprep.mubr.msk.bf16.mxu1 %vm1782_vm3, %v19891_v30  ;;  %v5707_v45 = vsel %vm5494_vm9, %v5105_v3, %v5706_v28  ;;  %v20014_v17 = vpack.c.bf16 %v6335_v46, %v6334_v8  ;;  %v20016_v57 = vpack.c.bf16 %v6337_v58, %v6336_v6  ;;  %v20024_v47 = vpack.c.bf16 %v6341_v0, %v6340_v48  ;;  %v6343_v4 = vld [vmem:[#allocation2 + $0xb2] sm:$0xff]  ;;  %v6347_v3 = vld [vmem:[#allocation2 + $0xe2] sm:$0xff]  ;;  %v6349_v28 = vld [vmem:[#allocation2 + $0xfa] sm:$0xff] }
 0x3c1   : > { %v5119_v52 = vmax.f32 %v5117_v13, %v5118_v5  ;;  %v5708_v9 = vsel %vm5496_vm10, %v5112_v49, %v5707_v45  ;;  %v20030_v25 = vpack.c.bf16 %v6343_v4, %v6342_v18  ;;  %v20032_v32 = vpack.c.bf16 %v6345_v35, %v6344_v7  ;;  %v6346_v13 = vld [vmem:[#allocation2 + $0xda] sm:$0xff]  ;;  %v6348_v49 = vld [vmem:[#allocation2 + $0xf2] sm:$0xff]  ;;  %v6353_v50 = vld [vmem:[#allocation2 + $0x12a] sm:$0xff] }
 0x3c2   : > { %v20038_v5 = vpack.c.bf16 %v6347_v3, %v6346_v13  ;;  %v20040_v45 = vpack.c.bf16 %v6349_v28, %v6348_v49  ;;  %v6354_v16 = vld [vmem:[#allocation2 + $0x13a] sm:$0xff]  ;;  %v6355_v53 = vld [vmem:[#allocation2 + $0x142] sm:$0xff]  ;;  %v6356_v21 = vld [vmem:[#allocation2 + $0x152] sm:$0xff] }
 0x3c3   : > { %v5709_v63 = vsel %vm5498_vm11, %v5119_v52, %v5708_v9  ;;  %v6350_v52 = vld [vmem:[#allocation2 + $0x10a] sm:$0xff]  ;;  %v6351_v9 = vld [vmem:[#allocation2 + $0x112] sm:$0xff]  ;;  %v6357_v15 = vld [vmem:[#allocation2 + $0x15a] sm:$0xff]  ;;  %v20054_v62 = vpack.c.bf16 %v6355_v53, %v6354_v16 }
 0x3c4   : > { %5780 = vst.msk [vmem:[#allocation2 + $0x181] sm:$0xff] %vm1782_vm3, %v5709_v63  ;;  %v6352_v63 = vld [vmem:[#allocation2 + $0x122] sm:$0xff]  ;;  %v20046_v11 = vpack.c.bf16 %v6351_v9, %v6350_v52  ;;  %v6358_v60 = vld [vmem:[#allocation2 + $0x16a] sm:$0xff]  ;;  %v6359_v19 = vld [vmem:[#allocation2 + $0x172] sm:$0xff] }
 0x3c5   : > { %v20048_v55 = vpack.c.bf16 %v6353_v50, %v6352_v63  ;;  %v20062_v59 = vpack.c.bf16 %v6359_v19, %v6358_v60  ;;  %v17158_v27 = vld [vmem:[%s22453_s3 + $0x48] sm:$0xff]   ;;  %v6946_v8 = vld [vmem:[#allocation2 + $0x79] sm:$0xff]  ;;  %v6951_v0 = vld [vmem:[#allocation2 + $0xb1] sm:$0xff] }
 0x3c6   : > { %v6947_v46 = vld [vmem:[#allocation2 + $0x81] sm:$0xff]  ;;  %v6950_v48 = vld [vmem:[#allocation2 + $0xa9] sm:$0xff]  ;;  %v6954_v13 = vld [vmem:[#allocation2 + $0xd9] sm:$0xff] }
 0x3c7   : > { %16272 = vmatmul.mubr.msk.bf16.gmra.mrb[24].mxu1 %vm1782_vm3, %v19925_v38  ;;  %v20123_v58 = vpack.c.bf16 %v6947_v46, %v6946_v8  ;;  %v20131_v4 = vpack.c.bf16 %v6951_v0, %v6950_v48  ;;  %v6952_v7 = vld [vmem:[#allocation2 + $0xc1] sm:$0xff]  ;;  %v6953_v35 = vld [vmem:[#allocation2 + $0xc9] sm:$0xff]  ;;  %v6956_v52 = vld [vmem:[#allocation2 + $0xf1] sm:$0xff] }
 0x3c8   : > { %16275 = vmatprep.mubr.msk.bf16.mxu1 %vm1782_vm3, %v19927_v31  ;;  %v6955_v3 = vld [vmem:[#allocation2 + $0xe1] sm:$0xff]  ;;  %v20137_v49 = vpack.c.bf16 %v6953_v35, %v6952_v7  ;;  %v6957_v9 = vld [vmem:[#allocation2 + $0xf9] sm:$0xff]  ;;  %v6958_v63 = vld [vmem:[#allocation2 + $0x109] sm:$0xff] }
 0x3c9   : > { %v20139_v28 = vpack.c.bf16 %v6955_v3, %v6954_v13  ;;  %v6959_v50 = vld [vmem:[#allocation2 + $0x111] sm:$0xff]  ;;  %v20145_v16 = vpack.c.bf16 %v6957_v9, %v6956_v52  ;;  %v7569_v0 = vld [vmem:[#allocation2 + $0x120] sm:$0xff]  ;;  %v7570_v7 = vld [vmem:[#allocation2 + $0x128] sm:$0xff] }
 0x3ca   : > { %v20147_v53 = vpack.c.bf16 %v6959_v50, %v6958_v63  ;;  %v7566_v8 = vld [vmem:[#allocation2 + $0xf8] sm:$0xff]  ;;  %v7568_v48 = vld [vmem:[#allocation2 + $0x110] sm:$0xff]  ;;  %v7591_v13 = vpack.c.bf16 %v7570_v7, %v7569_v0  ;;  %v7572_v52 = vld [vmem:[#allocation2 + $0x140] sm:$0xff] }
 0x3cb   : > { %v6968_v19 = vld [vmem:[#allocation2 + $0x181] sm:$0xff]  ;;  %v7571_v3 = vld [vmem:[#allocation2 + $0x138] sm:$0xff]  ;;  %v7573_v9 = vld [vmem:[#allocation2 + $0x150] sm:$0xff] }
 0x3cc   : > { %v7574_v63 = vld [vmem:[#allocation2 + $0x158] sm:$0xff]  ;;  %v7592_v50 = vpack.c.bf16 %v7572_v52, %v7571_v3  ;;  %v8179_v0 = vld [vmem:[#allocation2 + $0x122] sm:$0xff]  ;;  %v8180_v7 = vld [vmem:[#allocation2 + $0x12a] sm:$0xff] }
 0x3cd   : > { %v8181_v3 = vld [vmem:[#allocation2 + $0x13a] sm:$0xff]  ;;  %v8182_v52 = vld [vmem:[#allocation2 + $0x142] sm:$0xff] }
 0x3cf   : > { %16276 = vmatmul.mubr.msk.bf16.gmra.mrb[28].mxu1 %vm1782_vm3, %v19974_v33 }
 0x3d0   : > { %16279 = vmatprep.mubr.msk.bf16.mxu1 %vm1782_vm3, %v19976_v20 }
 0x3d7   : > { %16280 = vmatmul.mubr.msk.bf16.gmra.mrb[32].mxu1 %vm1782_vm3, %v19986_v51 }
 0x3d8   : > { %16283 = vmatprep.mubr.msk.bf16.mxu1 %vm1782_vm3, %v19988_v22 }
 0x3df   : > { %16284 = vmatmul.mubr.msk.bf16.gmra.mrb[36].mxu1 %vm1782_vm3, %v19994_v12 }
 0x3e0   : > { %16291 = vmatprep.mubr.msk.bf16.mxu1 %vm1782_vm3, %v6360_v41  ;;  %v20056_v41 = vpack.c.bf16 %v6357_v15, %v6356_v21  ;;  %v6960_v21 = vld [vmem:[#allocation2 + $0x121] sm:$0xff]  ;;  %v6961_v15 = vld [vmem:[#allocation2 + $0x129] sm:$0xff] }
 0x3e1   : > { %v20153_v60 = vpack.c.bf16 %v6961_v15, %v6960_v21  ;;  %v7593_v21 = vpack.c.bf16 %v7574_v63, %v7573_v9  ;;  %v7575_v15 = vld [vmem:[#allocation2 + $0x168] sm:$0xff]  ;;  %v8183_v9 = vld [vmem:[#allocation2 + $0x152] sm:$0xff]  ;;  %v8184_v63 = vld [vmem:[#allocation2 + $0x15a] sm:$0xff] }
 0x3e7   : > { %16292 = vmatmul.mubr.msk.bf16.vlgmr.msra.gmra.mrb[8].mxu1 %vm1782_vm3, %v19999_v2 }
 0x3e8   : > { %16324 = vmatpush3.bf16.msra.mxu1 %v19912_v34  ;;  %16295 = vmatprep.mubr.msk.bf16.mxu1 %vm1782_vm3, %v20004_v29  ;;  %v6338_v34 = vld [vmem:[#allocation2 + $0x7a] sm:$0xff] }
 0x3e9   : > { %16325 = vmatprep.subr.bf16.mxu1 %v17156_v14  ;;  %v20022_v54 = vpack.c.bf16 %v6339_v42, %v6338_v34  ;;  %v6948_v34 = vld [vmem:[#allocation2 + $0x91] sm:$0xff]  ;;  %v6949_v42 = vld [vmem:[#allocation2 + $0x99] sm:$0xff] }
 0x3ea   : > { %v20129_v18 = vpack.c.bf16 %v6949_v42, %v6948_v34  ;;  %v7567_v42 = vld [vmem:[#allocation2 + $0x108] sm:$0xff] }
 0x3eb   : > { %v7590_v35 = vpack.c.bf16 %v7568_v48, %v7567_v42  ;;  %v8177_v42 = vld [vmem:[#allocation2 + $0x10a] sm:$0xff]  ;;  %v8178_v48 = vld [vmem:[#allocation2 + $0x112] sm:$0xff] }
 0x3ec   : > { %16326 = vmatpush3.bf16.msra.mxu1 %v17156_v14  ;;  %v17159_v14 = vld [vmem:[%s22453_s3 + $0x50] sm:$0xff]  }
 0x3ed   : > { %16359 = vmatprep.subr.bf16.mxu1 %v17157_v36 }
 0x3ef   : > { %16296 = vmatmul.mubr.msk.bf16.gmra.mrb[12].mxu1 %vm1782_vm3, %v20014_v17 }
 0x3f0   : > { %16299 = vmatprep.mubr.msk.bf16.mxu1 %vm1782_vm3, %v20016_v57 }
 0x3f7   : > { %16300 = vmatmul.mubr.msk.bf16.gmra.mrb[16].mxu1 %vm1782_vm3, %v20022_v54 }
 0x3f8   : > { %16303 = vmatprep.mubr.msk.bf16.mxu1 %vm1782_vm3, %v20024_v47 }
 0x3ff   : > { %16304 = vmatmul.mubr.msk.bf16.gmra.mrb[20].mxu1 %vm1782_vm3, %v20030_v25 }
 0x400   : > { %16307 = vmatprep.mubr.msk.bf16.mxu1 %vm1782_vm3, %v20032_v32 }
 0x407   : > { %16308 = vmatmul.mubr.msk.bf16.gmra.mrb[24].mxu1 %vm1782_vm3, %v20038_v5 }
 0x408   : > { %16311 = vmatprep.mubr.msk.bf16.mxu1 %vm1782_vm3, %v20040_v45 }
 0x40f   : > { %16312 = vmatmul.mubr.msk.bf16.gmra.mrb[28].mxu1 %vm1782_vm3, %v20046_v11 }
 0x410   : > { %16315 = vmatprep.mubr.msk.bf16.mxu1 %vm1782_vm3, %v20048_v55 }
 0x417   : > { %16316 = vmatmul.mubr.msk.bf16.gmra.mrb[32].mxu1 %vm1782_vm3, %v20054_v62 }
 0x418   : > { %16319 = vmatprep.mubr.msk.bf16.mxu1 %vm1782_vm3, %v20056_v41 }
 0x41f   : > { %16320 = vmatmul.mubr.msk.bf16.gmra.mrb[36].mxu1 %vm1782_vm3, %v20062_v59 }
 0x420   : > { %16327 = vmatprep.mubr.msk.bf16.mxu1 %vm1782_vm3, %v19862_v40  ;;  %v6663_v40 = vld [vmem:[#allocation2 + $0x180] sm:$0xff] }
 0x427   : > { %16328 = vmatmul.mubr.msk.bf16.vlgmr.msra.gmra.mrb[8].mxu1 %vm1782_vm3, %v19864_v1  ;;  %v6664_v1 = vld [vmem:[#allocation2 + $0x188] sm:$0xff] }
 0x428   : > { %16360 = vmatpush3.bf16.msra.mxu1 %v17157_v36  ;;  %16331 = vmatprep.mubr.msk.bf16.mxu1 %vm1782_vm3, %v19866_v26  ;;  %v6938_v26 = vld [vmem:[#allocation2 + $0x19] sm:$0xff]  ;;  %v6945_v36 = vld [vmem:[#allocation2 + $0x69] sm:$0xff] }
 0x429   : > { %16361 = vmatprep.subr.bf16.mxu1 %v17158_v27 }
 0x42c   : > { %16362 = vmatpush3.bf16.msra.mxu1 %v17158_v27  ;;  %v6969_v27 = vld [vmem:[#allocation2 + $0x189] sm:$0xff] }
 0x42d   : > { %16395 = vmatprep.subr.bf16.mxu1 %v17159_v14 }
 0x42f   : > { %16332 = vmatmul.mubr.msk.bf16.gmra.mrb[12].mxu1 %vm1782_vm3, %v19877_v56  ;;  %v6939_v56 = vld [vmem:[#allocation2 + $0x21] sm:$0xff] }
 0x430   : > { %16335 = vmatprep.mubr.msk.bf16.mxu1 %vm1782_vm3, %v19879_v39  ;;  %v20102_v39 = vpack.c.bf16 %v6664_v1, %v6663_v40  ;;  %v7557_v40 = vld [vmem:[#allocation2 + $0x90] sm:$0xff]  ;;  %v7558_v1 = vld [vmem:[#allocation2 + $0x98] sm:$0xff] }
 0x437   : > { %16336 = vmatmul.mubr.msk.bf16.gmra.mrb[16].mxu1 %vm1782_vm3, %v19881_v10  ;;  %v6970_v10 = vpack.c.bf16 %v6939_v56, %v6938_v26  ;;  %v7585_v56 = vpack.c.bf16 %v7558_v1, %v7557_v40  ;;  %v8167_v40 = vld [vmem:[#allocation2 + $0x92] sm:$0xff]  ;;  %v8168_v1 = vld [vmem:[#allocation2 + $0x9a] sm:$0xff] }
 0x438   : > { %16339 = vmatprep.mubr.msk.bf16.mxu1 %vm1782_vm3, %v19883_v43  ;;  %v6940_v43 = vld [vmem:[#allocation2 + $0x31] sm:$0xff] }
 0x43f   : > { %16340 = vmatmul.mubr.msk.bf16.gmra.mrb[20].mxu1 %vm1782_vm3, %v19891_v30  ;;  %v6941_v30 = vld [vmem:[#allocation2 + $0x39] sm:$0xff] }
 0x440   : > { %16343 = vmatprep.mubr.msk.bf16.mxu1 %vm1782_vm3, %v19925_v38  ;;  %v6942_v38 = vld [vmem:[#allocation2 + $0x49] sm:$0xff] }
 0x447   : > { %16344 = vmatmul.mubr.msk.bf16.gmra.mrb[24].mxu1 %vm1782_vm3, %v19927_v31  ;;  %v6943_v31 = vld [vmem:[#allocation2 + $0x51] sm:$0xff] }
 0x448   : > { %16347 = vmatprep.mubr.msk.bf16.mxu1 %vm1782_vm3, %v19974_v33  ;;  %v20107_v33 = vpack.c.bf16 %v6941_v30, %v6940_v43  ;;  %v7560_v43 = vld [vmem:[#allocation2 + $0xb0] sm:$0xff]  ;;  %v7561_v30 = vld [vmem:[#allocation2 + $0xc0] sm:$0xff] }
 0x44f   : > { %16348 = vmatmul.mubr.msk.bf16.gmra.mrb[28].mxu1 %vm1782_vm3, %v19976_v20  ;;  %v17160_v20 = vld [vmem:[%s22453_s3 + $0x58] sm:$0xff]  }
 0x450   : > { %16351 = vmatprep.mubr.msk.bf16.mxu1 %vm1782_vm3, %v19986_v51  ;;  %v20112_v51 = vpack.c.bf16 %v6943_v31, %v6942_v38  ;;  %v7562_v38 = vld [vmem:[#allocation2 + $0xc8] sm:$0xff] }
 0x457   : > { %16352 = vmatmul.mubr.msk.bf16.gmra.mrb[32].mxu1 %vm1782_vm3, %v19988_v22  ;;  %v17161_v22 = vld [vmem:[%s22453_s3 + $0x60] sm:$0xff]  }
 0x458   : > { %16355 = vmatprep.mubr.msk.bf16.mxu1 %vm1782_vm3, %v19994_v12  ;;  %v6944_v12 = vld [vmem:[#allocation2 + $0x61] sm:$0xff] }
 0x459   : > { %v20121_v6 = vpack.c.bf16 %v6945_v36, %v6944_v12  ;;  %v7564_v12 = vld [vmem:[#allocation2 + $0xe0] sm:$0xff]  ;;  %v7565_v36 = vld [vmem:[#allocation2 + $0xf0] sm:$0xff] }
 0x45a   : > { %v7589_v34 = vpack.c.bf16 %v7566_v8, %v7565_v36  ;;  %v8175_v36 = vld [vmem:[#allocation2 + $0xf2] sm:$0xff]  ;;  %v8176_v8 = vld [vmem:[#allocation2 + $0xfa] sm:$0xff] }
 0x45f   : > { %16356 = vmatmul.mubr.msk.bf16.gmra.mrb[36].mxu1 %vm1782_vm3, %v20102_v39 }
 0x460   : > { %16363 = vmatprep.mubr.msk.bf16.mxu1 %vm1782_vm3, %v6970_v10  ;;  %v7559_v10 = vld [vmem:[#allocation2 + $0xa8] sm:$0xff] }
 0x461   : > { %v7586_v31 = vpack.c.bf16 %v7560_v43, %v7559_v10  ;;  %v8169_v10 = vld [vmem:[#allocation2 + $0xaa] sm:$0xff]  ;;  %v8170_v43 = vld [vmem:[#allocation2 + $0xb2] sm:$0xff] }
 0x467   : > { %16364 = vmatmul.mubr.msk.bf16.vlgmr.msra.gmra.mrb[8].mxu1 %vm1782_vm3, %v20107_v33 }
 0x468   : > { %16396 = vmatpush3.bf16.msra.mxu1 %v17159_v14  ;;  %16367 = vmatprep.mubr.msk.bf16.mxu1 %vm1782_vm3, %v20112_v51  ;;  %v20163_v14 = vpack.c.bf16 %v6969_v27, %v6968_v19  ;;  %v7576_v19 = vld [vmem:[#allocation2 + $0x170] sm:$0xff] }
 0x469   : > { %16397 = vmatprep.subr.bf16.mxu1 %v17160_v20  ;;  %v7594_v27 = vpack.c.bf16 %v7576_v19, %v7575_v15  ;;  %v8185_v15 = vld [vmem:[#allocation2 + $0x16a] sm:$0xff]  ;;  %v8186_v19 = vld [vmem:[#allocation2 + $0x172] sm:$0xff] }
 0x46c   : > { %16398 = vmatpush3.bf16.msra.mxu1 %v17160_v20  ;;  %v7587_v20 = vpack.c.bf16 %v7562_v38, %v7561_v30  ;;  %v8171_v30 = vld [vmem:[#allocation2 + $0xc2] sm:$0xff]  ;;  %v8172_v38 = vld [vmem:[#allocation2 + $0xca] sm:$0xff] }
 0x46d   : > { %16431 = vmatprep.subr.bf16.mxu1 %v17161_v22 }
 0x46f   : > { %16368 = vmatmul.mubr.msk.bf16.gmra.mrb[12].mxu1 %vm1782_vm3, %v20121_v6 }
 0x470   : > { %16371 = vmatprep.mubr.msk.bf16.mxu1 %vm1782_vm3, %v20123_v58 }
 0x477   : > { %16372 = vmatmul.mubr.msk.bf16.gmra.mrb[16].mxu1 %vm1782_vm3, %v20129_v18 }
 0x478   : > { %16375 = vmatprep.mubr.msk.bf16.mxu1 %vm1782_vm3, %v20131_v4 }
 0x47f   : > { %16376 = vmatmul.mubr.msk.bf16.gmra.mrb[20].mxu1 %vm1782_vm3, %v20137_v49 }
 0x480   : > { %16379 = vmatprep.mubr.msk.bf16.mxu1 %vm1782_vm3, %v20139_v28 }
 0x487   : > { %16380 = vmatmul.mubr.msk.bf16.gmra.mrb[24].mxu1 %vm1782_vm3, %v20145_v16 }
 0x488   : > { %16383 = vmatprep.mubr.msk.bf16.mxu1 %vm1782_vm3, %v20147_v53 }
 0x48f   : > { %16384 = vmatmul.mubr.msk.bf16.gmra.mrb[28].mxu1 %vm1782_vm3, %v20153_v60 }
 0x490   : > { %16387 = vmatprep.mubr.msk.bf16.mxu1 %vm1782_vm3, %v19777_v23  ;;  %v17162_v23 = vld [vmem:[%s22453_s3 + $0x68] sm:$0xff]  }
 0x497   : > { %16388 = vmatmul.mubr.msk.bf16.gmra.mrb[32].mxu1 %vm1782_vm3, %v19837_v61  ;;  %v17163_v61 = vld [vmem:[%s22453_s3 + $0x70] sm:$0xff]  }
 0x498   : > { %16391 = vmatprep.mubr.msk.bf16.mxu1 %vm1782_vm3, %v19853_v44  ;;  %v7273_v44 = vld [vmem:[#allocation2 + $0x182] sm:$0xff] }
 0x49f   : > { %16392 = vmatmul.mubr.msk.bf16.gmra.mrb[36].mxu1 %vm1782_vm3, %v20163_v14 }
 0x4a0   : > { %16399 = vmatprep.mubr.msk.bf16.mxu1 %vm1782_vm3, %v19999_v2  ;;  %v7274_v2 = vld [vmem:[#allocation2 + $0x18a] sm:$0xff] }
 0x4a7   : > { %16400 = vmatmul.mubr.msk.bf16.vlgmr.msra.gmra.mrb[8].mxu1 %vm1782_vm3, %v20004_v29  ;;  %v7549_v29 = vld [vmem:[#allocation2 + $0x30] sm:$0xff] }
 0x4a8   : > { %16432 = vmatpush3.bf16.msra.mxu1 %v17161_v22  ;;  %16403 = vmatprep.mubr.msk.bf16.mxu1 %vm1782_vm3, %v20014_v17  ;;  %v7550_v17 = vld [vmem:[#allocation2 + $0x38] sm:$0xff] }
 0x4a9   : > { %16433 = vmatprep.subr.bf16.mxu1 %v17162_v23  ;;  %v7563_v22 = vld [vmem:[#allocation2 + $0xd8] sm:$0xff] }
 0x4aa   : > { %v7588_v46 = vpack.c.bf16 %v7564_v12, %v7563_v22  ;;  %v8173_v22 = vld [vmem:[#allocation2 + $0xda] sm:$0xff]  ;;  %v8174_v12 = vld [vmem:[#allocation2 + $0xe2] sm:$0xff] }
 0x4ac   : > { %16434 = vmatpush3.bf16.msra.mxu1 %v17162_v23  ;;  %v7579_v23 = vld [vmem:[#allocation2 + $0x198] sm:$0xff] }
 0x4ad   : > { %16467 = vmatprep.subr.bf16.mxu1 %v17163_v61 }
 0x4af   : > { %16404 = vmatmul.mubr.msk.bf16.gmra.mrb[12].mxu1 %vm1782_vm3, %v20016_v57  ;;  %v20203_v57 = vpack.c.bf16 %v7274_v2, %v7273_v44  ;;  %v17167_v44 = vld [vmem:[%s22434_s5 + $0x20] sm:$0xff]  }
 0x4b0   : > { %16407 = vmatprep.mubr.msk.bf16.mxu1 %vm1782_vm3, %v20022_v54  ;;  %v7581_v54 = vpack.c.bf16 %v7550_v17, %v7549_v29  ;;  %16539 = vmatprep.subr.bf16.mxu0 %v17167_v44  ;;  %v17168_v29 = vld [vmem:[%s22434_s5 + $0x28] sm:$0xff]   ;;  %v17169_v17 = vld [vmem:[%s22434_s5 + $0x30] sm:$0xff]  }
 0x4b1   : > { %16540 = vmatpush3.bf16.msra.mxu0 %v17167_v44 }
 0x4b2   : > { %16541 = vmatprep.subr.bf16.mxu0 %v17168_v29 }
 0x4b5   : > { %16542 = vmatpush3.bf16.msra.mxu0 %v17168_v29  ;;  %v20337_v29 = vld [vmem:[%s22433_s4] ss:$0 sm:$0xff] }
 0x4b6   : > { %16543 = vmatprep.subr.bf16.mxu0 %v17169_v17 }
 0x4b7   : > { %16408 = vmatmul.mubr.msk.bf16.gmra.mrb[16].mxu1 %vm1782_vm3, %v20024_v47  ;;  %v7551_v47 = vld [vmem:[#allocation2 + $0x48] sm:$0xff] }
 0x4b8   : > { %16411 = vmatprep.mubr.msk.bf16.mxu1 %vm1782_vm3, %v20030_v25  ;;  %v7552_v25 = vld [vmem:[#allocation2 + $0x50] sm:$0xff] }
 0x4b9   : > { %16544 = vmatpush3.bf16.msra.mxu0 %v17169_v17 }
 0x4bf   : > { %16412 = vmatmul.mubr.msk.bf16.gmra.mrb[20].mxu1 %vm1782_vm3, %v20032_v32  ;;  %v7553_v32 = vld [vmem:[#allocation2 + $0x60] sm:$0xff] }
 0x4c0   : > { %16415 = vmatprep.mubr.msk.bf16.mxu1 %vm1782_vm3, %v20038_v5  ;;  %v7554_v5 = vld [vmem:[#allocation2 + $0x68] sm:$0xff] }
 0x4c7   : > { %16416 = vmatmul.mubr.msk.bf16.gmra.mrb[24].mxu1 %vm1782_vm3, %v20040_v45  ;;  %v7582_v45 = vpack.c.bf16 %v7552_v25, %v7551_v47  ;;  %v8159_v47 = vld [vmem:[#allocation2 + $0x32] sm:$0xff]  ;;  %v8160_v25 = vld [vmem:[#allocation2 + $0x3a] sm:$0xff] }
 0x4c8   : > { %16419 = vmatprep.mubr.msk.bf16.mxu1 %vm1782_vm3, %v20046_v11  ;;  %v17164_v11 = vld [vmem:[%s22453_s3 + $0x78] sm:$0xff]  }
 0x4cf   : > { %16420 = vmatmul.mubr.msk.bf16.gmra.mrb[28].mxu1 %vm1782_vm3, %v20048_v55  ;;  %v7583_v55 = vpack.c.bf16 %v7554_v5, %v7553_v32  ;;  %v8191_v32 = vpack.c.bf16 %v8160_v25, %v8159_v47  ;;  %v8161_v5 = vld [vmem:[#allocation2 + $0x4a] sm:$0xff] }
 0x4d0   : > { %16423 = vmatprep.mubr.msk.bf16.mxu1 %vm1782_vm3, %v20054_v62  ;;  %v20216_v62 = vld [vmem:[%s22453_s3 + $0x80] sm:$0xff]  }
 0x4d7   : > { %16424 = vmatmul.mubr.msk.bf16.gmra.mrb[32].mxu1 %vm1782_vm3, %v20056_v41  ;;  %v7555_v41 = vld [vmem:[#allocation2 + $0x78] sm:$0xff] }
 0x4d8   : > { %16427 = vmatprep.mubr.msk.bf16.mxu1 %vm1782_vm3, %v20062_v59  ;;  %v7556_v59 = vld [vmem:[#allocation2 + $0x80] sm:$0xff] }
 0x4d9   : > { %v7584_v26 = vpack.c.bf16 %v7556_v59, %v7555_v41  ;;  %v8166_v59 = vld [vmem:[#allocation2 + $0x82] sm:$0xff] }
 0x4df   : > { %16428 = vmatmul.mubr.msk.bf16.gmra.mrb[36].mxu1 %vm1782_vm3, %v20203_v57 }
 0x4e0   : > { %16435 = vmatprep.mubr.msk.bf16.mxu1 %vm1782_vm3, %v7581_v54 }
 0x4e7   : > { %16436 = vmatmul.mubr.msk.bf16.vlgmr.msra.gmra.mrb[8].mxu1 %vm1782_vm3, %v7582_v45  ;;  %v8162_v45 = vld [vmem:[#allocation2 + $0x52] sm:$0xff] }
 0x4e8   : > { %16468 = vmatpush3.bf16.msra.mxu1 %v17163_v61  ;;  %16439 = vmatprep.mubr.msk.bf16.mxu1 %vm1782_vm3, %v7583_v55  ;;  %v7580_v61 = vld [vmem:[#allocation2 + $0x1a0] sm:$0xff]  ;;  %v8164_v55 = vld [vmem:[#allocation2 + $0x6a] sm:$0xff] }
 0x4e9   : > { %16469 = vmatprep.subr.bf16.mxu1 %v17164_v11  ;;  %v7596_v2 = vpack.c.bf16 %v7580_v61, %v7579_v23  ;;  %v8189_v23 = vld [vmem:[#allocation2 + $0x19a] sm:$0xff]  ;;  %v8190_v61 = vld [vmem:[#allocation2 + $0x1a2] sm:$0xff] }
 0x4ea   : > { %v8206_v44 = vpack.c.bf16 %v8190_v61, %v8189_v23 }
 0x4ec   : > { %16470 = vmatpush3.bf16.msra.mxu1 %v17164_v11  ;;  %v8163_v11 = vld [vmem:[#allocation2 + $0x62] sm:$0xff] }
 0x4ed   : > { %16503 = vmatprep.subr.bf16.mxu1 %v20216_v62  ;;  %v8193_v41 = vpack.c.bf16 %v8164_v55, %v8163_v11 }
 0x4ef   : > { %16440 = vmatmul.mubr.msk.bf16.gmra.mrb[12].mxu1 %vm1782_vm3, %v7584_v26 }
 0x4f0   : > { %16443 = vmatprep.mubr.msk.bf16.mxu1 %vm1782_vm3, %v7585_v56  ;;  %v8195_v56 = vpack.c.bf16 %v8168_v1, %v8167_v40 }
 0x4f7   : > { %16444 = vmatmul.mubr.msk.bf16.gmra.mrb[16].mxu1 %vm1782_vm3, %v7586_v31  ;;  %v8196_v31 = vpack.c.bf16 %v8170_v43, %v8169_v10 }
 0x4f8   : > { %16447 = vmatprep.mubr.msk.bf16.mxu1 %vm1782_vm3, %v7587_v20  ;;  %v8197_v20 = vpack.c.bf16 %v8172_v38, %v8171_v30 }
 0x4ff   : > { %16448 = vmatmul.mubr.msk.bf16.gmra.mrb[20].mxu1 %vm1782_vm3, %v7588_v46  ;;  %v8198_v46 = vpack.c.bf16 %v8174_v12, %v8173_v22 }
 0x500   : > { %16451 = vmatprep.mubr.msk.bf16.mxu1 %vm1782_vm3, %v7589_v34  ;;  %v8199_v34 = vpack.c.bf16 %v8176_v8, %v8175_v36 }
 0x507   : > { %16452 = vmatmul.mubr.msk.bf16.gmra.mrb[24].mxu1 %vm1782_vm3, %v7590_v35  ;;  %v8200_v35 = vpack.c.bf16 %v8178_v48, %v8177_v42 }
 0x508   : > { %16455 = vmatprep.mubr.msk.bf16.mxu1 %vm1782_vm3, %v7591_v13  ;;  %v8201_v13 = vpack.c.bf16 %v8180_v7, %v8179_v0 }
 0x50f   : > { %16456 = vmatmul.mubr.msk.bf16.gmra.mrb[28].mxu1 %vm1782_vm3, %v7592_v50  ;;  %v8202_v50 = vpack.c.bf16 %v8182_v52, %v8181_v3 }
 0x510   : > { %16459 = vmatprep.mubr.msk.bf16.mxu1 %vm1782_vm3, %v7593_v21  ;;  %v8203_v21 = vpack.c.bf16 %v8184_v63, %v8183_v9 }
 0x517   : > { %16460 = vmatmul.mubr.msk.bf16.gmra.mrb[32].mxu1 %vm1782_vm3, %v7594_v27  ;;  %v8204_v27 = vpack.c.bf16 %v8186_v19, %v8185_v15 }
 0x518   : > { %16463 = vmatprep.mubr.msk.bf16.mxu1 %vm1782_vm3, %v20102_v39  ;;  %v17166_v39 = vld [vmem:[%s22453_s3 + $0x88] sm:$0xff]   ;;  %s431_s3 = sand.u32 1, %s17914_s26  }
 0x519   : > { %s432_s21 = scalar_lea.vmem [#allocation5], %s431_s3  ;;  %s14863_s0 = scalar_lea.sflag [#allocation6], %s431_s3 }
 0x51a   : > { %s14875_s22 = sshll.u32 %s432_s21, 4  ;;  %s22389_s22 = int_to_ptr.vmem [resolvable:$true] %s14875_s22 }
 0x51b   : > { %s17860_s1 = scalar_lea.vmem %s22389_s22, 16  ;;  %p17867_p0 = scmp.lt.s32.totalorder %s22389_s22, %s17865_s30 }
 0x51c   : > { %p17861_p11 = scmp.ne.s32.totalorder %s22389_s22, %s17860_s1  ;;  %p17868_p1 = scmp.lt.s32.totalorder %s17866_s15, %s17860_s1 }
 0x51e   : > { %p17862_p12 = pnand %p17861_p11, %p18038_p5  ;;  %p17869_p2 = por %p17868_p1, %p17867_p0 }
 0x51f   : > { %16464 = vmatmul.mubr.msk.bf16.gmra.mrb[36].mxu1 %vm1782_vm3, %v7596_v2  ;;  %v22456_v2 = vmov 0.0  }
 0x520   : > { %16471 = vmatprep.mubr.msk.bf16.mxu1 %vm1782_vm3, %v20107_v33  ;;  %v7876_v33 = vld [vmem:[#allocation2 + $0x139] sm:$0xff]  ;;  %9385 = vst.msk [vmem:[#allocation3] sm:$0xff] %vm8535_vm12, %v22456_v2  ;;  %9387 = vst.msk [vmem:[#allocation3 + $0x10] sm:$0xff] %vm8535_vm12, %v22456_v2  ;;  %p17863_p13 = pneg %p17862_p12 }
 0x521   : > { %9389 = vst.msk [vmem:[#allocation3 + $0x20] sm:$0xff] %vm8535_vm12, %v22456_v2  ;;  %9391 = vst.msk [vmem:[#allocation3 + $0x30] sm:$0xff] %vm8535_vm12, %v22456_v2 }
 0x522   : > { %9393 = vst.msk [vmem:[#allocation3 + $0x40] sm:$0xff] %vm8535_vm12, %v22456_v2  ;;  %9395 = vst.msk [vmem:[#allocation3 + $0x50] sm:$0xff] %vm8535_vm12, %v22456_v2  ;;  %p17870_p3 = pnand %p17869_p2, %p17863_p13 }
 0x523   : > { %9397 = vst.msk [vmem:[#allocation3 + $0x60] sm:$0xff] %vm8535_vm12, %v22456_v2  ;;  %9399 = vst.msk [vmem:[#allocation3 + $0x70] sm:$0xff] %vm8535_vm12, %v22456_v2 }
 0x524   : > { %9401 = vst.msk [vmem:[#allocation3 + $0x80] sm:$0xff] %vm8535_vm12, %v22456_v2  ;;  %9403 = vst.msk [vmem:[#allocation3 + $0x90] sm:$0xff] %vm8535_vm12, %v22456_v2 }
 0x525   : > { %9386 = vst.msk [vmem:[#allocation3 + $0x8] sm:$0x3] %vm8936_vm13, %v22456_v2  ;;  %9388 = vst.msk [vmem:[#allocation3 + $0x18] sm:$0x3] %vm8936_vm13, %v22456_v2 }
 0x526   : > { %9390 = vst.msk [vmem:[#allocation3 + $0x28] sm:$0x3] %vm8936_vm13, %v22456_v2  ;;  %9392 = vst.msk [vmem:[#allocation3 + $0x38] sm:$0x3] %vm8936_vm13, %v22456_v2 }
 0x527   : > { %16472 = vmatmul.mubr.msk.bf16.vlgmr.msra.gmra.mrb[8].mxu1 %vm1782_vm3, %v20112_v51  ;;  %v7877_v51 = vld [vmem:[#allocation2 + $0x141] sm:$0xff]  ;;  %9394 = vst.msk [vmem:[#allocation3 + $0x48] sm:$0x3] %vm8936_vm13, %v22456_v2  ;;  %9396 = vst.msk [vmem:[#allocation3 + $0x58] sm:$0x3] %vm8936_vm13, %v22456_v2 }
 0x528   : > { %16504 = vmatpush3.bf16.msra.mxu1 %v20216_v62  ;;  %16475 = vmatprep.mubr.msk.bf16.mxu1 %vm1782_vm3, %v20121_v6  ;;  %v7878_v6 = vld [vmem:[#allocation2 + $0x151] sm:$0xff]  ;;  %v8192_v62 = vpack.c.bf16 %v8162_v45, %v8161_v5  ;;  %9398 = vst.msk [vmem:[#allocation3 + $0x68] sm:$0x3] %vm8936_vm13, %v22456_v2  ;;  %9400 = vst.msk [vmem:[#allocation3 + $0x78] sm:$0x3] %vm8936_vm13, %v22456_v2 }
 0x529   : > { %16505 = vmatprep.subr.bf16.mxu1 %v17166_v39  ;;  %9402 = vst.msk [vmem:[#allocation3 + $0x88] sm:$0x3] %vm8936_vm13, %v22456_v2  ;;  %9404 = vst.msk [vmem:[#allocation3 + $0x98] sm:$0x3] %vm8936_vm13, %v22456_v2 }
 0x52c   : > { %16506 = vmatpush3.bf16.msra.mxu1 %v17166_v39 }
 0x52f   : > { %16476 = vmatmul.mubr.msk.bf16.gmra.mrb[12].mxu1 %vm1782_vm3, %v20123_v58  ;;  %v7879_v58 = vld [vmem:[#allocation2 + $0x159] sm:$0xff] }
 0x530   : > { %16479 = vmatprep.mubr.msk.bf16.mxu1 %vm1782_vm3, %v20129_v18  ;;  %v7897_v18 = vpack.c.bf16 %v7877_v51, %v7876_v33 }
 0x537   : > { %16480 = vmatmul.mubr.msk.bf16.gmra.mrb[16].mxu1 %vm1782_vm3, %v20131_v4  ;;  %v7898_v4 = vpack.c.bf16 %v7879_v58, %v7878_v6 }
 0x538   : > { %16483 = vmatprep.mubr.msk.bf16.mxu1 %vm1782_vm3, %v20137_v49  ;;  %v7880_v49 = vld [vmem:[#allocation2 + $0x169] sm:$0xff] }
 0x53f   : > { %16484 = vmatmul.mubr.msk.bf16.gmra.mrb[20].mxu1 %vm1782_vm3, %v20139_v28  ;;  %v7881_v28 = vld [vmem:[#allocation2 + $0x171] sm:$0xff] }
 0x540   : > { %16487 = vmatprep.mubr.msk.bf16.mxu1 %vm1782_vm3, %v20145_v16  ;;  %v7899_v54 = vpack.c.bf16 %v7881_v28, %v7880_v49  ;;  %v7884_v16 = vld [vmem:[#allocation2 + $0x199] sm:$0xff] }
 0x547   : > { %16488 = vmatmul.mubr.msk.bf16.gmra.mrb[24].mxu1 %vm1782_vm3, %v20147_v53  ;;  %v7885_v53 = vld [vmem:[#allocation2 + $0x1a1] sm:$0xff] }
 0x548   : > { %16491 = vmatprep.mubr.msk.bf16.mxu1 %vm1782_vm3, %v20153_v60  ;;  %v7901_v60 = vpack.c.bf16 %v7885_v53, %v7884_v16 }
 0x54f   : > { %16492 = vmatmul.mubr.msk.bf16.gmra.mrb[28].mxu1 %vm1782_vm3, %v7897_v18 }
 0x550   : > { %16495 = vmatprep.mubr.msk.bf16.mxu1 %vm1782_vm3, %v7898_v4 }
 0x557   : > { %16496 = vmatmul.mubr.msk.bf16.gmra.mrb[32].mxu1 %vm1782_vm3, %v7899_v54 }
 0x558   : > { %16499 = vmatprep.mubr.msk.bf16.mxu1 %vm1782_vm3, %v20163_v14  ;;  %v8165_v14 = vld [vmem:[#allocation2 + $0x7a] sm:$0xff] }
 0x559   : > { %v8194_v26 = vpack.c.bf16 %v8166_v59, %v8165_v14 }
 0x55f   : > { %16500 = vmatmul.mubr.msk.bf16.gmra.mrb[36].mxu1 %vm1782_vm3, %v7901_v60 }
 0x560   : > { %16507 = vmatprep.mubr.msk.bf16.mxu1 %vm1782_vm3, %v8191_v32 }
 0x567   : > { %16508 = vmatmul.mubr.msk.bf16.vlgmr.msra.gmra.mrb[8].mxu1 %vm1782_vm3, %v8192_v62 }
 0x568   : > { %16511 = vmatprep.mubr.msk.bf16.mxu1 %vm1782_vm3, %v8193_v41 }
 0x56f   : > { %16512 = vmatmul.mubr.msk.bf16.gmra.mrb[12].mxu1 %vm1782_vm3, %v8194_v26 }
 0x570   : > { %16515 = vmatprep.mubr.msk.bf16.mxu1 %vm1782_vm3, %v8195_v56 }
 0x577   : > { %16516 = vmatmul.mubr.msk.bf16.gmra.mrb[16].mxu1 %vm1782_vm3, %v8196_v31 }
 0x578   : > { %16519 = vmatprep.mubr.msk.bf16.mxu1 %vm1782_vm3, %v8197_v20 }
 0x57f   : > { %16520 = vmatmul.mubr.msk.bf16.gmra.mrb[20].mxu1 %vm1782_vm3, %v8198_v46 }
 0x580   : > { %16523 = vmatprep.mubr.msk.bf16.mxu1 %vm1782_vm3, %v8199_v34 }
 0x587   : > { %16524 = vmatmul.mubr.msk.bf16.gmra.mrb[24].mxu1 %vm1782_vm3, %v8200_v35 }
 0x588   : > { %16527 = vmatprep.mubr.msk.bf16.mxu1 %vm1782_vm3, %v8201_v13 }
 0x58f   : > { %16528 = vmatmul.mubr.msk.bf16.gmra.mrb[28].mxu1 %vm1782_vm3, %v8202_v50 }
 0x590   : > { %16531 = vmatprep.mubr.msk.bf16.mxu1 %vm1782_vm3, %v8203_v21 }
 0x597   : > { %16532 = vmatmul.mubr.msk.bf16.gmra.mrb[32].mxu1 %vm1782_vm3, %v8204_v27 }
 0x598   : > { %16535 = vmatprep.mubr.msk.bf16.mxu1 %vm1782_vm3, %v20203_v57  ;;  %v17170_v57 = vld [vmem:[%s22434_s5 + $0x38] sm:$0xff]  }
 0x599   : > { %16545 = vmatprep.subr.bf16.mxu0 %v17170_v57 }
 0x59a   : > { %16546 = vmatpush3.bf16.msra.mxu0 %v17170_v57 }
 0x59f   : > { %16536 = vmatmul.mubr.msk.bf16.gmra.mrb[36].mxu1 %vm1782_vm3, %v8206_v44 }
 0x63a   : > { %v16509_v17 = vpop.f32.mrb[8].mxu1 }
 0x63b   : > { %v8473_v39 = vadd.f32 %v16509_v17, %v20337_v29  ;;  %v8305_v33 = vpop.f32.mrb[9].mxu1 }
 0x63c   : > { %v8471_v51 = vadd.f32 %v20337_v29, %v8305_v33  ;;  %v16510_v6 = vpop.f32.mrb[10].mxu1 }
 0x63d   : > { %v8505_v58 = vmax.f32 %v8473_v39, 0.0  ;;  %v8474_v18 = vadd.f32 %v16510_v6, %v20337_v29  ;;  %v8308_v4 = vpop.f32.mrb[11].mxu1 }
 0x63e   : > { %v8503_v49 = vmax.f32 %v8471_v51, 0.0  ;;  %v8472_v28 = vadd.f32 %v20337_v29, %v8308_v4 }
 0x63f   : > { %v8537_v54 = vsel %vm8535_vm12, %v8505_v58, -inf  ;;  %v8506_v16 = vmax.f32 %v8474_v18, 0.0 }
 0x640   : > { %v8536_v53 = vsel %vm8535_vm12, %v8503_v49, -inf  ;;  %v8504_v60 = vmax.f32 %v8472_v28, 0.0 }
 0x641   : > { %v8538_v47 = vmax.f32 %v8536_v53, %v8537_v54  ;;  %v8540_v25 = vsel %vm8535_vm12, %v8506_v16, -inf }
 0x642   : > { %v8539_v32 = vsel %vm8535_vm12, %v8504_v60, -inf  ;;  %v16513_v5 = vpop.f32.mrb[12].mxu1 }
 0x643   : > { %v8600_v45 = vcombine.high %v8538_v47, %v8538_v47  ;;  %v8607_v11 = vrot.slane %v8538_v47, %v18324_v37  ;;  %v8541_v55 = vmax.f32 %v8539_v32, %v8540_v25  ;;  %v20349_v62 = vadd.f32 %v16513_v5, %v20337_v29  ;;  %v8321_v41 = vpop.f32.mrb[13].mxu1 }
 0x644   : > { %v20352_v14 = vadd.f32 %v20337_v29, %v8321_v41  ;;  %v20354_v59 = vpop.f32.mrb[14].mxu1 }
 0x645   : > { %v8614_v40 = vrot.slane %v8600_v45, %v18324_v37  ;;  %v8615_v1 = vcombine.high %v8607_v11, %v8607_v11  ;;  %v8937_v26 = vsel %vm8936_vm13, %v8607_v11, -inf  ;;  %v8617_v56 = vcombine.high %v8541_v55, %v8541_v55  ;;  %v20358_v10 = vpop.f32.mrb[15].mxu1 }
 0x646   : > { %v8938_v43 = vrot.slane %v8937_v26, 4  ;;  %v8624_v30 = vrot.slane %v8541_v55, %v18324_v37  ;;  %v8509_v38 = vmax.f32 %v20349_v62, 0.0  ;;  %v8507_v31 = vmax.f32 %v20352_v14, 0.0 }
 0x647   : > { %v8616_v20 = vcombine.high %v8614_v40, %v8614_v40  ;;  %v8944_v22 = vsel %vm8936_vm13, %v8615_v1, -inf  ;;  %v8951_v12 = vsel %vm8936_vm13, %v8614_v40, -inf  ;;  %v8631_v36 = vrot.slane %v8617_v56, %v18324_v37 }
 0x648   : > { %v8939_v8 = vmax.f32 %v8937_v26, %v8938_v43  ;;  %v8945_v46 = vrot.slane %v8944_v22, 4  ;;  %v8952_v34 = vrot.slane %v8951_v12, 4  ;;  %v8632_v42 = vcombine.high %v8624_v30, %v8624_v30 }
 0x649   : > { %v8958_v48 = vsel %vm8936_vm13, %v8616_v20, -inf  ;;  %v8633_v0 = vcombine.high %v8631_v36, %v8631_v36  ;;  %v8965_v7 = vsel %vm8936_vm13, %v8624_v30, -inf  ;;  %v8979_v35 = vsel %vm8936_vm13, %v8631_v36, -inf }
 0x64a   : > { %v8940_v13 = vrot.slane %v8939_v8, 2  ;;  %v8946_v3 = vmax.f32 %v8944_v22, %v8945_v46  ;;  %v8953_v52 = vmax.f32 %v8951_v12, %v8952_v34  ;;  %v8959_v9 = vrot.slane %v8958_v48, 4  ;;  %v16517_v63 = vpop.f32.mrb[16].mxu1 }
 0x64b   : > { %v8966_v50 = vrot.slane %v8965_v7, 4  ;;  %v8972_v21 = vsel %vm8936_vm13, %v8632_v42, -inf  ;;  %v8980_v15 = vrot.slane %v8979_v35, 4  ;;  %v8986_v19 = vsel %vm8936_vm13, %v8633_v0, -inf  ;;  %v8337_v27 = vpop.f32.mrb[17].mxu1 }
 0x64c   : > { %v8941_v23 = vmax.f32 %v8939_v8, %v8940_v13  ;;  %v8947_v61 = vrot.slane %v8946_v3, 2  ;;  %v8954_v44 = vrot.slane %v8953_v52, 2  ;;  %v8960_v2 = vmax.f32 %v8958_v48, %v8959_v9  ;;  %v20371_v57 = vpop.f32.mrb[18].mxu1 }
 0x64d   : > { %v8967_v17 = vmax.f32 %v8965_v7, %v8966_v50  ;;  %v8973_v39 = vrot.slane %v8972_v21, 4  ;;  %v8981_v33 = vmax.f32 %v8979_v35, %v8980_v15  ;;  %v8987_v51 = vrot.slane %v8986_v19, 4  ;;  %v20373_v6 = vpop.f32.mrb[19].mxu1 }
 0x64e   : > { %v8942_v58 = vrot.slane %v8941_v23, 1  ;;  %v8948_v18 = vmax.f32 %v8946_v3, %v8947_v61  ;;  %v8955_v4 = vmax.f32 %v8953_v52, %v8954_v44  ;;  %v8961_v49 = vrot.slane %v8960_v2, 2 }
 0x64f   : > { %v8968_v28 = vrot.slane %v8967_v17, 2  ;;  %v8974_v54 = vmax.f32 %v8972_v21, %v8973_v39  ;;  %v8982_v16 = vrot.slane %v8981_v33, 2  ;;  %v8988_v53 = vmax.f32 %v8986_v19, %v8987_v51 }
 0x650   : > { %v8943_v60 = vmax.f32 %v8941_v23, %v8942_v58  ;;  %v8949_v47 = vrot.slane %v8948_v18, 1  ;;  %v8956_v25 = vrot.slane %v8955_v4, 1  ;;  %v8962_v32 = vmax.f32 %v8960_v2, %v8961_v49 }
 0x651   : > { %v8969_v5 = vmax.f32 %v8967_v17, %v8968_v28  ;;  %v8975_v45 = vrot.slane %v8974_v54, 2  ;;  %v8983_v11 = vmax.f32 %v8981_v33, %v8982_v16  ;;  %v8989_v55 = vrot.slane %v8988_v53, 2 }
 0x652   : > { %v8950_v62 = vmax.f32 %v8948_v18, %v8949_v47  ;;  %v8957_v41 = vmax.f32 %v8955_v4, %v8956_v25  ;;  %v8963_v14 = vrot.slane %v8962_v32, 1  ;;  %v8543_v40 = vsel %vm8535_vm12, %v8509_v38, -inf  ;;  %v20376_v1 = vpop.f32.mrb[20].mxu1 }
 0x653   : > { %v8970_v26 = vrot.slane %v8969_v5, 1  ;;  %v8976_v56 = vmax.f32 %v8974_v54, %v8975_v45  ;;  %v8984_v43 = vrot.slane %v8983_v11, 1  ;;  %v8990_v30 = vmax.f32 %v8988_v53, %v8989_v55  ;;  %v20378_v20 = vpop.f32.mrb[21].mxu1 }
 0x654   : > { %v8964_v22 = vmax.f32 %v8962_v32, %v8963_v14  ;;  %v9469_v12 = vsel %vm5486_vm5, %v8950_v62, %v8943_v60  ;;  %v8542_v36 = vsel %vm8535_vm12, %v8507_v31, -inf  ;;  %v8478_v8 = vadd.f32 %v20354_v59, %v20337_v29  ;;  %v20384_v46 = vpop.f32.mrb[22].mxu1 }
 0x655   : > { %v9470_v38 = vsel %vm5488_vm6, %v8957_v41, %v9469_v12  ;;  %v8971_v34 = vmax.f32 %v8969_v5, %v8970_v26  ;;  %v8977_v42 = vrot.slane %v8976_v56, 1  ;;  %v8985_v48 = vmax.f32 %v8983_v11, %v8984_v43  ;;  %v20387_v0 = vpop.f32.mrb[23].mxu1 }
 0x656   : > { %v8991_v7 = vrot.slane %v8990_v30, 1  ;;  %v9471_v35 = vsel %vm5490_vm7, %v8964_v22, %v9470_v38  ;;  %v8544_v13 = vmax.f32 %v8542_v36, %v8543_v40  ;;  %v8510_v3 = vmax.f32 %v8478_v8, 0.0 }
 0x657   : > { %v8978_v52 = vmax.f32 %v8976_v56, %v8977_v42  ;;  %v9472_v31 = vsel %vm5492_vm8, %v8971_v34, %v9471_v35  ;;  %v8476_v59 = vadd.f32 %v20337_v29, %v20358_v10  ;;  %v8481_v9 = vadd.f32 %v16517_v63, %v20337_v29 }
 0x658   : > { %v8992_v50 = vmax.f32 %v8990_v30, %v8991_v7  ;;  %v8634_v21 = vcombine.high %v8544_v13, %v8544_v13  ;;  %v8641_v15 = vrot.slane %v8544_v13, %v18324_v37  ;;  %v8546_v19 = vsel %vm8535_vm12, %v8510_v3, -inf }
 0x659   : > { %v9473_v23 = vsel %vm5494_vm9, %v8978_v52, %v9472_v31  ;;  %v8508_v61 = vmax.f32 %v8476_v59, 0.0  ;;  %v8513_v44 = vmax.f32 %v8481_v9, 0.0  ;;  %v8479_v2 = vadd.f32 %v20337_v29, %v8337_v27 }
 0x65a   : > { %v9474_v17 = vsel %vm5496_vm10, %v8985_v48, %v9473_v23  ;;  %v8648_v39 = vrot.slane %v8634_v21, %v18324_v37  ;;  %v8649_v33 = vcombine.high %v8641_v15, %v8641_v15  ;;  %v8993_v10 = vsel %vm8936_vm13, %v8641_v15, -inf  ;;  %v20401_v63 = vpop.f32.mrb[24].mxu1 }
 0x65b   : > { %v9475_v51 = vsel %vm5498_vm11, %v8992_v50, %v9474_v17  ;;  %v8994_v58 = vrot.slane %v8993_v10, 4  ;;  %v8545_v18 = vsel %vm8535_vm12, %v8508_v61, -inf  ;;  %v8549_v4 = vsel %vm8535_vm12, %v8513_v44, -inf  ;;  %v20406_v49 = vpop.f32.mrb[25].mxu1 }
 0x65c   : > { %9534 = vst.msk [vmem:[#allocation3 + $0x11] sm:$0xff] %vm8535_vm12, %v9475_v51  ;;  %v8650_v27 = vcombine.high %v8648_v39, %v8648_v39  ;;  %v9000_v28 = vsel %vm8936_vm13, %v8649_v33, -inf  ;;  %v9007_v54 = vsel %vm8936_vm13, %v8648_v39, -inf  ;;  %v8547_v16 = vmax.f32 %v8545_v18, %v8546_v19  ;;  %v20411_v53 = vpop.f32.mrb[26].mxu1 }
 0x65d   : > { %v8995_v60 = vmax.f32 %v8993_v10, %v8994_v58  ;;  %v9001_v47 = vrot.slane %v9000_v28, 4  ;;  %v9008_v25 = vrot.slane %v9007_v54, 4  ;;  %v8511_v32 = vmax.f32 %v8479_v2, 0.0  ;;  %v20413_v5 = vpop.f32.mrb[27].mxu1 }
 0x65e   : > { %v9014_v45 = vsel %vm8936_vm13, %v8650_v27, -inf  ;;  %v8651_v11 = vcombine.high %v8547_v16, %v8547_v16  ;;  %v8658_v55 = vrot.slane %v8547_v16, %v18324_v37  ;;  %v20419_v62 = vadd.f32 %v20371_v57, %v20337_v29 }
 0x65f   : > { %v8996_v41 = vrot.slane %v8995_v60, 2  ;;  %v9002_v14 = vmax.f32 %v9000_v28, %v9001_v47  ;;  %v9009_v40 = vmax.f32 %v9007_v54, %v9008_v25  ;;  %v9015_v26 = vrot.slane %v9014_v45, 4 }
 0x660   : > { %v8665_v56 = vrot.slane %v8651_v11, %v18324_v37  ;;  %v8666_v43 = vcombine.high %v8658_v55, %v8658_v55  ;;  %v9021_v30 = vsel %vm8936_vm13, %v8658_v55, -inf  ;;  %v8548_v22 = vsel %vm8535_vm12, %v8511_v32, -inf }
 0x661   : > { %v8997_v12 = vmax.f32 %v8995_v60, %v8996_v41  ;;  %v9003_v36 = vrot.slane %v9002_v14, 2  ;;  %v9010_v8 = vrot.slane %v9009_v40, 2  ;;  %v9016_v38 = vmax.f32 %v9014_v45, %v9015_v26 }
 0x662   : > { %v8667_v34 = vcombine.high %v8665_v56, %v8665_v56  ;;  %v9022_v42 = vrot.slane %v9021_v30, 4  ;;  %v9028_v57 = vsel %vm8936_vm13, %v8666_v43, -inf  ;;  %v9035_v48 = vsel %vm8936_vm13, %v8665_v56, -inf  ;;  %v20426_v7 = vpop.f32.mrb[28].mxu1 }
 0x663   : > { %v8998_v35 = vrot.slane %v8997_v12, 1  ;;  %v9004_v13 = vmax.f32 %v9002_v14, %v9003_v36  ;;  %v9011_v3 = vmax.f32 %v9009_v40, %v9010_v8  ;;  %v9017_v52 = vrot.slane %v9016_v38, 2  ;;  %v20428_v31 = vpop.f32.mrb[29].mxu1 }
 0x664   : > { %v9023_v59 = vmax.f32 %v9021_v30, %v9022_v42  ;;  %v9029_v9 = vrot.slane %v9028_v57, 4  ;;  %v9036_v50 = vrot.slane %v9035_v48, 4  ;;  %v9042_v21 = vsel %vm8936_vm13, %v8667_v34, -inf  ;;  %v20431_v15 = vpop.f32.mrb[30].mxu1 }
 0x665   : > { %v8999_v19 = vmax.f32 %v8997_v12, %v8998_v35  ;;  %v9005_v23 = vrot.slane %v9004_v13, 1  ;;  %v9012_v61 = vrot.slane %v9011_v3, 1  ;;  %v9018_v44 = vmax.f32 %v9016_v38, %v9017_v52  ;;  %v20433_v2 = vpop.f32.mrb[31].mxu1 }
 0x666   : > { %v9024_v17 = vrot.slane %v9023_v59, 2  ;;  %v9030_v39 = vmax.f32 %v9028_v57, %v9029_v9  ;;  %v9037_v33 = vmax.f32 %v9035_v48, %v9036_v50  ;;  %v9043_v10 = vrot.slane %v9042_v21, 4 }
 0x667   : > { %v9006_v51 = vmax.f32 %v9004_v13, %v9005_v23  ;;  %v9013_v58 = vmax.f32 %v9011_v3, %v9012_v61  ;;  %v9019_v18 = vrot.slane %v9018_v44, 1  ;;  %v8550_v27 = vmax.f32 %v8548_v22, %v8549_v4 }
 0x668   : > { %v9025_v28 = vmax.f32 %v9023_v59, %v9024_v17  ;;  %v9031_v54 = vrot.slane %v9030_v39, 2  ;;  %v9038_v16 = vrot.slane %v9037_v33, 2  ;;  %v9044_v60 = vmax.f32 %v9042_v21, %v9043_v10 }
 0x669   : > { %v9020_v47 = vmax.f32 %v9018_v44, %v9019_v18  ;;  %v9476_v25 = vsel %vm5486_vm5, %v9006_v51, %v8999_v19  ;;  %v8668_v32 = vcombine.high %v8550_v27, %v8550_v27  ;;  %v8675_v45 = vrot.slane %v8550_v27, %v18324_v37 }
 0x66a   : > { %v9477_v11 = vsel %vm5488_vm6, %v9013_v58, %v9476_v25  ;;  %v9026_v55 = vrot.slane %v9025_v28, 1  ;;  %v9032_v41 = vmax.f32 %v9030_v39, %v9031_v54  ;;  %v9039_v14 = vmax.f32 %v9037_v33, %v9038_v16  ;;  %v20438_v40 = vpop.f32.mrb[32].mxu1 }
 0x66b   : > { %v9045_v26 = vrot.slane %v9044_v60, 2  ;;  %v9478_v4 = vsel %vm5490_vm7, %v9020_v47, %v9477_v11  ;;  %v8682_v56 = vrot.slane %v8668_v32, %v18324_v37  ;;  %v8683_v43 = vcombine.high %v8675_v45, %v8675_v45  ;;  %v20442_v30 = vpop.f32.mrb[33].mxu1 }
 0x66c   : > { %v9027_v22 = vmax.f32 %v9025_v28, %v9026_v55  ;;  %v9033_v12 = vrot.slane %v9032_v41, 1  ;;  %v9040_v36 = vrot.slane %v9039_v14, 1  ;;  %v9049_v8 = vsel %vm8936_vm13, %v8675_v45, -inf  ;;  %v20445_v38 = vpop.f32.mrb[34].mxu1 }
 0x66d   : > { %v9046_v34 = vmax.f32 %v9044_v60, %v9045_v26  ;;  %v8684_v42 = vcombine.high %v8682_v56, %v8682_v56  ;;  %v9050_v57 = vrot.slane %v9049_v8, 4  ;;  %v9056_v48 = vsel %vm8936_vm13, %v8683_v43, -inf  ;;  %v20448_v35 = vpop.f32.mrb[35].mxu1 }
 0x66e   : > { %v9034_v13 = vmax.f32 %v9032_v41, %v9033_v12  ;;  %v9041_v3 = vmax.f32 %v9039_v14, %v9040_v36  ;;  %v9479_v52 = vsel %vm5492_vm8, %v9027_v22, %v9478_v4  ;;  %v9057_v59 = vrot.slane %v9056_v48, 4 }
 0x66f   : > { %v9047_v9 = vrot.slane %v9046_v34, 1  ;;  %v9051_v50 = vmax.f32 %v9049_v8, %v9050_v57  ;;  %v9063_v21 = vsel %vm8936_vm13, %v8682_v56, -inf  ;;  %v9070_v19 = vsel %vm8936_vm13, %v8684_v42, -inf  ;;  %v20480_v57 = vld [vmem:[%s22434_s5] sm:$0xff]  }
 0x670   : > { %v9480_v23 = vsel %vm5494_vm9, %v9034_v13, %v9479_v52  ;;  %v9058_v61 = vmax.f32 %v9056_v48, %v9057_v59  ;;  %v9064_v44 = vrot.slane %v9063_v21, 4  ;;  %v9071_v17 = vrot.slane %v9070_v19, 4  ;;  %16555 = vmatprep.subr.bf16.mxu0 %v20480_v57 }
 0x671   : > { %v9048_v39 = vmax.f32 %v9046_v34, %v9047_v9  ;;  %v9481_v33 = vsel %vm5496_vm10, %v9041_v3, %v9480_v23  ;;  %v9052_v10 = vrot.slane %v9051_v50, 2  ;;  %v8514_v51 = vmax.f32 %v20419_v62, 0.0 }
 0x672   : > { %v9059_v58 = vrot.slane %v9058_v61, 2  ;;  %v9065_v18 = vmax.f32 %v9063_v21, %v9064_v44  ;;  %v9072_v27 = vmax.f32 %v9070_v19, %v9071_v17  ;;  %v8480_v28 = vadd.f32 %v20337_v29, %v20373_v6  ;;  %v20458_v54 = vpop.f32.mrb[36].mxu1 }
 0x673   : > { %v9482_v16 = vsel %vm5498_vm11, %v9048_v39, %v9481_v33  ;;  %v9053_v60 = vmax.f32 %v9051_v50, %v9052_v10  ;;  %v8552_v47 = vsel %vm8535_vm12, %v8514_v51, -inf  ;;  %v8485_v25 = vadd.f32 %v20376_v1, %v20337_v29  ;;  %v20464_v32 = vpop.f32.mrb[37].mxu1 }
 0x674   : > { %9535 = vst.msk [vmem:[#allocation3 + $0x21] sm:$0xff] %vm8535_vm12, %v9482_v16  ;;  %v9060_v62 = vmax.f32 %v9058_v61, %v9059_v58  ;;  %v9066_v45 = vrot.slane %v9065_v18, 2  ;;  %v9073_v11 = vrot.slane %v9072_v27, 2  ;;  %v8512_v55 = vmax.f32 %v8480_v28, 0.0  ;;  %v20467_v41 = vpop.f32.mrb[38].mxu1 }
 0x675   : > { %v9054_v6 = vrot.slane %v9053_v60, 1  ;;  %v8517_v14 = vmax.f32 %v8485_v25, 0.0  ;;  %v8483_v26 = vadd.f32 %v20337_v29, %v20378_v20  ;;  %v8486_v4 = vadd.f32 %v20384_v46, %v20337_v29  ;;  %v20473_v56 = vpop.f32.mrb[39].mxu1 }
 0x676   : > { %v9061_v1 = vrot.slane %v9060_v62, 1  ;;  %v9067_v43 = vmax.f32 %v9065_v18, %v9066_v45  ;;  %v9074_v22 = vmax.f32 %v9072_v27, %v9073_v11  ;;  %v8551_v12 = vsel %vm8535_vm12, %v8512_v55, -inf }
 0x677   : > { %v9055_v36 = vmax.f32 %v9053_v60, %v9054_v6  ;;  %v8553_v8 = vmax.f32 %v8551_v12, %v8552_v47  ;;  %v8555_v34 = vsel %vm8535_vm12, %v8517_v14, -inf  ;;  %v8515_v42 = vmax.f32 %v8483_v26, 0.0 }
 0x678   : > { %v9062_v20 = vmax.f32 %v9060_v62, %v9061_v1  ;;  %v9068_v48 = vrot.slane %v9067_v43, 1  ;;  %v9075_v46 = vrot.slane %v9074_v22, 1  ;;  %v8518_v13 = vmax.f32 %v8486_v4, 0.0 }
 0x679   : > { %v8685_v3 = vcombine.high %v8553_v8, %v8553_v8  ;;  %v8692_v52 = vrot.slane %v8553_v8, %v18324_v37  ;;  %v8554_v59 = vsel %vm8535_vm12, %v8515_v42, -inf  ;;  %v20486_v9 = vadd.f32 %v20337_v29, %v20387_v0 }
 0x67a   : > { %v9069_v50 = vmax.f32 %v9067_v43, %v9068_v48  ;;  %v9076_v21 = vmax.f32 %v9074_v22, %v9075_v46  ;;  %v9483_v19 = vsel %vm5486_vm5, %v9062_v20, %v9055_v36  ;;  %v8556_v23 = vmax.f32 %v8554_v59, %v8555_v34 }
 0x67b   : > { %v8699_v61 = vrot.slane %v8685_v3, %v18324_v37  ;;  %v8700_v44 = vcombine.high %v8692_v52, %v8692_v52  ;;  %v9077_v17 = vsel %vm8936_vm13, %v8692_v52, -inf  ;;  %v20493_v39 = vsel %vm8535_vm12, %v8518_v13, -inf }
 0x67c   : > { %v9484_v33 = vsel %vm5488_vm6, %v9069_v50, %v9483_v19  ;;  %v9078_v10 = vrot.slane %v9077_v17, 4  ;;  %v8702_v0 = vcombine.high %v8556_v23, %v8556_v23  ;;  %v8709_v51 = vrot.slane %v8556_v23, %v18324_v37 }
 0x67d   : > { %v8701_v58 = vcombine.high %v8699_v61, %v8699_v61  ;;  %v9084_v18 = vsel %vm8936_vm13, %v8700_v44, -inf  ;;  %v9091_v27 = vsel %vm8936_vm13, %v8699_v61, -inf  ;;  %v9485_v28 = vsel %vm5490_vm7, %v9076_v21, %v9484_v33 }
 0x67e   : > { %v9079_v16 = vmax.f32 %v9077_v17, %v9078_v10  ;;  %v9085_v60 = vrot.slane %v9084_v18, 4  ;;  %v9092_v47 = vrot.slane %v9091_v27, 4  ;;  %v8716_v25 = vrot.slane %v8702_v0, %v18324_v37 }
 0x67f   : > { %v9098_v62 = vsel %vm8936_vm13, %v8701_v58, -inf  ;;  %v8717_v45 = vcombine.high %v8709_v51, %v8709_v51  ;;  %v9105_v11 = vsel %vm8936_vm13, %v8709_v51, -inf  ;;  %v8516_v55 = vmax.f32 %v20486_v9, 0.0 }
 0x680   : > { %v9080_v6 = vrot.slane %v9079_v16, 2  ;;  %v9086_v14 = vmax.f32 %v9084_v18, %v9085_v60  ;;  %v9093_v26 = vmax.f32 %v9091_v27, %v9092_v47  ;;  %v9099_v4 = vrot.slane %v9098_v62, 4 }
 0x681   : > { %v8718_v1 = vcombine.high %v8716_v25, %v8716_v25  ;;  %v9106_v43 = vrot.slane %v9105_v11, 4  ;;  %v9112_v22 = vsel %vm8936_vm13, %v8717_v45, -inf  ;;  %v9119_v12 = vsel %vm8936_vm13, %v8716_v25, -inf }
 0x682   : > { %v9081_v36 = vmax.f32 %v9079_v16, %v9080_v6  ;;  %v9087_v8 = vrot.slane %v9086_v14, 2  ;;  %v9094_v34 = vrot.slane %v9093_v26, 2  ;;  %v9100_v42 = vmax.f32 %v9098_v62, %v9099_v4 }
 0x683   : > { %v9107_v20 = vmax.f32 %v9105_v11, %v9106_v43  ;;  %v9113_v48 = vrot.slane %v9112_v22, 4  ;;  %v9120_v46 = vrot.slane %v9119_v12, 4  ;;  %v9126_v13 = vsel %vm8936_vm13, %v8718_v1, -inf }
 0x684   : > { %v9082_v3 = vrot.slane %v9081_v36, 1  ;;  %v9088_v52 = vmax.f32 %v9086_v14, %v9087_v8  ;;  %v9095_v59 = vmax.f32 %v9093_v26, %v9094_v34  ;;  %v9101_v9 = vrot.slane %v9100_v42, 2 }
 0x685   : > { %v9108_v50 = vrot.slane %v9107_v20, 2  ;;  %v9114_v21 = vmax.f32 %v9112_v22, %v9113_v48  ;;  %v9121_v19 = vmax.f32 %v9119_v12, %v9120_v46  ;;  %v9127_v23 = vrot.slane %v9126_v13, 4 }
 0x686   : > { %v9083_v61 = vmax.f32 %v9081_v36, %v9082_v3  ;;  %v9089_v44 = vrot.slane %v9088_v52, 1  ;;  %v9096_v17 = vrot.slane %v9095_v59, 1  ;;  %v9102_v33 = vmax.f32 %v9100_v42, %v9101_v9 }
 0x687   : > { %v9109_v10 = vmax.f32 %v9107_v20, %v9108_v50  ;;  %v9115_v0 = vrot.slane %v9114_v21, 2  ;;  %v9122_v51 = vrot.slane %v9121_v19, 2  ;;  %v9128_v58 = vmax.f32 %v9126_v13, %v9127_v23 }
 0x688   : > { %v9090_v18 = vmax.f32 %v9088_v52, %v9089_v44  ;;  %v9097_v27 = vmax.f32 %v9095_v59, %v9096_v17  ;;  %v9103_v16 = vrot.slane %v9102_v33, 1  ;;  %v9486_v60 = vsel %vm5492_vm8, %v9083_v61, %v9485_v28 }
 0x689   : > { %v9110_v47 = vrot.slane %v9109_v10, 1  ;;  %v9116_v25 = vmax.f32 %v9114_v21, %v9115_v0  ;;  %v9123_v62 = vmax.f32 %v9121_v19, %v9122_v51  ;;  %v9129_v45 = vrot.slane %v9128_v58, 2 }
 0x68a   : > { %v9104_v11 = vmax.f32 %v9102_v33, %v9103_v16  ;;  %v9487_v6 = vsel %vm5494_vm9, %v9090_v18, %v9486_v60  ;;  %v8557_v14 = vsel %vm8535_vm12, %v8516_v55, -inf  ;;  %v8489_v26 = vadd.f32 %v20401_v63, %v20337_v29 }
 0x68b   : > { %v9488_v4 = vsel %vm5496_vm10, %v9097_v27, %v9487_v6  ;;  %v9111_v1 = vmax.f32 %v9109_v10, %v9110_v47  ;;  %v9117_v43 = vrot.slane %v9116_v25, 1  ;;  %v9124_v22 = vrot.slane %v9123_v62, 1 }
 0x68c   : > { %v9489_v12 = vsel %vm5498_vm11, %v9104_v11, %v9488_v4  ;;  %v9130_v28 = vmax.f32 %v9128_v58, %v9129_v45  ;;  %v8559_v36 = vmax.f32 %v8557_v14, %v20493_v39  ;;  %v8521_v8 = vmax.f32 %v8489_v26, 0.0 }
 0x68d   : > { %9536 = vst.msk [vmem:[#allocation3 + $0x31] sm:$0xff] %vm8535_vm12, %v9489_v12  ;;  %v9118_v34 = vmax.f32 %v9116_v25, %v9117_v43  ;;  %v9125_v42 = vmax.f32 %v9123_v62, %v9124_v22  ;;  %v8487_v55 = vadd.f32 %v20337_v29, %v20406_v49  ;;  %v8490_v63 = vadd.f32 %v20411_v53, %v20337_v29 }
 0x68e   : > { %v9131_v20 = vrot.slane %v9130_v28, 1  ;;  %v8719_v48 = vcombine.high %v8559_v36, %v8559_v36  ;;  %v8726_v46 = vrot.slane %v8559_v36, %v18324_v37  ;;  %v8561_v13 = vsel %vm8535_vm12, %v8521_v8, -inf }
 0x68f   : > { %v9490_v3 = vsel %vm5486_vm5, %v9118_v34, %v9111_v1  ;;  %v8519_v39 = vmax.f32 %v8487_v55, 0.0  ;;  %v8522_v52 = vmax.f32 %v8490_v63, 0.0  ;;  %v8488_v59 = vadd.f32 %v20337_v29, %v20413_v5 }
 0x690   : > { %v9132_v9 = vmax.f32 %v9130_v28, %v9131_v20  ;;  %v9491_v50 = vsel %vm5488_vm6, %v9125_v42, %v9490_v3  ;;  %v8733_v49 = vrot.slane %v8719_v48, %v18324_v37  ;;  %v8734_v21 = vcombine.high %v8726_v46, %v8726_v46 }
 0x691   : > { %v9133_v53 = vsel %vm8936_vm13, %v8726_v46, -inf  ;;  %v8560_v19 = vsel %vm8535_vm12, %v8519_v39, -inf  ;;  %v8564_v23 = vsel %vm8535_vm12, %v8522_v52, -inf  ;;  %v8520_v61 = vmax.f32 %v8488_v59, 0.0 }
 0x692   : > { %v8735_v44 = vcombine.high %v8733_v49, %v8733_v49  ;;  %v9134_v17 = vrot.slane %v9133_v53, 4  ;;  %v9140_v33 = vsel %vm8936_vm13, %v8734_v21, -inf  ;;  %v9147_v10 = vsel %vm8936_vm13, %v8733_v49, -inf }
 0x693   : > { %v9141_v5 = vrot.slane %v9140_v33, 4  ;;  %v9148_v0 = vrot.slane %v9147_v10, 4  ;;  %v9492_v51 = vsel %vm5490_vm7, %v9132_v9, %v9491_v50  ;;  %v8562_v58 = vmax.f32 %v8560_v19, %v8561_v13 }
 0x694   : > { %v9135_v18 = vmax.f32 %v9133_v53, %v9134_v17  ;;  %v9154_v27 = vsel %vm8936_vm13, %v8735_v44, -inf  ;;  %v8563_v16 = vsel %vm8535_vm12, %v8520_v61, -inf  ;;  %v20537_v60 = vadd.f32 %v20426_v7, %v20337_v29 }
 0x695   : > { %v9142_v47 = vmax.f32 %v9140_v33, %v9141_v5  ;;  %v9149_v25 = vmax.f32 %v9147_v10, %v9148_v0  ;;  %v9155_v62 = vrot.slane %v9154_v27, 4  ;;  %v8736_v45 = vcombine.high %v8562_v58, %v8562_v58 }
 0x696   : > { %v9136_v11 = vrot.slane %v9135_v18, 2  ;;  %v8743_v6 = vrot.slane %v8562_v58, %v18324_v37  ;;  %v8565_v14 = vmax.f32 %v8563_v16, %v8564_v23  ;;  %v8525_v26 = vmax.f32 %v20537_v60, 0.0 }
 0x697   : > { %v9143_v4 = vrot.slane %v9142_v47, 2  ;;  %v9150_v1 = vrot.slane %v9149_v25, 2  ;;  %v9156_v43 = vmax.f32 %v9154_v27, %v9155_v62  ;;  %v8750_v22 = vrot.slane %v8736_v45, %v18324_v37 }
 0x698   : > { %v9137_v12 = vmax.f32 %v9135_v18, %v9136_v11  ;;  %v8751_v28 = vcombine.high %v8743_v6, %v8743_v6  ;;  %v9161_v7 = vsel %vm8936_vm13, %v8743_v6, -inf  ;;  %v8753_v36 = vcombine.high %v8565_v14, %v8565_v14 }
 0x699   : > { %v9144_v8 = vmax.f32 %v9142_v47, %v9143_v4  ;;  %v9151_v34 = vmax.f32 %v9149_v25, %v9150_v1  ;;  %v9157_v42 = vrot.slane %v9156_v43, 2  ;;  %v8752_v55 = vcombine.high %v8750_v22, %v8750_v22 }
 0x69a   : > { %v9138_v63 = vrot.slane %v9137_v12, 1  ;;  %v9162_v20 = vrot.slane %v9161_v7, 4  ;;  %v9168_v48 = vsel %vm8936_vm13, %v8751_v28, -inf  ;;  %v9175_v46 = vsel %vm8936_vm13, %v8750_v22, -inf }
 0x69b   : > { %v9145_v13 = vrot.slane %v9144_v8, 1  ;;  %v9152_v3 = vrot.slane %v9151_v34, 1  ;;  %v9158_v39 = vmax.f32 %v9156_v43, %v9157_v42  ;;  %v9169_v52 = vrot.slane %v9168_v48, 4 }
 0x69c   : > { %v9139_v59 = vmax.f32 %v9137_v12, %v9138_v63  ;;  %v9163_v9 = vmax.f32 %v9161_v7, %v9162_v20  ;;  %v9176_v50 = vrot.slane %v9175_v46, 4  ;;  %v9182_v49 = vsel %vm8936_vm13, %v8752_v55, -inf }
 0x69d   : > { %v9146_v21 = vmax.f32 %v9144_v8, %v9145_v13  ;;  %v9153_v53 = vmax.f32 %v9151_v34, %v9152_v3  ;;  %v9159_v19 = vrot.slane %v9158_v39, 1  ;;  %v9170_v23 = vmax.f32 %v9168_v48, %v9169_v52 }
 0x69e   : > { %v9493_v61 = vsel %vm5492_vm8, %v9139_v59, %v9492_v51  ;;  %v9164_v44 = vrot.slane %v9163_v9, 2  ;;  %v9177_v17 = vmax.f32 %v9175_v46, %v9176_v50  ;;  %v9183_v33 = vrot.slane %v9182_v49, 4 }
 0x69f   : > { %v9160_v10 = vmax.f32 %v9158_v39, %v9159_v19  ;;  %v9494_v5 = vsel %vm5494_vm9, %v9146_v21, %v9493_v61  ;;  %v9171_v0 = vrot.slane %v9170_v23, 2  ;;  %v8760_v58 = vrot.slane %v8565_v14, %v18324_v37 }
 0x6a0   : > { %v9495_v18 = vsel %vm5496_vm10, %v9153_v53, %v9494_v5  ;;  %v9165_v27 = vmax.f32 %v9163_v9, %v9164_v44  ;;  %v9178_v16 = vrot.slane %v9177_v17, 2  ;;  %v9184_v47 = vmax.f32 %v9182_v49, %v9183_v33  ;;  %v9562_v44 = vld [vmem:[#allocation3 + $0x1] sm:$0xff] }
 0x6a1   : > { %v9496_v25 = vsel %vm5498_vm11, %v9160_v10, %v9495_v18  ;;  %v9172_v62 = vmax.f32 %v9170_v23, %v9171_v0  ;;  %v8767_v45 = vrot.slane %v8753_v36, %v18324_v37  ;;  %v8768_v51 = vcombine.high %v8760_v58, %v8760_v58 }
 0x6a2   : > { %9537 = vst.msk [vmem:[#allocation3 + $0x41] sm:$0xff] %vm8535_vm12, %v9496_v25  ;;  %v9166_v11 = vrot.slane %v9165_v27, 1  ;;  %v9179_v6 = vmax.f32 %v9177_v17, %v9178_v16  ;;  %v9185_v4 = vrot.slane %v9184_v47, 2  ;;  %v9189_v1 = vsel %vm8936_vm13, %v8760_v58, -inf  ;;  %v20566_v17 = vld [vmem:[#allocation3 + $0x11] sm:$0xff] }
 0x6a3   : > { %v9173_v43 = vrot.slane %v9172_v62, 1  ;;  %v8769_v14 = vcombine.high %v8767_v45, %v8767_v45  ;;  %v9190_v22 = vrot.slane %v9189_v1, 4  ;;  %v9196_v12 = vsel %vm8936_vm13, %v8768_v51, -inf }
 0x6a4   : > { %v9167_v28 = vmax.f32 %v9165_v27, %v9166_v11  ;;  %v9180_v7 = vrot.slane %v9179_v6, 1  ;;  %v9186_v8 = vmax.f32 %v9184_v47, %v9185_v4  ;;  %v9197_v34 = vrot.slane %v9196_v12, 4 }
 0x6a5   : > { %v9174_v42 = vmax.f32 %v9172_v62, %v9173_v43  ;;  %v9191_v55 = vmax.f32 %v9189_v1, %v9190_v22  ;;  %v9203_v36 = vsel %vm8936_vm13, %v8767_v45, -inf  ;;  %v9210_v63 = vsel %vm8936_vm13, %v8769_v14, -inf }
 0x6a6   : > { %v9181_v20 = vmax.f32 %v9179_v6, %v9180_v7  ;;  %v9187_v48 = vrot.slane %v9186_v8, 1  ;;  %v9198_v46 = vmax.f32 %v9196_v12, %v9197_v34  ;;  %v9204_v13 = vrot.slane %v9203_v36, 4 }
 0x6a7   : > { %v9497_v3 = vsel %vm5486_vm5, %v9174_v42, %v9167_v28  ;;  %v9192_v39 = vrot.slane %v9191_v55, 2  ;;  %v9211_v52 = vrot.slane %v9210_v63, 4  ;;  %v8567_v59 = vsel %vm8535_vm12, %v8525_v26, -inf }
 0x6a8   : > { %v9188_v9 = vmax.f32 %v9186_v8, %v9187_v48  ;;  %v9498_v50 = vsel %vm5488_vm6, %v9181_v20, %v9497_v3  ;;  %v9199_v49 = vrot.slane %v9198_v46, 2  ;;  %v9205_v21 = vmax.f32 %v9203_v36, %v9204_v13 }
 0x6a9   : > { %v9193_v53 = vmax.f32 %v9191_v55, %v9192_v39  ;;  %v9212_v19 = vmax.f32 %v9210_v63, %v9211_v52  ;;  %v8491_v23 = vadd.f32 %v20337_v29, %v20428_v31  ;;  %v8494_v61 = vadd.f32 %v20431_v15, %v20337_v29 }
 0x6aa   : > { %v9200_v33 = vmax.f32 %v9198_v46, %v9199_v49  ;;  %v9206_v60 = vrot.slane %v9205_v21, 2  ;;  %v9499_v26 = vsel %vm5490_vm7, %v9188_v9, %v9498_v50  ;;  %v8492_v10 = vadd.f32 %v20337_v29, %v20433_v2 }
 0x6ab   : > { %v9194_v5 = vrot.slane %v9193_v53, 1  ;;  %v9213_v0 = vrot.slane %v9212_v19, 2  ;;  %v8523_v58 = vmax.f32 %v8491_v23, 0.0  ;;  %v8526_v18 = vmax.f32 %v8494_v61, 0.0 }
 0x6ac   : > { %v9201_v27 = vrot.slane %v9200_v33, 1  ;;  %v9207_v16 = vmax.f32 %v9205_v21, %v9206_v60  ;;  %v8524_v31 = vmax.f32 %v8492_v10, 0.0  ;;  %v9570_v47 = vpack.c.bf16 %v20566_v17, %v9562_v44 }
 0x6ad   : > { %v9195_v15 = vmax.f32 %v9193_v53, %v9194_v5  ;;  %v9214_v25 = vmax.f32 %v9212_v19, %v9213_v0  ;;  %v8566_v62 = vsel %vm8535_vm12, %v8523_v58, -inf  ;;  %v8570_v45 = vsel %vm8535_vm12, %v8526_v18, -inf }
 0x6ae   : > { %v9202_v51 = vmax.f32 %v9200_v33, %v9201_v27  ;;  %v9208_v11 = vrot.slane %v9207_v16, 1  ;;  %v8568_v6 = vmax.f32 %v8566_v62, %v8567_v59  ;;  %v8569_v2 = vsel %vm8535_vm12, %v8524_v31, -inf  ;;  %16547 = vmatprep.mubr.msk.bf16.mxu0 %vm8535_vm12, %v9570_v47 }
 0x6af   : > { %v9215_v4 = vrot.slane %v9214_v25, 1  ;;  %v9500_v1 = vsel %vm5492_vm8, %v9195_v15, %v9499_v26  ;;  %v8571_v43 = vmax.f32 %v8569_v2, %v8570_v45  ;;  %v20579_v14 = vadd.f32 %v20438_v40, %v20337_v29 }
 0x6b0   : > { %v9209_v22 = vmax.f32 %v9207_v16, %v9208_v11  ;;  %v9501_v12 = vsel %vm5494_vm9, %v9202_v51, %v9500_v1  ;;  %v8770_v28 = vcombine.high %v8568_v6, %v8568_v6  ;;  %v8777_v7 = vrot.slane %v8568_v6, %v18324_v37 }
 0x6b1   : > { %v9216_v8 = vmax.f32 %v9214_v25, %v9215_v4  ;;  %v8787_v34 = vcombine.high %v8571_v43, %v8571_v43  ;;  %v8794_v42 = vrot.slane %v8571_v43, %v18324_v37  ;;  %v8529_v55 = vmax.f32 %v20579_v14, 0.0 }
 0x6b2   : > { %v9502_v36 = vsel %vm5496_vm10, %v9209_v22, %v9501_v12  ;;  %v8784_v63 = vrot.slane %v8770_v28, %v18324_v37  ;;  %v8785_v20 = vcombine.high %v8777_v7, %v8777_v7  ;;  %v9217_v29 = vsel %vm8936_vm13, %v8777_v7, -inf }
 0x6b3   : > { %v9503_v40 = vsel %vm5498_vm11, %v9216_v8, %v9502_v36  ;;  %v9218_v48 = vrot.slane %v9217_v29, 4  ;;  %v8801_v46 = vrot.slane %v8787_v34, %v18324_v37  ;;  %v8802_v13 = vcombine.high %v8794_v42, %v8794_v42 }
 0x6b4   : > { %9538 = vst.msk [vmem:[#allocation3 + $0x51] sm:$0xff] %vm8535_vm12, %v9503_v40  ;;  %v8786_v3 = vcombine.high %v8784_v63, %v8784_v63  ;;  %v9224_v39 = vsel %vm8936_vm13, %v8785_v20, -inf  ;;  %v9231_v52 = vsel %vm8936_vm13, %v8784_v63, -inf  ;;  %v9245_v59 = vsel %vm8936_vm13, %v8794_v42, -inf }
 0x6b5   : > { %v9219_v9 = vmax.f32 %v9217_v29, %v9218_v48  ;;  %v9225_v50 = vrot.slane %v9224_v39, 4  ;;  %v9232_v49 = vrot.slane %v9231_v52, 4  ;;  %v8803_v21 = vcombine.high %v8801_v46, %v8801_v46 }
 0x6b6   : > { %v9238_v53 = vsel %vm8936_vm13, %v8786_v3, -inf  ;;  %v9246_v19 = vrot.slane %v9245_v59, 4  ;;  %v9252_v23 = vsel %vm8936_vm13, %v8802_v13, -inf  ;;  %v9259_v61 = vsel %vm8936_vm13, %v8801_v46, -inf }
 0x6b7   : > { %v9220_v44 = vrot.slane %v9219_v9, 2  ;;  %v9226_v33 = vmax.f32 %v9224_v39, %v9225_v50  ;;  %v9233_v60 = vmax.f32 %v9231_v52, %v9232_v49  ;;  %v9239_v26 = vrot.slane %v9238_v53, 4  ;;  %v17859_v52 = vld [vmem:[%s22433_s4] ss:$0 sm:$0xff] }
 0x6b8   : > { %v9247_v10 = vmax.f32 %v9245_v59, %v9246_v19  ;;  %v9253_v5 = vrot.slane %v9252_v23, 4  ;;  %v9260_v0 = vrot.slane %v9259_v61, 4  ;;  %v9266_v58 = vsel %vm8936_vm13, %v8803_v21, -inf }
 0x6b9   : > { %v9221_v18 = vmax.f32 %v9219_v9, %v9220_v44  ;;  %v9227_v27 = vrot.slane %v9226_v33, 2  ;;  %v9234_v16 = vrot.slane %v9233_v60, 2  ;;  %v9240_v31 = vmax.f32 %v9238_v53, %v9239_v26 }
 0x6ba   : > { %v9248_v47 = vrot.slane %v9247_v10, 2  ;;  %v9254_v15 = vmax.f32 %v9252_v23, %v9253_v5  ;;  %v9261_v25 = vmax.f32 %v9259_v61, %v9260_v0  ;;  %v9267_v62 = vrot.slane %v9266_v58, 4 }
 0x6bb   : > { %v9222_v45 = vrot.slane %v9221_v18, 1  ;;  %v9228_v51 = vmax.f32 %v9226_v33, %v9227_v27  ;;  %v9235_v11 = vmax.f32 %v9233_v60, %v9234_v16  ;;  %v9241_v6 = vrot.slane %v9240_v31, 2 }
 0x6bc   : > { %v9249_v2 = vmax.f32 %v9247_v10, %v9248_v47  ;;  %v9255_v4 = vrot.slane %v9254_v15, 2  ;;  %v9262_v1 = vrot.slane %v9261_v25, 2  ;;  %v9268_v43 = vmax.f32 %v9266_v58, %v9267_v62 }
 0x6bd   : > { %v9223_v14 = vmax.f32 %v9221_v18, %v9222_v45  ;;  %v9229_v22 = vrot.slane %v9228_v51, 1  ;;  %v9236_v12 = vrot.slane %v9235_v11, 1  ;;  %v9242_v28 = vmax.f32 %v9240_v31, %v9241_v6  ;;  %v20626_v45 = vld [vmem:[#allocation3 + $0x21] sm:$0xff] }
 0x6be   : > { %v9250_v7 = vrot.slane %v9249_v2, 1  ;;  %v9256_v8 = vmax.f32 %v9254_v15, %v9255_v4  ;;  %v9263_v34 = vmax.f32 %v9261_v25, %v9262_v1  ;;  %v9269_v42 = vrot.slane %v9268_v43, 2 }
 0x6bf   : > { %v9230_v36 = vmax.f32 %v9228_v51, %v9229_v22  ;;  %v9237_v63 = vmax.f32 %v9235_v11, %v9236_v12  ;;  %v9243_v20 = vrot.slane %v9242_v28, 1  ;;  %v8573_v29 = vsel %vm8535_vm12, %v8529_v55, -inf }
 0x6c0   : > { %v9251_v40 = vmax.f32 %v9249_v2, %v9250_v7  ;;  %v9257_v48 = vrot.slane %v9256_v8, 1  ;;  %v9264_v46 = vrot.slane %v9263_v34, 1  ;;  %v9270_v13 = vmax.f32 %v9268_v43, %v9269_v42 }
 0x6c1   : > { %v9244_v3 = vmax.f32 %v9242_v28, %v9243_v20  ;;  %v9504_v39 = vsel %vm5486_vm5, %v9230_v36, %v9223_v14  ;;  %v8495_v59 = vadd.f32 %v17859_v52, %v20442_v30  ;;  %v8498_v9 = vadd.f32 %v17859_v52, %v20445_v38 }
 0x6c2   : > { %v9505_v50 = vsel %vm5488_vm6, %v9237_v63, %v9504_v39  ;;  %v9258_v49 = vmax.f32 %v9256_v8, %v9257_v48  ;;  %v9265_v21 = vmax.f32 %v9263_v34, %v9264_v46  ;;  %v9271_v55 = vrot.slane %v9270_v13, 1 }
 0x6c3   : > { %v9506_v53 = vsel %vm5490_vm7, %v9244_v3, %v9505_v50  ;;  %v8527_v19 = vmax.f32 %v8495_v59, 0.0  ;;  %v8530_v23 = vmax.f32 %v8498_v9, 0.0  ;;  %v8496_v61 = vadd.f32 %v17859_v52, %v20448_v35  ;;  %v20615_v35 = vld [vmem:[#allocation3 + $0x31] sm:$0xff] }
 0x6c4   : > { %v9272_v44 = vmax.f32 %v9270_v13, %v9271_v55  ;;  %v9507_v33 = vsel %vm5492_vm8, %v9251_v40, %v9506_v53  ;;  %v8501_v60 = vadd.f32 %v17859_v52, %v20458_v54  ;;  %v8499_v30 = vadd.f32 %v17859_v52, %v20464_v32  ;;  %v17173_v40 = vld [vmem:[%s22434_s5 + $0x10] sm:$0xff]  }
 0x6c5   : > { %v9508_v38 = vsel %vm5494_vm9, %v9258_v49, %v9507_v33  ;;  %v8572_v26 = vsel %vm8535_vm12, %v8527_v19, -inf  ;;  %v8576_v10 = vsel %vm8535_vm12, %v8530_v23, -inf  ;;  %v8528_v5 = vmax.f32 %v8496_v61, 0.0  ;;  %v17174_v61 = vld [vmem:[%s22434_s5 + $0x18] sm:$0xff]  }
 0x6c6   : > { %v9509_v0 = vsel %vm5496_vm10, %v9265_v21, %v9508_v38  ;;  %v8574_v58 = vmax.f32 %v8572_v26, %v8573_v29  ;;  %v8533_v18 = vmax.f32 %v8501_v60, 0.0  ;;  %v8531_v27 = vmax.f32 %v8499_v30, 0.0 }
 0x6c7   : > { %v9510_v16 = vsel %vm5498_vm11, %v9272_v44, %v9509_v0  ;;  %v8575_v54 = vsel %vm8535_vm12, %v8528_v5, -inf  ;;  %v8502_v32 = vadd.f32 %v17859_v52, %v20467_v41  ;;  %v20621_v31 = vadd.f32 %v17859_v52, %v20473_v56  ;;  %v17172_v56 = vld [vmem:[%s22434_s5 + $0x8] sm:$0xff]  }
 0x6c8   : > { %9539 = vst.msk [vmem:[#allocation3 + $0x61] sm:$0xff] %vm8535_vm12, %v9510_v16  ;;  %v8804_v47 = vcombine.high %v8574_v58, %v8574_v58  ;;  %v8811_v15 = vrot.slane %v8574_v58, %v18324_v37  ;;  %v8577_v25 = vmax.f32 %v8575_v54, %v8576_v10  ;;  %v8579_v62 = vsel %vm8535_vm12, %v8533_v18, -inf }
 0x6c9   : > { %v8578_v51 = vsel %vm8535_vm12, %v8531_v27, -inf  ;;  %v8534_v11 = vmax.f32 %v8502_v32, 0.0  ;;  %v8532_v6 = vmax.f32 %v20621_v31, 0.0  ;;  %v20632_v41 = vpack.c.bf16 %v20615_v35, %v20626_v45 }
 0x6ca   : > { %v8818_v2 = vrot.slane %v8804_v47, %v18324_v37  ;;  %v8819_v4 = vcombine.high %v8811_v15, %v8811_v15  ;;  %v9273_v1 = vsel %vm8936_vm13, %v8811_v15, -inf  ;;  %v8821_v43 = vcombine.high %v8577_v25, %v8577_v25  ;;  %v20665_v15 = vld [vmem:[%s22434_s5 + $0x40] sm:$0xff]  }
 0x6cb   : > { %v9274_v14 = vrot.slane %v9273_v1, 4  ;;  %v8828_v22 = vrot.slane %v8577_v25, %v18324_v37  ;;  %v20640_v12 = vmax.f32 %v8578_v51, %v8579_v62  ;;  %v20643_v28 = vsel %vm8535_vm12, %v8534_v11, -inf  ;;  %16548 = vmatmul.mubr.msk.bf16.vlgmr.msra.gmra.mrb[120].mxu0 %vm8535_vm12, %v20632_v41 }
 0x6cc   : > { %v8820_v7 = vcombine.high %v8818_v2, %v8818_v2  ;;  %v9280_v8 = vsel %vm8936_vm13, %v8819_v4, -inf  ;;  %v9287_v34 = vsel %vm8936_vm13, %v8818_v2, -inf  ;;  %v8835_v42 = vrot.slane %v8821_v43, %v18324_v37  ;;  %16556 = vmatpush3.bf16.msra.mxu0 %v20480_v57 }
 0x6cd   : > { %v9275_v36 = vmax.f32 %v9273_v1, %v9274_v14  ;;  %v9281_v63 = vrot.slane %v9280_v8, 4  ;;  %v9288_v20 = vrot.slane %v9287_v34, 4  ;;  %v8836_v29 = vcombine.high %v8828_v22, %v8828_v22  ;;  %16557 = vmatprep.subr.bf16.mxu0 %v17172_v56 }
 0x6ce   : > { %v9294_v48 = vsel %vm8936_vm13, %v8820_v7, -inf  ;;  %v8837_v46 = vcombine.high %v8835_v42, %v8835_v42  ;;  %v9301_v13 = vsel %vm8936_vm13, %v8828_v22, -inf  ;;  %v9315_v3 = vsel %vm8936_vm13, %v8835_v42, -inf }
 0x6cf   : > { %v9276_v39 = vrot.slane %v9275_v36, 2  ;;  %v9282_v52 = vmax.f32 %v9280_v8, %v9281_v63  ;;  %v9289_v59 = vmax.f32 %v9287_v34, %v9288_v20  ;;  %v9295_v57 = vrot.slane %v9294_v48, 4 }
 0x6d0   : > { %v9302_v9 = vrot.slane %v9301_v13, 4  ;;  %v9308_v50 = vsel %vm8936_vm13, %v8836_v29, -inf  ;;  %v9316_v49 = vrot.slane %v9315_v3, 4  ;;  %v9322_v21 = vsel %vm8936_vm13, %v8837_v46, -inf  ;;  %16558 = vmatpush3.bf16.msra.mxu0 %v17172_v56 }
 0x6d1   : > { %v9277_v55 = vmax.f32 %v9275_v36, %v9276_v39  ;;  %v9283_v53 = vrot.slane %v9282_v52, 2  ;;  %v9290_v19 = vrot.slane %v9289_v59, 2  ;;  %v9296_v23 = vmax.f32 %v9294_v48, %v9295_v57  ;;  %16559 = vmatprep.subr.bf16.mxu0 %v17173_v40 }
 0x6d2   : > { %v9303_v44 = vmax.f32 %v9301_v13, %v9302_v9  ;;  %v9309_v33 = vrot.slane %v9308_v50, 4  ;;  %v9317_v60 = vmax.f32 %v9315_v3, %v9316_v49  ;;  %v9323_v30 = vrot.slane %v9322_v21, 4 }
 0x6d3   : > { %v9278_v38 = vrot.slane %v9277_v55, 1  ;;  %v9284_v26 = vmax.f32 %v9282_v52, %v9283_v53  ;;  %v9291_v10 = vmax.f32 %v9289_v59, %v9290_v19  ;;  %v9297_v5 = vrot.slane %v9296_v23, 2 }
 0x6d4   : > { %v9304_v0 = vrot.slane %v9303_v44, 2  ;;  %v9310_v58 = vmax.f32 %v9308_v50, %v9309_v33  ;;  %v9318_v18 = vrot.slane %v9317_v60, 2  ;;  %v9324_v27 = vmax.f32 %v9322_v21, %v9323_v30  ;;  %16560 = vmatpush3.bf16.msra.mxu0 %v17173_v40  ;;  %v20680_v21 = vld [vmem:[#allocation3 + $0x51] sm:$0xff]  ;;  %v20688_v30 = vld [vmem:[#allocation3 + $0x41] sm:$0xff] }
 0x6d5   : > { %v9279_v16 = vmax.f32 %v9277_v55, %v9278_v38  ;;  %v9285_v54 = vrot.slane %v9284_v26, 1  ;;  %v9292_v32 = vrot.slane %v9291_v10, 1  ;;  %v9298_v47 = vmax.f32 %v9296_v23, %v9297_v5  ;;  %16561 = vmatprep.subr.bf16.mxu0 %v17174_v61 }
 0x6d6   : > { %v9305_v25 = vmax.f32 %v9303_v44, %v9304_v0  ;;  %v9311_v62 = vrot.slane %v9310_v58, 2  ;;  %v9319_v51 = vmax.f32 %v9317_v60, %v9318_v18  ;;  %v9325_v11 = vrot.slane %v9324_v27, 2 }
 0x6d7   : > { %v9286_v56 = vmax.f32 %v9284_v26, %v9285_v54  ;;  %v9293_v2 = vmax.f32 %v9291_v10, %v9292_v32  ;;  %v9299_v4 = vrot.slane %v9298_v47, 1  ;;  %v8838_v1 = vcombine.high %v20640_v12, %v20640_v12 }
 0x6d8   : > { %v9306_v43 = vrot.slane %v9305_v25, 1  ;;  %v9312_v14 = vmax.f32 %v9310_v58, %v9311_v62  ;;  %v9320_v22 = vrot.slane %v9319_v51, 1  ;;  %v9326_v7 = vmax.f32 %v9324_v27, %v9325_v11  ;;  %16562 = vmatpush3.bf16.msra.mxu0 %v17174_v61 }
 0x6d9   : > { %v9300_v8 = vmax.f32 %v9298_v47, %v9299_v4  ;;  %v9511_v34 = vsel %vm5486_vm5, %v9286_v56, %v9279_v16  ;;  %v8845_v42 = vrot.slane %v20640_v12, %v18324_v37  ;;  %v8852_v36 = vrot.slane %v8838_v1, %v18324_v37  ;;  %16571 = vmatprep.subr.bf16.mxu0 %v20665_v15 }
 0x6da   : > { %v9512_v63 = vsel %vm5488_vm6, %v9293_v2, %v9511_v34  ;;  %v9307_v20 = vmax.f32 %v9305_v25, %v9306_v43  ;;  %v9313_v29 = vrot.slane %v9312_v14, 1  ;;  %v9321_v40 = vmax.f32 %v9319_v51, %v9320_v22  ;;  %v9542_v22 = vld [vmem:[#allocation3] sm:$0xff] }
 0x6db   : > { %v9327_v48 = vrot.slane %v9326_v7, 1  ;;  %v9513_v46 = vsel %vm5490_vm7, %v9300_v8, %v9512_v63  ;;  %v8853_v13 = vcombine.high %v8845_v42, %v8845_v42  ;;  %v8854_v3 = vcombine.high %v8852_v36, %v8852_v36 }
 0x6dc   : > { %v9314_v39 = vmax.f32 %v9312_v14, %v9313_v29  ;;  %v9514_v52 = vsel %vm5492_vm8, %v9307_v20, %v9513_v46  ;;  %v9329_v59 = vsel %vm8936_vm13, %v8845_v42, -inf  ;;  %v9343_v12 = vsel %vm8936_vm13, %v8852_v36, -inf }
 0x6dd   : > { %v9328_v57 = vmax.f32 %v9326_v7, %v9327_v48  ;;  %v9330_v9 = vrot.slane %v9329_v59, 4  ;;  %v9336_v50 = vsel %vm8936_vm13, %v8853_v13, -inf  ;;  %v9344_v49 = vrot.slane %v9343_v12, 4  ;;  %v20704_v7 = vld [vmem:[#allocation3 + $0x10] sm:$0xff]  ;;  %v20707_v48 = vld [vmem:[#allocation3 + $0x61] sm:$0xff] }
 0x6de   : > { %v9515_v55 = vsel %vm5494_vm9, %v9314_v39, %v9514_v52  ;;  %v9337_v53 = vrot.slane %v9336_v50, 4  ;;  %v9350_v19 = vsel %vm8936_vm13, %v8854_v3, -inf  ;;  %v8581_v23 = vsel %vm8535_vm12, %v8532_v6, -inf }
 0x6df   : > { %v9516_v61 = vsel %vm5496_vm10, %v9321_v40, %v9515_v55  ;;  %v9331_v44 = vmax.f32 %v9329_v59, %v9330_v9  ;;  %v9345_v33 = vmax.f32 %v9343_v12, %v9344_v49  ;;  %v9351_v60 = vrot.slane %v9350_v19, 4 }
 0x6e0   : > { %v9517_v38 = vsel %vm5498_vm11, %v9328_v57, %v9516_v61  ;;  %v9338_v26 = vmax.f32 %v9336_v50, %v9337_v53  ;;  %v8583_v10 = vmax.f32 %v8581_v23, %v20643_v28  ;;  %v20694_v5 = vpack.c.bf16 %v20680_v21, %v20688_v30 }
 0x6e1   : > { %9540 = vst.msk [vmem:[#allocation3 + $0x71] sm:$0xff] %vm8535_vm12, %v9517_v38  ;;  %v9332_v31 = vrot.slane %v9331_v44, 2  ;;  %v9346_v6 = vrot.slane %v9345_v33, 2  ;;  %v9352_v0 = vmax.f32 %v9350_v19, %v9351_v60  ;;  %v9550_v52 = vpack.c.bf16 %v20704_v7, %v9542_v22  ;;  %v20722_v38 = vld [vmem:[#allocation3 + $0x30] sm:$0xff] }
 0x6e2   : > { %v9339_v58 = vrot.slane %v9338_v26, 2  ;;  %v8855_v18 = vcombine.high %v8583_v10, %v8583_v10  ;;  %v8862_v27 = vrot.slane %v8583_v10, %v18324_v37  ;;  %16551 = vmatprep.mubr.msk.bf16.mxu0 %vm8535_vm12, %v20694_v5 }
 0x6e3   : > { %v9333_v16 = vmax.f32 %v9331_v44, %v9332_v31  ;;  %v9347_v54 = vmax.f32 %v9345_v33, %v9346_v6  ;;  %v9353_v32 = vrot.slane %v9352_v0, 2  ;;  %v20724_v31 = vld [vmem:[#allocation3 + $0x50] sm:$0xff] }
 0x6e4   : > { %v9340_v28 = vmax.f32 %v9338_v26, %v9339_v58  ;;  %v8869_v47 = vrot.slane %v8855_v18, %v18324_v37  ;;  %v8870_v25 = vcombine.high %v8862_v27, %v8862_v27  ;;  %v9357_v62 = vsel %vm8936_vm13, %v8862_v27, -inf  ;;  %v9544_v58 = vld [vmem:[#allocation3 + $0x20] sm:$0xff] }
 0x6e5   : > { %v9334_v51 = vrot.slane %v9333_v16, 1  ;;  %v9348_v11 = vrot.slane %v9347_v54, 1  ;;  %v9354_v56 = vmax.f32 %v9352_v0, %v9353_v32  ;;  %v9358_v2 = vrot.slane %v9357_v62, 4  ;;  %v9546_v32 = vld [vmem:[#allocation3 + $0x40] sm:$0xff] }
 0x6e6   : > { %v9341_v4 = vrot.slane %v9340_v28, 1  ;;  %v8871_v1 = vcombine.high %v8869_v47, %v8869_v47  ;;  %v9364_v43 = vsel %vm8936_vm13, %v8870_v25, -inf  ;;  %v9371_v14 = vsel %vm8936_vm13, %v8869_v47, -inf }
 0x6e7   : > { %v9335_v8 = vmax.f32 %v9333_v16, %v9334_v51  ;;  %v9349_v34 = vmax.f32 %v9347_v54, %v9348_v11  ;;  %v9355_v42 = vrot.slane %v9354_v56, 1  ;;  %v9359_v36 = vmax.f32 %v9357_v62, %v9358_v2  ;;  %v17177_v2 = vld [vmem:[%s22434_s5 + $0x50] sm:$0xff]  }
 0x6e8   : > { %v9342_v63 = vmax.f32 %v9340_v28, %v9341_v4  ;;  %v9365_v20 = vrot.slane %v9364_v43, 4  ;;  %v9372_v29 = vrot.slane %v9371_v14, 4  ;;  %v9378_v40 = vsel %vm8936_vm13, %v8871_v1, -inf  ;;  %v20709_v46 = vld [vmem:[#allocation3 + $0x71] sm:$0xff] }
 0x6e9   : > { %v9360_v13 = vrot.slane %v9359_v36, 2  ;;  %v9379_v3 = vrot.slane %v9378_v40, 4  ;;  %v20713_v39 = vpack.c.bf16 %v20709_v46, %v20707_v48  ;;  %v9356_v59 = vmax.f32 %v9354_v56, %v9355_v42  ;;  %v17176_v28 = vld [vmem:[%s22434_s5 + $0x48] sm:$0xff]   ;;  %v9549_v1 = vld [vmem:[#allocation3 + $0x70] sm:$0xff] }
 0x6ea   : > { %v9518_v12 = vsel %vm5486_vm5, %v9342_v63, %v9335_v8  ;;  %v9366_v57 = vmax.f32 %v9364_v43, %v9365_v20  ;;  %v9373_v9 = vmax.f32 %v9371_v14, %v9372_v29  ;;  %v10051_v18 = vpack.c.bf16 %v20688_v30, %v20615_v35  ;;  %v9784_v43 = vld [vmem:[#allocation3 + $0x2] sm:$0xff]  ;;  %v20750_v14 = vld [vmem:[#allocation3 + $0x12] sm:$0xff] }
 0x6eb   : > { %v9519_v50 = vsel %vm5488_vm6, %v9349_v34, %v9518_v12  ;;  %v9361_v49 = vmax.f32 %v9359_v36, %v9360_v13  ;;  %v9380_v55 = vmax.f32 %v9378_v40, %v9379_v3  ;;  %16552 = vmatmul.mubr.msk.bf16.gmra.mrb[124].mxu0 %vm8535_vm12, %v20713_v39  ;;  %v20730_v54 = vpack.c.bf16 %v20722_v38, %v9544_v58  ;;  %v17178_v8 = vld [vmem:[%s22434_s5 + $0x58] sm:$0xff]   ;;  %v17179_v42 = vld [vmem:[%s22434_s5 + $0x60] sm:$0xff]   ;;  %v17180_v13 = vld [vmem:[%s22434_s5 + $0x68] sm:$0xff]  }
 0x6ec   : > { %v9367_v53 = vrot.slane %v9366_v57, 2  ;;  %v9374_v19 = vrot.slane %v9373_v9, 2  ;;  %16563 = vmatprep.mubr.msk.bf16.mxu0 %vm8535_vm12, %v9550_v52  ;;  %v9520_v60 = vsel %vm5490_vm7, %v9356_v59, %v9519_v50  ;;  %v20736_v25 = vpack.c.bf16 %v20724_v31, %v9546_v32  ;;  %v20764_v36 = vld [vmem:[#allocation3 + $0x32] sm:$0xff]  ;;  %v9786_v20 = vld [vmem:[#allocation3 + $0x22] sm:$0xff] }
 0x6ed   : > { %v9362_v23 = vrot.slane %v9361_v49, 1  ;;  %v9381_v61 = vrot.slane %v9380_v55, 2  ;;  %v9792_v34 = vpack.c.bf16 %v20750_v14, %v9784_v43  ;;  %v20766_v63 = vld [vmem:[#allocation3 + $0x52] sm:$0xff]  ;;  %v20769_v29 = vpack.c.bf16 %v20764_v36, %v9786_v20  ;;  %v20771_v40 = vld [vmem:[#allocation3 + $0x42] sm:$0xff] }
 0x6ee   : > { %v9368_v44 = vmax.f32 %v9366_v57, %v9367_v53  ;;  %v9375_v33 = vmax.f32 %v9373_v9, %v9374_v19  ;;  %v20778_v3 = vpack.c.bf16 %v20766_v63, %v20771_v40  ;;  %v17181_v52 = vld [vmem:[%s22434_s5 + $0x70] sm:$0xff]   ;;  %v20787_v59 = vld [vmem:[#allocation3 + $0x72] sm:$0xff]  ;;  %v17182_v9 = vld [vmem:[%s22434_s5 + $0x78] sm:$0xff]   ;;  %v9921_v50 = vpack.c.bf16 %v9544_v58, %v20704_v7 }
 0x6ef   : > { %v9363_v26 = vmax.f32 %v9361_v49, %v9362_v23  ;;  %v9382_v10 = vmax.f32 %v9380_v55, %v9381_v61  ;;  %v9790_v12 = vld [vmem:[#allocation3 + $0x62] sm:$0xff]  ;;  %v17183_v49 = vld [vmem:[%s22434_s5 + $0x80] sm:$0xff]   ;;  %v9922_v55 = vpack.c.bf16 %v9546_v32, %v20722_v38  ;;  %v17184_v53 = vld [vmem:[%s22434_s5 + $0x88] sm:$0xff]   ;;  %v10179_v30 = vpack.c.bf16 %v9786_v20, %v20750_v14 }
 0x6f0   : > { %v9369_v6 = vrot.slane %v9368_v44, 1  ;;  %v9376_v0 = vrot.slane %v9375_v33, 1  ;;  %v20790_v57 = vpack.c.bf16 %v20787_v59, %v9790_v12  ;;  %v17185_v19 = vld [vmem:[%s22434_s5 + $0x90] sm:$0xff]   ;;  %v17188_v38 = vld [vmem:[%s22434_s5 + $0xa8] sm:$0xff]   ;;  %v17190_v35 = vld [vmem:[%s22434_s5 + $0xb8] sm:$0xff]  }
 0x6f1   : > { %v9383_v27 = vrot.slane %v9382_v10, 1  ;;  %v9521_v16 = vsel %vm5492_vm8, %v9363_v26, %v9520_v60  ;;  %v17187_v60 = vld [vmem:[%s22434_s5 + $0xa0] sm:$0xff]   ;;  %v10052_v26 = vpack.c.bf16 %v20707_v48, %v20680_v21  ;;  %v17206_v43 = vld [vmem:[%s22436_s7 + $0x90] ss:$8 sps:$4 sm:$0xff]  }
 0x6f2   : > { %v9370_v47 = vmax.f32 %v9368_v44, %v9369_v6  ;;  %v9377_v62 = vmax.f32 %v9375_v33, %v9376_v0  ;;  %v17186_v44 = vld [vmem:[%s22434_s5 + $0x98] sm:$0xff]   ;;  %v10050_v33 = vpack.c.bf16 %v20626_v45, %v20566_v17  ;;  %v17189_v17 = vld [vmem:[%s22434_s5 + $0xb0] sm:$0xff]   ;;  %v17191_v48 = vld [vmem:[%s22434_s5 + $0xc0] sm:$0xff]  }
 0x6f3   : > { %16564 = vmatmul.mubr.msk.bf16.vlgmr.msra.gmra.mrb[120].mxu0 %vm8535_vm12, %v20730_v54  ;;  %v9384_v51 = vmax.f32 %v9382_v10, %v9383_v27  ;;  %v17192_v10 = vld [vmem:[%s22434_s5 + $0xc8] sm:$0xff]   ;;  %v17193_v6 = vld [vmem:[%s22434_s5 + $0xd0] sm:$0xff]   ;;  %v17195_v27 = vld [vmem:[%s22434_s5 + $0xe0] sm:$0xff]  }
 0x6f4   : > { %v9522_v11 = vsel %vm5494_vm9, %v9370_v47, %v9521_v16  ;;  %16572 = vmatpush3.bf16.msra.mxu0 %v20665_v15  ;;  %16567 = vmatprep.mubr.msk.bf16.mxu0 %vm8535_vm12, %v20736_v25  ;;  %v9548_v15 = vld [vmem:[#allocation3 + $0x60] sm:$0xff]  ;;  %v17196_v16 = vld [vmem:[%s22434_s5 + $0xe8] sm:$0xff]   ;;  %v10308_v32 = vld [vmem:[#allocation3 + $0x90] sm:$0xff] }
 0x6f5   : > { %v9523_v56 = vsel %vm5496_vm10, %v9377_v62, %v9522_v11  ;;  %16573 = vmatprep.subr.bf16.mxu0 %v17176_v28  ;;  %v20752_v22 = vpack.c.bf16 %v9549_v1, %v9548_v15  ;;  %v9923_v7 = vpack.c.bf16 %v9548_v15, %v20724_v31  ;;  %v10181_v31 = vpack.c.bf16 %v9790_v12, %v20766_v63  ;;  %v17198_v47 = vld [vmem:[%s22434_s5 + $0xf8] sm:$0xff]   ;;  %v17200_v62 = vld [vmem:[%s22434_s5 + $0x108] sm:$0xff]  }
 0x6f6   : > { %v9524_v4 = vsel %vm5498_vm11, %v9384_v51, %v9523_v56  ;;  %v10437_v51 = vld [vmem:[#allocation3 + $0x91] sm:$0xff]  ;;  %v17202_v56 = vld [vmem:[%s22434_s5 + $0x118] sm:$0xff]   ;;  %v17927_v15 = vmov 0  }
 0x6f7   : > { %9541 = vst.msk [vmem:[#allocation3 + $0x81] sm:$0xff] %vm8535_vm12, %v9524_v4  ;;  %v17205_v4 = vld [vmem:[%s22436_s7 + $0x84] ss:$8 sps:$4 sm:$0xff]   ;;  %v17220_v63 = vld [vmem:[%s22436_s7 + $0xd4] ss:$8 sps:$4 sm:$0xff]  }
 0x6f8   : > { %16574 = vmatpush3.bf16.msra.mxu0 %v17176_v28  ;;  %v17211_v14 = vld [vmem:[%s22436_s7 + $0xa4] ss:$8 sps:$4 sm:$0xff]   ;;  %v17218_v20 = vld [vmem:[%s22436_s7 + $0xd0] ss:$8 sps:$4 sm:$0xff]  }
 0x6f9   : > { %16575 = vmatprep.subr.bf16.mxu0 %v17177_v2 }
 0x6fb   : > { %16568 = vmatmul.mubr.msk.bf16.gmra.mrb[124].mxu0 %vm8535_vm12, %v20752_v22 }
 0x6fc   : > { %16576 = vmatpush3.bf16.msra.mxu0 %v17177_v2  ;;  %16579 = vmatprep.mubr.msk.bf16.mxu0 %vm8535_vm12, %v9792_v34  ;;  %v17203_v2 = vld [vmem:[%s22436_s7 + $0x80] ss:$8 sps:$4 sm:$0xff]   ;;  %v17212_v34 = vld [vmem:[%s22436_s7 + $0xb0] ss:$8 sps:$4 sm:$0xff]  }
 0x6fd   : > { %16577 = vmatprep.subr.bf16.mxu0 %v17178_v8 }
 0x6fe   : > { %v20812_v23 = vld [vmem:[#allocation3 + $0x80] sm:$0xff] }
 0x6ff   : > { %v9924_v61 = vpack.c.bf16 %v20812_v23, %v9549_v1  ;;  %v20838_v45 = vld [vmem:[#allocation3 + $0x81] sm:$0xff]  ;;  %v10312_v28 = vpack.c.bf16 %v10308_v32, %v20812_v23 }
 0x700   : > { %16578 = vmatpush3.bf16.msra.mxu0 %v17178_v8  ;;  %v10053_v21 = vpack.c.bf16 %v20838_v45, %v20709_v46  ;;  %v10180_v46 = vpack.c.bf16 %v20771_v40, %v20764_v36  ;;  %v10178_v0 = vld [vmem:[#allocation3 + $0x82] sm:$0xff]  ;;  %v10441_v11 = vpack.c.bf16 %v10437_v51, %v20838_v45  ;;  %v17215_v36 = vld [vmem:[%s22436_s7 + $0xc0] ss:$8 sps:$4 sm:$0xff]  }
 0x701   : > { %16587 = vmatprep.subr.bf16.mxu0 %v17179_v42  ;;  %v10182_v58 = vpack.c.bf16 %v10178_v0, %v20787_v59  ;;  %v17208_v1 = vld [vmem:[%s22436_s7 + $0x94] ss:$8 sps:$4 sm:$0xff]   ;;  %v17221_v40 = vld [vmem:[%s22436_s7 + $0xe0] ss:$8 sps:$4 sm:$0xff]  }
 0x702   : > { %v17214_v8 = vld [vmem:[%s22436_s7 + $0xb4] ss:$8 sps:$4 sm:$0xff]   ;;  %v20969_v59 = vld [vmem:[%s22435_s6] ss:$0 sm:$0xff] }
 0x703   : > { %16580 = vmatmul.mubr.msk.bf16.vlgmr.msra.gmra.mrb[120].mxu0 %vm8535_vm12, %v20769_v29 }
 0x704   : > { %16588 = vmatpush3.bf16.msra.mxu0 %v17179_v42  ;;  %16583 = vmatprep.mubr.msk.bf16.mxu0 %vm8535_vm12, %v20778_v3  ;;  %v17217_v42 = vld [vmem:[%s22436_s7 + $0xc4] ss:$8 sps:$4 sm:$0xff]  }
 0x705   : > { %16589 = vmatprep.subr.bf16.mxu0 %v17180_v13 }
 0x708   : > { %16590 = vmatpush3.bf16.msra.mxu0 %v17180_v13  ;;  %v17226_v13 = vld [vmem:[%s22436_s7 + $0xf4] ss:$8 sps:$4 sm:$0xff]  }
 0x709   : > { %16591 = vmatprep.subr.bf16.mxu0 %v17181_v52 }
 0x70b   : > { %16584 = vmatmul.mubr.msk.bf16.gmra.mrb[124].mxu0 %vm8535_vm12, %v20790_v57 }
 0x70c   : > { %16592 = vmatpush3.bf16.msra.mxu0 %v17181_v52  ;;  %16595 = vmatprep.mubr.msk.bf16.mxu0 %vm8535_vm12, %v9921_v50  ;;  %v17229_v52 = vld [vmem:[%s22436_s7 + $0x4] ss:$8 sps:$4 sm:$0xff]  }
 0x70d   : > { %16593 = vmatprep.subr.bf16.mxu0 %v17182_v9 }
 0x710   : > { %16594 = vmatpush3.bf16.msra.mxu0 %v17182_v9 }
 0x711   : > { %16603 = vmatprep.subr.bf16.mxu0 %v17183_v49 }
 0x713   : > { %16596 = vmatmul.mubr.msk.bf16.vlgmr.msra.gmra.mrb[120].mxu0 %vm8535_vm12, %v9922_v55 }
 0x714   : > { %16604 = vmatpush3.bf16.msra.mxu0 %v17183_v49  ;;  %16599 = vmatprep.mubr.msk.bf16.mxu0 %vm8535_vm12, %v9923_v7 }
 0x715   : > { %16605 = vmatprep.subr.bf16.mxu0 %v17184_v53 }
 0x718   : > { %16606 = vmatpush3.bf16.msra.mxu0 %v17184_v53 }
 0x719   : > { %16607 = vmatprep.subr.bf16.mxu0 %v17185_v19 }
 0x71b   : > { %16600 = vmatmul.mubr.msk.bf16.gmra.mrb[124].mxu0 %vm8535_vm12, %v9924_v61 }
 0x71c   : > { %16608 = vmatpush3.bf16.msra.mxu0 %v17185_v19  ;;  %16611 = vmatprep.mubr.msk.bf16.mxu0 %vm8535_vm12, %v10050_v33 }
 0x71d   : > { %16609 = vmatprep.subr.bf16.mxu0 %v17186_v44 }
 0x720   : > { %16610 = vmatpush3.bf16.msra.mxu0 %v17186_v44 }
 0x721   : > { %16619 = vmatprep.subr.bf16.mxu0 %v17187_v60 }
 0x723   : > { %16612 = vmatmul.mubr.msk.bf16.vlgmr.msra.gmra.mrb[120].mxu0 %vm8535_vm12, %v10051_v18  ;;  %v17194_v18 = vld [vmem:[%s22434_s5 + $0xd8] sm:$0xff]  }
 0x724   : > { %16620 = vmatpush3.bf16.msra.mxu0 %v17187_v60  ;;  %16615 = vmatprep.mubr.msk.bf16.mxu0 %vm8535_vm12, %v10052_v26 }
 0x725   : > { %16621 = vmatprep.subr.bf16.mxu0 %v17188_v38 }
 0x728   : > { %16622 = vmatpush3.bf16.msra.mxu0 %v17188_v38 }
 0x729   : > { %16623 = vmatprep.subr.bf16.mxu0 %v17189_v17 }
 0x72b   : > { %16616 = vmatmul.mubr.msk.bf16.gmra.mrb[124].mxu0 %vm8535_vm12, %v10053_v21 }
 0x72c   : > { %16624 = vmatpush3.bf16.msra.mxu0 %v17189_v17  ;;  %16627 = vmatprep.mubr.msk.bf16.mxu0 %vm8535_vm12, %v10179_v30 }
 0x72d   : > { %16625 = vmatprep.subr.bf16.mxu0 %v17190_v35 }
 0x730   : > { %16626 = vmatpush3.bf16.msra.mxu0 %v17190_v35 }
 0x731   : > { %16635 = vmatprep.subr.bf16.mxu0 %v17191_v48 }
 0x733   : > { %16628 = vmatmul.mubr.msk.bf16.vlgmr.msra.gmra.mrb[120].mxu0 %vm8535_vm12, %v10180_v46 }
 0x734   : > { %16636 = vmatpush3.bf16.msra.mxu0 %v17191_v48  ;;  %16631 = vmatprep.mubr.msk.bf16.mxu0 %vm8535_vm12, %v10181_v31 }
 0x735   : > { %16637 = vmatprep.subr.bf16.mxu0 %v17192_v10 }
 0x738   : > { %16638 = vmatpush3.bf16.msra.mxu0 %v17192_v10 }
 0x739   : > { %16639 = vmatprep.subr.bf16.mxu0 %v17193_v6 }
 0x73b   : > { %16632 = vmatmul.mubr.msk.bf16.gmra.mrb[124].mxu0 %vm8535_vm12, %v10182_v58 }
 0x73c   : > { %16640 = vmatpush3.bf16.msra.mxu0 %v17193_v6  ;;  %16643 = vmatprep.mubr.msk.bf16.mxu0 %vm8535_vm12, %v20730_v54  ;;  %v17197_v54 = vld [vmem:[%s22434_s5 + $0xf0] sm:$0xff]  }
 0x73d   : > { %16641 = vmatprep.subr.bf16.mxu0 %v17194_v18 }
 0x740   : > { %16642 = vmatpush3.bf16.msra.mxu0 %v17194_v18 }
 0x741   : > { %16651 = vmatprep.subr.bf16.mxu0 %v17195_v27 }
 0x743   : > { %16644 = vmatmul.mubr.msk.bf16.vlgmr.msra.gmra.mrb[120].mxu0 %vm8535_vm12, %v20736_v25  ;;  %v17199_v25 = vld [vmem:[%s22434_s5 + $0x100] sm:$0xff]  }
 0x744   : > { %16652 = vmatpush3.bf16.msra.mxu0 %v17195_v27  ;;  %16647 = vmatprep.mubr.msk.bf16.mxu0 %vm8535_vm12, %v20752_v22  ;;  %v17209_v22 = vld [vmem:[%s22436_s7 + $0xa0] ss:$8 sps:$4 sm:$0xff]  }
 0x745   : > { %16653 = vmatprep.subr.bf16.mxu0 %v17196_v16 }
 0x748   : > { %16654 = vmatpush3.bf16.msra.mxu0 %v17196_v16 }
 0x749   : > { %16655 = vmatprep.subr.bf16.mxu0 %v17197_v54 }
 0x74b   : > { %16648 = vmatmul.mubr.msk.bf16.gmra.mrb[124].mxu0 %vm8535_vm12, %v10312_v28 }
 0x74c   : > { %16656 = vmatpush3.bf16.msra.mxu0 %v17197_v54  ;;  %16659 = vmatprep.mubr.msk.bf16.mxu0 %vm8535_vm12, %v20632_v41  ;;  %v17201_v41 = vld [vmem:[%s22434_s5 + $0x110] sm:$0xff]  }
 0x74d   : > { %16657 = vmatprep.subr.bf16.mxu0 %v17198_v47 }
 0x750   : > { %16658 = vmatpush3.bf16.msra.mxu0 %v17198_v47 }
 0x751   : > { %16667 = vmatprep.subr.bf16.mxu0 %v17199_v25 }
 0x753   : > { %16660 = vmatmul.mubr.msk.bf16.vlgmr.msra.gmra.mrb[120].mxu0 %vm8535_vm12, %v20694_v5  ;;  %v10566_v5 = vld [vmem:[#allocation3 + $0x92] sm:$0xff] }
 0x754   : > { %16668 = vmatpush3.bf16.msra.mxu0 %v17199_v25  ;;  %16663 = vmatprep.mubr.msk.bf16.mxu0 %vm8535_vm12, %v20713_v39  ;;  %v10570_v39 = vpack.c.bf16 %v10566_v5, %v10178_v0 }
 0x755   : > { %16669 = vmatprep.subr.bf16.mxu0 %v17200_v62 }
 0x758   : > { %16670 = vmatpush3.bf16.msra.mxu0 %v17200_v62 }
 0x759   : > { %16671 = vmatprep.subr.bf16.mxu0 %v17201_v41 }
 0x75b   : > { %16664 = vmatmul.mubr.msk.bf16.gmra.mrb[124].mxu0 %vm8535_vm12, %v10441_v11 }
 0x75c   : > { %16672 = vmatpush3.bf16.msra.mxu0 %v17201_v41  ;;  %16675 = vmatprep.mubr.msk.bf16.mxu0 %vm8535_vm12, %v20769_v29  ;;  %v17223_v29 = vld [vmem:[%s22436_s7 + $0xe4] ss:$8 sps:$4 sm:$0xff]  }
 0x75d   : > { %16673 = vmatprep.subr.bf16.mxu0 %v17202_v56 }
 0x760   : > { %16674 = vmatpush3.bf16.msra.mxu0 %v17202_v56 }
 0x761   : > { %11097 = vmatprep.subr.bf16.mxu0 %v17205_v4 }
 0x763   : > { %16676 = vmatmul.mubr.msk.bf16.vlgmr.msra.gmra.mrb[120].mxu0 %vm8535_vm12, %v20778_v3  ;;  %v17224_v3 = vld [vmem:[%s22436_s7 + $0xf0] ss:$8 sps:$4 sm:$0xff]  }
 0x764   : > { %16679 = vmatprep.mubr.msk.bf16.mxu0 %vm8535_vm12, %v20790_v57  ;;  %11098 = vmatpush1.bf16.msra.mxu0 %v17203_v2 }
 0x765   : > { %11099 = vmatprep.subr.bf16.mxu0 %v17208_v1 }
 0x768   : > { %11100 = vmatpush1.bf16.msra.mxu0 %v17206_v43 }
 0x769   : > { %11101 = vmatprep.subr.bf16.mxu0 %v17211_v14 }
 0x76b   : > { %16680 = vmatmul.mubr.msk.bf16.gmra.mrb[124].mxu0 %vm8535_vm12, %v10570_v39 }
 0x76c   : > { %11129 = vmatprep.mubr.bf16.mxu0 %v17927_v15  ;;  %11102 = vmatpush1.bf16.msra.mxu0 %v17209_v22 }
 0x76d   : > { %11103 = vmatprep.subr.bf16.mxu0 %v17214_v8 }
 0x770   : > { %11104 = vmatpush1.bf16.msra.mxu0 %v17212_v34 }
 0x771   : > { %11105 = vmatprep.subr.bf16.mxu0 %v17217_v42 }
 0x774   : > { %11106 = vmatpush1.bf16.msra.mxu0 %v17215_v36 }
 0x775   : > { %11107 = vmatprep.subr.bf16.mxu0 %v17220_v63 }
 0x778   : > { %11108 = vmatpush1.bf16.msra.mxu0 %v17218_v20 }
 0x779   : > { %11109 = vmatprep.subr.bf16.mxu0 %v17223_v29 }
 0x77c   : > { %11110 = vmatpush1.bf16.msra.mxu0 %v17221_v40 }
 0x77d   : > { %11111 = vmatprep.subr.bf16.mxu0 %v17226_v13 }
 0x780   : > { %11112 = vmatpush1.bf16.msra.mxu0 %v17224_v3 }
 0x781   : > { %11220 = vmatprep.subr.bf16.mxu0 %v17229_v52 }
 0x836   : > { %v16677_v12 = vpop.f32.mrb[120].mxu0 }
 0x837   : > { %v10697_v57 = vadd.f32 %v16677_v12, %v20969_v59  ;;  %v10649_v9 = vpop.f32.mrb[121].mxu0 }
 0x838   : > { %v10695_v50 = vadd.f32 %v20969_v59, %v10649_v9  ;;  %v16678_v49 = vpop.f32.mrb[122].mxu0 }
 0x839   : > { %v10698_v55 = vadd.f32 %v16678_v49, %v20969_v59  ;;  %v10652_v53 = vpop.f32.mrb[123].mxu0  ;;  %v10705_v19 = vmax.f32 %v10697_v57, 0.0 }
 0x83a   : > { %v10696_v7 = vadd.f32 %v20969_v59, %v10652_v53  ;;  %v10703_v61 = vmax.f32 %v10695_v50, 0.0 }
 0x83b   : > { %v10706_v23 = vmax.f32 %v10698_v55, 0.0 }
 0x83c   : > { %v10704_v44 = vmax.f32 %v10696_v7, 0.0 }
 0x83d   : > { %v10712_v33 = vmax.f32 %v10705_v19, %v10706_v23 }
 0x83e   : > { %v10711_v60 = vmax.f32 %v10703_v61, %v10704_v44  ;;  %v16681_v38 = vpop.f32.mrb[124].mxu0 }
 0x83f   : > { %v10736_v26 = vcombine.high %v10712_v33, %v10712_v33  ;;  %v10743_v17 = vrot.slane %v10712_v33, %v18324_v37  ;;  %v10665_v45 = vpop.f32.mrb[125].mxu0  ;;  %v20980_v31 = vadd.f32 %v16681_v38, %v20969_v59 }
 0x840   : > { %v10719_v21 = vcombine.high %v10711_v60, %v10711_v60  ;;  %v10726_v35 = vrot.slane %v10711_v60, %v18324_v37  ;;  %v16682_v30 = vpop.f32.mrb[126].mxu0  ;;  %v10699_v55 = vadd.f32 %v20969_v59, %v10665_v45 }
 0x841   : > { %v10750_v48 = vrot.slane %v10736_v26, %v18324_v37  ;;  %v10751_v46 = vcombine.high %v10743_v17, %v10743_v17  ;;  %v10832_v10 = vsel %vm10803_vm14, %v10743_v17, -inf  ;;  %v10668_v6 = vpop.f32.mrb[127].mxu0  ;;  %v10709_v60 = vmax.f32 %v20980_v31, 0.0 }
 0x842   : > { %v10833_v0 = vrot.slane %v10832_v10, 4  ;;  %v10733_v58 = vrot.slane %v10719_v21, %v18324_v37  ;;  %v10734_v18 = vcombine.high %v10726_v35, %v10726_v35  ;;  %v10804_v27 = vsel %vm10803_vm14, %v10726_v35, -inf }
 0x843   : > { %v10752_v16 = vcombine.high %v10750_v48, %v10750_v48  ;;  %v10839_v54 = vsel %vm10803_vm14, %v10751_v46, -inf  ;;  %v10846_v32 = vsel %vm10803_vm14, %v10750_v48, -inf  ;;  %v10805_v28 = vrot.slane %v10804_v27, 4 }
 0x844   : > { %v10834_v47 = vmax.f32 %v10832_v10, %v10833_v0  ;;  %v10840_v25 = vrot.slane %v10839_v54, 4  ;;  %v10847_v62 = vrot.slane %v10846_v32, 4  ;;  %v10735_v41 = vcombine.high %v10733_v58, %v10733_v58 }
 0x845   : > { %v10853_v51 = vsel %vm10803_vm14, %v10752_v16, -inf  ;;  %v10806_v11 = vmax.f32 %v10804_v27, %v10805_v28  ;;  %v10811_v56 = vsel %vm10803_vm14, %v10734_v18, -inf  ;;  %v10818_v5 = vsel %vm10803_vm14, %v10733_v58, -inf }
 0x846   : > { %v10835_v39 = vrot.slane %v10834_v47, 2  ;;  %v10841_v2 = vmax.f32 %v10839_v54, %v10840_v25  ;;  %v10848_v4 = vmax.f32 %v10846_v32, %v10847_v62  ;;  %v10854_v1 = vrot.slane %v10853_v51, 4 }
 0x847   : > { %v10807_v43 = vrot.slane %v10806_v11, 2  ;;  %v10812_v14 = vrot.slane %v10811_v56, 4  ;;  %v10819_v22 = vrot.slane %v10818_v5, 4  ;;  %v10825_v8 = vsel %vm10803_vm14, %v10735_v41, -inf }
 0x848   : > { %v10836_v34 = vmax.f32 %v10834_v47, %v10835_v39  ;;  %v10842_v42 = vrot.slane %v10841_v2, 2  ;;  %v10849_v36 = vrot.slane %v10848_v4, 2  ;;  %v10855_v63 = vmax.f32 %v10853_v51, %v10854_v1 }
 0x849   : > { %v10808_v20 = vmax.f32 %v10806_v11, %v10807_v43  ;;  %v10813_v29 = vmax.f32 %v10811_v56, %v10812_v14  ;;  %v10820_v40 = vmax.f32 %v10818_v5, %v10819_v22  ;;  %v10826_v13 = vrot.slane %v10825_v8, 4 }
 0x84a   : > { %v10837_v3 = vrot.slane %v10836_v34, 1  ;;  %v10843_v52 = vmax.f32 %v10841_v2, %v10842_v42  ;;  %v10850_v12 = vmax.f32 %v10848_v4, %v10849_v36  ;;  %v10856_v57 = vrot.slane %v10855_v63, 2 }
 0x84b   : > { %v10814_v9 = vrot.slane %v10813_v29, 2  ;;  %v10821_v50 = vrot.slane %v10820_v40, 2  ;;  %v10827_v49 = vmax.f32 %v10825_v8, %v10826_v13  ;;  %v10809_v23 = vrot.slane %v10808_v20, 1 }
 0x84c   : > { %v10844_v53 = vrot.slane %v10843_v52, 1  ;;  %v10851_v7 = vrot.slane %v10850_v12, 1  ;;  %v10857_v19 = vmax.f32 %v10855_v63, %v10856_v57  ;;  %v10838_v38 = vmax.f32 %v10836_v34, %v10837_v3 }
 0x84d   : > { %v10815_v61 = vmax.f32 %v10813_v29, %v10814_v9  ;;  %v10822_v44 = vmax.f32 %v10820_v40, %v10821_v50  ;;  %v10828_v33 = vrot.slane %v10827_v49, 2  ;;  %v10702_v10 = vadd.f32 %v16682_v30, %v20969_v59 }
 0x84e   : > { %v10845_v26 = vmax.f32 %v10843_v52, %v10844_v53  ;;  %v10852_v17 = vmax.f32 %v10850_v12, %v10851_v7  ;;  %v10858_v21 = vrot.slane %v10857_v19, 1  ;;  %v10810_v58 = vmax.f32 %v10808_v20, %v10809_v23 }
 0x84f   : > { %v10816_v35 = vrot.slane %v10815_v61, 1  ;;  %v10823_v48 = vrot.slane %v10822_v44, 1  ;;  %v10829_v46 = vmax.f32 %v10827_v49, %v10828_v33  ;;  %v10700_v18 = vadd.f32 %v20969_v59, %v10668_v6 }
 0x850   : > { %v10859_v0 = vmax.f32 %v10857_v19, %v10858_v21  ;;  %v10941_v45 = vsel %vm5486_vm5, %v10845_v26, %v10838_v38  ;;  %v10707_v28 = vmax.f32 %v10699_v55, 0.0  ;;  %v10710_v47 = vmax.f32 %v10702_v10, 0.0 }
 0x851   : > { %v10942_v27 = vsel %vm5488_vm6, %v10852_v17, %v10941_v45  ;;  %v10817_v16 = vmax.f32 %v10815_v61, %v10816_v35  ;;  %v10824_v54 = vmax.f32 %v10822_v44, %v10823_v48  ;;  %v10830_v31 = vrot.slane %v10829_v46, 1 }
 0x852   : > { %v10943_v32 = vsel %vm5490_vm7, %v10859_v0, %v10942_v27  ;;  %v10708_v25 = vmax.f32 %v10700_v18, 0.0  ;;  %v10714_v51 = vmax.f32 %v10709_v60, %v10710_v47 }
 0x853   : > { %10956 = vst [vmem:[#allocation4 + $0x11] sm:$0xf] %v10943_v32  ;;  %v10831_v62 = vmax.f32 %v10829_v46, %v10830_v31  ;;  %v10938_v30 = vsel %vm5486_vm5, %v10817_v16, %v10810_v58 }
 0x854   : > { %v10939_v41 = vsel %vm5488_vm6, %v10824_v54, %v10938_v30  ;;  %v10713_v11 = vmax.f32 %v10707_v28, %v10708_v25  ;;  %v10770_v6 = vcombine.high %v10714_v51, %v10714_v51  ;;  %v10777_v56 = vrot.slane %v10714_v51, %v18324_v37 }
 0x855   : > { %v10940_v59 = vsel %vm5490_vm7, %v10831_v62, %v10939_v41 }
 0x856   : > { %10955 = vst [vmem:[#allocation4 + $0x9] sm:$0xf] %v10940_v59  ;;  %v10753_v5 = vcombine.high %v10713_v11, %v10713_v11  ;;  %v10760_v39 = vrot.slane %v10713_v11, %v18324_v37  ;;  %v10784_v2 = vrot.slane %v10770_v6, %v18324_v37  ;;  %v10785_v4 = vcombine.high %v10777_v56, %v10777_v56 }
 0x857   : > { %v10888_v1 = vsel %vm10803_vm14, %v10777_v56, -inf }
 0x858   : > { %v10767_v43 = vrot.slane %v10753_v5, %v18324_v37  ;;  %v10889_v14 = vrot.slane %v10888_v1, 4  ;;  %v10768_v22 = vcombine.high %v10760_v39, %v10760_v39  ;;  %v10860_v8 = vsel %vm10803_vm14, %v10760_v39, -inf }
 0x859   : > { %v10786_v34 = vcombine.high %v10784_v2, %v10784_v2  ;;  %v10895_v42 = vsel %vm10803_vm14, %v10785_v4, -inf  ;;  %v10902_v36 = vsel %vm10803_vm14, %v10784_v2, -inf  ;;  %v10861_v13 = vrot.slane %v10860_v8, 4 }
 0x85a   : > { %v10769_v63 = vcombine.high %v10767_v43, %v10767_v43  ;;  %v10890_v20 = vmax.f32 %v10888_v1, %v10889_v14  ;;  %v10896_v29 = vrot.slane %v10895_v42, 4  ;;  %v10903_v40 = vrot.slane %v10902_v36, 4 }
 0x85b   : > { %v10909_v3 = vsel %vm10803_vm14, %v10786_v34, -inf  ;;  %v10867_v52 = vsel %vm10803_vm14, %v10768_v22, -inf  ;;  %v10874_v12 = vsel %vm10803_vm14, %v10767_v43, -inf  ;;  %v10862_v53 = vmax.f32 %v10860_v8, %v10861_v13  ;;  %v17235_v13 = vld [vmem:[%s22436_s7 + $0x20] ss:$8 sps:$4 sm:$0xff]  }
 0x85c   : > { %v10881_v57 = vsel %vm10803_vm14, %v10769_v63, -inf  ;;  %v10891_v9 = vrot.slane %v10890_v20, 2  ;;  %v10897_v50 = vmax.f32 %v10895_v42, %v10896_v29  ;;  %v10904_v49 = vmax.f32 %v10902_v36, %v10903_v40  ;;  %v17227_v36 = vld [vmem:[%s22436_s7] ss:$8 sps:$4 sm:$0xff]   ;;  %v17232_v29 = vld [vmem:[%s22436_s7 + $0x10] ss:$8 sps:$4 sm:$0xff]  }
 0x85d   : > { %v10910_v55 = vrot.slane %v10909_v3, 4  ;;  %v10868_v7 = vrot.slane %v10867_v52, 4  ;;  %v10875_v19 = vrot.slane %v10874_v12, 4  ;;  %v10882_v23 = vrot.slane %v10881_v57, 4  ;;  %v17230_v34 = vld [vmem:[#allocation4 + $0x1] ss:$8 sps:$4 sm:$0xff]  }
 0x85e   : > { %v10892_v61 = vmax.f32 %v10890_v20, %v10891_v9  ;;  %v10898_v44 = vrot.slane %v10897_v50, 2  ;;  %v10905_v33 = vrot.slane %v10904_v49, 2  ;;  %v10863_v38 = vrot.slane %v10862_v53, 2  ;;  %v17234_v20 = vld [vmem:[%s22436_s7 + $0x14] ss:$8 sps:$4 sm:$0xff]  }
 0x85f   : > { %v10911_v60 = vmax.f32 %v10909_v3, %v10910_v55  ;;  %v10869_v26 = vmax.f32 %v10867_v52, %v10868_v7  ;;  %v10876_v17 = vmax.f32 %v10874_v12, %v10875_v19  ;;  %v10883_v21 = vmax.f32 %v10881_v57, %v10882_v23  ;;  %v17237_v40 = vld [vmem:[%s22436_s7 + $0x24] ss:$8 sps:$4 sm:$0xff]   ;;  %v17240_v3 = vld [vmem:[%s22436_s7 + $0x34] ss:$8 sps:$4 sm:$0xff]   ;;  %v17238_v52 = vld [vmem:[%s22436_s7 + $0x30] ss:$8 sps:$4 sm:$0xff]  }
 0x860   : > { %v10893_v35 = vrot.slane %v10892_v61, 1  ;;  %v10899_v48 = vmax.f32 %v10897_v50, %v10898_v44  ;;  %v10906_v46 = vmax.f32 %v10904_v49, %v10905_v33  ;;  %v10864_v0 = vmax.f32 %v10862_v53, %v10863_v38  ;;  %v17243_v12 = vld [vmem:[%s22436_s7 + $0x44] ss:$8 sps:$4 sm:$0xff]   ;;  %v17241_v57 = vld [vmem:[%s22436_s7 + $0x40] ss:$8 sps:$4 sm:$0xff]  }
 0x861   : > { %v10912_v10 = vrot.slane %v10911_v60, 2  ;;  %v10870_v45 = vrot.slane %v10869_v26, 2  ;;  %v10877_v58 = vrot.slane %v10876_v17, 2  ;;  %v10884_v18 = vrot.slane %v10883_v21, 2  ;;  %v17246_v9 = vld [vmem:[%s22436_s7 + $0x54] ss:$8 sps:$4 sm:$0xff]  }
 0x862   : > { %v10900_v27 = vrot.slane %v10899_v48, 1  ;;  %v10907_v16 = vrot.slane %v10906_v46, 1  ;;  %v10865_v31 = vrot.slane %v10864_v0, 1  ;;  %v10894_v25 = vmax.f32 %v10892_v61, %v10893_v35  ;;  %v17244_v50 = vld [vmem:[%s22436_s7 + $0x50] ss:$8 sps:$4 sm:$0xff]  }
 0x863   : > { %v10913_v54 = vmax.f32 %v10911_v60, %v10912_v10  ;;  %v10871_v32 = vmax.f32 %v10869_v26, %v10870_v45  ;;  %v10878_v28 = vmax.f32 %v10876_v17, %v10877_v58  ;;  %v10885_v47 = vmax.f32 %v10883_v21, %v10884_v18  ;;  %v17249_v49 = vld [vmem:[%s22436_s7 + $0x64] ss:$8 sps:$4 sm:$0xff]   ;;  %v17247_v55 = vld [vmem:[%s22436_s7 + $0x60] ss:$8 sps:$4 sm:$0xff]   ;;  %v17252_v53 = vld [vmem:[%s22436_s7 + $0x74] ss:$8 sps:$4 sm:$0xff]  }
 0x864   : > { %v10901_v62 = vmax.f32 %v10899_v48, %v10900_v27  ;;  %v10908_v30 = vmax.f32 %v10906_v46, %v10907_v16  ;;  %v10866_v5 = vmax.f32 %v10864_v0, %v10865_v31  ;;  %v17250_v7 = vld [vmem:[%s22436_s7 + $0x70] ss:$8 sps:$4 sm:$0xff]   ;;  %v17257_v23 = vld [vmem:[%s22436_s7 + $0x104] ss:$8 sps:$4 sm:$0xff]   ;;  %v17255_v44 = vld [vmem:[%s22436_s7 + $0x100] ss:$8 sps:$4 sm:$0xff]  }
 0x865   : > { %v10914_v41 = vrot.slane %v10913_v54, 1  ;;  %v10872_v51 = vrot.slane %v10871_v32, 1  ;;  %v10879_v11 = vrot.slane %v10878_v28, 1  ;;  %v10886_v59 = vrot.slane %v10885_v47, 1  ;;  %v17253_v61 = vld [vmem:[#allocation4] ss:$8 sps:$4 sm:$0xff]  }
 0x866   : > { %v10947_v56 = vsel %vm5486_vm5, %v10901_v62, %v10894_v25  ;;  %v17260_v60 = vld [vmem:[%s22436_s7 + $0x114] ss:$8 sps:$4 sm:$0xff]   ;;  %v17258_v38 = vld [vmem:[%s22436_s7 + $0x110] ss:$8 sps:$4 sm:$0xff]   ;;  %v17263_v26 = vld [vmem:[%s22436_s7 + $0x124] ss:$8 sps:$4 sm:$0xff]  }
 0x867   : > { %v10915_v6 = vmax.f32 %v10913_v54, %v10914_v41  ;;  %v10948_v39 = vsel %vm5488_vm6, %v10908_v30, %v10947_v56  ;;  %v10873_v2 = vmax.f32 %v10871_v32, %v10872_v51  ;;  %v10880_v4 = vmax.f32 %v10878_v28, %v10879_v11  ;;  %v17261_v17 = vld [vmem:[%s22436_s7 + $0x120] ss:$8 sps:$4 sm:$0xff]   ;;  %v17266_v21 = vld [vmem:[%s22436_s7 + $0x134] ss:$8 sps:$4 sm:$0xff]   ;;  %v17264_v35 = vld [vmem:[%s22436_s7 + $0x130] ss:$8 sps:$4 sm:$0xff]  }
 0x868   : > { %v10887_v1 = vmax.f32 %v10885_v47, %v10886_v59  ;;  %v17269_v48 = vld [vmem:[%s22436_s7 + $0x144] ss:$8 sps:$4 sm:$0xff]   ;;  %v17267_v46 = vld [vmem:[%s22436_s7 + $0x140] ss:$8 sps:$4 sm:$0xff]   ;;  %v17272_v10 = vld [vmem:[%s22436_s7 + $0x154] ss:$8 sps:$4 sm:$0xff]  }
 0x869   : > { %v10949_v43 = vsel %vm5490_vm7, %v10915_v6, %v10948_v39  ;;  %v10944_v14 = vsel %vm5486_vm5, %v10873_v2, %v10866_v5  ;;  %v17270_v0 = vld [vmem:[%s22436_s7 + $0x150] ss:$8 sps:$4 sm:$0xff]   ;;  %v17275_v45 = vld [vmem:[%s22436_s7 + $0x164] ss:$8 sps:$4 sm:$0xff]   ;;  %v17273_v58 = vld [vmem:[%s22436_s7 + $0x160] ss:$8 sps:$4 sm:$0xff]  }
 0x86a   : > { %10958 = vst [vmem:[#allocation4 + $0x21] sm:$0xf] %v10949_v43  ;;  %v10945_v22 = vsel %vm5488_vm6, %v10880_v4, %v10944_v14  ;;  %v17278_v18 = vld [vmem:[%s22436_s7 + $0x174] ss:$8 sps:$4 sm:$0xff]   ;;  %v17276_v27 = vld [vmem:[%s22436_s7 + $0x170] ss:$8 sps:$4 sm:$0xff]  }
 0x86b   : > { %v10946_v8 = vsel %vm5490_vm7, %v10887_v1, %v10945_v22  ;;  %v17283_v54 = vld [vmem:[%s22436_s7 + $0x184] ss:$8 sps:$4 sm:$0xff]   ;;  %v17279_v31 = vld [vmem:[#allocation4 + $0x2] ss:$8 sps:$4 sm:$0xff]   ;;  %v17281_v32 = vld [vmem:[%s22436_s7 + $0x180] ss:$8 sps:$4 sm:$0xff]  }
 0x86c   : > { %10957 = vst [vmem:[#allocation4 + $0x19] sm:$0xf] %v10946_v8  ;;  %v17286_v47 = vld [vmem:[%s22436_s7 + $0x194] ss:$8 sps:$4 sm:$0xff]   ;;  %v17284_v25 = vld [vmem:[%s22436_s7 + $0x190] ss:$8 sps:$4 sm:$0xff]  }
 0x86d   : > { %v17289_v62 = vld [vmem:[%s22436_s7 + $0x1a4] ss:$8 sps:$4 sm:$0xff]   ;;  %v17287_v30 = vld [vmem:[%s22436_s7 + $0x1a0] ss:$8 sps:$4 sm:$0xff]   ;;  %v17292_v41 = vld [vmem:[%s22436_s7 + $0x1b4] ss:$8 sps:$4 sm:$0xff]  }
 0x86e   : > { %v17290_v51 = vld [vmem:[%s22436_s7 + $0x1b0] ss:$8 sps:$4 sm:$0xff]   ;;  %v17295_v11 = vld [vmem:[%s22436_s7 + $0x1c4] ss:$8 sps:$4 sm:$0xff]   ;;  %v17293_v59 = vld [vmem:[%s22436_s7 + $0x1c0] ss:$8 sps:$4 sm:$0xff]  }
 0x86f   : > { %v17298_v6 = vld [vmem:[%s22436_s7 + $0x1d4] ss:$8 sps:$4 sm:$0xff]   ;;  %v17296_v56 = vld [vmem:[%s22436_s7 + $0x1d0] ss:$8 sps:$4 sm:$0xff]   ;;  %v17301_v5 = vld [vmem:[%s22436_s7 + $0x1e4] ss:$8 sps:$4 sm:$0xff]  }
 0x870   : > { %v17299_v39 = vld [vmem:[%s22436_s7 + $0x1e0] ss:$8 sps:$4 sm:$0xff]   ;;  %v17304_v2 = vld [vmem:[%s22436_s7 + $0x1f4] ss:$8 sps:$4 sm:$0xff]   ;;  %v17302_v4 = vld [vmem:[%s22436_s7 + $0x1f0] ss:$8 sps:$4 sm:$0xff]  }
 0x871   : > { %v17309_v43 = vld [vmem:[%s22436_s7 + $0x204] ss:$8 sps:$4 sm:$0xff]   ;;  %v17305_v14 = vld [vmem:[#allocation4 + $0x8] ss:$8 sps:$4 sm:$0xff]  }
 0x872   : > { %v17307_v22 = vld [vmem:[%s22436_s7 + $0x200] ss:$8 sps:$4 sm:$0xff]  }
 0x873   : > { %v17231_v42 = vld [vmem:[#allocation4 + $0x11] ss:$8 sps:$4 sm:$0xff]  }
 0x874   : > { %v11000_v63 = vpack.c.bf16 %v17231_v42, %v17230_v34  ;;  %v17254_v19 = vld [vmem:[#allocation4 + $0x10] ss:$8 sps:$4 sm:$0xff]   ;;  %v17312_v34 = vld [vmem:[%s22436_s7 + $0x214] ss:$8 sps:$4 sm:$0xff]   ;;  %v17310_v42 = vld [vmem:[%s22436_s7 + $0x210] ss:$8 sps:$4 sm:$0xff]  }
 0x875   : > { %v10971_v33 = vpack.c.bf16 %v17254_v19, %v17253_v61  ;;  %v17280_v16 = vld [vmem:[#allocation4 + $0x12] ss:$8 sps:$4 sm:$0xff]  }
 0x876   : > { %11130 = vmatmul.mubr.bf16.vlgmr.msra.gmra.mrb[128].mxu0 %v11000_v63  ;;  %v11275_v28 = vpack.c.bf16 %v17280_v16, %v17279_v31  ;;  %v17306_v1 = vld [vmem:[#allocation4 + $0x18] ss:$8 sps:$4 sm:$0xff]   ;;  %v17469_v31 = vld [vmem:[%s22438_s9 + $0xa4] ss:$16 sps:$4 sm:$0xff]  }
 0x877   : > { %11221 = vmatpush1.bf16.msra.mxu0 %v17227_v36  ;;  %11252 = vmatprep.mubr.bf16.mxu0 %v17927_v15  ;;  %v11431_v8 = vpack.c.bf16 %v17306_v1, %v17305_v14  ;;  %v17315_v36 = vld [vmem:[%s22436_s7 + $0x224] ss:$8 sps:$4 sm:$0xff]   ;;  %v17313_v63 = vld [vmem:[%s22436_s7 + $0x220] ss:$8 sps:$4 sm:$0xff]  }
 0x878   : > { %11222 = vmatprep.subr.bf16.mxu0 %v17234_v20  ;;  %v17318_v20 = vld [vmem:[%s22436_s7 + $0x234] ss:$8 sps:$4 sm:$0xff]   ;;  %v17437_v61 = vld [vmem:[%s22438_s9] ss:$16 sps:$4 sm:$0xff]   ;;  %v17367_v14 = vld [vmem:[%s22436_s7 + $0x324] ss:$8 sps:$4 sm:$0xff]  }
 0x879   : > { %v17461_v16 = vld [vmem:[%s22438_s9 + $0x80] ss:$16 sps:$4 sm:$0xff]  }
 0x87a   : > { %v17485_v1 = vld [vmem:[%s22438_s9 + $0x100] ss:$16 sps:$4 sm:$0xff]  }
 0x87b   : > { %11223 = vmatpush1.bf16.msra.mxu0 %v17232_v29  ;;  %v17316_v29 = vld [vmem:[%s22436_s7 + $0x230] ss:$8 sps:$4 sm:$0xff]  }
 0x87c   : > { %11224 = vmatprep.subr.bf16.mxu0 %v17237_v40  ;;  %v17321_v40 = vld [vmem:[%s22436_s7 + $0x244] ss:$8 sps:$4 sm:$0xff]  }
 0x87f   : > { %11225 = vmatpush1.bf16.msra.mxu0 %v17235_v13  ;;  %v17319_v13 = vld [vmem:[%s22436_s7 + $0x240] ss:$8 sps:$4 sm:$0xff]  }
 0x880   : > { %11226 = vmatprep.subr.bf16.mxu0 %v17240_v3  ;;  %v17324_v3 = vld [vmem:[%s22436_s7 + $0x254] ss:$8 sps:$4 sm:$0xff]  }
 0x883   : > { %11227 = vmatpush1.bf16.msra.mxu0 %v17238_v52  ;;  %v17322_v52 = vld [vmem:[%s22436_s7 + $0x250] ss:$8 sps:$4 sm:$0xff]  }
 0x884   : > { %11228 = vmatprep.subr.bf16.mxu0 %v17243_v12  ;;  %v17327_v12 = vld [vmem:[%s22436_s7 + $0x264] ss:$8 sps:$4 sm:$0xff]  }
 0x887   : > { %11229 = vmatpush1.bf16.msra.mxu0 %v17241_v57  ;;  %v17325_v57 = vld [vmem:[%s22436_s7 + $0x260] ss:$8 sps:$4 sm:$0xff]  }
 0x888   : > { %11230 = vmatprep.subr.bf16.mxu0 %v17246_v9  ;;  %v17330_v9 = vld [vmem:[%s22436_s7 + $0x274] ss:$8 sps:$4 sm:$0xff]  }
 0x88b   : > { %11231 = vmatpush1.bf16.msra.mxu0 %v17244_v50  ;;  %v17328_v50 = vld [vmem:[%s22436_s7 + $0x270] ss:$8 sps:$4 sm:$0xff]  }
 0x88c   : > { %11232 = vmatprep.subr.bf16.mxu0 %v17249_v49  ;;  %v17332_v49 = vld [vmem:[#allocation4 + $0x19] ss:$8 sps:$4 sm:$0xff]  }
 0x88f   : > { %11233 = vmatpush1.bf16.msra.mxu0 %v17247_v55  ;;  %v17335_v55 = vld [vmem:[%s22436_s7 + $0x284] ss:$8 sps:$4 sm:$0xff]  }
 0x890   : > { %11234 = vmatprep.subr.bf16.mxu0 %v17252_v53  ;;  %v17331_v53 = vld [vmem:[#allocation4 + $0x9] ss:$8 sps:$4 sm:$0xff]  }
 0x891   : > { %v11587_v19 = vpack.c.bf16 %v17332_v49, %v17331_v53  ;;  %v17390_v49 = vld [vmem:[%s22436_s7 + $0x394] ss:$8 sps:$4 sm:$0xff]   ;;  %v17393_v53 = vld [vmem:[%s22436_s7 + $0x3a4] ss:$8 sps:$4 sm:$0xff]  }
 0x893   : > { %11235 = vmatpush1.bf16.msra.mxu0 %v17250_v7  ;;  %v17333_v7 = vld [vmem:[%s22436_s7 + $0x280] ss:$8 sps:$4 sm:$0xff]  }
 0x894   : > { %11372 = vmatprep.subr.bf16.mxu0 %v17257_v23  ;;  %v17338_v23 = vld [vmem:[%s22436_s7 + $0x294] ss:$8 sps:$4 sm:$0xff]  }
 0x896   : > { %11253 = vmatmul.mubr.bf16.vlgmr.msra.gmra.mrb[128].mxu0 %v10971_v33  ;;  %v17336_v33 = vld [vmem:[%s22436_s7 + $0x290] ss:$8 sps:$4 sm:$0xff]  }
 0x897   : > { %11373 = vmatpush1.bf16.msra.mxu0 %v17255_v44  ;;  %11404 = vmatprep.mubr.bf16.mxu0 %v17927_v15  ;;  %v17439_v44 = vld [vmem:[%s22438_s9 + $0x4] ss:$16 sps:$4 sm:$0xff]  }
 0x898   : > { %11374 = vmatprep.subr.bf16.mxu0 %v17260_v60  ;;  %v17445_v60 = vld [vmem:[%s22438_s9 + $0x24] ss:$16 sps:$4 sm:$0xff]   ;;  %12891 = vmatprep.subr.bf16.mxu1 %v17439_v44  ;;  %v17397_v44 = vld [vmem:[%s22436_s7 + $0x3c0] ss:$8 sps:$4 sm:$0xff]  }
 0x899   : > { %12892 = vmatpush1.bf16.msra.mxu1 %v17437_v61  ;;  %v17399_v61 = vld [vmem:[%s22436_s7 + $0x3c4] ss:$8 sps:$4 sm:$0xff]  }
 0x89a   : > { %12893 = vmatprep.subr.bf16.mxu1 %v17445_v60  ;;  %v17400_v60 = vld [vmem:[%s22436_s7 + $0x3d0] ss:$8 sps:$4 sm:$0xff]  }
 0x89b   : > { %11375 = vmatpush1.bf16.msra.mxu0 %v17258_v38  ;;  %v17341_v38 = vld [vmem:[%s22436_s7 + $0x2a4] ss:$8 sps:$4 sm:$0xff]  }
 0x89c   : > { %11376 = vmatprep.subr.bf16.mxu0 %v17263_v26  ;;  %v17443_v26 = vld [vmem:[%s22438_s9 + $0x20] ss:$16 sps:$4 sm:$0xff]  }
 0x89d   : > { %12894 = vmatpush1.bf16.msra.mxu1 %v17443_v26  ;;  %v17403_v26 = vld [vmem:[%s22436_s7 + $0x3e0] ss:$8 sps:$4 sm:$0xff]  }
 0x89f   : > { %11377 = vmatpush1.bf16.msra.mxu0 %v17261_v17  ;;  %v17339_v17 = vld [vmem:[%s22436_s7 + $0x2a0] ss:$8 sps:$4 sm:$0xff]  }
 0x8a0   : > { %11378 = vmatprep.subr.bf16.mxu0 %v17266_v21  ;;  %v17451_v21 = vld [vmem:[%s22438_s9 + $0x44] ss:$16 sps:$4 sm:$0xff]  }
 0x8a1   : > { %12895 = vmatprep.subr.bf16.mxu1 %v17451_v21  ;;  %v17406_v21 = vld [vmem:[%s22436_s7 + $0x3f0] ss:$8 sps:$4 sm:$0xff]  }
 0x8a3   : > { %11379 = vmatpush1.bf16.msra.mxu0 %v17264_v35  ;;  %v17344_v35 = vld [vmem:[%s22436_s7 + $0x2b4] ss:$8 sps:$4 sm:$0xff]  }
 0x8a4   : > { %11380 = vmatprep.subr.bf16.mxu0 %v17269_v48  ;;  %v17449_v48 = vld [vmem:[%s22438_s9 + $0x40] ss:$16 sps:$4 sm:$0xff]  }
 0x8a5   : > { %12896 = vmatpush1.bf16.msra.mxu1 %v17449_v48  ;;  %v17410_v48 = vld [vmem:[#allocation4 + $0x21] ss:$8 sps:$4 sm:$0xff]  }
 0x8a7   : > { %11381 = vmatpush1.bf16.msra.mxu0 %v17267_v46  ;;  %v17342_v46 = vld [vmem:[%s22436_s7 + $0x2b0] ss:$8 sps:$4 sm:$0xff]  }
 0x8a8   : > { %11382 = vmatprep.subr.bf16.mxu0 %v17272_v10  ;;  %v17457_v10 = vld [vmem:[%s22438_s9 + $0x64] ss:$16 sps:$4 sm:$0xff]  }
 0x8a9   : > { %12897 = vmatprep.subr.bf16.mxu1 %v17457_v10  ;;  %v17411_v10 = vld [vmem:[%s22436_s7 + $0x400] ss:$8 sps:$4 sm:$0xff]  }
 0x8ab   : > { %11383 = vmatpush1.bf16.msra.mxu0 %v17270_v0  ;;  %v17347_v0 = vld [vmem:[%s22436_s7 + $0x2c4] ss:$8 sps:$4 sm:$0xff]  }
 0x8ac   : > { %11384 = vmatprep.subr.bf16.mxu0 %v17275_v45  ;;  %v17455_v45 = vld [vmem:[%s22438_s9 + $0x60] ss:$16 sps:$4 sm:$0xff]  }
 0x8ad   : > { %12898 = vmatpush1.bf16.msra.mxu1 %v17455_v45  ;;  %v17416_v45 = vld [vmem:[%s22436_s7 + $0x414] ss:$8 sps:$4 sm:$0xff]  }
 0x8af   : > { %11385 = vmatpush1.bf16.msra.mxu0 %v17273_v58  ;;  %v17345_v58 = vld [vmem:[%s22436_s7 + $0x2c0] ss:$8 sps:$4 sm:$0xff]  }
 0x8b0   : > { %11386 = vmatprep.subr.bf16.mxu0 %v17278_v18  ;;  %v17463_v18 = vld [vmem:[%s22438_s9 + $0x84] ss:$16 sps:$4 sm:$0xff]  }
 0x8b1   : > { %12899 = vmatprep.subr.bf16.mxu1 %v17463_v18  ;;  %v17419_v18 = vld [vmem:[%s22436_s7 + $0x424] ss:$8 sps:$4 sm:$0xff]  }
 0x8b2   : > { %12900 = vmatpush1.bf16.msra.mxu1 %v17461_v16  ;;  %v17422_v16 = vld [vmem:[%s22436_s7 + $0x434] ss:$8 sps:$4 sm:$0xff]  }
 0x8b3   : > { %11387 = vmatpush1.bf16.msra.mxu0 %v17276_v27  ;;  %v17350_v27 = vld [vmem:[%s22436_s7 + $0x2d4] ss:$8 sps:$4 sm:$0xff]   ;;  %12901 = vmatprep.subr.bf16.mxu1 %v17469_v31  ;;  %v17423_v31 = vld [vmem:[%s22436_s7 + $0x440] ss:$8 sps:$4 sm:$0xff]  }
 0x8b4   : > { %11528 = vmatprep.subr.bf16.mxu0 %v17283_v54  ;;  %v17348_v54 = vld [vmem:[%s22436_s7 + $0x2d0] ss:$8 sps:$4 sm:$0xff]  }
 0x8b6   : > { %11405 = vmatmul.mubr.bf16.vlgmr.msra.gmra.mrb[128].mxu0 %v11275_v28  ;;  %v17467_v28 = vld [vmem:[%s22438_s9 + $0xa0] ss:$16 sps:$4 sm:$0xff]  }
 0x8b7   : > { %11529 = vmatpush1.bf16.msra.mxu0 %v17281_v32  ;;  %11560 = vmatprep.mubr.bf16.mxu0 %v17927_v15  ;;  %v17353_v32 = vld [vmem:[%s22436_s7 + $0x2e4] ss:$8 sps:$4 sm:$0xff]  }
 0x8b8   : > { %11530 = vmatprep.subr.bf16.mxu0 %v17286_v47  ;;  %v17351_v47 = vld [vmem:[%s22436_s7 + $0x2e0] ss:$8 sps:$4 sm:$0xff]   ;;  %12902 = vmatpush1.bf16.msra.mxu1 %v17467_v28  ;;  %v17426_v28 = vld [vmem:[%s22436_s7 + $0x450] ss:$8 sps:$4 sm:$0xff]  }
 0x8bb   : > { %11531 = vmatpush1.bf16.msra.mxu0 %v17284_v25  ;;  %v17475_v25 = vld [vmem:[%s22438_s9 + $0xc4] ss:$16 sps:$4 sm:$0xff]  }
 0x8bc   : > { %11532 = vmatprep.subr.bf16.mxu0 %v17289_v62  ;;  %v17356_v62 = vld [vmem:[%s22436_s7 + $0x2f4] ss:$8 sps:$4 sm:$0xff]   ;;  %12903 = vmatprep.subr.bf16.mxu1 %v17475_v25  ;;  %v17429_v25 = vld [vmem:[%s22436_s7 + $0x460] ss:$8 sps:$4 sm:$0xff]  }
 0x8bf   : > { %11533 = vmatpush1.bf16.msra.mxu0 %v17287_v30  ;;  %v17473_v30 = vld [vmem:[%s22438_s9 + $0xc0] ss:$16 sps:$4 sm:$0xff]  }
 0x8c0   : > { %11534 = vmatprep.subr.bf16.mxu0 %v17292_v41  ;;  %v17354_v41 = vld [vmem:[%s22436_s7 + $0x2f0] ss:$8 sps:$4 sm:$0xff]   ;;  %12904 = vmatpush1.bf16.msra.mxu1 %v17473_v30 }
 0x8c1   : > { %v17432_v30 = vld [vmem:[%s22436_s7 + $0x470] ss:$8 sps:$4 sm:$0xff]  }
 0x8c3   : > { %11535 = vmatpush1.bf16.msra.mxu0 %v17290_v51  ;;  %v17481_v51 = vld [vmem:[%s22438_s9 + $0xe4] ss:$16 sps:$4 sm:$0xff]  }
 0x8c4   : > { %11536 = vmatprep.subr.bf16.mxu0 %v17295_v11  ;;  %v17358_v11 = vld [vmem:[#allocation4 + $0x1a] ss:$8 sps:$4 sm:$0xff]   ;;  %12905 = vmatprep.subr.bf16.mxu1 %v17481_v51 }
 0x8c5   : > { %v17436_v51 = vld [vmem:[#allocation4 + $0x22] ss:$8 sps:$4 sm:$0xff]  }
 0x8c7   : > { %11537 = vmatpush1.bf16.msra.mxu0 %v17293_v59  ;;  %v17361_v59 = vld [vmem:[%s22436_s7 + $0x304] ss:$8 sps:$4 sm:$0xff]  }
 0x8c8   : > { %11538 = vmatprep.subr.bf16.mxu0 %v17298_v6  ;;  %v17479_v6 = vld [vmem:[%s22438_s9 + $0xe0] ss:$16 sps:$4 sm:$0xff]  }
 0x8c9   : > { %12906 = vmatpush1.bf16.msra.mxu1 %v17479_v6 }
 0x8cb   : > { %11539 = vmatpush1.bf16.msra.mxu0 %v17296_v56  ;;  %v17357_v56 = vld [vmem:[#allocation4 + $0xa] ss:$8 sps:$4 sm:$0xff]  }
 0x8cc   : > { %11540 = vmatprep.subr.bf16.mxu0 %v17301_v5  ;;  %v17359_v5 = vld [vmem:[%s22436_s7 + $0x300] ss:$8 sps:$4 sm:$0xff]  }
 0x8cf   : > { %11541 = vmatpush1.bf16.msra.mxu0 %v17299_v39  ;;  %v17487_v39 = vld [vmem:[%s22438_s9 + $0x104] ss:$16 sps:$4 sm:$0xff]  }
 0x8d0   : > { %11542 = vmatprep.subr.bf16.mxu0 %v17304_v2  ;;  %v11743_v2 = vpack.c.bf16 %v17358_v11, %v17357_v56  ;;  %12907 = vmatprep.subr.bf16.mxu1 %v17487_v39  ;;  %v17442_v11 = vld [vmem:[%s22438_s9 + $0x20c] ss:$16 sps:$4 sm:$0xff]  }
 0x8d1   : > { %12908 = vmatpush1.bf16.msra.mxu1 %v17485_v1  ;;  %v17448_v56 = vld [vmem:[%s22438_s9 + $0x22c] ss:$16 sps:$4 sm:$0xff]   ;;  %v17458_v1 = vld [vmem:[%s22438_s9 + $0x268] ss:$16 sps:$4 sm:$0xff]  }
 0x8d2   : > { %v17454_v39 = vld [vmem:[%s22438_s9 + $0x24c] ss:$16 sps:$4 sm:$0xff]  }
 0x8d3   : > { %11543 = vmatpush1.bf16.msra.mxu0 %v17302_v4  ;;  %v17364_v4 = vld [vmem:[%s22436_s7 + $0x314] ss:$8 sps:$4 sm:$0xff]  }
 0x8d4   : > { %11684 = vmatprep.subr.bf16.mxu0 %v17309_v43  ;;  %v17362_v43 = vld [vmem:[%s22436_s7 + $0x310] ss:$8 sps:$4 sm:$0xff]  }
 0x8d6   : > { %11561 = vmatmul.mubr.bf16.vlgmr.msra.gmra.mrb[128].mxu0 %v11431_v8  ;;  %v17370_v8 = vld [vmem:[%s22436_s7 + $0x334] ss:$8 sps:$4 sm:$0xff]  }
 0x8d7   : > { %11685 = vmatpush1.bf16.msra.mxu0 %v17307_v22  ;;  %11716 = vmatprep.mubr.bf16.mxu0 %v17927_v15  ;;  %v17365_v22 = vld [vmem:[%s22436_s7 + $0x320] ss:$8 sps:$4 sm:$0xff]  }
 0x8d8   : > { %11686 = vmatprep.subr.bf16.mxu0 %v17312_v34  ;;  %v17368_v34 = vld [vmem:[%s22436_s7 + $0x330] ss:$8 sps:$4 sm:$0xff]  }
 0x8db   : > { %11687 = vmatpush1.bf16.msra.mxu0 %v17310_v42  ;;  %v17373_v42 = vld [vmem:[%s22436_s7 + $0x344] ss:$8 sps:$4 sm:$0xff]  }
 0x8dc   : > { %11688 = vmatprep.subr.bf16.mxu0 %v17315_v36  ;;  %v17371_v36 = vld [vmem:[%s22436_s7 + $0x340] ss:$8 sps:$4 sm:$0xff]  }
 0x8df   : > { %11689 = vmatpush1.bf16.msra.mxu0 %v17313_v63  ;;  %v17376_v63 = vld [vmem:[%s22436_s7 + $0x354] ss:$8 sps:$4 sm:$0xff]  }
 0x8e0   : > { %11690 = vmatprep.subr.bf16.mxu0 %v17318_v20  ;;  %v17374_v20 = vld [vmem:[%s22436_s7 + $0x350] ss:$8 sps:$4 sm:$0xff]  }
 0x8e3   : > { %11691 = vmatpush1.bf16.msra.mxu0 %v17316_v29  ;;  %v17379_v29 = vld [vmem:[%s22436_s7 + $0x364] ss:$8 sps:$4 sm:$0xff]  }
 0x8e4   : > { %11692 = vmatprep.subr.bf16.mxu0 %v17321_v40  ;;  %v17377_v40 = vld [vmem:[%s22436_s7 + $0x360] ss:$8 sps:$4 sm:$0xff]  }
 0x8e7   : > { %11693 = vmatpush1.bf16.msra.mxu0 %v17319_v13  ;;  %v17382_v13 = vld [vmem:[%s22436_s7 + $0x374] ss:$8 sps:$4 sm:$0xff]  }
 0x8e8   : > { %11694 = vmatprep.subr.bf16.mxu0 %v17324_v3  ;;  %v17380_v3 = vld [vmem:[%s22436_s7 + $0x370] ss:$8 sps:$4 sm:$0xff]  }
 0x8eb   : > { %11695 = vmatpush1.bf16.msra.mxu0 %v17322_v52  ;;  %v17383_v52 = vld [vmem:[#allocation4 + $0x10] ss:$8 sps:$4 sm:$0xff]  }
 0x8ec   : > { %11696 = vmatprep.subr.bf16.mxu0 %v17327_v12  ;;  %v17384_v12 = vld [vmem:[#allocation4 + $0x20] ss:$8 sps:$4 sm:$0xff]  }
 0x8ef   : > { %11697 = vmatpush1.bf16.msra.mxu0 %v17325_v57  ;;  %v17387_v57 = vld [vmem:[%s22436_s7 + $0x384] ss:$8 sps:$4 sm:$0xff]  }
 0x8f0   : > { %11698 = vmatprep.subr.bf16.mxu0 %v17330_v9  ;;  %v17385_v9 = vld [vmem:[%s22436_s7 + $0x380] ss:$8 sps:$4 sm:$0xff]  }
 0x8f3   : > { %11699 = vmatpush1.bf16.msra.mxu0 %v17328_v50  ;;  %v11900_v50 = vpack.c.bf16 %v17384_v12, %v17383_v52  ;;  %v17499_v52 = vld [vmem:[%s22438_s9 + $0x144] ss:$16 sps:$4 sm:$0xff]   ;;  %v17494_v12 = vld [vmem:[%s22438_s9 + $0x328] ss:$16 sps:$4 sm:$0xff]  }
 0x8f4   : > { %11840 = vmatprep.subr.bf16.mxu0 %v17335_v55  ;;  %v17388_v55 = vld [vmem:[%s22436_s7 + $0x390] ss:$8 sps:$4 sm:$0xff]  }
 0x8f6   : > { %11717 = vmatmul.mubr.bf16.vlgmr.msra.gmra.mrb[128].mxu0 %v11587_v19  ;;  %v17396_v19 = vld [vmem:[%s22436_s7 + $0x3b4] ss:$8 sps:$4 sm:$0xff]  }
 0x8f7   : > { %11841 = vmatpush1.bf16.msra.mxu0 %v17333_v7  ;;  %11872 = vmatprep.mubr.bf16.mxu0 %v17927_v15  ;;  %v17391_v7 = vld [vmem:[%s22436_s7 + $0x3a0] ss:$8 sps:$4 sm:$0xff]  }
 0x8f8   : > { %11842 = vmatprep.subr.bf16.mxu0 %v17338_v23  ;;  %v17394_v23 = vld [vmem:[%s22436_s7 + $0x3b0] ss:$8 sps:$4 sm:$0xff]  }
 0x8fb   : > { %11843 = vmatpush1.bf16.msra.mxu0 %v17336_v33  ;;  %v17402_v33 = vld [vmem:[%s22436_s7 + $0x3d4] ss:$8 sps:$4 sm:$0xff]  }
 0x8fc   : > { %11844 = vmatprep.subr.bf16.mxu0 %v17341_v38  ;;  %v17405_v38 = vld [vmem:[%s22436_s7 + $0x3e4] ss:$8 sps:$4 sm:$0xff]  }
 0x8ff   : > { %11845 = vmatpush1.bf16.msra.mxu0 %v17339_v17  ;;  %v17408_v17 = vld [vmem:[%s22436_s7 + $0x3f4] ss:$8 sps:$4 sm:$0xff]  }
 0x900   : > { %11846 = vmatprep.subr.bf16.mxu0 %v17344_v35  ;;  %v17409_v35 = vld [vmem:[#allocation4 + $0x11] ss:$8 sps:$4 sm:$0xff]  }
 0x903   : > { %11847 = vmatpush1.bf16.msra.mxu0 %v17342_v46  ;;  %v17413_v46 = vld [vmem:[%s22436_s7 + $0x404] ss:$8 sps:$4 sm:$0xff]  }
 0x904   : > { %11848 = vmatprep.subr.bf16.mxu0 %v17347_v0  ;;  %v12056_v0 = vpack.c.bf16 %v17410_v48, %v17409_v35  ;;  %v17526_v35 = vld [vmem:[%s22438_s9 + $0x3cc] ss:$16 sps:$4 sm:$0xff]   ;;  %v17529_v48 = vld [vmem:[%s22438_s9 + $0x1e4] ss:$16 sps:$4 sm:$0xff]  }
 0x907   : > { %11849 = vmatpush1.bf16.msra.mxu0 %v17345_v58  ;;  %v17414_v58 = vld [vmem:[%s22436_s7 + $0x410] ss:$8 sps:$4 sm:$0xff]  }
 0x908   : > { %11850 = vmatprep.subr.bf16.mxu0 %v17350_v27  ;;  %v17417_v27 = vld [vmem:[%s22436_s7 + $0x420] ss:$8 sps:$4 sm:$0xff]  }
 0x90b   : > { %11851 = vmatpush1.bf16.msra.mxu0 %v17348_v54  ;;  %v17425_v54 = vld [vmem:[%s22436_s7 + $0x444] ss:$8 sps:$4 sm:$0xff]  }
 0x90c   : > { %11852 = vmatprep.subr.bf16.mxu0 %v17353_v32  ;;  %v17428_v32 = vld [vmem:[%s22436_s7 + $0x454] ss:$8 sps:$4 sm:$0xff]  }
 0x90f   : > { %11853 = vmatpush1.bf16.msra.mxu0 %v17351_v47  ;;  %v17431_v47 = vld [vmem:[%s22436_s7 + $0x464] ss:$8 sps:$4 sm:$0xff]  }
 0x910   : > { %11854 = vmatprep.subr.bf16.mxu0 %v17356_v62  ;;  %v17434_v62 = vld [vmem:[%s22436_s7 + $0x474] ss:$8 sps:$4 sm:$0xff]  }
 0x913   : > { %11855 = vmatpush1.bf16.msra.mxu0 %v17354_v41  ;;  %v17435_v41 = vld [vmem:[#allocation4 + $0x12] ss:$8 sps:$4 sm:$0xff]  }
 0x914   : > { %11997 = vmatprep.subr.bf16.mxu0 %v17361_v59  ;;  %v17440_v59 = vld [vmem:[%s22438_s9 + $0x208] ss:$16 sps:$4 sm:$0xff]   ;;  %v12212_v6 = vpack.c.bf16 %v17436_v51, %v17435_v41 }
 0x916   : > { %11873 = vmatmul.mubr.bf16.vlgmr.msra.gmra.mrb[128].mxu0 %v11743_v2  ;;  %v17452_v2 = vld [vmem:[%s22438_s9 + $0x248] ss:$16 sps:$4 sm:$0xff]  }
 0x917   : > { %11998 = vmatpush1.bf16.msra.mxu0 %v17359_v5  ;;  %12029 = vmatprep.mubr.bf16.mxu0 %v17927_v15  ;;  %v17446_v5 = vld [vmem:[%s22438_s9 + $0x228] ss:$16 sps:$4 sm:$0xff]  }
 0x918   : > { %11999 = vmatprep.subr.bf16.mxu0 %v17364_v4  ;;  %v17460_v4 = vld [vmem:[%s22438_s9 + $0x26c] ss:$16 sps:$4 sm:$0xff]  }
 0x91b   : > { %12000 = vmatpush1.bf16.msra.mxu0 %v17362_v43  ;;  %v17466_v43 = vld [vmem:[%s22438_s9 + $0x28c] ss:$16 sps:$4 sm:$0xff]  }
 0x91c   : > { %12001 = vmatprep.subr.bf16.mxu0 %v17367_v14  ;;  %v17464_v14 = vld [vmem:[%s22438_s9 + $0x288] ss:$16 sps:$4 sm:$0xff]  }
 0x91f   : > { %12002 = vmatpush1.bf16.msra.mxu0 %v17365_v22  ;;  %v17472_v22 = vld [vmem:[%s22438_s9 + $0x2ac] ss:$16 sps:$4 sm:$0xff]  }
 0x920   : > { %12003 = vmatprep.subr.bf16.mxu0 %v17370_v8  ;;  %v17470_v8 = vld [vmem:[%s22438_s9 + $0x2a8] ss:$16 sps:$4 sm:$0xff]  }
 0x923   : > { %12004 = vmatpush1.bf16.msra.mxu0 %v17368_v34  ;;  %v17478_v34 = vld [vmem:[%s22438_s9 + $0x2cc] ss:$16 sps:$4 sm:$0xff]  }
 0x924   : > { %12005 = vmatprep.subr.bf16.mxu0 %v17373_v42  ;;  %v17476_v42 = vld [vmem:[%s22438_s9 + $0x2c8] ss:$16 sps:$4 sm:$0xff]  }
 0x927   : > { %12006 = vmatpush1.bf16.msra.mxu0 %v17371_v36  ;;  %v17484_v36 = vld [vmem:[%s22438_s9 + $0x2ec] ss:$16 sps:$4 sm:$0xff]  }
 0x928   : > { %12007 = vmatprep.subr.bf16.mxu0 %v17376_v63  ;;  %v17482_v63 = vld [vmem:[%s22438_s9 + $0x2e8] ss:$16 sps:$4 sm:$0xff]  }
 0x92b   : > { %12008 = vmatpush1.bf16.msra.mxu0 %v17374_v20  ;;  %v17488_v20 = vld [vmem:[%s22438_s9 + $0x308] ss:$16 sps:$4 sm:$0xff]  }
 0x92c   : > { %12009 = vmatprep.subr.bf16.mxu0 %v17379_v29  ;;  %v17490_v29 = vld [vmem:[%s22438_s9 + $0x30c] ss:$16 sps:$4 sm:$0xff]  }
 0x92f   : > { %12010 = vmatpush1.bf16.msra.mxu0 %v17377_v40  ;;  %v17491_v40 = vld [vmem:[%s22438_s9 + $0x120] ss:$16 sps:$4 sm:$0xff]  }
 0x930   : > { %12011 = vmatprep.subr.bf16.mxu0 %v17382_v13  ;;  %v17493_v13 = vld [vmem:[%s22438_s9 + $0x124] ss:$16 sps:$4 sm:$0xff]  }
 0x931   : > { %12909 = vmatprep.subr.bf16.mxu1 %v17493_v13 }
 0x932   : > { %12910 = vmatpush1.bf16.msra.mxu1 %v17491_v40 }
 0x933   : > { %12012 = vmatpush1.bf16.msra.mxu0 %v17380_v3  ;;  %v17496_v3 = vld [vmem:[%s22438_s9 + $0x32c] ss:$16 sps:$4 sm:$0xff]   ;;  %12911 = vmatprep.subr.bf16.mxu1 %v17499_v52 }
 0x934   : > { %12153 = vmatprep.subr.bf16.mxu0 %v17387_v57  ;;  %v17497_v57 = vld [vmem:[%s22438_s9 + $0x140] ss:$16 sps:$4 sm:$0xff]  }
 0x936   : > { %12030 = vmatmul.mubr.bf16.vlgmr.msra.gmra.mrb[128].mxu0 %v11900_v50  ;;  %v17505_v50 = vld [vmem:[%s22438_s9 + $0x164] ss:$16 sps:$4 sm:$0xff]   ;;  %12912 = vmatpush1.bf16.msra.mxu1 %v17497_v57 }
 0x937   : > { %12154 = vmatpush1.bf16.msra.mxu0 %v17385_v9  ;;  %12185 = vmatprep.mubr.bf16.mxu0 %v17927_v15  ;;  %v17502_v9 = vld [vmem:[%s22438_s9 + $0x34c] ss:$16 sps:$4 sm:$0xff]  }
 0x938   : > { %12155 = vmatprep.subr.bf16.mxu0 %v17390_v49  ;;  %v17500_v49 = vld [vmem:[%s22438_s9 + $0x348] ss:$16 sps:$4 sm:$0xff]   ;;  %12913 = vmatprep.subr.bf16.mxu1 %v17505_v50 }
 0x93b   : > { %12156 = vmatpush1.bf16.msra.mxu0 %v17388_v55  ;;  %v17503_v55 = vld [vmem:[%s22438_s9 + $0x160] ss:$16 sps:$4 sm:$0xff]  }
 0x93c   : > { %12157 = vmatprep.subr.bf16.mxu0 %v17393_v53  ;;  %v17508_v53 = vld [vmem:[%s22438_s9 + $0x36c] ss:$16 sps:$4 sm:$0xff]   ;;  %12914 = vmatpush1.bf16.msra.mxu1 %v17503_v55 }
 0x93f   : > { %12158 = vmatpush1.bf16.msra.mxu0 %v17391_v7  ;;  %v17511_v7 = vld [vmem:[%s22438_s9 + $0x184] ss:$16 sps:$4 sm:$0xff]  }
 0x940   : > { %12159 = vmatprep.subr.bf16.mxu0 %v17396_v19  ;;  %v17506_v19 = vld [vmem:[%s22438_s9 + $0x368] ss:$16 sps:$4 sm:$0xff]   ;;  %12915 = vmatprep.subr.bf16.mxu1 %v17511_v7 }
 0x943   : > { %12160 = vmatpush1.bf16.msra.mxu0 %v17394_v23  ;;  %v17509_v23 = vld [vmem:[%s22438_s9 + $0x180] ss:$16 sps:$4 sm:$0xff]  }
 0x944   : > { %12161 = vmatprep.subr.bf16.mxu0 %v17399_v61  ;;  %v17514_v61 = vld [vmem:[%s22438_s9 + $0x38c] ss:$16 sps:$4 sm:$0xff]   ;;  %12916 = vmatpush1.bf16.msra.mxu1 %v17509_v23 }
 0x947   : > { %12162 = vmatpush1.bf16.msra.mxu0 %v17397_v44  ;;  %v17517_v44 = vld [vmem:[%s22438_s9 + $0x1a4] ss:$16 sps:$4 sm:$0xff]  }
 0x948   : > { %12163 = vmatprep.subr.bf16.mxu0 %v17402_v33  ;;  %v17512_v33 = vld [vmem:[%s22438_s9 + $0x388] ss:$16 sps:$4 sm:$0xff]   ;;  %12917 = vmatprep.subr.bf16.mxu1 %v17517_v44 }
 0x94b   : > { %12164 = vmatpush1.bf16.msra.mxu0 %v17400_v60  ;;  %v17515_v60 = vld [vmem:[%s22438_s9 + $0x1a0] ss:$16 sps:$4 sm:$0xff]  }
 0x94c   : > { %12165 = vmatprep.subr.bf16.mxu0 %v17405_v38  ;;  %v17520_v38 = vld [vmem:[%s22438_s9 + $0x3ac] ss:$16 sps:$4 sm:$0xff]   ;;  %12918 = vmatpush1.bf16.msra.mxu1 %v17515_v60 }
 0x94f   : > { %12166 = vmatpush1.bf16.msra.mxu0 %v17403_v26  ;;  %v17523_v26 = vld [vmem:[%s22438_s9 + $0x1c4] ss:$16 sps:$4 sm:$0xff]  }
 0x950   : > { %12167 = vmatprep.subr.bf16.mxu0 %v17408_v17  ;;  %v17518_v17 = vld [vmem:[%s22438_s9 + $0x3a8] ss:$16 sps:$4 sm:$0xff]   ;;  %12919 = vmatprep.subr.bf16.mxu1 %v17523_v26 }
 0x953   : > { %12168 = vmatpush1.bf16.msra.mxu0 %v17406_v21  ;;  %v17521_v21 = vld [vmem:[%s22438_s9 + $0x1c0] ss:$16 sps:$4 sm:$0xff]  }
 0x954   : > { %12309 = vmatprep.subr.bf16.mxu0 %v17413_v46  ;;  %v17524_v46 = vld [vmem:[%s22438_s9 + $0x3c8] ss:$16 sps:$4 sm:$0xff]   ;;  %12920 = vmatpush1.bf16.msra.mxu1 %v17521_v21 }
 0x955   : > { %12921 = vmatprep.subr.bf16.mxu1 %v17529_v48 }
 0x956   : > { %12186 = vmatmul.mubr.bf16.vlgmr.msra.gmra.mrb[128].mxu0 %v12056_v0  ;;  %v17532_v0 = vld [vmem:[%s22438_s9 + $0x3ec] ss:$16 sps:$4 sm:$0xff]  }
 0x957   : > { %12310 = vmatpush1.bf16.msra.mxu0 %v17411_v10  ;;  %12341 = vmatprep.mubr.bf16.mxu0 %v17927_v15  ;;  %v17420_v15 = vld [vmem:[%s22436_s7 + $0x430] ss:$8 sps:$4 sm:$0xff]  }
 0x958   : > { %12311 = vmatprep.subr.bf16.mxu0 %v17416_v45  ;;  %v17527_v10 = vld [vmem:[%s22438_s9 + $0x1e0] ss:$16 sps:$4 sm:$0xff]   ;;  %v17535_v45 = vld [vmem:[%s22438_s9 + $0xc] ss:$16 sps:$4 sm:$0xff]  }
 0x959   : > { %12922 = vmatpush1.bf16.msra.mxu1 %v17527_v10 }
 0x95a   : > { %12932 = vmatprep.subr.bf16.mxu1 %v17535_v45 }
 0x95b   : > { %12312 = vmatpush1.bf16.msra.mxu0 %v17414_v58  ;;  %v17530_v58 = vld [vmem:[%s22438_s9 + $0x3e8] ss:$16 sps:$4 sm:$0xff]  }
 0x95c   : > { %12313 = vmatprep.subr.bf16.mxu0 %v17419_v18  ;;  %v17538_v18 = vld [vmem:[%s22438_s9 + $0x40c] ss:$16 sps:$4 sm:$0xff]  }
 0x95f   : > { %12314 = vmatpush1.bf16.msra.mxu0 %v17417_v27  ;;  %v12360_v27 = vsub.s32 0, %v18317_v24 }
 0x960   : > { %12315 = vmatprep.subr.bf16.mxu0 %v17422_v16  ;;  %v12356_v16 = vld [vmem:[%s22437_s8] sm:$0x3] }
 0x963   : > { %12316 = vmatpush1.bf16.msra.mxu0 %v17420_v15  ;;  %v12364_v15 = vsub.s32 1, %v18317_v24 }
 0x964   : > { %12317 = vmatprep.subr.bf16.mxu0 %v17425_v54  ;;  %v12361_v54 = vrot.slane %v12356_v16, %v12360_v27 }
 0x967   : > { %12318 = vmatpush1.bf16.msra.mxu0 %v17423_v31  ;;  %v12365_v31 = vrot.slane %v12356_v16, %v12364_v15 }
 0x968   : > { %12319 = vmatprep.subr.bf16.mxu0 %v17428_v32 }
 0x96b   : > { %12320 = vmatpush1.bf16.msra.mxu0 %v17426_v28 }
 0x96c   : > { %12321 = vmatprep.subr.bf16.mxu0 %v17431_v47 }
 0x96f   : > { %12322 = vmatpush1.bf16.msra.mxu0 %v17429_v25 }
 0x970   : > { %12323 = vmatprep.subr.bf16.mxu0 %v17434_v62 }
 0x973   : > { %12324 = vmatpush1.bf16.msra.mxu0 %v17432_v30 }
 0x974   : > { %13430 = vmatprep.subr.bf16.mxu0 %v17442_v11 }
 0x976   : > { %12342 = vmatmul.mubr.bf16.vlgmr.msra.gmra.mrb[128].mxu0 %v12212_v6 }
 0x977   : > { %13431 = vmatpush1.bf16.msra.mxu0 %v17440_v59 }
 0x978   : > { %13432 = vmatprep.subr.bf16.mxu0 %v17448_v56 }
 0x97b   : > { %13433 = vmatpush1.bf16.msra.mxu0 %v17446_v5 }
 0x97c   : > { %13434 = vmatprep.subr.bf16.mxu0 %v17454_v39 }
 0x97f   : > { %13435 = vmatpush1.bf16.msra.mxu0 %v17452_v2 }
 0x980   : > { %13436 = vmatprep.subr.bf16.mxu0 %v17460_v4 }
 0x983   : > { %13437 = vmatpush1.bf16.msra.mxu0 %v17458_v1 }
 0x984   : > { %13438 = vmatprep.subr.bf16.mxu0 %v17466_v43 }
 0x987   : > { %13439 = vmatpush1.bf16.msra.mxu0 %v17464_v14 }
 0x988   : > { %13440 = vmatprep.subr.bf16.mxu0 %v17472_v22 }
 0x98b   : > { %13441 = vmatpush1.bf16.msra.mxu0 %v17470_v8 }
 0x98c   : > { %13442 = vmatprep.subr.bf16.mxu0 %v17478_v34 }
 0x98f   : > { %13443 = vmatpush1.bf16.msra.mxu0 %v17476_v42 }
 0x990   : > { %13444 = vmatprep.subr.bf16.mxu0 %v17484_v36 }
 0x993   : > { %13445 = vmatpush1.bf16.msra.mxu0 %v17482_v63 }
 0x994   : > { %13446 = vmatprep.subr.bf16.mxu0 %v17490_v29 }
 0x997   : > { %13447 = vmatpush1.bf16.msra.mxu0 %v17488_v20 }
 0x998   : > { %13448 = vmatprep.subr.bf16.mxu0 %v17496_v3 }
 0x99b   : > { %13449 = vmatpush1.bf16.msra.mxu0 %v17494_v12 }
 0x99c   : > { %13450 = vmatprep.subr.bf16.mxu0 %v17502_v9 }
 0x99f   : > { %13451 = vmatpush1.bf16.msra.mxu0 %v17500_v49 }
 0x9a0   : > { %13452 = vmatprep.subr.bf16.mxu0 %v17508_v53 }
 0x9a3   : > { %13453 = vmatpush1.bf16.msra.mxu0 %v17506_v19 }
 0x9a4   : > { %13454 = vmatprep.subr.bf16.mxu0 %v17514_v61 }
 0x9a7   : > { %13455 = vmatpush1.bf16.msra.mxu0 %v17512_v33 }
 0x9a8   : > { %13456 = vmatprep.subr.bf16.mxu0 %v17520_v38 }
 0x9ab   : > { %13457 = vmatpush1.bf16.msra.mxu0 %v17518_v17 }
 0x9ac   : > { %13458 = vmatprep.subr.bf16.mxu0 %v17526_v35 }
 0x9af   : > { %13459 = vmatpush1.bf16.msra.mxu0 %v17524_v46 }
 0x9b0   : > { %13460 = vmatprep.subr.bf16.mxu0 %v17532_v0 }
 0x9b3   : > { %13461 = vmatpush1.bf16.msra.mxu0 %v17530_v58 }
 0x9b4   : > { %13928 = vmatprep.subr.bf16.mxu0 %v17538_v18 }
 0xa49   : > { %v12343_v32 = vpop.f32.mrb[128].mxu0 }
 0xa4a   : > { %v12368_v28 = vadd.f32 %v12361_v54, %v12343_v32  ;;  %v12345_v47 = vpop.f32.mrb[129].mxu0  ;;  %v17533_v32 = vld [vmem:[%s22438_s9 + $0x8] ss:$16 sps:$4 sm:$0xff]  }
 0xa4b   : > { %v12369_v25 = vadd.f32 %v12365_v31, %v12345_v47  ;;  %v12347_v62 = vpop.f32.mrb[130].mxu0 }
 0xa4c   : > { %v12372_v30 = vmax.f32 %v12368_v28, 0.0  ;;  %v12370_v41 = vadd.f32 %v12361_v54, %v12347_v62  ;;  %v12349_v51 = vpop.f32.mrb[131].mxu0  ;;  %v17541_v62 = vld [vmem:[%s22438_s9 + $0x2c] ss:$16 sps:$4 sm:$0xff]  }
 0xa4d   : > { %v12373_v11 = vmax.f32 %v12369_v25, 0.0  ;;  %v12371_v59 = vadd.f32 %v12365_v31, %v12349_v51  ;;  %v17536_v51 = vld [vmem:[%s22438_s9 + $0x408] ss:$16 sps:$4 sm:$0xff]  }
 0xa4e   : > { %v12374_v6 = vmax.f32 %v12370_v41, 0.0 }
 0xa4f   : > { %v12380_v56 = vcombine.low %v12372_v30, %v12373_v11  ;;  %v12381_v5 = vcombine.high %v12372_v30, %v12373_v11  ;;  %v12375_v39 = vmax.f32 %v12371_v59, 0.0  ;;  %v17539_v59 = vld [vmem:[%s22438_s9 + $0x28] ss:$16 sps:$4 sm:$0xff]  }
 0xa51   : > { %v12388_v2 = vmax.f32 %v12380_v56, %v12381_v5  ;;  %v12382_v4 = vcombine.low %v12374_v6, %v12375_v39  ;;  %v12383_v1 = vcombine.high %v12374_v6, %v12375_v39  ;;  %v17544_v6 = vld [vmem:[%s22438_s9 + $0x42c] ss:$16 sps:$4 sm:$0xff]   ;;  %v17542_v39 = vld [vmem:[%s22438_s9 + $0x428] ss:$16 sps:$4 sm:$0xff]  }
 0xa52   : > { %v17547_v5 = vld [vmem:[%s22438_s9 + $0x4c] ss:$16 sps:$4 sm:$0xff]  }
 0xa53   : > { %v12398_v43 = vrot.slane %v12388_v2, %v18324_v37  ;;  %v12389_v14 = vmax.f32 %v12382_v4, %v12383_v1  ;;  %v17545_v2 = vld [vmem:[%s22438_s9 + $0x48] ss:$16 sps:$4 sm:$0xff]   ;;  %v17550_v4 = vld [vmem:[%s22438_s9 + $0x44c] ss:$16 sps:$4 sm:$0xff]  }
 0xa54   : > { %v17553_v1 = vld [vmem:[%s22438_s9 + $0x6c] ss:$16 sps:$4 sm:$0xff]  }
 0xa55   : > { %v12399_v22 = vcombine.high %v12398_v43, %v12398_v43  ;;  %v12414_v8 = vrot.slane %v12398_v43, %v18324_v37  ;;  %v21617_v34 = vrot.slane %v12389_v14, %v18324_v37  ;;  %v17548_v43 = vld [vmem:[%s22438_s9 + $0x448] ss:$16 sps:$4 sm:$0xff]  }
 0xa56   : > { %v17551_v14 = vld [vmem:[%s22438_s9 + $0x68] ss:$16 sps:$4 sm:$0xff]  }
 0xa57   : > { %v12415_v42 = vcombine.high %v12414_v8, %v12414_v8  ;;  %v12422_v36 = vrot.slane %v12399_v22, %v18324_v37  ;;  %v12448_v63 = vsel %vm10803_vm14, %v12414_v8, -inf  ;;  %v21623_v29 = vrot.slane %v21617_v34, %v18324_v37  ;;  %v17556_v22 = vld [vmem:[%s22438_s9 + $0x46c] ss:$16 sps:$4 sm:$0xff]  }
 0xa58   : > { %v12449_v20 = vrot.slane %v12448_v63, 4  ;;  %v17559_v8 = vld [vmem:[%s22438_s9 + $0x8c] ss:$16 sps:$4 sm:$0xff]  }
 0xa59   : > { %v12455_v40 = vsel %vm10803_vm14, %v12415_v42, -inf  ;;  %v12423_v13 = vcombine.high %v12422_v36, %v12422_v36  ;;  %v12462_v3 = vsel %vm10803_vm14, %v12422_v36, -inf  ;;  %v12431_v12 = vcombine.high %v21623_v29, %v21623_v29  ;;  %v17554_v42 = vld [vmem:[%s22438_s9 + $0x468] ss:$16 sps:$4 sm:$0xff]  }
 0xa5a   : > { %v12450_v52 = vmax.f32 %v12448_v63, %v12449_v20  ;;  %v12456_v57 = vrot.slane %v12455_v40, 4  ;;  %v12463_v50 = vrot.slane %v12462_v3, 4  ;;  %v17557_v36 = vld [vmem:[%s22438_s9 + $0x88] ss:$16 sps:$4 sm:$0xff]   ;;  %v17562_v63 = vld [vmem:[%s22438_s9 + $0x48c] ss:$16 sps:$4 sm:$0xff]  }
 0xa5b   : > { %v12469_v9 = vsel %vm10803_vm14, %v12423_v13, -inf  ;;  %v12483_v7 = vsel %vm10803_vm14, %v12431_v12, -inf  ;;  %v17565_v20 = vld [vmem:[%s22438_s9 + $0xac] ss:$16 sps:$4 sm:$0xff]   ;;  %v17563_v13 = vld [vmem:[%s22438_s9 + $0xa8] ss:$16 sps:$4 sm:$0xff]  }
 0xa5c   : > { %v12451_v49 = vrot.slane %v12450_v52, 2  ;;  %v12457_v55 = vmax.f32 %v12455_v40, %v12456_v57  ;;  %v12470_v53 = vrot.slane %v12469_v9, 4  ;;  %v12464_v19 = vmax.f32 %v12462_v3, %v12463_v50  ;;  %v17560_v40 = vld [vmem:[%s22438_s9 + $0x488] ss:$16 sps:$4 sm:$0xff]   ;;  %v17568_v3 = vld [vmem:[%s22438_s9 + $0x4ac] ss:$16 sps:$4 sm:$0xff]  }
 0xa5d   : > { %v12484_v23 = vrot.slane %v12483_v7, 4  ;;  %v17566_v12 = vld [vmem:[%s22438_s9 + $0x4a8] ss:$16 sps:$4 sm:$0xff]   ;;  %v17577_v50 = vld [vmem:[%s22438_s9 + $0xec] ss:$16 sps:$4 sm:$0xff]  }
 0xa5e   : > { %v12452_v61 = vmax.f32 %v12450_v52, %v12451_v49  ;;  %v12458_v44 = vrot.slane %v12457_v55, 2  ;;  %v12471_v33 = vmax.f32 %v12469_v9, %v12470_v53  ;;  %v12465_v60 = vrot.slane %v12464_v19, 2  ;;  %v17571_v52 = vld [vmem:[%s22438_s9 + $0xcc] ss:$16 sps:$4 sm:$0xff]   ;;  %v17569_v57 = vld [vmem:[%s22438_s9 + $0xc8] ss:$16 sps:$4 sm:$0xff]  }
 0xa5f   : > { %v12485_v38 = vmax.f32 %v12483_v7, %v12484_v23  ;;  %v17574_v9 = vld [vmem:[%s22438_s9 + $0x4cc] ss:$16 sps:$4 sm:$0xff]   ;;  %v17572_v49 = vld [vmem:[%s22438_s9 + $0x4c8] ss:$16 sps:$4 sm:$0xff]  }
 0xa60   : > { %v12459_v26 = vmax.f32 %v12457_v55, %v12458_v44  ;;  %v12453_v17 = vrot.slane %v12452_v61, 1  ;;  %v12472_v21 = vrot.slane %v12471_v33, 2  ;;  %v12466_v35 = vmax.f32 %v12464_v19, %v12465_v60  ;;  %v17575_v55 = vld [vmem:[%s22438_s9 + $0xe8] ss:$16 sps:$4 sm:$0xff]   ;;  %v17580_v53 = vld [vmem:[%s22438_s9 + $0x4ec] ss:$16 sps:$4 sm:$0xff]  }
 0xa61   : > { %v12486_v48 = vrot.slane %v12485_v38, 2  ;;  %v17583_v7 = vld [vmem:[%s22438_s9 + $0x10c] ss:$16 sps:$4 sm:$0xff]   ;;  %v12407_v19 = vcombine.high %v21617_v34, %v21617_v34  ;;  %v17578_v23 = vld [vmem:[%s22438_s9 + $0x4e8] ss:$16 sps:$4 sm:$0xff]  }
 0xa62   : > { %v12460_v46 = vrot.slane %v12459_v26, 1  ;;  %v12473_v10 = vmax.f32 %v12471_v33, %v12472_v21  ;;  %v12454_v0 = vmax.f32 %v12452_v61, %v12453_v17  ;;  %v12467_v45 = vrot.slane %v12466_v35, 1  ;;  %v17581_v61 = vld [vmem:[%s22438_s9 + $0x108] ss:$16 sps:$4 sm:$0xff]   ;;  %v17586_v44 = vld [vmem:[%s22438_s9 + $0x50c] ss:$16 sps:$4 sm:$0xff]  }
 0xa63   : > { %v12487_v58 = vmax.f32 %v12485_v38, %v12486_v48  ;;  %v17589_v34 = vld [vmem:[%s22438_s9 + $0x12c] ss:$16 sps:$4 sm:$0xff]   ;;  %v21748_v33 = vrot.slane %v12407_v19, %v18324_v37  ;;  %v17584_v60 = vld [vmem:[%s22438_s9 + $0x508] ss:$16 sps:$4 sm:$0xff]  }
 0xa64   : > { %v12461_v18 = vmax.f32 %v12459_v26, %v12460_v46  ;;  %v12474_v16 = vrot.slane %v12473_v10, 1  ;;  %v12468_v47 = vmax.f32 %v12466_v35, %v12467_v45  ;;  %v21634_v25 = vpack.c.bf16 %v12454_v0, %v12454_v0  ;;  %v17587_v38 = vld [vmem:[%s22438_s9 + $0x128] ss:$16 sps:$4 sm:$0xff]   ;;  %v17592_v26 = vld [vmem:[%s22438_s9 + $0x52c] ss:$16 sps:$4 sm:$0xff]  }
 0xa65   : > { %v12488_v54 = vrot.slane %v12487_v58, 1  ;;  %v17595_v37 = vld [vmem:[%s22438_s9 + $0x14c] ss:$16 sps:$4 sm:$0xff]   ;;  %v12439_v17 = vcombine.high %v21748_v33, %v21748_v33  ;;  %v17590_v21 = vld [vmem:[%s22438_s9 + $0x528] ss:$16 sps:$4 sm:$0xff]   ;;  %v12476_v46 = vsel %vm10803_vm14, %v21623_v29, -inf }
 0xa66   : > { %v12506_v31 = vpack.c.bf16 %v12461_v18, %v12461_v18  ;;  %v12475_v28 = vmax.f32 %v12473_v10, %v12474_v16  ;;  %v21645_v11 = vpack.c.bf16 %v12468_v47, %v12468_v47  ;;  %v17593_v35 = vld [vmem:[%s22438_s9 + $0x148] ss:$16 sps:$4 sm:$0xff]   ;;  %v17598_v48 = vld [vmem:[%s22438_s9 + $0x54c] ss:$16 sps:$4 sm:$0xff]  }
 0xa67   : > { %v12489_v30 = vmax.f32 %v12487_v58, %v12488_v54  ;;  %v17601_v10 = vld [vmem:[%s22438_s9 + $0x16c] ss:$16 sps:$4 sm:$0xff]   ;;  %v12497_v0 = vsel %vm10803_vm14, %v12439_v17, -inf  ;;  %v17596_v45 = vld [vmem:[%s22438_s9 + $0x548] ss:$16 sps:$4 sm:$0xff]   ;;  %v12477_v58 = vrot.slane %v12476_v46, 4 }
 0xa68   : > { %12923 = vmatprep.mubr.bf16.mxu1 %v12506_v31  ;;  %v21639_v41 = vpack.c.bf16 %v12475_v28, %v12475_v28  ;;  %v17599_v18 = vld [vmem:[%s22438_s9 + $0x168] ss:$16 sps:$4 sm:$0xff]   ;;  %v17604_v29 = vld [vmem:[%s22438_s9 + $0x56c] ss:$16 sps:$4 sm:$0xff]   ;;  %v12498_v54 = vrot.slane %v12497_v0, 4 }
 0xa69   : > { %12924 = vmatmul.mubr.bf16.vlgmr.msra.gmra.mrb[40].mxu1 %v21634_v25  ;;  %v21654_v56 = vpack.c.bf16 %v12489_v30, %v12489_v30  ;;  %v17607_v16 = vld [vmem:[%s22438_s9 + $0x18c] ss:$16 sps:$4 sm:$0xff]   ;;  %v12478_v47 = vmax.f32 %v12476_v46, %v12477_v58  ;;  %v17653_v17 = vld [vmem:[%s22438_s9 + $0x280] ss:$16 sps:$4 sm:$0xff]  }
 0xa6a   : > { %12933 = vmatpush1.bf16.msra.mxu1 %v17533_v32  ;;  %12964 = vmatprep.mubr.bf16.mxu1 %v12506_v31  ;;  %v17602_v31 = vld [vmem:[%s22438_s9 + $0x568] ss:$16 sps:$4 sm:$0xff]   ;;  %v17610_v28 = vld [vmem:[%s22438_s9 + $0x58c] ss:$16 sps:$4 sm:$0xff]   ;;  %v12499_v30 = vmax.f32 %v12497_v0, %v12498_v54  ;;  %v17659_v46 = vld [vmem:[%s22438_s9 + $0x2a0] ss:$16 sps:$4 sm:$0xff]  }
 0xa6b   : > { %13462 = vmatprep.mubr.bf16.mxu0 %v21639_v41  ;;  %12934 = vmatprep.subr.bf16.mxu1 %v17541_v62  ;;  %v17605_v32 = vld [vmem:[%s22438_s9 + $0x188] ss:$16 sps:$4 sm:$0xff]   ;;  %v17613_v62 = vld [vmem:[%s22438_s9 + $0x1ac] ss:$16 sps:$4 sm:$0xff]   ;;  %v17667_v0 = vld [vmem:[%s22438_s9 + $0x2c4] ss:$16 sps:$4 sm:$0xff]  }
 0xa6c   : > { %13463 = vmatmul.mubr.bf16.vlgmr.msra.gmra.mrb[132].mxu0 %v21645_v11  ;;  %v17665_v58 = vld [vmem:[%s22438_s9 + $0x2c0] ss:$16 sps:$4 sm:$0xff]  }
 0xa6d   : > { %13929 = vmatpush1.bf16.msra.mxu0 %v17536_v51  ;;  %13960 = vmatprep.mubr.bf16.mxu0 %v21654_v56  ;;  %v17608_v51 = vld [vmem:[%s22438_s9 + $0x588] ss:$16 sps:$4 sm:$0xff]   ;;  %v17671_v54 = vld [vmem:[%s22438_s9 + $0x2e0] ss:$16 sps:$4 sm:$0xff]  }
 0xa6e   : > { %12935 = vmatpush1.bf16.msra.mxu1 %v17539_v59  ;;  %13930 = vmatprep.subr.bf16.mxu0 %v17544_v6  ;;  %v17611_v59 = vld [vmem:[%s22438_s9 + $0x1a8] ss:$16 sps:$4 sm:$0xff]   ;;  %v17616_v6 = vld [vmem:[%s22438_s9 + $0x5ac] ss:$16 sps:$4 sm:$0xff]  }
 0xa6f   : > { %12936 = vmatprep.subr.bf16.mxu1 %v17547_v5  ;;  %v12479_v5 = vrot.slane %v12478_v47, 2 }
 0xa71   : > { %13931 = vmatpush1.bf16.msra.mxu0 %v17542_v39  ;;  %v17619_v39 = vld [vmem:[%s22438_s9 + $0x1cc] ss:$16 sps:$4 sm:$0xff]  }
 0xa72   : > { %12937 = vmatpush1.bf16.msra.mxu1 %v17545_v2  ;;  %13932 = vmatprep.subr.bf16.mxu0 %v17550_v4  ;;  %v12500_v2 = vrot.slane %v12499_v30, 2  ;;  %v17614_v4 = vld [vmem:[%s22438_s9 + $0x5a8] ss:$16 sps:$4 sm:$0xff]  }
 0xa73   : > { %12938 = vmatprep.subr.bf16.mxu1 %v17553_v1  ;;  %v17617_v1 = vld [vmem:[%s22438_s9 + $0x1c8] ss:$16 sps:$4 sm:$0xff]  }
 0xa75   : > { %13933 = vmatpush1.bf16.msra.mxu0 %v17548_v43  ;;  %v17622_v43 = vld [vmem:[%s22438_s9 + $0x5cc] ss:$16 sps:$4 sm:$0xff]  }
 0xa76   : > { %12939 = vmatpush1.bf16.msra.mxu1 %v17551_v14  ;;  %13934 = vmatprep.subr.bf16.mxu0 %v17556_v22  ;;  %v12480_v14 = vmax.f32 %v12478_v47, %v12479_v5  ;;  %v17625_v22 = vld [vmem:[%s22438_s9 + $0x1ec] ss:$16 sps:$4 sm:$0xff]   ;;  %v17677_v47 = vld [vmem:[%s22438_s9 + $0x300] ss:$16 sps:$4 sm:$0xff]   ;;  %v17691_v5 = vld [vmem:[%s22438_s9 + $0x344] ss:$16 sps:$4 sm:$0xff]  }
 0xa77   : > { %12940 = vmatprep.subr.bf16.mxu1 %v17559_v8  ;;  %v12501_v8 = vmax.f32 %v12499_v30, %v12500_v2  ;;  %v17685_v30 = vld [vmem:[%s22438_s9 + $0x324] ss:$16 sps:$4 sm:$0xff]   ;;  %v17689_v2 = vld [vmem:[%s22438_s9 + $0x340] ss:$16 sps:$4 sm:$0xff]  }
 0xa79   : > { %13935 = vmatpush1.bf16.msra.mxu0 %v17554_v42  ;;  %v17620_v42 = vld [vmem:[%s22438_s9 + $0x5c8] ss:$16 sps:$4 sm:$0xff]  }
 0xa7a   : > { %12941 = vmatpush1.bf16.msra.mxu1 %v17557_v36  ;;  %13936 = vmatprep.subr.bf16.mxu0 %v17562_v63  ;;  %v17623_v36 = vld [vmem:[%s22438_s9 + $0x1e8] ss:$16 sps:$4 sm:$0xff]   ;;  %v17628_v63 = vld [vmem:[%s22438_s9 + $0x5ec] ss:$16 sps:$4 sm:$0xff]  }
 0xa7b   : > { %12942 = vmatprep.subr.bf16.mxu1 %v17565_v20  ;;  %v12481_v20 = vrot.slane %v12480_v14, 1 }
 0xa7d   : > { %13937 = vmatpush1.bf16.msra.mxu0 %v17560_v40  ;;  %v17631_v40 = vld [vmem:[%s22438_s9 + $0x204] ss:$16 sps:$4 sm:$0xff]  }
 0xa7e   : > { %12943 = vmatpush1.bf16.msra.mxu1 %v17563_v13  ;;  %13938 = vmatprep.subr.bf16.mxu0 %v17568_v3  ;;  %v12502_v13 = vrot.slane %v12501_v8, 1  ;;  %v17626_v3 = vld [vmem:[%s22438_s9 + $0x5e8] ss:$16 sps:$4 sm:$0xff]  }
 0xa7f   : > { %12944 = vmatprep.subr.bf16.mxu1 %v17571_v52  ;;  %v17629_v52 = vld [vmem:[%s22438_s9 + $0x200] ss:$16 sps:$4 sm:$0xff]  }
 0xa81   : > { %13939 = vmatpush1.bf16.msra.mxu0 %v17566_v12  ;;  %v12482_v12 = vmax.f32 %v12480_v14, %v12481_v20  ;;  %v17692_v14 = vld [vmem:[%s22438_s9 + $0x748] ss:$16 sps:$4 sm:$0xff]   ;;  %v17706_v20 = vld [vmem:[%s22438_s9 + $0x78c] ss:$16 sps:$4 sm:$0xff]  }
 0xa82   : > { %12945 = vmatpush1.bf16.msra.mxu1 %v17569_v57  ;;  %13940 = vmatprep.subr.bf16.mxu0 %v17574_v9  ;;  %v17634_v57 = vld [vmem:[%s22438_s9 + $0x60c] ss:$16 sps:$4 sm:$0xff]   ;;  %v12503_v9 = vmax.f32 %v12501_v8, %v12502_v13  ;;  %v17709_v13 = vld [vmem:[%s22438_s9 + $0x3a4] ss:$16 sps:$4 sm:$0xff]  }
 0xa83   : > { %12946 = vmatprep.subr.bf16.mxu1 %v17577_v50  ;;  %v17637_v50 = vld [vmem:[%s22438_s9 + $0x224] ss:$16 sps:$4 sm:$0xff]   ;;  %v17700_v8 = vld [vmem:[%s22438_s9 + $0x76c] ss:$16 sps:$4 sm:$0xff]  }
 0xa84   : > { %v21864_v19 = vpack.c.bf16 %v12503_v9, %v12503_v9  ;;  %v17715_v9 = vld [vmem:[%s22438_s9 + $0x3c4] ss:$16 sps:$4 sm:$0xff]  }
 0xa85   : > { %13941 = vmatpush1.bf16.msra.mxu0 %v17572_v49  ;;  %v17632_v49 = vld [vmem:[%s22438_s9 + $0x608] ss:$16 sps:$4 sm:$0xff]  }
 0xa86   : > { %12947 = vmatpush1.bf16.msra.mxu1 %v17575_v55  ;;  %13942 = vmatprep.subr.bf16.mxu0 %v17580_v53  ;;  %v21856_v55 = vpack.c.bf16 %v12482_v12, %v12482_v12  ;;  %v17635_v53 = vld [vmem:[%s22438_s9 + $0x220] ss:$16 sps:$4 sm:$0xff]   ;;  %v17712_v12 = vld [vmem:[%s22438_s9 + $0x7ac] ss:$16 sps:$4 sm:$0xff]  }
 0xa87   : > { %12948 = vmatprep.subr.bf16.mxu1 %v17583_v7  ;;  %v17640_v7 = vld [vmem:[%s22438_s9 + $0x62c] ss:$16 sps:$4 sm:$0xff]  }
 0xa89   : > { %13943 = vmatpush1.bf16.msra.mxu0 %v17578_v23  ;;  %v17641_v23 = vld [vmem:[%s22438_s9 + $0x240] ss:$16 sps:$4 sm:$0xff]  }
 0xa8a   : > { %12949 = vmatpush1.bf16.msra.mxu1 %v17581_v61  ;;  %13944 = vmatprep.subr.bf16.mxu0 %v17586_v44  ;;  %v17646_v61 = vld [vmem:[%s22438_s9 + $0x64c] ss:$16 sps:$4 sm:$0xff]   ;;  %v17649_v44 = vld [vmem:[%s22438_s9 + $0x264] ss:$16 sps:$4 sm:$0xff]  }
 0xa8b   : > { %12950 = vmatprep.subr.bf16.mxu1 %v17589_v34  ;;  %v17644_v34 = vld [vmem:[%s22438_s9 + $0x648] ss:$16 sps:$4 sm:$0xff]  }
 0xa8d   : > { %13945 = vmatpush1.bf16.msra.mxu0 %v17584_v60  ;;  %v17647_v60 = vld [vmem:[%s22438_s9 + $0x260] ss:$16 sps:$4 sm:$0xff]  }
 0xa8e   : > { %12951 = vmatpush1.bf16.msra.mxu1 %v17587_v38  ;;  %13946 = vmatprep.subr.bf16.mxu0 %v17592_v26  ;;  %v17652_v38 = vld [vmem:[%s22438_s9 + $0x66c] ss:$16 sps:$4 sm:$0xff]   ;;  %v17655_v26 = vld [vmem:[%s22438_s9 + $0x284] ss:$16 sps:$4 sm:$0xff]  }
 0xa8f   : > { %12952 = vmatprep.subr.bf16.mxu1 %v17595_v37  ;;  %v17650_v37 = vld [vmem:[%s22438_s9 + $0x668] ss:$16 sps:$4 sm:$0xff]  }
 0xa91   : > { %13947 = vmatpush1.bf16.msra.mxu0 %v17590_v21  ;;  %v17658_v21 = vld [vmem:[%s22438_s9 + $0x68c] ss:$16 sps:$4 sm:$0xff]  }
 0xa92   : > { %12953 = vmatpush1.bf16.msra.mxu1 %v17593_v35  ;;  %13948 = vmatprep.subr.bf16.mxu0 %v17598_v48  ;;  %v17661_v35 = vld [vmem:[%s22438_s9 + $0x2a4] ss:$16 sps:$4 sm:$0xff]   ;;  %v17656_v48 = vld [vmem:[%s22438_s9 + $0x688] ss:$16 sps:$4 sm:$0xff]  }
 0xa93   : > { %12954 = vmatprep.subr.bf16.mxu1 %v17601_v10  ;;  %v17664_v10 = vld [vmem:[%s22438_s9 + $0x6ac] ss:$16 sps:$4 sm:$0xff]  }
 0xa95   : > { %13949 = vmatpush1.bf16.msra.mxu0 %v17596_v45  ;;  %v17662_v45 = vld [vmem:[%s22438_s9 + $0x6a8] ss:$16 sps:$4 sm:$0xff]  }
 0xa96   : > { %12955 = vmatpush1.bf16.msra.mxu1 %v17599_v18  ;;  %13950 = vmatprep.subr.bf16.mxu0 %v17604_v29  ;;  %v17670_v18 = vld [vmem:[%s22438_s9 + $0x6cc] ss:$16 sps:$4 sm:$0xff]   ;;  %v17673_v29 = vld [vmem:[%s22438_s9 + $0x2e4] ss:$16 sps:$4 sm:$0xff]  }
 0xa97   : > { %12956 = vmatprep.subr.bf16.mxu1 %v17607_v16  ;;  %v17668_v16 = vld [vmem:[%s22438_s9 + $0x6c8] ss:$16 sps:$4 sm:$0xff]  }
 0xa99   : > { %13951 = vmatpush1.bf16.msra.mxu0 %v17602_v31  ;;  %v17676_v31 = vld [vmem:[%s22438_s9 + $0x6ec] ss:$16 sps:$4 sm:$0xff]  }
 0xa9a   : > { %12957 = vmatpush1.bf16.msra.mxu1 %v17605_v32  ;;  %13952 = vmatprep.subr.bf16.mxu0 %v17610_v28  ;;  %v17679_v32 = vld [vmem:[%s22438_s9 + $0x304] ss:$16 sps:$4 sm:$0xff]   ;;  %v17674_v28 = vld [vmem:[%s22438_s9 + $0x6e8] ss:$16 sps:$4 sm:$0xff]  }
 0xa9b   : > { %12958 = vmatprep.subr.bf16.mxu1 %v17613_v62  ;;  %v17682_v62 = vld [vmem:[%s22438_s9 + $0x70c] ss:$16 sps:$4 sm:$0xff]  }
 0xa9d   : > { %13953 = vmatpush1.bf16.msra.mxu0 %v17608_v51  ;;  %v17680_v51 = vld [vmem:[%s22438_s9 + $0x708] ss:$16 sps:$4 sm:$0xff]  }
 0xa9e   : > { %12959 = vmatpush1.bf16.msra.mxu1 %v17611_v59  ;;  %13954 = vmatprep.subr.bf16.mxu0 %v17616_v6  ;;  %v17683_v59 = vld [vmem:[%s22438_s9 + $0x320] ss:$16 sps:$4 sm:$0xff]   ;;  %v17688_v6 = vld [vmem:[%s22438_s9 + $0x72c] ss:$16 sps:$4 sm:$0xff]  }
 0xa9f   : > { %12960 = vmatprep.subr.bf16.mxu1 %v17619_v39  ;;  %v17686_v39 = vld [vmem:[%s22438_s9 + $0x728] ss:$16 sps:$4 sm:$0xff]  }
 0xaa1   : > { %13955 = vmatpush1.bf16.msra.mxu0 %v17614_v4  ;;  %v17694_v4 = vld [vmem:[%s22438_s9 + $0x74c] ss:$16 sps:$4 sm:$0xff]  }
 0xaa2   : > { %12961 = vmatpush1.bf16.msra.mxu1 %v17617_v1  ;;  %13956 = vmatprep.subr.bf16.mxu0 %v17622_v43  ;;  %v17697_v1 = vld [vmem:[%s22438_s9 + $0x364] ss:$16 sps:$4 sm:$0xff]   ;;  %v12490_v43 = vsel %vm10803_vm14, %v21748_v33, -inf }
 0xaa3   : > { %12962 = vmatprep.subr.bf16.mxu1 %v17625_v22  ;;  %v17695_v22 = vld [vmem:[%s22438_s9 + $0x360] ss:$16 sps:$4 sm:$0xff]   ;;  %v17703_v33 = vld [vmem:[%s22438_s9 + $0x384] ss:$16 sps:$4 sm:$0xff]  }
 0xaa5   : > { %13957 = vmatpush1.bf16.msra.mxu0 %v17620_v42  ;;  %v12491_v42 = vrot.slane %v12490_v43, 4 }
 0xaa6   : > { %12963 = vmatpush1.bf16.msra.mxu1 %v17623_v36  ;;  %13958 = vmatprep.subr.bf16.mxu0 %v17628_v63  ;;  %v17698_v36 = vld [vmem:[%s22438_s9 + $0x768] ss:$16 sps:$4 sm:$0xff]   ;;  %v17701_v63 = vld [vmem:[%s22438_s9 + $0x380] ss:$16 sps:$4 sm:$0xff]  }
 0xaa7   : > { %13389 = vmatprep.subr.bf16.mxu1 %v17631_v40  ;;  %v12492_v40 = vmax.f32 %v12490_v43, %v12491_v42  ;;  %v17770_v43 = vld [vmem:[%s22438_s9 + $0x5e0] ss:$16 sps:$4 sm:$0xff]  }
 0xaa8   : > { %v17776_v42 = vld [vmem:[%s22438_s9 + $0x620] ss:$16 sps:$4 sm:$0xff]  }
 0xaa9   : > { %13959 = vmatpush1.bf16.msra.mxu0 %v17626_v3  ;;  %12965 = vmatmul.mubr.bf16.vlgmr.msra.gmra.mrb[44].mxu1 %v21634_v25  ;;  %v17643_v25 = vld [vmem:[%s22438_s9 + $0x244] ss:$16 sps:$4 sm:$0xff]   ;;  %v17704_v3 = vld [vmem:[%s22438_s9 + $0x788] ss:$16 sps:$4 sm:$0xff]  }
 0xaaa   : > { %13390 = vmatpush1.bf16.msra.mxu1 %v17629_v52  ;;  %13421 = vmatprep.mubr.bf16.mxu1 %v21639_v41  ;;  %v17638_v41 = vld [vmem:[%s22438_s9 + $0x628] ss:$16 sps:$4 sm:$0xff]   ;;  %v17707_v52 = vld [vmem:[%s22438_s9 + $0x3a0] ss:$16 sps:$4 sm:$0xff]  }
 0xaab   : > { %14426 = vmatprep.subr.bf16.mxu0 %v17634_v57  ;;  %13391 = vmatprep.subr.bf16.mxu1 %v17637_v50  ;;  %v12493_v57 = vrot.slane %v12492_v40, 2  ;;  %v17710_v50 = vld [vmem:[%s22438_s9 + $0x7a8] ss:$16 sps:$4 sm:$0xff]  }
 0xaac   : > { %13961 = vmatmul.mubr.bf16.vlgmr.msra.gmra.mrb[136].mxu0 %v21856_v55 }
 0xaad   : > { %14427 = vmatpush1.bf16.msra.mxu0 %v17632_v49  ;;  %14458 = vmatprep.mubr.bf16.mxu0 %v21864_v19  ;;  %v17713_v49 = vld [vmem:[%s22438_s9 + $0x3c0] ss:$16 sps:$4 sm:$0xff]  }
 0xaae   : > { %13392 = vmatpush1.bf16.msra.mxu1 %v17635_v53  ;;  %14428 = vmatprep.subr.bf16.mxu0 %v17640_v7  ;;  %v17718_v53 = vld [vmem:[%s22438_s9 + $0x7cc] ss:$16 sps:$4 sm:$0xff]   ;;  %v12494_v7 = vmax.f32 %v12492_v40, %v12493_v57  ;;  %v17790_v40 = vld [vmem:[%s22438_s9 + $0x6a4] ss:$16 sps:$4 sm:$0xff]  }
 0xaaf   : > { %13393 = vmatprep.subr.bf16.mxu1 %v17643_v25  ;;  %v17721_v25 = vld [vmem:[%s22438_s9 + $0x3e4] ss:$16 sps:$4 sm:$0xff]  }
 0xab1   : > { %14429 = vmatpush1.bf16.msra.mxu0 %v17638_v41  ;;  %v17716_v41 = vld [vmem:[%s22438_s9 + $0x7c8] ss:$16 sps:$4 sm:$0xff]  }
 0xab2   : > { %13394 = vmatpush1.bf16.msra.mxu1 %v17641_v23  ;;  %14430 = vmatprep.subr.bf16.mxu0 %v17646_v61  ;;  %v17719_v23 = vld [vmem:[%s22438_s9 + $0x3e0] ss:$16 sps:$4 sm:$0xff]   ;;  %v17724_v61 = vld [vmem:[%s22438_s9 + $0x7ec] ss:$16 sps:$4 sm:$0xff]  }
 0xab3   : > { %13395 = vmatprep.subr.bf16.mxu1 %v17649_v44  ;;  %v12495_v44 = vrot.slane %v12494_v7, 1 }
 0xab5   : > { %14431 = vmatpush1.bf16.msra.mxu0 %v17644_v34  ;;  %v17727_v34 = vld [vmem:[%s22438_s9 + $0x404] ss:$16 sps:$4 sm:$0xff]  }
 0xab6   : > { %13396 = vmatpush1.bf16.msra.mxu1 %v17647_v60  ;;  %14432 = vmatprep.subr.bf16.mxu0 %v17652_v38  ;;  %v17722_v60 = vld [vmem:[%s22438_s9 + $0x7e8] ss:$16 sps:$4 sm:$0xff]   ;;  %v17725_v38 = vld [vmem:[%s22438_s9 + $0x400] ss:$16 sps:$4 sm:$0xff]  }
 0xab7   : > { %13397 = vmatprep.subr.bf16.mxu1 %v17655_v26  ;;  %v12496_v26 = vmax.f32 %v12494_v7, %v12495_v44  ;;  %v17796_v7 = vld [vmem:[%s22438_s9 + $0x6e4] ss:$16 sps:$4 sm:$0xff]   ;;  %v17794_v44 = vld [vmem:[%s22438_s9 + $0x6e0] ss:$16 sps:$4 sm:$0xff]  }
 0xab9   : > { %14433 = vmatpush1.bf16.msra.mxu0 %v17650_v37  ;;  %v17730_v37 = vld [vmem:[%s22438_s9 + $0x424] ss:$16 sps:$4 sm:$0xff]  }
 0xaba   : > { %13398 = vmatpush1.bf16.msra.mxu1 %v17653_v17  ;;  %14434 = vmatprep.subr.bf16.mxu0 %v17658_v21  ;;  %v22052_v17 = vpack.c.bf16 %v12496_v26, %v12496_v26  ;;  %v17728_v21 = vld [vmem:[%s22438_s9 + $0x420] ss:$16 sps:$4 sm:$0xff]  }
 0xabb   : > { %13399 = vmatprep.subr.bf16.mxu1 %v17661_v35  ;;  %v17733_v35 = vld [vmem:[%s22438_s9 + $0x444] ss:$16 sps:$4 sm:$0xff]   ;;  %v17800_v26 = vld [vmem:[%s22438_s9 + $0x720] ss:$16 sps:$4 sm:$0xff]  }
 0xabd   : > { %14435 = vmatpush1.bf16.msra.mxu0 %v17656_v48  ;;  %v17734_v48 = vld [vmem:[%s22438_s9 + $0x460] ss:$16 sps:$4 sm:$0xff]  }
 0xabe   : > { %13400 = vmatpush1.bf16.msra.mxu1 %v17659_v46  ;;  %14436 = vmatprep.subr.bf16.mxu0 %v17664_v10  ;;  %v17739_v46 = vld [vmem:[%s22438_s9 + $0x484] ss:$16 sps:$4 sm:$0xff]   ;;  %v17737_v10 = vld [vmem:[%s22438_s9 + $0x480] ss:$16 sps:$4 sm:$0xff]  }
 0xabf   : > { %13401 = vmatprep.subr.bf16.mxu1 %v17667_v0  ;;  %v17742_v0 = vld [vmem:[%s22438_s9 + $0x4a4] ss:$16 sps:$4 sm:$0xff]  }
 0xac1   : > { %14437 = vmatpush1.bf16.msra.mxu0 %v17662_v45  ;;  %v17740_v45 = vld [vmem:[%s22438_s9 + $0x4a0] ss:$16 sps:$4 sm:$0xff]  }
 0xac2   : > { %13402 = vmatpush1.bf16.msra.mxu1 %v17665_v58  ;;  %14438 = vmatprep.subr.bf16.mxu0 %v17670_v18  ;;  %v17745_v58 = vld [vmem:[%s22438_s9 + $0x4c4] ss:$16 sps:$4 sm:$0xff]   ;;  %v17743_v18 = vld [vmem:[%s22438_s9 + $0x4c0] ss:$16 sps:$4 sm:$0xff]  }
 0xac3   : > { %13403 = vmatprep.subr.bf16.mxu1 %v17673_v29  ;;  %v17748_v29 = vld [vmem:[%s22438_s9 + $0x4e4] ss:$16 sps:$4 sm:$0xff]  }
 0xac5   : > { %14439 = vmatpush1.bf16.msra.mxu0 %v17668_v16  ;;  %v17746_v16 = vld [vmem:[%s22438_s9 + $0x4e0] ss:$16 sps:$4 sm:$0xff]  }
 0xac6   : > { %13404 = vmatpush1.bf16.msra.mxu1 %v17671_v54  ;;  %14440 = vmatprep.subr.bf16.mxu0 %v17676_v31  ;;  %v17751_v54 = vld [vmem:[%s22438_s9 + $0x504] ss:$16 sps:$4 sm:$0xff]   ;;  %v17749_v31 = vld [vmem:[%s22438_s9 + $0x500] ss:$16 sps:$4 sm:$0xff]  }
 0xac7   : > { %13405 = vmatprep.subr.bf16.mxu1 %v17679_v32  ;;  %v17754_v32 = vld [vmem:[%s22438_s9 + $0x524] ss:$16 sps:$4 sm:$0xff]  }
 0xac9   : > { %14441 = vmatpush1.bf16.msra.mxu0 %v17674_v28  ;;  %v17752_v28 = vld [vmem:[%s22438_s9 + $0x520] ss:$16 sps:$4 sm:$0xff]  }
 0xaca   : > { %13406 = vmatpush1.bf16.msra.mxu1 %v17677_v47  ;;  %14442 = vmatprep.subr.bf16.mxu0 %v17682_v62  ;;  %v17757_v47 = vld [vmem:[%s22438_s9 + $0x544] ss:$16 sps:$4 sm:$0xff]   ;;  %v17755_v62 = vld [vmem:[%s22438_s9 + $0x540] ss:$16 sps:$4 sm:$0xff]  }
 0xacb   : > { %13407 = vmatprep.subr.bf16.mxu1 %v17685_v30  ;;  %v17760_v30 = vld [vmem:[%s22438_s9 + $0x564] ss:$16 sps:$4 sm:$0xff]  }
 0xacd   : > { %14443 = vmatpush1.bf16.msra.mxu0 %v17680_v51  ;;  %v17758_v51 = vld [vmem:[%s22438_s9 + $0x560] ss:$16 sps:$4 sm:$0xff]  }
 0xace   : > { %13408 = vmatpush1.bf16.msra.mxu1 %v17683_v59  ;;  %14444 = vmatprep.subr.bf16.mxu0 %v17688_v6  ;;  %v17763_v59 = vld [vmem:[%s22438_s9 + $0x584] ss:$16 sps:$4 sm:$0xff]   ;;  %v17761_v6 = vld [vmem:[%s22438_s9 + $0x580] ss:$16 sps:$4 sm:$0xff]  }
 0xacf   : > { %13409 = vmatprep.subr.bf16.mxu1 %v17691_v5  ;;  %v17766_v5 = vld [vmem:[%s22438_s9 + $0x5a4] ss:$16 sps:$4 sm:$0xff]  }
 0xad1   : > { %14445 = vmatpush1.bf16.msra.mxu0 %v17686_v39  ;;  %v17764_v39 = vld [vmem:[%s22438_s9 + $0x5a0] ss:$16 sps:$4 sm:$0xff]  }
 0xad2   : > { %13410 = vmatpush1.bf16.msra.mxu1 %v17689_v2  ;;  %14446 = vmatprep.subr.bf16.mxu0 %v17694_v4  ;;  %v17769_v2 = vld [vmem:[%s22438_s9 + $0x5c4] ss:$16 sps:$4 sm:$0xff]   ;;  %v17767_v4 = vld [vmem:[%s22438_s9 + $0x5c0] ss:$16 sps:$4 sm:$0xff]  }
 0xad3   : > { %13411 = vmatprep.subr.bf16.mxu1 %v17697_v1  ;;  %v17772_v1 = vld [vmem:[%s22438_s9 + $0x5e4] ss:$16 sps:$4 sm:$0xff]  }
 0xad5   : > { %14447 = vmatpush1.bf16.msra.mxu0 %v17692_v14  ;;  %v17775_v14 = vld [vmem:[%s22438_s9 + $0x604] ss:$16 sps:$4 sm:$0xff]  }
 0xad6   : > { %13412 = vmatpush1.bf16.msra.mxu1 %v17695_v22  ;;  %14448 = vmatprep.subr.bf16.mxu0 %v17700_v8  ;;  %v17773_v22 = vld [vmem:[%s22438_s9 + $0x600] ss:$16 sps:$4 sm:$0xff]   ;;  %v17778_v8 = vld [vmem:[%s22438_s9 + $0x624] ss:$16 sps:$4 sm:$0xff]  }
 0xad7   : > { %13413 = vmatprep.subr.bf16.mxu1 %v17703_v33  ;;  %v17781_v33 = vld [vmem:[%s22438_s9 + $0x644] ss:$16 sps:$4 sm:$0xff]  }
 0xad9   : > { %14449 = vmatpush1.bf16.msra.mxu0 %v17698_v36  ;;  %v17779_v36 = vld [vmem:[%s22438_s9 + $0x640] ss:$16 sps:$4 sm:$0xff]  }
 0xada   : > { %13414 = vmatpush1.bf16.msra.mxu1 %v17701_v63  ;;  %14450 = vmatprep.subr.bf16.mxu0 %v17706_v20  ;;  %v17787_v63 = vld [vmem:[%s22438_s9 + $0x684] ss:$16 sps:$4 sm:$0xff]   ;;  %v17785_v20 = vld [vmem:[%s22438_s9 + $0x680] ss:$16 sps:$4 sm:$0xff]  }
 0xadb   : > { %13415 = vmatprep.subr.bf16.mxu1 %v17709_v13  ;;  %v17788_v13 = vld [vmem:[%s22438_s9 + $0x6a0] ss:$16 sps:$4 sm:$0xff]  }
 0xadd   : > { %14451 = vmatpush1.bf16.msra.mxu0 %v17704_v3  ;;  %v17793_v3 = vld [vmem:[%s22438_s9 + $0x6c4] ss:$16 sps:$4 sm:$0xff]  }
 0xade   : > { %13416 = vmatpush1.bf16.msra.mxu1 %v17707_v52  ;;  %14452 = vmatprep.subr.bf16.mxu0 %v17712_v12 }
 0xadf   : > { %13417 = vmatprep.subr.bf16.mxu1 %v17715_v9 }
 0xae1   : > { %14453 = vmatpush1.bf16.msra.mxu0 %v17710_v50  ;;  %v17791_v50 = vld [vmem:[%s22438_s9 + $0x6c0] ss:$16 sps:$4 sm:$0xff]  }
 0xae2   : > { %13418 = vmatpush1.bf16.msra.mxu1 %v17713_v49  ;;  %14454 = vmatprep.subr.bf16.mxu0 %v17718_v53 }
 0xae3   : > { %13419 = vmatprep.subr.bf16.mxu1 %v17721_v25 }
 0xae5   : > { %14455 = vmatpush1.bf16.msra.mxu0 %v17716_v41 }
 0xae6   : > { %13420 = vmatpush1.bf16.msra.mxu1 %v17719_v23  ;;  %14456 = vmatprep.subr.bf16.mxu0 %v17724_v61 }
 0xae7   : > { %13887 = vmatprep.subr.bf16.mxu1 %v17727_v34  ;;  %v17799_v34 = vld [vmem:[%s22438_s9 + $0x704] ss:$16 sps:$4 sm:$0xff]  }
 0xae9   : > { %14457 = vmatpush1.bf16.msra.mxu0 %v17722_v60  ;;  %13422 = vmatmul.mubr.bf16.vlgmr.msra.gmra.mrb[48].mxu1 %v21645_v11  ;;  %v17731_v11 = vld [vmem:[%s22438_s9 + $0x440] ss:$16 sps:$4 sm:$0xff]  }
 0xaea   : > { %13888 = vmatpush1.bf16.msra.mxu1 %v17725_v38  ;;  %13919 = vmatprep.mubr.bf16.mxu1 %v21654_v56  ;;  %v17736_v56 = vld [vmem:[%s22438_s9 + $0x464] ss:$16 sps:$4 sm:$0xff]   ;;  %v17797_v60 = vld [vmem:[%s22438_s9 + $0x700] ss:$16 sps:$4 sm:$0xff]  }
 0xaeb   : > { %13889 = vmatprep.subr.bf16.mxu1 %v17730_v37  ;;  %v17802_v38 = vld [vmem:[%s22438_s9 + $0x724] ss:$16 sps:$4 sm:$0xff]  }
 0xaec   : > { %14459 = vmatmul.mubr.bf16.vlgmr.msra.gmra.mrb[140].mxu0 %v22052_v17  ;;  %v17805_v37 = vld [vmem:[%s22438_s9 + $0x744] ss:$16 sps:$4 sm:$0xff]  }
 0xaee   : > { %13890 = vmatpush1.bf16.msra.mxu1 %v17728_v21  ;;  %v17803_v21 = vld [vmem:[%s22438_s9 + $0x740] ss:$16 sps:$4 sm:$0xff]  }
 0xaef   : > { %13891 = vmatprep.subr.bf16.mxu1 %v17733_v35  ;;  %v17808_v35 = vld [vmem:[%s22438_s9 + $0x764] ss:$16 sps:$4 sm:$0xff]  }
 0xaf2   : > { %13892 = vmatpush1.bf16.msra.mxu1 %v17731_v11  ;;  %v17806_v11 = vld [vmem:[%s22438_s9 + $0x760] ss:$16 sps:$4 sm:$0xff]  }
 0xaf3   : > { %13893 = vmatprep.subr.bf16.mxu1 %v17736_v56  ;;  %v17811_v56 = vld [vmem:[%s22438_s9 + $0x784] ss:$16 sps:$4 sm:$0xff]  }
 0xaf6   : > { %13894 = vmatpush1.bf16.msra.mxu1 %v17734_v48  ;;  %v17809_v48 = vld [vmem:[%s22438_s9 + $0x780] ss:$16 sps:$4 sm:$0xff]  }
 0xaf7   : > { %13895 = vmatprep.subr.bf16.mxu1 %v17739_v46  ;;  %v17814_v46 = vld [vmem:[%s22438_s9 + $0x7a4] ss:$16 sps:$4 sm:$0xff]  }
 0xafa   : > { %13896 = vmatpush1.bf16.msra.mxu1 %v17737_v10  ;;  %v17812_v10 = vld [vmem:[%s22438_s9 + $0x7a0] ss:$16 sps:$4 sm:$0xff]  }
 0xafb   : > { %13897 = vmatprep.subr.bf16.mxu1 %v17742_v0  ;;  %v17817_v0 = vld [vmem:[%s22438_s9 + $0x7c4] ss:$16 sps:$4 sm:$0xff]  }
 0xafe   : > { %13898 = vmatpush1.bf16.msra.mxu1 %v17740_v45  ;;  %v17815_v45 = vld [vmem:[%s22438_s9 + $0x7c0] ss:$16 sps:$4 sm:$0xff]  }
 0xaff   : > { %13899 = vmatprep.subr.bf16.mxu1 %v17745_v58  ;;  %v17820_v58 = vld [vmem:[%s22438_s9 + $0x7e4] ss:$16 sps:$4 sm:$0xff]  }
 0xb02   : > { %13900 = vmatpush1.bf16.msra.mxu1 %v17743_v18  ;;  %v17818_v18 = vld [vmem:[%s22438_s9 + $0x7e0] ss:$16 sps:$4 sm:$0xff]  }
 0xb03   : > { %13901 = vmatprep.subr.bf16.mxu1 %v17748_v29  ;;  %v17928_v29 = vmov 1966171168  }
 0xb06   : > { %13902 = vmatpush1.bf16.msra.mxu1 %v17746_v16  ;;  %v12980_v16 = vunpack.c.l.s4 %v17928_v29  ;;  %v17847_v29 = vld [vmem:[%s22440_s11 + $0x30] sm:$0xff]  }
 0xb07   : > { %13903 = vmatprep.subr.bf16.mxu1 %v17751_v54 }
 0xb08   : > { %v12981_v54 = vunpack.c.0.s8 %v12980_v16  ;;  %v17848_v16 = vld [vmem:[%s22440_s11 + $0xb0] sm:$0xff]  }
 0xb0a   : > { %13904 = vmatpush1.bf16.msra.mxu1 %v17749_v31  ;;  %v22248_v31 = vsub.s32 %v12981_v54, %v18317_v24  ;;  %v17849_v54 = vld [vmem:[%s22440_s11 + $0x78] sm:$0xff]  }
 0xb0b   : > { %13905 = vmatprep.subr.bf16.mxu1 %v17754_v32 }
 0xb0e   : > { %13906 = vmatpush1.bf16.msra.mxu1 %v17752_v28 }
 0xb0f   : > { %13907 = vmatprep.subr.bf16.mxu1 %v17757_v47 }
 0xb12   : > { %13908 = vmatpush1.bf16.msra.mxu1 %v17755_v62 }
 0xb13   : > { %13909 = vmatprep.subr.bf16.mxu1 %v17760_v30 }
 0xb16   : > { %13910 = vmatpush1.bf16.msra.mxu1 %v17758_v51 }
 0xb17   : > { %13911 = vmatprep.subr.bf16.mxu1 %v17763_v59 }
 0xb1a   : > { %13912 = vmatpush1.bf16.msra.mxu1 %v17761_v6 }
 0xb1b   : > { %13913 = vmatprep.subr.bf16.mxu1 %v17766_v5 }
 0xb1e   : > { %13914 = vmatpush1.bf16.msra.mxu1 %v17764_v39 }
 0xb1f   : > { %13915 = vmatprep.subr.bf16.mxu1 %v17769_v2 }
 0xb22   : > { %13916 = vmatpush1.bf16.msra.mxu1 %v17767_v4 }
 0xb23   : > { %13917 = vmatprep.subr.bf16.mxu1 %v17772_v1  ;;  %v17821_v1 = vld [vmem:[%s22440_s11 + $0x40] sm:$0xff]  }
 0xb26   : > { %13918 = vmatpush1.bf16.msra.mxu1 %v17770_v43  ;;  %v17822_v43 = vld [vmem:[%s22440_s11 + $0xc0] sm:$0xff]  }
 0xb27   : > { %14385 = vmatprep.subr.bf16.mxu1 %v17775_v14  ;;  %v17823_v14 = vld [vmem:[%s22440_s11] sm:$0xff]   ;;  %16061 = vmatprep.subr.bf16.mxu0 %v17822_v43 }
 0xb29   : > { %13920 = vmatmul.mubr.bf16.vlgmr.msra.gmra.mrb[52].mxu1 %v21856_v55  ;;  %v17784_v55 = vld [vmem:[%s22438_s9 + $0x664] ss:$16 sps:$4 sm:$0xff]  }
 0xb2a   : > { %14386 = vmatpush1.bf16.msra.mxu1 %v17773_v22  ;;  %14417 = vmatprep.mubr.bf16.mxu1 %v21864_v19  ;;  %v17782_v19 = vld [vmem:[%s22438_s9 + $0x660] ss:$16 sps:$4 sm:$0xff]  }
 0xb2b   : > { %14387 = vmatprep.subr.bf16.mxu1 %v17778_v8  ;;  %v17824_v22 = vld [vmem:[%s22440_s11 + $0x80] sm:$0xff]   ;;  %v17825_v8 = vld [vmem:[%s22440_s11 + $0x48] sm:$0xff]  }
 0xb2c   : > { %16062 = vmatpush3.bf16.msra.mxu0 %v17824_v22 }
 0xb2e   : > { %14388 = vmatpush1.bf16.msra.mxu1 %v17776_v42  ;;  %v17826_v42 = vld [vmem:[%s22440_s11 + $0xc8] sm:$0xff]  }
 0xb2f   : > { %14389 = vmatprep.subr.bf16.mxu1 %v17781_v33  ;;  %v17827_v33 = vld [vmem:[%s22440_s11 + $0x8] sm:$0xff]   ;;  %16063 = vmatprep.subr.bf16.mxu0 %v17826_v42 }
 0xb32   : > { %14390 = vmatpush1.bf16.msra.mxu1 %v17779_v36  ;;  %v17828_v36 = vld [vmem:[%s22440_s11 + $0x88] sm:$0xff]  }
 0xb33   : > { %14391 = vmatprep.subr.bf16.mxu1 %v17784_v55  ;;  %v17829_v55 = vld [vmem:[%s22440_s11 + $0x50] sm:$0xff]   ;;  %16064 = vmatpush3.bf16.msra.mxu0 %v17828_v36 }
 0xb36   : > { %14392 = vmatpush1.bf16.msra.mxu1 %v17782_v19  ;;  %v17830_v19 = vld [vmem:[%s22440_s11 + $0xd0] sm:$0xff]  }
 0xb37   : > { %14393 = vmatprep.subr.bf16.mxu1 %v17787_v63  ;;  %v17831_v63 = vld [vmem:[%s22440_s11 + $0x10] sm:$0xff]   ;;  %16065 = vmatprep.subr.bf16.mxu0 %v17830_v19 }
 0xb3a   : > { %14394 = vmatpush1.bf16.msra.mxu1 %v17785_v20  ;;  %v17832_v20 = vld [vmem:[%s22440_s11 + $0x90] sm:$0xff]  }
 0xb3b   : > { %14395 = vmatprep.subr.bf16.mxu1 %v17790_v40  ;;  %v17833_v40 = vld [vmem:[%s22440_s11 + $0x58] sm:$0xff]   ;;  %16066 = vmatpush3.bf16.msra.mxu0 %v17832_v20 }
 0xb3c   : > { %v12925_v52 = vpop.f32.mrb[40].mxu1 }
 0xb3d   : > { %v12927_v12 = vpop.f32.mrb[41].mxu1 }
 0xb3e   : > { %v12977_v57 = vcombine.low %v12925_v52, %v12927_v12  ;;  %14396 = vmatpush1.bf16.msra.mxu1 %v17788_v13  ;;  %v12929_v9 = vpop.f32.mrb[42].mxu1  ;;  %v17834_v13 = vld [vmem:[%s22440_s11 + $0xd8] sm:$0xff]  }
 0xb3f   : > { %v22186_v49 = vpop.f32.mrb[132].mxu0  ;;  %v12930_v53 = vpop.f32.mrb[43].mxu1  ;;  %14397 = vmatprep.subr.bf16.mxu1 %v17793_v3  ;;  %16067 = vmatprep.subr.bf16.mxu0 %v17834_v13  ;;  %v17835_v52 = vld [vmem:[%s22440_s11 + $0x18] sm:$0xff]  }
 0xb40   : > { %v22191_v25 = vpop.f32.mrb[133].mxu0  ;;  %v12985_v59 = vrot.slane %v12977_v57, %v22248_v31  ;;  %v17836_v12 = vld [vmem:[%s22440_s11 + $0x98] sm:$0xff]  }
 0xb41   : > { %v13476_v41 = vcombine.low %v22186_v49, %v22191_v25  ;;  %v13468_v23 = vpop.f32.mrb[134].mxu0  ;;  %16068 = vmatpush3.bf16.msra.mxu0 %v17836_v12  ;;  %v17837_v49 = vld [vmem:[%s22440_s11 + $0x60] sm:$0xff]  }
 0xb42   : > { %v13469_v61 = vpop.f32.mrb[135].mxu0  ;;  %14398 = vmatpush1.bf16.msra.mxu1 %v17791_v50  ;;  %v17838_v25 = vld [vmem:[%s22440_s11 + $0xe0] sm:$0xff]  }
 0xb43   : > { %14399 = vmatprep.subr.bf16.mxu1 %v17796_v7  ;;  %v13490_v23 = vrot.slane %v13476_v41, %v22248_v31  ;;  %v17839_v41 = vld [vmem:[%s22440_s11 + $0x20] sm:$0xff]   ;;  %16069 = vmatprep.subr.bf16.mxu0 %v17838_v25 }
 0xb46   : > { %14400 = vmatpush1.bf16.msra.mxu1 %v17794_v44 }
 0xb47   : > { %14401 = vmatprep.subr.bf16.mxu1 %v17799_v34 }
 0xb4a   : > { %14402 = vmatpush1.bf16.msra.mxu1 %v17797_v60  ;;  %v12504_v60 = vld [vmem:[%s22439_s10] sm:$0xf] }
 0xb4b   : > { %14403 = vmatprep.subr.bf16.mxu1 %v17802_v38 }
 0xb4e   : > { %14404 = vmatpush1.bf16.msra.mxu1 %v17800_v26 }
 0xb4f   : > { %14405 = vmatprep.subr.bf16.mxu1 %v17805_v37 }
 0xb52   : > { %14406 = vmatpush1.bf16.msra.mxu1 %v17803_v21 }
 0xb53   : > { %14407 = vmatprep.subr.bf16.mxu1 %v17808_v35 }
 0xb56   : > { %14408 = vmatpush1.bf16.msra.mxu1 %v17806_v11 }
 0xb57   : > { %14409 = vmatprep.subr.bf16.mxu1 %v17811_v56 }
 0xb5a   : > { %14410 = vmatpush1.bf16.msra.mxu1 %v17809_v48  ;;  %v17840_v48 = vld [vmem:[%s22440_s11 + $0xa0] sm:$0xff]  }
 0xb5b   : > { %14411 = vmatprep.subr.bf16.mxu1 %v17814_v46  ;;  %v17841_v46 = vld [vmem:[%s22440_s11 + $0x68] sm:$0xff]   ;;  %16070 = vmatpush3.bf16.msra.mxu0 %v17840_v48 }
 0xb5e   : > { %14412 = vmatpush1.bf16.msra.mxu1 %v17812_v10  ;;  %v17842_v10 = vld [vmem:[%s22440_s11 + $0xe8] sm:$0xff]  }
 0xb5f   : > { %14413 = vmatprep.subr.bf16.mxu1 %v17817_v0  ;;  %v17843_v0 = vld [vmem:[%s22440_s11 + $0x28] sm:$0xff]   ;;  %16071 = vmatprep.subr.bf16.mxu0 %v17842_v10 }
 0xb62   : > { %14414 = vmatpush1.bf16.msra.mxu1 %v17815_v45  ;;  %v17844_v45 = vld [vmem:[%s22440_s11 + $0xa8] sm:$0xff]  }
 0xb63   : > { %14415 = vmatprep.subr.bf16.mxu1 %v17820_v58  ;;  %v17845_v58 = vld [vmem:[%s22440_s11 + $0x70] sm:$0xff]   ;;  %16072 = vmatpush3.bf16.msra.mxu0 %v17844_v45 }
 0xb66   : > { %14416 = vmatpush1.bf16.msra.mxu1 %v17818_v18  ;;  %v17846_v18 = vld [vmem:[%s22440_s11 + $0xf0] sm:$0xff]  }
 0xb67   : > { %16039 = vmatprep.subr.bf16.mxu1 %v17821_v1  ;;  %16073 = vmatprep.subr.bf16.mxu0 %v17846_v18 }
 0xb68   : > { %16074 = vmatpush3.bf16.msra.mxu0 %v17848_v16 }
 0xb69   : > { %14418 = vmatmul.mubr.bf16.vlgmr.msra.gmra.mrb[56].mxu1 %v22052_v17 }
 0xb6a   : > { %16040 = vmatpush3.bf16.msra.mxu1 %v17823_v14 }
 0xb6b   : > { %16041 = vmatprep.subr.bf16.mxu1 %v17825_v8 }
 0xb6e   : > { %16042 = vmatpush3.bf16.msra.mxu1 %v17827_v33 }
 0xb6f   : > { %16043 = vmatprep.subr.bf16.mxu1 %v17829_v55 }
 0xb72   : > { %16044 = vmatpush3.bf16.msra.mxu1 %v17831_v63 }
 0xb73   : > { %16045 = vmatprep.subr.bf16.mxu1 %v17833_v40 }
 0xb76   : > { %16046 = vmatpush3.bf16.msra.mxu1 %v17835_v52 }
 0xb77   : > { %16047 = vmatprep.subr.bf16.mxu1 %v17837_v49 }
 0xb7a   : > { %16048 = vmatpush3.bf16.msra.mxu1 %v17839_v41 }
 0xb7b   : > { %16049 = vmatprep.subr.bf16.mxu1 %v17841_v46 }
 0xb7c   : > { %v12966_v32 = vpop.f32.mrb[44].mxu1 }
 0xb7d   : > { %v12968_v28 = vpop.f32.mrb[45].mxu1 }
 0xb7e   : > { %v12978_v47 = vcombine.low %v12966_v32, %v12968_v28  ;;  %v12970_v62 = vpop.f32.mrb[46].mxu1  ;;  %16050 = vmatpush3.bf16.msra.mxu1 %v17843_v0  ;;  %v17850_v32 = vld [vmem:[%s22440_s11 + $0xf8] sm:$0xff]  }
 0xb7f   : > { %v22250_v30 = vpop.f32.mrb[136].mxu0  ;;  %v12971_v51 = vpop.f32.mrb[47].mxu1  ;;  %16051 = vmatprep.subr.bf16.mxu1 %v17845_v58  ;;  %v17851_v28 = vld [vmem:[%s22440_s11 + $0x38] sm:$0xff]   ;;  %16075 = vmatprep.subr.bf16.mxu0 %v17850_v32 }
 0xb80   : > { %v12992_v6 = vrot.slane %v12978_v47, %v22248_v31  ;;  %v22254_v5 = vpop.f32.mrb[137].mxu0  ;;  %v17852_v47 = vld [vmem:[%s22440_s11 + $0xb8] sm:$0xff]  }
 0xb81   : > { %v13974_v17 = vcombine.low %v22250_v30, %v22254_v5  ;;  %v13966_v39 = vpop.f32.mrb[138].mxu0  ;;  %16076 = vmatpush3.bf16.msra.mxu0 %v17852_v47  ;;  %v14513_v5 = vsub.s32 3, %v18317_v24 }
 0xb82   : > { %v12993_v2 = vcombine.low %v12985_v59, %v12992_v6  ;;  %v13967_v4 = vpop.f32.mrb[139].mxu0  ;;  %16052 = vmatpush3.bf16.msra.mxu1 %v17847_v29 }
 0xb83   : > { %16053 = vmatprep.subr.bf16.mxu1 %v17849_v54 }
 0xb84   : > { %v13000_v61 = vrot.slane %v12993_v2, %v22248_v31  ;;  %v13988_v2 = vrot.slane %v13974_v17, %v22248_v31  ;;  %v14509_v17 = vsub.s32 2, %v18317_v24 }
 0xb86   : > { %v13002_v35 = vadd.f32 %v13000_v61, %v12504_v60  ;;  %16054 = vmatpush3.bf16.msra.mxu1 %v17851_v28 }
 0xbbc   : > { %v13423_v3 = vpop.f32.mrb[48].mxu1 }
 0xbbd   : > { %v13425_v57 = vpop.f32.mrb[49].mxu1 }
 0xbbe   : > { %v13475_v9 = vcombine.low %v13423_v3, %v13425_v57  ;;  %v13427_v50 = vpop.f32.mrb[50].mxu1 }
 0xbbf   : > { %v14460_v53 = vpop.f32.mrb[140].mxu0  ;;  %v13428_v7 = vpop.f32.mrb[51].mxu1 }
 0xbc0   : > { %v13483_v44 = vrot.slane %v13475_v9, %v22248_v31  ;;  %v14462_v34 = vpop.f32.mrb[141].mxu0 }
 0xbc1   : > { %v14472_v38 = vcombine.low %v14460_v53, %v14462_v34  ;;  %v14464_v26 = vpop.f32.mrb[142].mxu0 }
 0xbc2   : > { %v13491_v37 = vcombine.low %v13483_v44, %v13490_v23  ;;  %v14465_v21 = vpop.f32.mrb[143].mxu0 }
 0xbc3   : > { %v14486_v55 = vrot.slane %v14472_v38, %v22248_v31 }
 0xbc4   : > { %v13498_v11 = vrot.slane %v13491_v37, %v22248_v31 }
 0xbc6   : > { %v13500_v56 = vadd.f32 %v13498_v11, %v13002_v35 }
 0xbfc   : > { %v13921_v62 = vpop.f32.mrb[52].mxu1 }
 0xbfd   : > { %v13923_v51 = vpop.f32.mrb[53].mxu1 }
 0xbfe   : > { %v13973_v59 = vcombine.low %v13921_v62, %v13923_v51  ;;  %v13925_v6 = vpop.f32.mrb[54].mxu1 }
 0xbff   : > { %v13926_v39 = vpop.f32.mrb[55].mxu1 }
 0xc00   : > { %v13981_v4 = vrot.slane %v13973_v59, %v22248_v31 }
 0xc02   : > { %v13989_v1 = vcombine.low %v13981_v4, %v13988_v2 }
 0xc04   : > { %v13996_v43 = vrot.slane %v13989_v1, %v22248_v31 }
 0xc06   : > { %v13998_v14 = vadd.f32 %v13996_v43, %v13500_v56 }
 0xc3c   : > { %v14419_v22 = vpop.f32.mrb[56].mxu1 }
 0xc3d   : > { %v14421_v8 = vpop.f32.mrb[57].mxu1 }
 0xc3e   : > { %v14471_v42 = vcombine.low %v14419_v22, %v14421_v8  ;;  %v14423_v33 = vpop.f32.mrb[58].mxu1 }
 0xc3f   : > { %v14424_v36 = vpop.f32.mrb[59].mxu1 }
 0xc40   : > { %v14479_v19 = vrot.slane %v14471_v42, %v22248_v31 }
 0xc42   : > { %v14487_v63 = vcombine.low %v14479_v19, %v14486_v55 }
 0xc44   : > { %v14494_v20 = vrot.slane %v14487_v63, %v22248_v31 }
 0xc46   : > { %v14496_v30 = vadd.f32 %v14494_v20, %v13998_v14 }
 0xc48   : > { %v14497_v40 = vmax.f32 %v14496_v30, 0.0 }
 0xc4a   : > { %v14506_v13 = vrot.slane %v14497_v40, %v12364_v15  ;;  %v14514_v3 = vrot.slane %v14497_v40, %v14513_v5  ;;  %v14502_v52 = vrot.slane %v14497_v40, %v12360_v27  ;;  %v14510_v12 = vrot.slane %v14497_v40, %v14509_v17  ;;  %v14587_v15 = vld [vmem:[%s22441_s12] sm:$0x1] }
 0xc4c   : > { %v14520_v57 = vpack.c.bf16 %v14506_v13, %v14506_v13  ;;  %v14522_v9 = vpack.c.bf16 %v14514_v3, %v14514_v3  ;;  %v14519_v50 = vpack.c.bf16 %v14502_v52, %v14502_v52  ;;  %v14521_v53 = vpack.c.bf16 %v14510_v12, %v14510_v12 }
 0xc4e   : > { %14812 = vmatprep.mubr.bf16.mxu1 %v14520_v57  ;;  %14852 = vmatprep.mubr.bf16.mxu0 %v14522_v9 }
 0xc4f   : > { %14813 = vmatmul.mubr.bf16.vlgmr.msra.gmra.mrb[60].mxu1 %v14519_v50  ;;  %14853 = vmatmul.mubr.bf16.vlgmr.msra.gmra.mrb[144].mxu0 %v14521_v53 }
 0xd22   : > { %v16055_v31 = vpop.f32.mrb[60].mxu1  ;;  %v16077_v7 = vpop.f32.mrb[144].mxu0 }
 0xd23   : > { %v16056_v23 = vpop.f32.mrb[61].mxu1  ;;  %v16078_v24 = vpop.f32.mrb[145].mxu0 }
 0xd24   : > { %v16057_v27 = vadd.f32 %v16056_v23, %v16055_v31  ;;  %v16079_v61 = vadd.f32 %v16078_v24, %v16077_v7  ;;  %v16058_v44 = vpop.f32.mrb[62].mxu1  ;;  %v16080_v34 = vpop.f32.mrb[146].mxu0 }
 0xd25   : > { %v16059_v60 = vpop.f32.mrb[63].mxu1  ;;  %v16081_v38 = vpop.f32.mrb[147].mxu0 }
 0xd26   : > { %v14815_v26 = vadd.f32 %v16057_v27, %v14587_v15 }
 0xd28   : > { %v14855_v37 = vadd.f32 %v16079_v61, %v14815_v26 }
 0xd2a   : > { %14861 = vst.msk [vmem:[%s432_s21] sm:$0x1] %vm14860_vm15, %v14855_v37 }
 0xd2b   : > { %17873 = shalt.err (!%p17870_p3)
}
 0xd2c   : > { %s17874_s3 = scalar_lea.hbm %s22387_s2, 16  ;;  %s17878_s21 = scalar_lea.hbm %s22442_s13, 32 }
 0xd2d   : > { %p17875_p4 = scmp.ne.s32.totalorder %s22387_s2, %s17874_s3  ;;  %p17879_p9 = scmp.lt.u32.totalorder %s22387_s2, %s22442_s13 }
 0xd2e   : > { %p17880_p10 = scmp.lt.u32.totalorder %s17878_s21, %s17874_s3  ;;  %p17882_p12 = scmp.lt.u32.totalorder %s17874_s3, %s22387_s2 }
 0xd2f   : > { %p17876_p7 = pnand %p17875_p4, %p18038_p5 }
 0xd30   : > { %p17881_p11 = por %p17880_p10, %p17879_p9 }
 0xd31   : > { %p17877_p8 = pneg %p17876_p7 }
 0xd32   : > { %p17883_p13 = por %p17882_p12, %p17881_p11 }
 0xd34   : > { %p17884_p0 = pnand %p17883_p13, %p17877_p8 }
 0xd36   : > { %17887 = shalt.err (!%p17884_p0)
}
 0xd37   : > { %17039 = dma.vmem_to_hbm [thread:$0]  (%p18038_p5), %s22389_s22, 16, %s22387_s2, %s14863_s0  }
 0xd38 PF: > { %p17045_p1 = scmp.ge.s32.totalorder %s17922_s28, 2  ;;  %s14887_s1 = sand.u32 1, %s17910_s25  }
 0xd39   : > { %s14888_s29 = scalar_lea.sflag [#allocation6], %s14887_s1 }
 0xd3a   : > { %p17042_p2 = pnand %p17045_p1, %p18042_p6 }
 0xd3c   : > { %17905 = dma.done.wait (!%p17042_p2), %s14888_s29, 16  }
 0xd3d   : > { %17907 = vsyncadd (!%p17042_p2), %s14888_s29, 4294967280  ;;  %p23_p3 = scmp.ge.s32.totalorder %s18025_s14, 4   ;;  %s22457_s25 = smov %s17914_s26 }
 0xd3e   : > { %s22458_s26 = smov %s17918_s27  ;;  %s22459_s27 = smov %s18036_s17 }
 0xd3f   : > { %s22460_s28 = smov %s18025_s14  ;;  %25 = sbr.rel (!%p23_p3) target bundleno = 8 (0x8), region = 113 }
 0xd46   :  { %14892 = vsyncpa [#allocation6], 1 }
 0xd47   :  { %14894 = vsyncpa [#allocation6 + $0x1], 1 }

</bundles_post_ra>
